<compile_context>
chip_gen: v6e
topology: v6e:2x2x1
jax: 0.10.0
libtpu: 0.0.40
codegen_flags: <defaults>
</compile_context>

<pallas_src>
import functools

import jax
import jax.numpy as jnp
from jax import lax
from jax.experimental import pallas as pl
from jax.experimental.pallas import tpu as pltpu


# ---------------------------------------------------------------------------
# Static geometry (dictated by the module: 84x84 input, 7*7*64 flatten).
# ---------------------------------------------------------------------------
_WB = 11          # flattened spatial row pitch (11x11 space-to-depth(8) grid)
_ES = 136         # per-batch-element row stride shared by x / a1 / a2 / a3
_XV = 121         # valid s2d(8) rows per element (rest zero padding)
_R1 = 120         # conv1 rows needed per element (valid rows: h', w' < 10)
_R2 = 104         # conv2 rows needed per element (valid rows: h,  w  < 9)
_R3 = 80          # conv3 rows needed per element (valid rows: h,  w  < 7)
_C1 = 128         # conv1 packed output width (4 output parities x 32 ch)
_C2 = 64          # conv2 output channels
_C3 = 64          # conv3 output channels
_FLAT = 49 * _C3  # fc1 input features (7*7*64)
_OUT_PAD = 128    # fc2 output padded to a lane-dense width

# Bounds (per element, local row offsets; valid for every B_TILE >= 1):
#   conv1 reads x  locals <= 108 + 12 = 120  <= 135  (valid s2d rows 0..120)
#   conv2 reads a1 locals <=  96 + 12 = 108  <= 119  (conv1 computes 120)
#   conv3 reads a2 locals <=  72 + 24 =  96  <= 103  (conv2 computes 104)
#   fc1   reads a3 locals <=  72            <=  79   (conv3 computes  80)
# so all reads backing a valid output stay inside the owning element's block.


# ---------------------------------------------------------------------------
# The fused kernel (one grid step == B_TILE batch elements).
# ---------------------------------------------------------------------------
def _qnet_kernel(x_ref, w1_ref, b1_ref, w2_ref, b2_ref, w3_ref, b3_ref,
                 wf1_ref, bf1_ref, wf2_ref, bf2_ref, o_ref,
                 a1_ref, a2_ref, a3_ref, fc_ref):
    f32 = jnp.float32
    bf16 = jnp.bfloat16
    bt = o_ref.shape[0]                                   # B_TILE
    m1, m2, m3 = a1_ref.shape[0], a2_ref.shape[0], a3_ref.shape[0]

    # ---- conv1: 8x8/s4 == 2x2 block conv over the s2d(8) input.  All bt
    # elements are stacked along M (per-element stride _ES), so each tap is
    # one (m1, K) @ (K, 128) GEMM.  The 128 output columns hold the 4 output
    # parity classes x 32 channels, i.e. already the layout conv2 expects.
    acc = None
    for t, (di, dj) in enumerate(((0, 0), (0, 1), (1, 0), (1, 1))):
        s = di * _WB + dj
        lhs = x_ref[s:s + m1, :].astype(bf16)
        part = jnp.dot(lhs, w1_ref[t], preferred_element_type=f32)
        acc = part if acc is None else acc + part
    a1_ref[...] = jnp.maximum(acc + b1_ref[...], 0.0)

    # ---- conv2: 4x4/s2 == 2x2 block conv over the packed a1.
    acc = None
    for t, (di, dj) in enumerate(((0, 0), (0, 1), (1, 0), (1, 1))):
        s = di * _WB + dj
        lhs = a1_ref[s:s + m2, :].astype(bf16)
        part = jnp.dot(lhs, w2_ref[t], preferred_element_type=f32)
        acc = part if acc is None else acc + part
    a2_ref[...] = jnp.maximum(acc + b2_ref[...], 0.0)

    # ---- conv3: 3x3 stride-1 conv.
    acc = None
    for t in range(9):
        ki, kj = divmod(t, 3)
        s = ki * _WB + kj
        lhs = a2_ref[s:s + m3, :].astype(bf16)
        part = jnp.dot(lhs, w3_ref[t], preferred_element_type=f32)
        acc = part if acc is None else acc + part
    a3_ref[...] = jnp.maximum(acc + b3_ref[...], 0.0)

    # ---- fc1: gather the 49 valid conv3 rows of every element into one
    # lane-dense (bt, 3136) LHS via static (1, 64) copies, then a single
    # K=3136 GEMM replaces 49 M=1 dots.  The PyTorch NCHW flatten
    # permutation is folded into wf1.
    for b in range(bt):
        base = b * _ES
        for p in range(49):
            hh, ww = divmod(p, 7)
            r = base + hh * _WB + ww
            fc_ref[b:b + 1, p * _C3:(p + 1) * _C3] = a3_ref[r:r + 1, :]

    h = jnp.dot(fc_ref[...].astype(bf16), wf1_ref[...],
                preferred_element_type=f32)
    h = jnp.maximum(h + bf1_ref[...], 0.0).astype(bf16)

    # ---- fc2: lane-dense (bt, 128) padded output.
    o_ref[...] = jnp.dot(h, wf2_ref[...],
                         preferred_element_type=f32) + bf2_ref[...]


# ---------------------------------------------------------------------------
# One-time weight repacking (PyTorch layouts -> kernel GEMM layouts).
# ---------------------------------------------------------------------------
def prepare_params(params):
    f32, bf16 = jnp.float32, jnp.bfloat16

    # conv1: (32, cin, 8, 8) -> (4 taps, 64*cin, 4*32). Output columns are
    # the four output-parity classes (p, q) packed side by side; taps that
    # fall outside the 8x8 kernel for a given parity are zero-padded.
    w1 = params["w_c1"].astype(f32)
    c1_out, cin = w1.shape[0], w1.shape[1]
    w1_t = jnp.transpose(w1, (2, 3, 1, 0))                 # (kh, kw, cin, cout)
    pq_blocks = []
    for p in (0, 1):
        for q in (0, 1):
            wpq = jnp.pad(w1_t, ((4 * p, 8 - 4 * p), (4 * q, 8 - 4 * q),
                                 (0, 0), (0, 0)))          # (16, 16, cin, cout)
            wpq = wpq.reshape(2, 8, 2, 8, cin, c1_out)
            wpq = wpq.transpose(0, 2, 1, 3, 4, 5)          # (di,dj,rr,cc,ci,co)
            pq_blocks.append(wpq.reshape(2, 2, 64 * cin, c1_out))
    w1p = jnp.stack(pq_blocks, axis=3)                     # (di, dj, K, pq, co)
    w1p = w1p.reshape(2, 2, 64 * cin, 4 * c1_out).reshape(4, 64 * cin,
                                                          4 * c1_out)
    b1p = jnp.tile(params["b_c1"].astype(f32).reshape(1, -1), (1, 4))

    # conv2: (64, 32, 4, 4) -> (4 taps, 4*32, 64); K rows follow a1 packing.
    w2 = params["w_c2"].astype(f32)
    c2_out, c2_in = w2.shape[0], w2.shape[1]
    w2p = jnp.transpose(w2, (2, 3, 1, 0))                  # (ki, kj, cin, cout)
    w2p = w2p.reshape(2, 2, 2, 2, c2_in, c2_out)           # (di, p, dj, q, ...)
    w2p = w2p.transpose(0, 2, 1, 3, 4, 5)                  # (di, dj, p, q, ...)
    w2p = w2p.reshape(4, 4 * c2_in, c2_out)
    b2p = params["b_c2"].astype(f32).reshape(1, -1)

    # conv3: (64, 64, 3, 3) -> (9 taps, 64, 64).
    w3 = params["w_c3"].astype(f32)
    c3_out, c3_in = w3.shape[0], w3.shape[1]
    w3p = jnp.transpose(w3, (2, 3, 1, 0)).reshape(9, c3_in, c3_out)
    b3p = params["b_c3"].astype(f32).reshape(1, -1)

    # fc1: (hidden, 3136) -> (49*64, hidden); PyTorch flatten index is
    # c*49 + h*7 + w, folded so row p*64 + c matches the in-kernel gather.
    wf1 = params["w_f1"].astype(f32)
    hidden = wf1.shape[0]
    wf1p = wf1.reshape(hidden, c3_out, 7, 7).transpose(2, 3, 1, 0)
    wf1p = wf1p.reshape(49 * c3_out, hidden)
    bf1p = params["b_f1"].astype(f32).reshape(1, -1)

    # fc2: (out, hidden) -> (hidden, 128) zero-padded for a lane-dense store.
    wf2 = params["w_f2"].astype(f32)
    out_size = wf2.shape[0]
    assert out_size <= _OUT_PAD
    wf2p = jnp.zeros((hidden, _OUT_PAD), f32).at[:, :out_size].set(wf2.T)
    bf2p = jnp.zeros((1, _OUT_PAD), f32).at[0, :out_size].set(
        params["b_f2"].astype(f32))

    return {
        "w1": w1p.astype(bf16), "b1": b1p,
        "w2": w2p.astype(bf16), "b2": b2p,
        "w3": w3p.astype(bf16), "b3": b3p,
        "wf1": wf1p.astype(bf16), "bf1": bf1p,
        "wf2": wf2p.astype(bf16), "bf2": bf2p,
    }


def _pick_b_tile(n):
    """Batch elements per grid step.  Keeps grid length >= 2 for small
    batches so both v7x TensorCores stay busy; 8 per step for large n."""
    if n <= 1:
        return 1
    if n < 16:
        return (n + 1) // 2
    return 8


# ---------------------------------------------------------------------------
# Forward pass (single fused pallas_call).
# ---------------------------------------------------------------------------
@functools.partial(jax.jit, static_argnames=("output_size",))
def qnetwork_forward(x, prep, *, output_size):
    if x.ndim == 3:
        x = x[None, ...]
    x = x.astype(jnp.float32)
    n, cin, hh, ww = x.shape
    assert hh == 84 and ww == 84, "QNetwork hardcodes a 7*7*64 flatten (84x84)."

    bt = _pick_b_tile(n)
    grid_len = -(-n // bt)
    n_pad = grid_len * bt
    kdim = 64 * cin

    # space-to-depth(8): (N, cin, 84, 84) -> flat (N_pad*136, 64*cin) rows.
    # Each element owns 136 rows: 121 valid s2d rows + zero padding, so every
    # in-kernel halo slice stays inside the owning element's block.
    xt = jnp.transpose(x, (0, 2, 3, 1))                    # NHWC
    xt = jnp.pad(xt, ((0, n_pad - n), (0, 4), (0, 4), (0, 0)))   # 84 -> 88
    xt = xt.reshape(n_pad, 11, 8, 11, 8, cin).transpose(0, 1, 3, 2, 4, 5)
    xt = xt.reshape(n_pad, _XV, kdim)
    xt = jnp.pad(xt, ((0, 0), (0, _ES - _XV), (0, 0)))
    xt = xt.reshape(n_pad * _ES, kdim)

    m1 = (bt - 1) * _ES + _R1
    m2 = (bt - 1) * _ES + _R2
    m3 = (bt - 1) * _ES + _R3
    hidden = prep["wf1"].shape[-1]

    macs = grid_len * (4 * m1 * kdim * _C1 + 4 * m2 * _C1 * _C2
                       + 9 * m3 * _C2 * _C3
                       + bt * (_FLAT * hidden + hidden * _OUT_PAD))
    weight_bytes = sum(int(v.size) * v.dtype.itemsize for v in prep.values())
    cost = pl.CostEstimate(
        flops=int(2 * macs),
        transcendentals=0,
        bytes_accessed=int(xt.size * xt.dtype.itemsize
                           + n_pad * _OUT_PAD * 4 + weight_bytes),
    )

    grid_spec = pltpu.PrefetchScalarGridSpec(
        num_scalar_prefetch=0,
        grid=(grid_len,),
        in_specs=[
            pl.BlockSpec((bt * _ES, kdim), lambda i: (i, 0)),
            pl.BlockSpec(prep["w1"].shape, lambda i: (0, 0, 0)),
            pl.BlockSpec(prep["b1"].shape, lambda i: (0, 0)),
            pl.BlockSpec(prep["w2"].shape, lambda i: (0, 0, 0)),
            pl.BlockSpec(prep["b2"].shape, lambda i: (0, 0)),
            pl.BlockSpec(prep["w3"].shape, lambda i: (0, 0, 0)),
            pl.BlockSpec(prep["b3"].shape, lambda i: (0, 0)),
            pl.BlockSpec(prep["wf1"].shape, lambda i: (0, 0)),
            pl.BlockSpec(prep["bf1"].shape, lambda i: (0, 0)),
            pl.BlockSpec(prep["wf2"].shape, lambda i: (0, 0)),
            pl.BlockSpec(prep["bf2"].shape, lambda i: (0, 0)),
        ],
        out_specs=pl.BlockSpec((pl.Squeezed(), bt, _OUT_PAD),
                               lambda i: (i, 0, 0)),
        scratch_shapes=[
            pltpu.VMEM((m1, _C1), jnp.float32),
            pltpu.VMEM((m2, _C2), jnp.float32),
            pltpu.VMEM((m3, _C3), jnp.float32),
            pltpu.VMEM((bt, _FLAT), jnp.float32),
        ],
    )
    out = pl.pallas_call(
        _qnet_kernel,
        out_shape=jax.ShapeDtypeStruct((grid_len, bt, _OUT_PAD), jnp.float32),
        grid_spec=grid_spec,
        compiler_params=pltpu.CompilerParams(
            dimension_semantics=("parallel",)),
        cost_estimate=cost,
    )(xt, prep["w1"], prep["b1"], prep["w2"], prep["b2"],
      prep["w3"], prep["b3"], prep["wf1"], prep["bf1"],
      prep["wf2"], prep["bf2"])
    return out.reshape(n_pad, _OUT_PAD)[:n, :output_size]


# ---------------------------------------------------------------------------
# Deterministic PyTorch-layout params and a pure-XLA reference.
# ---------------------------------------------------------------------------
def init_params(key, in_channels, hidden_size, output_size):
    ks = jax.random.split(key, 10)

    def w(k, shape, fan_in):
        return jax.random.normal(k, shape, jnp.float32) / jnp.sqrt(
            jnp.float32(fan_in))

    flat = 7 * 7 * 64
    return {
        "w_c1": w(ks[0], (32, in_channels, 8, 8), in_channels * 64),
        "b_c1": w(ks[1], (32,), in_channels * 64),
        "w_c2": w(ks[2], (64, 32, 4, 4), 32 * 16),
        "b_c2": w(ks[3], (64,), 32 * 16),
        "w_c3": w(ks[4], (64, 64, 3, 3), 64 * 9),
        "b_c3": w(ks[5], (64,), 64 * 9),
        "w_f1": w(ks[6], (hidden_size, flat), flat),
        "b_f1": w(ks[7], (hidden_size,), flat),
        "w_f2": w(ks[8], (output_size, hidden_size), hidden_size),
        "b_f2": w(ks[9], (output_size,), hidden_size),
    }


def qnetwork_reference(x, params, *, matmul_dtype=jnp.float32):
    """Pure-XLA reference. matmul_dtype=bfloat16 reproduces the kernel's
    bf16-input / f32-accumulate scheme for a tight correctness check."""
    dt, f32 = matmul_dtype, jnp.float32
    if x.ndim == 3:
        x = x[None, ...]
    x = x.astype(f32)

    def conv(inp, w, b, stride):
        y = lax.conv_general_dilated(
            inp.astype(dt), w.astype(dt), (stride, stride), "VALID",
            dimension_numbers=("NCHW", "OIHW", "NCHW"),
            preferred_element_type=f32)
        return jnp.maximum(y + b.astype(f32)[None, :, None, None], 0.0)

    h = conv(x, params["w_c1"], params["b_c1"], 4)
    h = conv(h, params["w_c2"], params["b_c2"], 2)
    h = conv(h, params["w_c3"], params["b_c3"], 1)
    h = h.reshape(h.shape[0], -1)
    h = jnp.dot(h.astype(dt), params["w_f1"].T.astype(dt),
                preferred_element_type=f32) + params["b_f1"]
    h = jnp.maximum(h, 0.0)
    return jnp.dot(h.astype(dt), params["w_f2"].T.astype(dt),
                   preferred_element_type=f32) + params["b_f2"]


if __name__ == "__main__":
    # 84x84 spatial is implied by the module's hardcoded 7*7*64 flatten.
    # batch=5 exercises batch stacking (B_TILE=3), ragged-batch padding
    # (5 -> 6) and a length-2 grid (both v7x TensorCores).
    batch, in_channels, spatial = 5, 4, 84
    hidden_size, output_size = 64, 6

    key = jax.random.PRNGKey(0)
    k_params, k_x = jax.random.split(key)
    params = init_params(k_params, in_channels, hidden_size, output_size)
    x = jax.random.uniform(k_x, (batch, in_channels, spatial, spatial),
                           jnp.float32)

    prep = prepare_params(params)   # one-time repack, off the hot path

    out = qnetwork_forward(x, prep, output_size=output_size)
    out = jax.block_until_ready(out)
    assert out.shape == (batch, output_size), out.shape

    # Tight check vs a matched-precision (bf16 inputs, f32 accumulate) reference.
    ref_bf16 = qnetwork_reference(x, params, matmul_dtype=jnp.bfloat16)
    assert jnp.allclose(out, ref_bf16, rtol=2e-3, atol=2e-3), (
        "mismatch vs matched-precision reference")

    # Loose sanity bound vs the full-f32 reference (bf16 quantization only).
    ref_f32 = qnetwork_reference(x, params, matmul_dtype=jnp.float32)
    assert float(jnp.max(jnp.abs(out - ref_f32))) < 0.25, (
        "bf16 deviation vs f32 reference too large")

    print("KERNEL_OK")
</pallas_src>

<mosaic_0001>
module attributes {stable_mosaic.version = 11 : i64} {
  func.func @_qnet_kernel(%arg0: i32, %arg1: memref<408x256xf32, #tpu.memory_space<vmem>>, %arg2: memref<4x256x128xbf16, #tpu.memory_space<vmem>>, %arg3: memref<1x128xf32, #tpu.memory_space<vmem>>, %arg4: memref<4x128x64xbf16, #tpu.memory_space<vmem>>, %arg5: memref<1x64xf32, #tpu.memory_space<vmem>>, %arg6: memref<9x64x64xbf16, #tpu.memory_space<vmem>>, %arg7: memref<1x64xf32, #tpu.memory_space<vmem>>, %arg8: memref<3136x64xbf16, #tpu.memory_space<vmem>>, %arg9: memref<1x64xf32, #tpu.memory_space<vmem>>, %arg10: memref<64x128xbf16, #tpu.memory_space<vmem>>, %arg11: memref<1x128xf32, #tpu.memory_space<vmem>>, %arg12: memref<1x3x128xf32, #tpu.memory_space<vmem>>, %arg13: memref<392x128xf32, #tpu.memory_space<vmem>>, %arg14: memref<376x64xf32, #tpu.memory_space<vmem>>, %arg15: memref<352x64xf32, #tpu.memory_space<vmem>>, %arg16: memref<3x3136xf32, #tpu.memory_space<vmem>>) attributes {dimension_semantics = [#tpu.dimension_semantics<parallel>], iteration_bounds = array<i64: 2>, scalar_prefetch = 0 : i64, scratch_operands = 4 : i64, tpu.core_type = #tpu.core_type<tc>, window_params = [{transform_indices = @transform_0, window_bounds = array<i64: 408, 256>}, {pipeline_mode = #tpu.pipeline_mode<synchronous>, transform_indices = @transform_1, window_bounds = array<i64: 4, 256, 128>}, {pipeline_mode = #tpu.pipeline_mode<synchronous>, transform_indices = @transform_2, window_bounds = array<i64: 1, 128>}, {pipeline_mode = #tpu.pipeline_mode<synchronous>, transform_indices = @transform_3, window_bounds = array<i64: 4, 128, 64>}, {pipeline_mode = #tpu.pipeline_mode<synchronous>, transform_indices = @transform_4, window_bounds = array<i64: 1, 64>}, {pipeline_mode = #tpu.pipeline_mode<synchronous>, transform_indices = @transform_5, window_bounds = array<i64: 9, 64, 64>}, {pipeline_mode = #tpu.pipeline_mode<synchronous>, transform_indices = @transform_6, window_bounds = array<i64: 1, 64>}, {pipeline_mode = #tpu.pipeline_mode<synchronous>, transform_indices = @transform_7, window_bounds = array<i64: 3136, 64>}, {pipeline_mode = #tpu.pipeline_mode<synchronous>, transform_indices = @transform_8, window_bounds = array<i64: 1, 64>}, {pipeline_mode = #tpu.pipeline_mode<synchronous>, transform_indices = @transform_9, window_bounds = array<i64: 64, 128>}, {pipeline_mode = #tpu.pipeline_mode<synchronous>, transform_indices = @transform_10, window_bounds = array<i64: 1, 128>}, {transform_indices = @transform_11, window_bounds = array<i64: 1, 3, 128>}]} {
    %c0 = arith.constant 0 : index
    %c0_0 = arith.constant 0 : index
    %0 = vector.load %arg1[%c0, %c0_0] : memref<408x256xf32, #tpu.memory_space<vmem>>, vector<392x256xf32>
    %1 = arith.truncf %0 : vector<392x256xf32> to vector<392x256xbf16>
    %c0_1 = arith.constant 0 : index
    %c0_2 = arith.constant 0 : index
    %c0_3 = arith.constant 0 : index
    %2 = vector.load %arg2[%c0_1, %c0_2, %c0_3] : memref<4x256x128xbf16, #tpu.memory_space<vmem>>, vector<1x256x128xbf16>
    %3 = vector.shape_cast %2 : vector<1x256x128xbf16> to vector<256x128xbf16>
    %cst = arith.constant dense<0.000000e+00> : vector<392x128xf32>
    %4 = tpu.matmul %1, %3, %cst {dimension_numbers = #tpu.dot_dimension_numbers<[1], [0], [0], [1], [0, 0, 1, 1], [], []>} : vector<392x256xbf16>, vector<256x128xbf16>, vector<392x128xf32> -> vector<392x128xf32>
    %c1 = arith.constant 1 : index
    %c0_4 = arith.constant 0 : index
    %5 = vector.load %arg1[%c1, %c0_4] : memref<408x256xf32, #tpu.memory_space<vmem>>, vector<392x256xf32>
    %6 = arith.truncf %5 : vector<392x256xf32> to vector<392x256xbf16>
    %c1_5 = arith.constant 1 : index
    %c0_6 = arith.constant 0 : index
    %c0_7 = arith.constant 0 : index
    %7 = vector.load %arg2[%c1_5, %c0_6, %c0_7] : memref<4x256x128xbf16, #tpu.memory_space<vmem>>, vector<1x256x128xbf16>
    %8 = vector.shape_cast %7 : vector<1x256x128xbf16> to vector<256x128xbf16>
    %cst_8 = arith.constant dense<0.000000e+00> : vector<392x128xf32>
    %9 = tpu.matmul %6, %8, %cst_8 {dimension_numbers = #tpu.dot_dimension_numbers<[1], [0], [0], [1], [0, 0, 1, 1], [], []>} : vector<392x256xbf16>, vector<256x128xbf16>, vector<392x128xf32> -> vector<392x128xf32>
    %10 = arith.addf %4, %9 : vector<392x128xf32>
    %c11 = arith.constant 11 : index
    %c0_9 = arith.constant 0 : index
    %11 = vector.load %arg1[%c11, %c0_9] : memref<408x256xf32, #tpu.memory_space<vmem>>, vector<392x256xf32>
    %12 = arith.truncf %11 : vector<392x256xf32> to vector<392x256xbf16>
    %c2 = arith.constant 2 : index
    %c0_10 = arith.constant 0 : index
    %c0_11 = arith.constant 0 : index
    %13 = vector.load %arg2[%c2, %c0_10, %c0_11] : memref<4x256x128xbf16, #tpu.memory_space<vmem>>, vector<1x256x128xbf16>
    %14 = vector.shape_cast %13 : vector<1x256x128xbf16> to vector<256x128xbf16>
    %cst_12 = arith.constant dense<0.000000e+00> : vector<392x128xf32>
    %15 = tpu.matmul %12, %14, %cst_12 {dimension_numbers = #tpu.dot_dimension_numbers<[1], [0], [0], [1], [0, 0, 1, 1], [], []>} : vector<392x256xbf16>, vector<256x128xbf16>, vector<392x128xf32> -> vector<392x128xf32>
    %16 = arith.addf %10, %15 : vector<392x128xf32>
    %c12 = arith.constant 12 : index
    %c0_13 = arith.constant 0 : index
    %17 = vector.load %arg1[%c12, %c0_13] : memref<408x256xf32, #tpu.memory_space<vmem>>, vector<392x256xf32>
    %18 = arith.truncf %17 : vector<392x256xf32> to vector<392x256xbf16>
    %c3 = arith.constant 3 : index
    %c0_14 = arith.constant 0 : index
    %c0_15 = arith.constant 0 : index
    %19 = vector.load %arg2[%c3, %c0_14, %c0_15] : memref<4x256x128xbf16, #tpu.memory_space<vmem>>, vector<1x256x128xbf16>
    %20 = vector.shape_cast %19 : vector<1x256x128xbf16> to vector<256x128xbf16>
    %cst_16 = arith.constant dense<0.000000e+00> : vector<392x128xf32>
    %21 = tpu.matmul %18, %20, %cst_16 {dimension_numbers = #tpu.dot_dimension_numbers<[1], [0], [0], [1], [0, 0, 1, 1], [], []>} : vector<392x256xbf16>, vector<256x128xbf16>, vector<392x128xf32> -> vector<392x128xf32>
    %22 = arith.addf %16, %21 : vector<392x128xf32>
    %c0_17 = arith.constant 0 : index
    %c0_18 = arith.constant 0 : index
    %23 = vector.load %arg3[%c0_17, %c0_18] : memref<1x128xf32, #tpu.memory_space<vmem>>, vector<1x128xf32>
    %24 = vector.broadcast %23 : vector<1x128xf32> to vector<392x128xf32>
    %25 = arith.addf %22, %24 : vector<392x128xf32>
    %cst_19 = arith.constant 0.000000e+00 : f32
    %26 = vector.broadcast %cst_19 : f32 to vector<392x128xf32>
    %27 = arith.maximumf %25, %26 : vector<392x128xf32>
    %c0_20 = arith.constant 0 : index
    %c0_21 = arith.constant 0 : index
    %28 = vector.load %arg13[%c0_20, %c0_21] : memref<392x128xf32, #tpu.memory_space<vmem>>, vector<392x128xf32>
    tpu.vector_store %arg13[%c0_20, %c0_21], %27 {strides = array<i32>} : memref<392x128xf32, #tpu.memory_space<vmem>>, vector<392x128xf32>,
    %c0_22 = arith.constant 0 : index
    %c0_23 = arith.constant 0 : index
    %29 = vector.load %arg13[%c0_22, %c0_23] : memref<392x128xf32, #tpu.memory_space<vmem>>, vector<376x128xf32>
    %30 = arith.truncf %29 : vector<376x128xf32> to vector<376x128xbf16>
    %c0_24 = arith.constant 0 : index
    %c0_25 = arith.constant 0 : index
    %c0_26 = arith.constant 0 : index
    %31 = vector.load %arg4[%c0_24, %c0_25, %c0_26] : memref<4x128x64xbf16, #tpu.memory_space<vmem>>, vector<1x128x64xbf16>
    %32 = vector.shape_cast %31 : vector<1x128x64xbf16> to vector<128x64xbf16>
    %cst_27 = arith.constant dense<0.000000e+00> : vector<376x64xf32>
    %33 = tpu.matmul %30, %32, %cst_27 {dimension_numbers = #tpu.dot_dimension_numbers<[1], [0], [0], [1], [0, 0, 1, 1], [], []>} : vector<376x128xbf16>, vector<128x64xbf16>, vector<376x64xf32> -> vector<376x64xf32>
    %c1_28 = arith.constant 1 : index
    %c0_29 = arith.constant 0 : index
    %34 = vector.load %arg13[%c1_28, %c0_29] : memref<392x128xf32, #tpu.memory_space<vmem>>, vector<376x128xf32>
    %35 = arith.truncf %34 : vector<376x128xf32> to vector<376x128xbf16>
    %c1_30 = arith.constant 1 : index
    %c0_31 = arith.constant 0 : index
    %c0_32 = arith.constant 0 : index
    %36 = vector.load %arg4[%c1_30, %c0_31, %c0_32] : memref<4x128x64xbf16, #tpu.memory_space<vmem>>, vector<1x128x64xbf16>
    %37 = vector.shape_cast %36 : vector<1x128x64xbf16> to vector<128x64xbf16>
    %cst_33 = arith.constant dense<0.000000e+00> : vector<376x64xf32>
    %38 = tpu.matmul %35, %37, %cst_33 {dimension_numbers = #tpu.dot_dimension_numbers<[1], [0], [0], [1], [0, 0, 1, 1], [], []>} : vector<376x128xbf16>, vector<128x64xbf16>, vector<376x64xf32> -> vector<376x64xf32>
    %39 = arith.addf %33, %38 : vector<376x64xf32>
    %c11_34 = arith.constant 11 : index
    %c0_35 = arith.constant 0 : index
    %40 = vector.load %arg13[%c11_34, %c0_35] : memref<392x128xf32, #tpu.memory_space<vmem>>, vector<376x128xf32>
    %41 = arith.truncf %40 : vector<376x128xf32> to vector<376x128xbf16>
    %c2_36 = arith.constant 2 : index
    %c0_37 = arith.constant 0 : index
    %c0_38 = arith.constant 0 : index
    %42 = vector.load %arg4[%c2_36, %c0_37, %c0_38] : memref<4x128x64xbf16, #tpu.memory_space<vmem>>, vector<1x128x64xbf16>
    %43 = vector.shape_cast %42 : vector<1x128x64xbf16> to vector<128x64xbf16>
    %cst_39 = arith.constant dense<0.000000e+00> : vector<376x64xf32>
    %44 = tpu.matmul %41, %43, %cst_39 {dimension_numbers = #tpu.dot_dimension_numbers<[1], [0], [0], [1], [0, 0, 1, 1], [], []>} : vector<376x128xbf16>, vector<128x64xbf16>, vector<376x64xf32> -> vector<376x64xf32>
    %45 = arith.addf %39, %44 : vector<376x64xf32>
    %c12_40 = arith.constant 12 : index
    %c0_41 = arith.constant 0 : index
    %46 = vector.load %arg13[%c12_40, %c0_41] : memref<392x128xf32, #tpu.memory_space<vmem>>, vector<376x128xf32>
    %47 = arith.truncf %46 : vector<376x128xf32> to vector<376x128xbf16>
    %c3_42 = arith.constant 3 : index
    %c0_43 = arith.constant 0 : index
    %c0_44 = arith.constant 0 : index
    %48 = vector.load %arg4[%c3_42, %c0_43, %c0_44] : memref<4x128x64xbf16, #tpu.memory_space<vmem>>, vector<1x128x64xbf16>
    %49 = vector.shape_cast %48 : vector<1x128x64xbf16> to vector<128x64xbf16>
    %cst_45 = arith.constant dense<0.000000e+00> : vector<376x64xf32>
    %50 = tpu.matmul %47, %49, %cst_45 {dimension_numbers = #tpu.dot_dimension_numbers<[1], [0], [0], [1], [0, 0, 1, 1], [], []>} : vector<376x128xbf16>, vector<128x64xbf16>, vector<376x64xf32> -> vector<376x64xf32>
    %51 = arith.addf %45, %50 : vector<376x64xf32>
    %c0_46 = arith.constant 0 : index
    %c0_47 = arith.constant 0 : index
    %52 = vector.load %arg5[%c0_46, %c0_47] : memref<1x64xf32, #tpu.memory_space<vmem>>, vector<1x64xf32>
    %53 = vector.broadcast %52 : vector<1x64xf32> to vector<376x64xf32>
    %54 = arith.addf %51, %53 : vector<376x64xf32>
    %cst_48 = arith.constant 0.000000e+00 : f32
    %55 = vector.broadcast %cst_48 : f32 to vector<376x64xf32>
    %56 = arith.maximumf %54, %55 : vector<376x64xf32>
    %c0_49 = arith.constant 0 : index
    %c0_50 = arith.constant 0 : index
    %57 = vector.load %arg14[%c0_49, %c0_50] : memref<376x64xf32, #tpu.memory_space<vmem>>, vector<376x64xf32>
    tpu.vector_store %arg14[%c0_49, %c0_50], %56 {strides = array<i32>} : memref<376x64xf32, #tpu.memory_space<vmem>>, vector<376x64xf32>,
    %c0_51 = arith.constant 0 : index
    %c0_52 = arith.constant 0 : index
    %58 = vector.load %arg14[%c0_51, %c0_52] : memref<376x64xf32, #tpu.memory_space<vmem>>, vector<352x64xf32>
    %59 = arith.truncf %58 : vector<352x64xf32> to vector<352x64xbf16>
    %c0_53 = arith.constant 0 : index
    %c0_54 = arith.constant 0 : index
    %c0_55 = arith.constant 0 : index
    %60 = vector.load %arg6[%c0_53, %c0_54, %c0_55] : memref<9x64x64xbf16, #tpu.memory_space<vmem>>, vector<1x64x64xbf16>
    %61 = vector.shape_cast %60 : vector<1x64x64xbf16> to vector<64x64xbf16>
    %cst_56 = arith.constant dense<0.000000e+00> : vector<352x64xf32>
    %62 = tpu.matmul %59, %61, %cst_56 {dimension_numbers = #tpu.dot_dimension_numbers<[1], [0], [0], [1], [0, 0, 1, 1], [], []>} : vector<352x64xbf16>, vector<64x64xbf16>, vector<352x64xf32> -> vector<352x64xf32>
    %c1_57 = arith.constant 1 : index
    %c0_58 = arith.constant 0 : index
    %63 = vector.load %arg14[%c1_57, %c0_58] : memref<376x64xf32, #tpu.memory_space<vmem>>, vector<352x64xf32>
    %64 = arith.truncf %63 : vector<352x64xf32> to vector<352x64xbf16>
    %c1_59 = arith.constant 1 : index
    %c0_60 = arith.constant 0 : index
    %c0_61 = arith.constant 0 : index
    %65 = vector.load %arg6[%c1_59, %c0_60, %c0_61] : memref<9x64x64xbf16, #tpu.memory_space<vmem>>, vector<1x64x64xbf16>
    %66 = vector.shape_cast %65 : vector<1x64x64xbf16> to vector<64x64xbf16>
    %cst_62 = arith.constant dense<0.000000e+00> : vector<352x64xf32>
    %67 = tpu.matmul %64, %66, %cst_62 {dimension_numbers = #tpu.dot_dimension_numbers<[1], [0], [0], [1], [0, 0, 1, 1], [], []>} : vector<352x64xbf16>, vector<64x64xbf16>, vector<352x64xf32> -> vector<352x64xf32>
    %68 = arith.addf %62, %67 : vector<352x64xf32>
    %c2_63 = arith.constant 2 : index
    %c0_64 = arith.constant 0 : index
    %69 = vector.load %arg14[%c2_63, %c0_64] : memref<376x64xf32, #tpu.memory_space<vmem>>, vector<352x64xf32>
    %70 = arith.truncf %69 : vector<352x64xf32> to vector<352x64xbf16>
    %c2_65 = arith.constant 2 : index
    %c0_66 = arith.constant 0 : index
    %c0_67 = arith.constant 0 : index
    %71 = vector.load %arg6[%c2_65, %c0_66, %c0_67] : memref<9x64x64xbf16, #tpu.memory_space<vmem>>, vector<1x64x64xbf16>
    %72 = vector.shape_cast %71 : vector<1x64x64xbf16> to vector<64x64xbf16>
    %cst_68 = arith.constant dense<0.000000e+00> : vector<352x64xf32>
    %73 = tpu.matmul %70, %72, %cst_68 {dimension_numbers = #tpu.dot_dimension_numbers<[1], [0], [0], [1], [0, 0, 1, 1], [], []>} : vector<352x64xbf16>, vector<64x64xbf16>, vector<352x64xf32> -> vector<352x64xf32>
    %74 = arith.addf %68, %73 : vector<352x64xf32>
    %c11_69 = arith.constant 11 : index
    %c0_70 = arith.constant 0 : index
    %75 = vector.load %arg14[%c11_69, %c0_70] : memref<376x64xf32, #tpu.memory_space<vmem>>, vector<352x64xf32>
    %76 = arith.truncf %75 : vector<352x64xf32> to vector<352x64xbf16>
    %c3_71 = arith.constant 3 : index
    %c0_72 = arith.constant 0 : index
    %c0_73 = arith.constant 0 : index
    %77 = vector.load %arg6[%c3_71, %c0_72, %c0_73] : memref<9x64x64xbf16, #tpu.memory_space<vmem>>, vector<1x64x64xbf16>
    %78 = vector.shape_cast %77 : vector<1x64x64xbf16> to vector<64x64xbf16>
    %cst_74 = arith.constant dense<0.000000e+00> : vector<352x64xf32>
    %79 = tpu.matmul %76, %78, %cst_74 {dimension_numbers = #tpu.dot_dimension_numbers<[1], [0], [0], [1], [0, 0, 1, 1], [], []>} : vector<352x64xbf16>, vector<64x64xbf16>, vector<352x64xf32> -> vector<352x64xf32>
    %80 = arith.addf %74, %79 : vector<352x64xf32>
    %c12_75 = arith.constant 12 : index
    %c0_76 = arith.constant 0 : index
    %81 = vector.load %arg14[%c12_75, %c0_76] : memref<376x64xf32, #tpu.memory_space<vmem>>, vector<352x64xf32>
    %82 = arith.truncf %81 : vector<352x64xf32> to vector<352x64xbf16>
    %c4 = arith.constant 4 : index
    %c0_77 = arith.constant 0 : index
    %c0_78 = arith.constant 0 : index
    %83 = vector.load %arg6[%c4, %c0_77, %c0_78] : memref<9x64x64xbf16, #tpu.memory_space<vmem>>, vector<1x64x64xbf16>
    %84 = vector.shape_cast %83 : vector<1x64x64xbf16> to vector<64x64xbf16>
    %cst_79 = arith.constant dense<0.000000e+00> : vector<352x64xf32>
    %85 = tpu.matmul %82, %84, %cst_79 {dimension_numbers = #tpu.dot_dimension_numbers<[1], [0], [0], [1], [0, 0, 1, 1], [], []>} : vector<352x64xbf16>, vector<64x64xbf16>, vector<352x64xf32> -> vector<352x64xf32>
    %86 = arith.addf %80, %85 : vector<352x64xf32>
    %c13 = arith.constant 13 : index
    %c0_80 = arith.constant 0 : index
    %87 = vector.load %arg14[%c13, %c0_80] : memref<376x64xf32, #tpu.memory_space<vmem>>, vector<352x64xf32>
    %88 = arith.truncf %87 : vector<352x64xf32> to vector<352x64xbf16>
    %c5 = arith.constant 5 : index
    %c0_81 = arith.constant 0 : index
    %c0_82 = arith.constant 0 : index
    %89 = vector.load %arg6[%c5, %c0_81, %c0_82] : memref<9x64x64xbf16, #tpu.memory_space<vmem>>, vector<1x64x64xbf16>
    %90 = vector.shape_cast %89 : vector<1x64x64xbf16> to vector<64x64xbf16>
    %cst_83 = arith.constant dense<0.000000e+00> : vector<352x64xf32>
    %91 = tpu.matmul %88, %90, %cst_83 {dimension_numbers = #tpu.dot_dimension_numbers<[1], [0], [0], [1], [0, 0, 1, 1], [], []>} : vector<352x64xbf16>, vector<64x64xbf16>, vector<352x64xf32> -> vector<352x64xf32>
    %92 = arith.addf %86, %91 : vector<352x64xf32>
    %c22 = arith.constant 22 : index
    %c0_84 = arith.constant 0 : index
    %93 = vector.load %arg14[%c22, %c0_84] : memref<376x64xf32, #tpu.memory_space<vmem>>, vector<352x64xf32>
    %94 = arith.truncf %93 : vector<352x64xf32> to vector<352x64xbf16>
    %c6 = arith.constant 6 : index
    %c0_85 = arith.constant 0 : index
    %c0_86 = arith.constant 0 : index
    %95 = vector.load %arg6[%c6, %c0_85, %c0_86] : memref<9x64x64xbf16, #tpu.memory_space<vmem>>, vector<1x64x64xbf16>
    %96 = vector.shape_cast %95 : vector<1x64x64xbf16> to vector<64x64xbf16>
    %cst_87 = arith.constant dense<0.000000e+00> : vector<352x64xf32>
    %97 = tpu.matmul %94, %96, %cst_87 {dimension_numbers = #tpu.dot_dimension_numbers<[1], [0], [0], [1], [0, 0, 1, 1], [], []>} : vector<352x64xbf16>, vector<64x64xbf16>, vector<352x64xf32> -> vector<352x64xf32>
    %98 = arith.addf %92, %97 : vector<352x64xf32>
    %c23 = arith.constant 23 : index
    %c0_88 = arith.constant 0 : index
    %99 = vector.load %arg14[%c23, %c0_88] : memref<376x64xf32, #tpu.memory_space<vmem>>, vector<352x64xf32>
    %100 = arith.truncf %99 : vector<352x64xf32> to vector<352x64xbf16>
    %c7 = arith.constant 7 : index
    %c0_89 = arith.constant 0 : index
    %c0_90 = arith.constant 0 : index
    %101 = vector.load %arg6[%c7, %c0_89, %c0_90] : memref<9x64x64xbf16, #tpu.memory_space<vmem>>, vector<1x64x64xbf16>
    %102 = vector.shape_cast %101 : vector<1x64x64xbf16> to vector<64x64xbf16>
    %cst_91 = arith.constant dense<0.000000e+00> : vector<352x64xf32>
    %103 = tpu.matmul %100, %102, %cst_91 {dimension_numbers = #tpu.dot_dimension_numbers<[1], [0], [0], [1], [0, 0, 1, 1], [], []>} : vector<352x64xbf16>, vector<64x64xbf16>, vector<352x64xf32> -> vector<352x64xf32>
    %104 = arith.addf %98, %103 : vector<352x64xf32>
    %c24 = arith.constant 24 : index
    %c0_92 = arith.constant 0 : index
    %105 = vector.load %arg14[%c24, %c0_92] : memref<376x64xf32, #tpu.memory_space<vmem>>, vector<352x64xf32>
    %106 = arith.truncf %105 : vector<352x64xf32> to vector<352x64xbf16>
    %c8 = arith.constant 8 : index
    %c0_93 = arith.constant 0 : index
    %c0_94 = arith.constant 0 : index
    %107 = vector.load %arg6[%c8, %c0_93, %c0_94] : memref<9x64x64xbf16, #tpu.memory_space<vmem>>, vector<1x64x64xbf16>
    %108 = vector.shape_cast %107 : vector<1x64x64xbf16> to vector<64x64xbf16>
    %cst_95 = arith.constant dense<0.000000e+00> : vector<352x64xf32>
    %109 = tpu.matmul %106, %108, %cst_95 {dimension_numbers = #tpu.dot_dimension_numbers<[1], [0], [0], [1], [0, 0, 1, 1], [], []>} : vector<352x64xbf16>, vector<64x64xbf16>, vector<352x64xf32> -> vector<352x64xf32>
    %110 = arith.addf %104, %109 : vector<352x64xf32>
    %c0_96 = arith.constant 0 : index
    %c0_97 = arith.constant 0 : index
    %111 = vector.load %arg7[%c0_96, %c0_97] : memref<1x64xf32, #tpu.memory_space<vmem>>, vector<1x64xf32>
    %112 = vector.broadcast %111 : vector<1x64xf32> to vector<352x64xf32>
    %113 = arith.addf %110, %112 : vector<352x64xf32>
    %cst_98 = arith.constant 0.000000e+00 : f32
    %114 = vector.broadcast %cst_98 : f32 to vector<352x64xf32>
    %115 = arith.maximumf %113, %114 : vector<352x64xf32>
    %c0_99 = arith.constant 0 : index
    %c0_100 = arith.constant 0 : index
    %116 = vector.load %arg15[%c0_99, %c0_100] : memref<352x64xf32, #tpu.memory_space<vmem>>, vector<352x64xf32>
    tpu.vector_store %arg15[%c0_99, %c0_100], %115 {strides = array<i32>} : memref<352x64xf32, #tpu.memory_space<vmem>>, vector<352x64xf32>,
    %c0_101 = arith.constant 0 : index
    %c0_102 = arith.constant 0 : index
    %117 = vector.load %arg15[%c0_101, %c0_102] : memref<352x64xf32, #tpu.memory_space<vmem>>, vector<1x64xf32>
    %c0_103 = arith.constant 0 : index
    %c0_104 = arith.constant 0 : index
    %118 = vector.load %arg16[%c0_103, %c0_104] : memref<3x3136xf32, #tpu.memory_space<vmem>>, vector<1x64xf32>
    tpu.vector_store %arg16[%c0_103, %c0_104], %117 {strides = array<i32>} : memref<3x3136xf32, #tpu.memory_space<vmem>>, vector<1x64xf32>,
    %c1_105 = arith.constant 1 : index
    %c0_106 = arith.constant 0 : index
    %119 = vector.load %arg15[%c1_105, %c0_106] : memref<352x64xf32, #tpu.memory_space<vmem>>, vector<1x64xf32>
    %c0_107 = arith.constant 0 : index
    %c64 = arith.constant 64 : index
    %120 = vector.load %arg16[%c0_107, %c64] : memref<3x3136xf32, #tpu.memory_space<vmem>>, vector<1x64xf32>
    tpu.vector_store %arg16[%c0_107, %c64], %119 {strides = array<i32>} : memref<3x3136xf32, #tpu.memory_space<vmem>>, vector<1x64xf32>,
    %c2_108 = arith.constant 2 : index
    %c0_109 = arith.constant 0 : index
    %121 = vector.load %arg15[%c2_108, %c0_109] : memref<352x64xf32, #tpu.memory_space<vmem>>, vector<1x64xf32>
    %c0_110 = arith.constant 0 : index
    %c128 = arith.constant 128 : index
    %122 = vector.load %arg16[%c0_110, %c128] : memref<3x3136xf32, #tpu.memory_space<vmem>>, vector<1x64xf32>
    tpu.vector_store %arg16[%c0_110, %c128], %121 {strides = array<i32>} : memref<3x3136xf32, #tpu.memory_space<vmem>>, vector<1x64xf32>,
    %c3_111 = arith.constant 3 : index
    %c0_112 = arith.constant 0 : index
    %123 = vector.load %arg15[%c3_111, %c0_112] : memref<352x64xf32, #tpu.memory_space<vmem>>, vector<1x64xf32>
    %c0_113 = arith.constant 0 : index
    %c192 = arith.constant 192 : index
    %124 = vector.load %arg16[%c0_113, %c192] : memref<3x3136xf32, #tpu.memory_space<vmem>>, vector<1x64xf32>
    tpu.vector_store %arg16[%c0_113, %c192], %123 {strides = array<i32>} : memref<3x3136xf32, #tpu.memory_space<vmem>>, vector<1x64xf32>,
    %c4_114 = arith.constant 4 : index
    %c0_115 = arith.constant 0 : index
    %125 = vector.load %arg15[%c4_114, %c0_115] : memref<352x64xf32, #tpu.memory_space<vmem>>, vector<1x64xf32>
    %c0_116 = arith.constant 0 : index
    %c256 = arith.constant 256 : index
    %126 = vector.load %arg16[%c0_116, %c256] : memref<3x3136xf32, #tpu.memory_space<vmem>>, vector<1x64xf32>
    tpu.vector_store %arg16[%c0_116, %c256], %125 {strides = array<i32>} : memref<3x3136xf32, #tpu.memory_space<vmem>>, vector<1x64xf32>,
    %c5_117 = arith.constant 5 : index
    %c0_118 = arith.constant 0 : index
    %127 = vector.load %arg15[%c5_117, %c0_118] : memref<352x64xf32, #tpu.memory_space<vmem>>, vector<1x64xf32>
    %c0_119 = arith.constant 0 : index
    %c320 = arith.constant 320 : index
    %128 = vector.load %arg16[%c0_119, %c320] : memref<3x3136xf32, #tpu.memory_space<vmem>>, vector<1x64xf32>
    tpu.vector_store %arg16[%c0_119, %c320], %127 {strides = array<i32>} : memref<3x3136xf32, #tpu.memory_space<vmem>>, vector<1x64xf32>,
    %c6_120 = arith.constant 6 : index
    %c0_121 = arith.constant 0 : index
    %129 = vector.load %arg15[%c6_120, %c0_121] : memref<352x64xf32, #tpu.memory_space<vmem>>, vector<1x64xf32>
    %c0_122 = arith.constant 0 : index
    %c384 = arith.constant 384 : index
    %130 = vector.load %arg16[%c0_122, %c384] : memref<3x3136xf32, #tpu.memory_space<vmem>>, vector<1x64xf32>
    tpu.vector_store %arg16[%c0_122, %c384], %129 {strides = array<i32>} : memref<3x3136xf32, #tpu.memory_space<vmem>>, vector<1x64xf32>,
    %c11_123 = arith.constant 11 : index
    %c0_124 = arith.constant 0 : index
    %131 = vector.load %arg15[%c11_123, %c0_124] : memref<352x64xf32, #tpu.memory_space<vmem>>, vector<1x64xf32>
    %c0_125 = arith.constant 0 : index
    %c448 = arith.constant 448 : index
    %132 = vector.load %arg16[%c0_125, %c448] : memref<3x3136xf32, #tpu.memory_space<vmem>>, vector<1x64xf32>
    tpu.vector_store %arg16[%c0_125, %c448], %131 {strides = array<i32>} : memref<3x3136xf32, #tpu.memory_space<vmem>>, vector<1x64xf32>,
    %c12_126 = arith.constant 12 : index
    %c0_127 = arith.constant 0 : index
    %133 = vector.load %arg15[%c12_126, %c0_127] : memref<352x64xf32, #tpu.memory_space<vmem>>, vector<1x64xf32>
    %c0_128 = arith.constant 0 : index
    %c512 = arith.constant 512 : index
    %134 = vector.load %arg16[%c0_128, %c512] : memref<3x3136xf32, #tpu.memory_space<vmem>>, vector<1x64xf32>
    tpu.vector_store %arg16[%c0_128, %c512], %133 {strides = array<i32>} : memref<3x3136xf32, #tpu.memory_space<vmem>>, vector<1x64xf32>,
    %c13_129 = arith.constant 13 : index
    %c0_130 = arith.constant 0 : index
    %135 = vector.load %arg15[%c13_129, %c0_130] : memref<352x64xf32, #tpu.memory_space<vmem>>, vector<1x64xf32>
    %c0_131 = arith.constant 0 : index
    %c576 = arith.constant 576 : index
    %136 = vector.load %arg16[%c0_131, %c576] : memref<3x3136xf32, #tpu.memory_space<vmem>>, vector<1x64xf32>
    tpu.vector_store %arg16[%c0_131, %c576], %135 {strides = array<i32>} : memref<3x3136xf32, #tpu.memory_space<vmem>>, vector<1x64xf32>,
    %c14 = arith.constant 14 : index
    %c0_132 = arith.constant 0 : index
    %137 = vector.load %arg15[%c14, %c0_132] : memref<352x64xf32, #tpu.memory_space<vmem>>, vector<1x64xf32>
    %c0_133 = arith.constant 0 : index
    %c640 = arith.constant 640 : index
    %138 = vector.load %arg16[%c0_133, %c640] : memref<3x3136xf32, #tpu.memory_space<vmem>>, vector<1x64xf32>
    tpu.vector_store %arg16[%c0_133, %c640], %137 {strides = array<i32>} : memref<3x3136xf32, #tpu.memory_space<vmem>>, vector<1x64xf32>,
    %c15 = arith.constant 15 : index
    %c0_134 = arith.constant 0 : index
    %139 = vector.load %arg15[%c15, %c0_134] : memref<352x64xf32, #tpu.memory_space<vmem>>, vector<1x64xf32>
    %c0_135 = arith.constant 0 : index
    %c704 = arith.constant 704 : index
    %140 = vector.load %arg16[%c0_135, %c704] : memref<3x3136xf32, #tpu.memory_space<vmem>>, vector<1x64xf32>
    tpu.vector_store %arg16[%c0_135, %c704], %139 {strides = array<i32>} : memref<3x3136xf32, #tpu.memory_space<vmem>>, vector<1x64xf32>,
    %c16 = arith.constant 16 : index
    %c0_136 = arith.constant 0 : index
    %141 = vector.load %arg15[%c16, %c0_136] : memref<352x64xf32, #tpu.memory_space<vmem>>, vector<1x64xf32>
    %c0_137 = arith.constant 0 : index
    %c768 = arith.constant 768 : index
    %142 = vector.load %arg16[%c0_137, %c768] : memref<3x3136xf32, #tpu.memory_space<vmem>>, vector<1x64xf32>
    tpu.vector_store %arg16[%c0_137, %c768], %141 {strides = array<i32>} : memref<3x3136xf32, #tpu.memory_space<vmem>>, vector<1x64xf32>,
    %c17 = arith.constant 17 : index
    %c0_138 = arith.constant 0 : index
    %143 = vector.load %arg15[%c17, %c0_138] : memref<352x64xf32, #tpu.memory_space<vmem>>, vector<1x64xf32>
    %c0_139 = arith.constant 0 : index
    %c832 = arith.constant 832 : index
    %144 = vector.load %arg16[%c0_139, %c832] : memref<3x3136xf32, #tpu.memory_space<vmem>>, vector<1x64xf32>
    tpu.vector_store %arg16[%c0_139, %c832], %143 {strides = array<i32>} : memref<3x3136xf32, #tpu.memory_space<vmem>>, vector<1x64xf32>,
    %c22_140 = arith.constant 22 : index
    %c0_141 = arith.constant 0 : index
    %145 = vector.load %arg15[%c22_140, %c0_141] : memref<352x64xf32, #tpu.memory_space<vmem>>, vector<1x64xf32>
    %c0_142 = arith.constant 0 : index
    %c896 = arith.constant 896 : index
    %146 = vector.load %arg16[%c0_142, %c896] : memref<3x3136xf32, #tpu.memory_space<vmem>>, vector<1x64xf32>
    tpu.vector_store %arg16[%c0_142, %c896], %145 {strides = array<i32>} : memref<3x3136xf32, #tpu.memory_space<vmem>>, vector<1x64xf32>,
    %c23_143 = arith.constant 23 : index
    %c0_144 = arith.constant 0 : index
    %147 = vector.load %arg15[%c23_143, %c0_144] : memref<352x64xf32, #tpu.memory_space<vmem>>, vector<1x64xf32>
    %c0_145 = arith.constant 0 : index
    %c960 = arith.constant 960 : index
    %148 = vector.load %arg16[%c0_145, %c960] : memref<3x3136xf32, #tpu.memory_space<vmem>>, vector<1x64xf32>
    tpu.vector_store %arg16[%c0_145, %c960], %147 {strides = array<i32>} : memref<3x3136xf32, #tpu.memory_space<vmem>>, vector<1x64xf32>,
    %c24_146 = arith.constant 24 : index
    %c0_147 = arith.constant 0 : index
    %149 = vector.load %arg15[%c24_146, %c0_147] : memref<352x64xf32, #tpu.memory_space<vmem>>, vector<1x64xf32>
    %c0_148 = arith.constant 0 : index
    %c1024 = arith.constant 1024 : index
    %150 = vector.load %arg16[%c0_148, %c1024] : memref<3x3136xf32, #tpu.memory_space<vmem>>, vector<1x64xf32>
    tpu.vector_store %arg16[%c0_148, %c1024], %149 {strides = array<i32>} : memref<3x3136xf32, #tpu.memory_space<vmem>>, vector<1x64xf32>,
    %c25 = arith.constant 25 : index
    %c0_149 = arith.constant 0 : index
    %151 = vector.load %arg15[%c25, %c0_149] : memref<352x64xf32, #tpu.memory_space<vmem>>, vector<1x64xf32>
    %c0_150 = arith.constant 0 : index
    %c1088 = arith.constant 1088 : index
    %152 = vector.load %arg16[%c0_150, %c1088] : memref<3x3136xf32, #tpu.memory_space<vmem>>, vector<1x64xf32>
    tpu.vector_store %arg16[%c0_150, %c1088], %151 {strides = array<i32>} : memref<3x3136xf32, #tpu.memory_space<vmem>>, vector<1x64xf32>,
    %c26 = arith.constant 26 : index
    %c0_151 = arith.constant 0 : index
    %153 = vector.load %arg15[%c26, %c0_151] : memref<352x64xf32, #tpu.memory_space<vmem>>, vector<1x64xf32>
    %c0_152 = arith.constant 0 : index
    %c1152 = arith.constant 1152 : index
    %154 = vector.load %arg16[%c0_152, %c1152] : memref<3x3136xf32, #tpu.memory_space<vmem>>, vector<1x64xf32>
    tpu.vector_store %arg16[%c0_152, %c1152], %153 {strides = array<i32>} : memref<3x3136xf32, #tpu.memory_space<vmem>>, vector<1x64xf32>,
    %c27 = arith.constant 27 : index
    %c0_153 = arith.constant 0 : index
    %155 = vector.load %arg15[%c27, %c0_153] : memref<352x64xf32, #tpu.memory_space<vmem>>, vector<1x64xf32>
    %c0_154 = arith.constant 0 : index
    %c1216 = arith.constant 1216 : index
    %156 = vector.load %arg16[%c0_154, %c1216] : memref<3x3136xf32, #tpu.memory_space<vmem>>, vector<1x64xf32>
    tpu.vector_store %arg16[%c0_154, %c1216], %155 {strides = array<i32>} : memref<3x3136xf32, #tpu.memory_space<vmem>>, vector<1x64xf32>,
    %c28 = arith.constant 28 : index
    %c0_155 = arith.constant 0 : index
    %157 = vector.load %arg15[%c28, %c0_155] : memref<352x64xf32, #tpu.memory_space<vmem>>, vector<1x64xf32>
    %c0_156 = arith.constant 0 : index
    %c1280 = arith.constant 1280 : index
    %158 = vector.load %arg16[%c0_156, %c1280] : memref<3x3136xf32, #tpu.memory_space<vmem>>, vector<1x64xf32>
    tpu.vector_store %arg16[%c0_156, %c1280], %157 {strides = array<i32>} : memref<3x3136xf32, #tpu.memory_space<vmem>>, vector<1x64xf32>,
    %c33 = arith.constant 33 : index
    %c0_157 = arith.constant 0 : index
    %159 = vector.load %arg15[%c33, %c0_157] : memref<352x64xf32, #tpu.memory_space<vmem>>, vector<1x64xf32>
    %c0_158 = arith.constant 0 : index
    %c1344 = arith.constant 1344 : index
    %160 = vector.load %arg16[%c0_158, %c1344] : memref<3x3136xf32, #tpu.memory_space<vmem>>, vector<1x64xf32>
    tpu.vector_store %arg16[%c0_158, %c1344], %159 {strides = array<i32>} : memref<3x3136xf32, #tpu.memory_space<vmem>>, vector<1x64xf32>,
    %c34 = arith.constant 34 : index
    %c0_159 = arith.constant 0 : index
    %161 = vector.load %arg15[%c34, %c0_159] : memref<352x64xf32, #tpu.memory_space<vmem>>, vector<1x64xf32>
    %c0_160 = arith.constant 0 : index
    %c1408 = arith.constant 1408 : index
    %162 = vector.load %arg16[%c0_160, %c1408] : memref<3x3136xf32, #tpu.memory_space<vmem>>, vector<1x64xf32>
    tpu.vector_store %arg16[%c0_160, %c1408], %161 {strides = array<i32>} : memref<3x3136xf32, #tpu.memory_space<vmem>>, vector<1x64xf32>,
    %c35 = arith.constant 35 : index
    %c0_161 = arith.constant 0 : index
    %163 = vector.load %arg15[%c35, %c0_161] : memref<352x64xf32, #tpu.memory_space<vmem>>, vector<1x64xf32>
    %c0_162 = arith.constant 0 : index
    %c1472 = arith.constant 1472 : index
    %164 = vector.load %arg16[%c0_162, %c1472] : memref<3x3136xf32, #tpu.memory_space<vmem>>, vector<1x64xf32>
    tpu.vector_store %arg16[%c0_162, %c1472], %163 {strides = array<i32>} : memref<3x3136xf32, #tpu.memory_space<vmem>>, vector<1x64xf32>,
    %c36 = arith.constant 36 : index
    %c0_163 = arith.constant 0 : index
    %165 = vector.load %arg15[%c36, %c0_163] : memref<352x64xf32, #tpu.memory_space<vmem>>, vector<1x64xf32>
    %c0_164 = arith.constant 0 : index
    %c1536 = arith.constant 1536 : index
    %166 = vector.load %arg16[%c0_164, %c1536] : memref<3x3136xf32, #tpu.memory_space<vmem>>, vector<1x64xf32>
    tpu.vector_store %arg16[%c0_164, %c1536], %165 {strides = array<i32>} : memref<3x3136xf32, #tpu.memory_space<vmem>>, vector<1x64xf32>,
    %c37 = arith.constant 37 : index
    %c0_165 = arith.constant 0 : index
    %167 = vector.load %arg15[%c37, %c0_165] : memref<352x64xf32, #tpu.memory_space<vmem>>, vector<1x64xf32>
    %c0_166 = arith.constant 0 : index
    %c1600 = arith.constant 1600 : index
    %168 = vector.load %arg16[%c0_166, %c1600] : memref<3x3136xf32, #tpu.memory_space<vmem>>, vector<1x64xf32>
    tpu.vector_store %arg16[%c0_166, %c1600], %167 {strides = array<i32>} : memref<3x3136xf32, #tpu.memory_space<vmem>>, vector<1x64xf32>,
    %c38 = arith.constant 38 : index
    %c0_167 = arith.constant 0 : index
    %169 = vector.load %arg15[%c38, %c0_167] : memref<352x64xf32, #tpu.memory_space<vmem>>, vector<1x64xf32>
    %c0_168 = arith.constant 0 : index
    %c1664 = arith.constant 1664 : index
    %170 = vector.load %arg16[%c0_168, %c1664] : memref<3x3136xf32, #tpu.memory_space<vmem>>, vector<1x64xf32>
    tpu.vector_store %arg16[%c0_168, %c1664], %169 {strides = array<i32>} : memref<3x3136xf32, #tpu.memory_space<vmem>>, vector<1x64xf32>,
    %c39 = arith.constant 39 : index
    %c0_169 = arith.constant 0 : index
    %171 = vector.load %arg15[%c39, %c0_169] : memref<352x64xf32, #tpu.memory_space<vmem>>, vector<1x64xf32>
    %c0_170 = arith.constant 0 : index
    %c1728 = arith.constant 1728 : index
    %172 = vector.load %arg16[%c0_170, %c1728] : memref<3x3136xf32, #tpu.memory_space<vmem>>, vector<1x64xf32>
    tpu.vector_store %arg16[%c0_170, %c1728], %171 {strides = array<i32>} : memref<3x3136xf32, #tpu.memory_space<vmem>>, vector<1x64xf32>,
    %c44 = arith.constant 44 : index
    %c0_171 = arith.constant 0 : index
    %173 = vector.load %arg15[%c44, %c0_171] : memref<352x64xf32, #tpu.memory_space<vmem>>, vector<1x64xf32>
    %c0_172 = arith.constant 0 : index
    %c1792 = arith.constant 1792 : index
    %174 = vector.load %arg16[%c0_172, %c1792] : memref<3x3136xf32, #tpu.memory_space<vmem>>, vector<1x64xf32>
    tpu.vector_store %arg16[%c0_172, %c1792], %173 {strides = array<i32>} : memref<3x3136xf32, #tpu.memory_space<vmem>>, vector<1x64xf32>,
    %c45 = arith.constant 45 : index
    %c0_173 = arith.constant 0 : index
    %175 = vector.load %arg15[%c45, %c0_173] : memref<352x64xf32, #tpu.memory_space<vmem>>, vector<1x64xf32>
    %c0_174 = arith.constant 0 : index
    %c1856 = arith.constant 1856 : index
    %176 = vector.load %arg16[%c0_174, %c1856] : memref<3x3136xf32, #tpu.memory_space<vmem>>, vector<1x64xf32>
    tpu.vector_store %arg16[%c0_174, %c1856], %175 {strides = array<i32>} : memref<3x3136xf32, #tpu.memory_space<vmem>>, vector<1x64xf32>,
    %c46 = arith.constant 46 : index
    %c0_175 = arith.constant 0 : index
    %177 = vector.load %arg15[%c46, %c0_175] : memref<352x64xf32, #tpu.memory_space<vmem>>, vector<1x64xf32>
    %c0_176 = arith.constant 0 : index
    %c1920 = arith.constant 1920 : index
    %178 = vector.load %arg16[%c0_176, %c1920] : memref<3x3136xf32, #tpu.memory_space<vmem>>, vector<1x64xf32>
    tpu.vector_store %arg16[%c0_176, %c1920], %177 {strides = array<i32>} : memref<3x3136xf32, #tpu.memory_space<vmem>>, vector<1x64xf32>,
    %c47 = arith.constant 47 : index
    %c0_177 = arith.constant 0 : index
    %179 = vector.load %arg15[%c47, %c0_177] : memref<352x64xf32, #tpu.memory_space<vmem>>, vector<1x64xf32>
    %c0_178 = arith.constant 0 : index
    %c1984 = arith.constant 1984 : index
    %180 = vector.load %arg16[%c0_178, %c1984] : memref<3x3136xf32, #tpu.memory_space<vmem>>, vector<1x64xf32>
    tpu.vector_store %arg16[%c0_178, %c1984], %179 {strides = array<i32>} : memref<3x3136xf32, #tpu.memory_space<vmem>>, vector<1x64xf32>,
    %c48 = arith.constant 48 : index
    %c0_179 = arith.constant 0 : index
    %181 = vector.load %arg15[%c48, %c0_179] : memref<352x64xf32, #tpu.memory_space<vmem>>, vector<1x64xf32>
    %c0_180 = arith.constant 0 : index
    %c2048 = arith.constant 2048 : index
    %182 = vector.load %arg16[%c0_180, %c2048] : memref<3x3136xf32, #tpu.memory_space<vmem>>, vector<1x64xf32>
    tpu.vector_store %arg16[%c0_180, %c2048], %181 {strides = array<i32>} : memref<3x3136xf32, #tpu.memory_space<vmem>>, vector<1x64xf32>,
    %c49 = arith.constant 49 : index
    %c0_181 = arith.constant 0 : index
    %183 = vector.load %arg15[%c49, %c0_181] : memref<352x64xf32, #tpu.memory_space<vmem>>, vector<1x64xf32>
    %c0_182 = arith.constant 0 : index
    %c2112 = arith.constant 2112 : index
    %184 = vector.load %arg16[%c0_182, %c2112] : memref<3x3136xf32, #tpu.memory_space<vmem>>, vector<1x64xf32>
    tpu.vector_store %arg16[%c0_182, %c2112], %183 {strides = array<i32>} : memref<3x3136xf32, #tpu.memory_space<vmem>>, vector<1x64xf32>,
    %c50 = arith.constant 50 : index
    %c0_183 = arith.constant 0 : index
    %185 = vector.load %arg15[%c50, %c0_183] : memref<352x64xf32, #tpu.memory_space<vmem>>, vector<1x64xf32>
    %c0_184 = arith.constant 0 : index
    %c2176 = arith.constant 2176 : index
    %186 = vector.load %arg16[%c0_184, %c2176] : memref<3x3136xf32, #tpu.memory_space<vmem>>, vector<1x64xf32>
    tpu.vector_store %arg16[%c0_184, %c2176], %185 {strides = array<i32>} : memref<3x3136xf32, #tpu.memory_space<vmem>>, vector<1x64xf32>,
    %c55 = arith.constant 55 : index
    %c0_185 = arith.constant 0 : index
    %187 = vector.load %arg15[%c55, %c0_185] : memref<352x64xf32, #tpu.memory_space<vmem>>, vector<1x64xf32>
    %c0_186 = arith.constant 0 : index
    %c2240 = arith.constant 2240 : index
    %188 = vector.load %arg16[%c0_186, %c2240] : memref<3x3136xf32, #tpu.memory_space<vmem>>, vector<1x64xf32>
    tpu.vector_store %arg16[%c0_186, %c2240], %187 {strides = array<i32>} : memref<3x3136xf32, #tpu.memory_space<vmem>>, vector<1x64xf32>,
    %c56 = arith.constant 56 : index
    %c0_187 = arith.constant 0 : index
    %189 = vector.load %arg15[%c56, %c0_187] : memref<352x64xf32, #tpu.memory_space<vmem>>, vector<1x64xf32>
    %c0_188 = arith.constant 0 : index
    %c2304 = arith.constant 2304 : index
    %190 = vector.load %arg16[%c0_188, %c2304] : memref<3x3136xf32, #tpu.memory_space<vmem>>, vector<1x64xf32>
    tpu.vector_store %arg16[%c0_188, %c2304], %189 {strides = array<i32>} : memref<3x3136xf32, #tpu.memory_space<vmem>>, vector<1x64xf32>,
    %c57 = arith.constant 57 : index
    %c0_189 = arith.constant 0 : index
    %191 = vector.load %arg15[%c57, %c0_189] : memref<352x64xf32, #tpu.memory_space<vmem>>, vector<1x64xf32>
    %c0_190 = arith.constant 0 : index
    %c2368 = arith.constant 2368 : index
    %192 = vector.load %arg16[%c0_190, %c2368] : memref<3x3136xf32, #tpu.memory_space<vmem>>, vector<1x64xf32>
    tpu.vector_store %arg16[%c0_190, %c2368], %191 {strides = array<i32>} : memref<3x3136xf32, #tpu.memory_space<vmem>>, vector<1x64xf32>,
    %c58 = arith.constant 58 : index
    %c0_191 = arith.constant 0 : index
    %193 = vector.load %arg15[%c58, %c0_191] : memref<352x64xf32, #tpu.memory_space<vmem>>, vector<1x64xf32>
    %c0_192 = arith.constant 0 : index
    %c2432 = arith.constant 2432 : index
    %194 = vector.load %arg16[%c0_192, %c2432] : memref<3x3136xf32, #tpu.memory_space<vmem>>, vector<1x64xf32>
    tpu.vector_store %arg16[%c0_192, %c2432], %193 {strides = array<i32>} : memref<3x3136xf32, #tpu.memory_space<vmem>>, vector<1x64xf32>,
    %c59 = arith.constant 59 : index
    %c0_193 = arith.constant 0 : index
    %195 = vector.load %arg15[%c59, %c0_193] : memref<352x64xf32, #tpu.memory_space<vmem>>, vector<1x64xf32>
    %c0_194 = arith.constant 0 : index
    %c2496 = arith.constant 2496 : index
    %196 = vector.load %arg16[%c0_194, %c2496] : memref<3x3136xf32, #tpu.memory_space<vmem>>, vector<1x64xf32>
    tpu.vector_store %arg16[%c0_194, %c2496], %195 {strides = array<i32>} : memref<3x3136xf32, #tpu.memory_space<vmem>>, vector<1x64xf32>,
    %c60 = arith.constant 60 : index
    %c0_195 = arith.constant 0 : index
    %197 = vector.load %arg15[%c60, %c0_195] : memref<352x64xf32, #tpu.memory_space<vmem>>, vector<1x64xf32>
    %c0_196 = arith.constant 0 : index
    %c2560 = arith.constant 2560 : index
    %198 = vector.load %arg16[%c0_196, %c2560] : memref<3x3136xf32, #tpu.memory_space<vmem>>, vector<1x64xf32>
    tpu.vector_store %arg16[%c0_196, %c2560], %197 {strides = array<i32>} : memref<3x3136xf32, #tpu.memory_space<vmem>>, vector<1x64xf32>,
    %c61 = arith.constant 61 : index
    %c0_197 = arith.constant 0 : index
    %199 = vector.load %arg15[%c61, %c0_197] : memref<352x64xf32, #tpu.memory_space<vmem>>, vector<1x64xf32>
    %c0_198 = arith.constant 0 : index
    %c2624 = arith.constant 2624 : index
    %200 = vector.load %arg16[%c0_198, %c2624] : memref<3x3136xf32, #tpu.memory_space<vmem>>, vector<1x64xf32>
    tpu.vector_store %arg16[%c0_198, %c2624], %199 {strides = array<i32>} : memref<3x3136xf32, #tpu.memory_space<vmem>>, vector<1x64xf32>,
    %c66 = arith.constant 66 : index
    %c0_199 = arith.constant 0 : index
    %201 = vector.load %arg15[%c66, %c0_199] : memref<352x64xf32, #tpu.memory_space<vmem>>, vector<1x64xf32>
    %c0_200 = arith.constant 0 : index
    %c2688 = arith.constant 2688 : index
    %202 = vector.load %arg16[%c0_200, %c2688] : memref<3x3136xf32, #tpu.memory_space<vmem>>, vector<1x64xf32>
    tpu.vector_store %arg16[%c0_200, %c2688], %201 {strides = array<i32>} : memref<3x3136xf32, #tpu.memory_space<vmem>>, vector<1x64xf32>,
    %c67 = arith.constant 67 : index
    %c0_201 = arith.constant 0 : index
    %203 = vector.load %arg15[%c67, %c0_201] : memref<352x64xf32, #tpu.memory_space<vmem>>, vector<1x64xf32>
    %c0_202 = arith.constant 0 : index
    %c2752 = arith.constant 2752 : index
    %204 = vector.load %arg16[%c0_202, %c2752] : memref<3x3136xf32, #tpu.memory_space<vmem>>, vector<1x64xf32>
    tpu.vector_store %arg16[%c0_202, %c2752], %203 {strides = array<i32>} : memref<3x3136xf32, #tpu.memory_space<vmem>>, vector<1x64xf32>,
    %c68 = arith.constant 68 : index
    %c0_203 = arith.constant 0 : index
    %205 = vector.load %arg15[%c68, %c0_203] : memref<352x64xf32, #tpu.memory_space<vmem>>, vector<1x64xf32>
    %c0_204 = arith.constant 0 : index
    %c2816 = arith.constant 2816 : index
    %206 = vector.load %arg16[%c0_204, %c2816] : memref<3x3136xf32, #tpu.memory_space<vmem>>, vector<1x64xf32>
    tpu.vector_store %arg16[%c0_204, %c2816], %205 {strides = array<i32>} : memref<3x3136xf32, #tpu.memory_space<vmem>>, vector<1x64xf32>,
    %c69 = arith.constant 69 : index
    %c0_205 = arith.constant 0 : index
    %207 = vector.load %arg15[%c69, %c0_205] : memref<352x64xf32, #tpu.memory_space<vmem>>, vector<1x64xf32>
    %c0_206 = arith.constant 0 : index
    %c2880 = arith.constant 2880 : index
    %208 = vector.load %arg16[%c0_206, %c2880] : memref<3x3136xf32, #tpu.memory_space<vmem>>, vector<1x64xf32>
    tpu.vector_store %arg16[%c0_206, %c2880], %207 {strides = array<i32>} : memref<3x3136xf32, #tpu.memory_space<vmem>>, vector<1x64xf32>,
    %c70 = arith.constant 70 : index
    %c0_207 = arith.constant 0 : index
    %209 = vector.load %arg15[%c70, %c0_207] : memref<352x64xf32, #tpu.memory_space<vmem>>, vector<1x64xf32>
    %c0_208 = arith.constant 0 : index
    %c2944 = arith.constant 2944 : index
    %210 = vector.load %arg16[%c0_208, %c2944] : memref<3x3136xf32, #tpu.memory_space<vmem>>, vector<1x64xf32>
    tpu.vector_store %arg16[%c0_208, %c2944], %209 {strides = array<i32>} : memref<3x3136xf32, #tpu.memory_space<vmem>>, vector<1x64xf32>,
    %c71 = arith.constant 71 : index
    %c0_209 = arith.constant 0 : index
    %211 = vector.load %arg15[%c71, %c0_209] : memref<352x64xf32, #tpu.memory_space<vmem>>, vector<1x64xf32>
    %c0_210 = arith.constant 0 : index
    %c3008 = arith.constant 3008 : index
    %212 = vector.load %arg16[%c0_210, %c3008] : memref<3x3136xf32, #tpu.memory_space<vmem>>, vector<1x64xf32>
    tpu.vector_store %arg16[%c0_210, %c3008], %211 {strides = array<i32>} : memref<3x3136xf32, #tpu.memory_space<vmem>>, vector<1x64xf32>,
    %c72 = arith.constant 72 : index
    %c0_211 = arith.constant 0 : index
    %213 = vector.load %arg15[%c72, %c0_211] : memref<352x64xf32, #tpu.memory_space<vmem>>, vector<1x64xf32>
    %c0_212 = arith.constant 0 : index
    %c3072 = arith.constant 3072 : index
    %214 = vector.load %arg16[%c0_212, %c3072] : memref<3x3136xf32, #tpu.memory_space<vmem>>, vector<1x64xf32>
    tpu.vector_store %arg16[%c0_212, %c3072], %213 {strides = array<i32>} : memref<3x3136xf32, #tpu.memory_space<vmem>>, vector<1x64xf32>,
    %c136 = arith.constant 136 : index
    %c0_213 = arith.constant 0 : index
    %215 = vector.load %arg15[%c136, %c0_213] : memref<352x64xf32, #tpu.memory_space<vmem>>, vector<1x64xf32>
    %c1_214 = arith.constant 1 : index
    %c0_215 = arith.constant 0 : index
    %216 = vector.load %arg16[%c1_214, %c0_215] : memref<3x3136xf32, #tpu.memory_space<vmem>>, vector<1x64xf32>
    tpu.vector_store %arg16[%c1_214, %c0_215], %215 {strides = array<i32>} : memref<3x3136xf32, #tpu.memory_space<vmem>>, vector<1x64xf32>,
    %c137 = arith.constant 137 : index
    %c0_216 = arith.constant 0 : index
    %217 = vector.load %arg15[%c137, %c0_216] : memref<352x64xf32, #tpu.memory_space<vmem>>, vector<1x64xf32>
    %c1_217 = arith.constant 1 : index
    %c64_218 = arith.constant 64 : index
    %218 = vector.load %arg16[%c1_217, %c64_218] : memref<3x3136xf32, #tpu.memory_space<vmem>>, vector<1x64xf32>
    tpu.vector_store %arg16[%c1_217, %c64_218], %217 {strides = array<i32>} : memref<3x3136xf32, #tpu.memory_space<vmem>>, vector<1x64xf32>,
    %c138 = arith.constant 138 : index
    %c0_219 = arith.constant 0 : index
    %219 = vector.load %arg15[%c138, %c0_219] : memref<352x64xf32, #tpu.memory_space<vmem>>, vector<1x64xf32>
    %c1_220 = arith.constant 1 : index
    %c128_221 = arith.constant 128 : index
    %220 = vector.load %arg16[%c1_220, %c128_221] : memref<3x3136xf32, #tpu.memory_space<vmem>>, vector<1x64xf32>
    tpu.vector_store %arg16[%c1_220, %c128_221], %219 {strides = array<i32>} : memref<3x3136xf32, #tpu.memory_space<vmem>>, vector<1x64xf32>,
    %c139 = arith.constant 139 : index
    %c0_222 = arith.constant 0 : index
    %221 = vector.load %arg15[%c139, %c0_222] : memref<352x64xf32, #tpu.memory_space<vmem>>, vector<1x64xf32>
    %c1_223 = arith.constant 1 : index
    %c192_224 = arith.constant 192 : index
    %222 = vector.load %arg16[%c1_223, %c192_224] : memref<3x3136xf32, #tpu.memory_space<vmem>>, vector<1x64xf32>
    tpu.vector_store %arg16[%c1_223, %c192_224], %221 {strides = array<i32>} : memref<3x3136xf32, #tpu.memory_space<vmem>>, vector<1x64xf32>,
    %c140 = arith.constant 140 : index
    %c0_225 = arith.constant 0 : index
    %223 = vector.load %arg15[%c140, %c0_225] : memref<352x64xf32, #tpu.memory_space<vmem>>, vector<1x64xf32>
    %c1_226 = arith.constant 1 : index
    %c256_227 = arith.constant 256 : index
    %224 = vector.load %arg16[%c1_226, %c256_227] : memref<3x3136xf32, #tpu.memory_space<vmem>>, vector<1x64xf32>
    tpu.vector_store %arg16[%c1_226, %c256_227], %223 {strides = array<i32>} : memref<3x3136xf32, #tpu.memory_space<vmem>>, vector<1x64xf32>,
    %c141 = arith.constant 141 : index
    %c0_228 = arith.constant 0 : index
    %225 = vector.load %arg15[%c141, %c0_228] : memref<352x64xf32, #tpu.memory_space<vmem>>, vector<1x64xf32>
    %c1_229 = arith.constant 1 : index
    %c320_230 = arith.constant 320 : index
    %226 = vector.load %arg16[%c1_229, %c320_230] : memref<3x3136xf32, #tpu.memory_space<vmem>>, vector<1x64xf32>
    tpu.vector_store %arg16[%c1_229, %c320_230], %225 {strides = array<i32>} : memref<3x3136xf32, #tpu.memory_space<vmem>>, vector<1x64xf32>,
    %c142 = arith.constant 142 : index
    %c0_231 = arith.constant 0 : index
    %227 = vector.load %arg15[%c142, %c0_231] : memref<352x64xf32, #tpu.memory_space<vmem>>, vector<1x64xf32>
    %c1_232 = arith.constant 1 : index
    %c384_233 = arith.constant 384 : index
    %228 = vector.load %arg16[%c1_232, %c384_233] : memref<3x3136xf32, #tpu.memory_space<vmem>>, vector<1x64xf32>
    tpu.vector_store %arg16[%c1_232, %c384_233], %227 {strides = array<i32>} : memref<3x3136xf32, #tpu.memory_space<vmem>>, vector<1x64xf32>,
    %c147 = arith.constant 147 : index
    %c0_234 = arith.constant 0 : index
    %229 = vector.load %arg15[%c147, %c0_234] : memref<352x64xf32, #tpu.memory_space<vmem>>, vector<1x64xf32>
    %c1_235 = arith.constant 1 : index
    %c448_236 = arith.constant 448 : index
    %230 = vector.load %arg16[%c1_235, %c448_236] : memref<3x3136xf32, #tpu.memory_space<vmem>>, vector<1x64xf32>
    tpu.vector_store %arg16[%c1_235, %c448_236], %229 {strides = array<i32>} : memref<3x3136xf32, #tpu.memory_space<vmem>>, vector<1x64xf32>,
    %c148 = arith.constant 148 : index
    %c0_237 = arith.constant 0 : index
    %231 = vector.load %arg15[%c148, %c0_237] : memref<352x64xf32, #tpu.memory_space<vmem>>, vector<1x64xf32>
    %c1_238 = arith.constant 1 : index
    %c512_239 = arith.constant 512 : index
    %232 = vector.load %arg16[%c1_238, %c512_239] : memref<3x3136xf32, #tpu.memory_space<vmem>>, vector<1x64xf32>
    tpu.vector_store %arg16[%c1_238, %c512_239], %231 {strides = array<i32>} : memref<3x3136xf32, #tpu.memory_space<vmem>>, vector<1x64xf32>,
    %c149 = arith.constant 149 : index
    %c0_240 = arith.constant 0 : index
    %233 = vector.load %arg15[%c149, %c0_240] : memref<352x64xf32, #tpu.memory_space<vmem>>, vector<1x64xf32>
    %c1_241 = arith.constant 1 : index
    %c576_242 = arith.constant 576 : index
    %234 = vector.load %arg16[%c1_241, %c576_242] : memref<3x3136xf32, #tpu.memory_space<vmem>>, vector<1x64xf32>
    tpu.vector_store %arg16[%c1_241, %c576_242], %233 {strides = array<i32>} : memref<3x3136xf32, #tpu.memory_space<vmem>>, vector<1x64xf32>,
    %c150 = arith.constant 150 : index
    %c0_243 = arith.constant 0 : index
    %235 = vector.load %arg15[%c150, %c0_243] : memref<352x64xf32, #tpu.memory_space<vmem>>, vector<1x64xf32>
    %c1_244 = arith.constant 1 : index
    %c640_245 = arith.constant 640 : index
    %236 = vector.load %arg16[%c1_244, %c640_245] : memref<3x3136xf32, #tpu.memory_space<vmem>>, vector<1x64xf32>
    tpu.vector_store %arg16[%c1_244, %c640_245], %235 {strides = array<i32>} : memref<3x3136xf32, #tpu.memory_space<vmem>>, vector<1x64xf32>,
    %c151 = arith.constant 151 : index
    %c0_246 = arith.constant 0 : index
    %237 = vector.load %arg15[%c151, %c0_246] : memref<352x64xf32, #tpu.memory_space<vmem>>, vector<1x64xf32>
    %c1_247 = arith.constant 1 : index
    %c704_248 = arith.constant 704 : index
    %238 = vector.load %arg16[%c1_247, %c704_248] : memref<3x3136xf32, #tpu.memory_space<vmem>>, vector<1x64xf32>
    tpu.vector_store %arg16[%c1_247, %c704_248], %237 {strides = array<i32>} : memref<3x3136xf32, #tpu.memory_space<vmem>>, vector<1x64xf32>,
    %c152 = arith.constant 152 : index
    %c0_249 = arith.constant 0 : index
    %239 = vector.load %arg15[%c152, %c0_249] : memref<352x64xf32, #tpu.memory_space<vmem>>, vector<1x64xf32>
    %c1_250 = arith.constant 1 : index
    %c768_251 = arith.constant 768 : index
    %240 = vector.load %arg16[%c1_250, %c768_251] : memref<3x3136xf32, #tpu.memory_space<vmem>>, vector<1x64xf32>
    tpu.vector_store %arg16[%c1_250, %c768_251], %239 {strides = array<i32>} : memref<3x3136xf32, #tpu.memory_space<vmem>>, vector<1x64xf32>,
    %c153 = arith.constant 153 : index
    %c0_252 = arith.constant 0 : index
    %241 = vector.load %arg15[%c153, %c0_252] : memref<352x64xf32, #tpu.memory_space<vmem>>, vector<1x64xf32>
    %c1_253 = arith.constant 1 : index
    %c832_254 = arith.constant 832 : index
    %242 = vector.load %arg16[%c1_253, %c832_254] : memref<3x3136xf32, #tpu.memory_space<vmem>>, vector<1x64xf32>
    tpu.vector_store %arg16[%c1_253, %c832_254], %241 {strides = array<i32>} : memref<3x3136xf32, #tpu.memory_space<vmem>>, vector<1x64xf32>,
    %c158 = arith.constant 158 : index
    %c0_255 = arith.constant 0 : index
    %243 = vector.load %arg15[%c158, %c0_255] : memref<352x64xf32, #tpu.memory_space<vmem>>, vector<1x64xf32>
    %c1_256 = arith.constant 1 : index
    %c896_257 = arith.constant 896 : index
    %244 = vector.load %arg16[%c1_256, %c896_257] : memref<3x3136xf32, #tpu.memory_space<vmem>>, vector<1x64xf32>
    tpu.vector_store %arg16[%c1_256, %c896_257], %243 {strides = array<i32>} : memref<3x3136xf32, #tpu.memory_space<vmem>>, vector<1x64xf32>,
    %c159 = arith.constant 159 : index
    %c0_258 = arith.constant 0 : index
    %245 = vector.load %arg15[%c159, %c0_258] : memref<352x64xf32, #tpu.memory_space<vmem>>, vector<1x64xf32>
    %c1_259 = arith.constant 1 : index
    %c960_260 = arith.constant 960 : index
    %246 = vector.load %arg16[%c1_259, %c960_260] : memref<3x3136xf32, #tpu.memory_space<vmem>>, vector<1x64xf32>
    tpu.vector_store %arg16[%c1_259, %c960_260], %245 {strides = array<i32>} : memref<3x3136xf32, #tpu.memory_space<vmem>>, vector<1x64xf32>,
    %c160 = arith.constant 160 : index
    %c0_261 = arith.constant 0 : index
    %247 = vector.load %arg15[%c160, %c0_261] : memref<352x64xf32, #tpu.memory_space<vmem>>, vector<1x64xf32>
    %c1_262 = arith.constant 1 : index
    %c1024_263 = arith.constant 1024 : index
    %248 = vector.load %arg16[%c1_262, %c1024_263] : memref<3x3136xf32, #tpu.memory_space<vmem>>, vector<1x64xf32>
    tpu.vector_store %arg16[%c1_262, %c1024_263], %247 {strides = array<i32>} : memref<3x3136xf32, #tpu.memory_space<vmem>>, vector<1x64xf32>,
    %c161 = arith.constant 161 : index
    %c0_264 = arith.constant 0 : index
    %249 = vector.load %arg15[%c161, %c0_264] : memref<352x64xf32, #tpu.memory_space<vmem>>, vector<1x64xf32>
    %c1_265 = arith.constant 1 : index
    %c1088_266 = arith.constant 1088 : index
    %250 = vector.load %arg16[%c1_265, %c1088_266] : memref<3x3136xf32, #tpu.memory_space<vmem>>, vector<1x64xf32>
    tpu.vector_store %arg16[%c1_265, %c1088_266], %249 {strides = array<i32>} : memref<3x3136xf32, #tpu.memory_space<vmem>>, vector<1x64xf32>,
    %c162 = arith.constant 162 : index
    %c0_267 = arith.constant 0 : index
    %251 = vector.load %arg15[%c162, %c0_267] : memref<352x64xf32, #tpu.memory_space<vmem>>, vector<1x64xf32>
    %c1_268 = arith.constant 1 : index
    %c1152_269 = arith.constant 1152 : index
    %252 = vector.load %arg16[%c1_268, %c1152_269] : memref<3x3136xf32, #tpu.memory_space<vmem>>, vector<1x64xf32>
    tpu.vector_store %arg16[%c1_268, %c1152_269], %251 {strides = array<i32>} : memref<3x3136xf32, #tpu.memory_space<vmem>>, vector<1x64xf32>,
    %c163 = arith.constant 163 : index
    %c0_270 = arith.constant 0 : index
    %253 = vector.load %arg15[%c163, %c0_270] : memref<352x64xf32, #tpu.memory_space<vmem>>, vector<1x64xf32>
    %c1_271 = arith.constant 1 : index
    %c1216_272 = arith.constant 1216 : index
    %254 = vector.load %arg16[%c1_271, %c1216_272] : memref<3x3136xf32, #tpu.memory_space<vmem>>, vector<1x64xf32>
    tpu.vector_store %arg16[%c1_271, %c1216_272], %253 {strides = array<i32>} : memref<3x3136xf32, #tpu.memory_space<vmem>>, vector<1x64xf32>,
    %c164 = arith.constant 164 : index
    %c0_273 = arith.constant 0 : index
    %255 = vector.load %arg15[%c164, %c0_273] : memref<352x64xf32, #tpu.memory_space<vmem>>, vector<1x64xf32>
    %c1_274 = arith.constant 1 : index
    %c1280_275 = arith.constant 1280 : index
    %256 = vector.load %arg16[%c1_274, %c1280_275] : memref<3x3136xf32, #tpu.memory_space<vmem>>, vector<1x64xf32>
    tpu.vector_store %arg16[%c1_274, %c1280_275], %255 {strides = array<i32>} : memref<3x3136xf32, #tpu.memory_space<vmem>>, vector<1x64xf32>,
    %c169 = arith.constant 169 : index
    %c0_276 = arith.constant 0 : index
    %257 = vector.load %arg15[%c169, %c0_276] : memref<352x64xf32, #tpu.memory_space<vmem>>, vector<1x64xf32>
    %c1_277 = arith.constant 1 : index
    %c1344_278 = arith.constant 1344 : index
    %258 = vector.load %arg16[%c1_277, %c1344_278] : memref<3x3136xf32, #tpu.memory_space<vmem>>, vector<1x64xf32>
    tpu.vector_store %arg16[%c1_277, %c1344_278], %257 {strides = array<i32>} : memref<3x3136xf32, #tpu.memory_space<vmem>>, vector<1x64xf32>,
    %c170 = arith.constant 170 : index
    %c0_279 = arith.constant 0 : index
    %259 = vector.load %arg15[%c170, %c0_279] : memref<352x64xf32, #tpu.memory_space<vmem>>, vector<1x64xf32>
    %c1_280 = arith.constant 1 : index
    %c1408_281 = arith.constant 1408 : index
    %260 = vector.load %arg16[%c1_280, %c1408_281] : memref<3x3136xf32, #tpu.memory_space<vmem>>, vector<1x64xf32>
    tpu.vector_store %arg16[%c1_280, %c1408_281], %259 {strides = array<i32>} : memref<3x3136xf32, #tpu.memory_space<vmem>>, vector<1x64xf32>,
    %c171 = arith.constant 171 : index
    %c0_282 = arith.constant 0 : index
    %261 = vector.load %arg15[%c171, %c0_282] : memref<352x64xf32, #tpu.memory_space<vmem>>, vector<1x64xf32>
    %c1_283 = arith.constant 1 : index
    %c1472_284 = arith.constant 1472 : index
    %262 = vector.load %arg16[%c1_283, %c1472_284] : memref<3x3136xf32, #tpu.memory_space<vmem>>, vector<1x64xf32>
    tpu.vector_store %arg16[%c1_283, %c1472_284], %261 {strides = array<i32>} : memref<3x3136xf32, #tpu.memory_space<vmem>>, vector<1x64xf32>,
    %c172 = arith.constant 172 : index
    %c0_285 = arith.constant 0 : index
    %263 = vector.load %arg15[%c172, %c0_285] : memref<352x64xf32, #tpu.memory_space<vmem>>, vector<1x64xf32>
    %c1_286 = arith.constant 1 : index
    %c1536_287 = arith.constant 1536 : index
    %264 = vector.load %arg16[%c1_286, %c1536_287] : memref<3x3136xf32, #tpu.memory_space<vmem>>, vector<1x64xf32>
    tpu.vector_store %arg16[%c1_286, %c1536_287], %263 {strides = array<i32>} : memref<3x3136xf32, #tpu.memory_space<vmem>>, vector<1x64xf32>,
    %c173 = arith.constant 173 : index
    %c0_288 = arith.constant 0 : index
    %265 = vector.load %arg15[%c173, %c0_288] : memref<352x64xf32, #tpu.memory_space<vmem>>, vector<1x64xf32>
    %c1_289 = arith.constant 1 : index
    %c1600_290 = arith.constant 1600 : index
    %266 = vector.load %arg16[%c1_289, %c1600_290] : memref<3x3136xf32, #tpu.memory_space<vmem>>, vector<1x64xf32>
    tpu.vector_store %arg16[%c1_289, %c1600_290], %265 {strides = array<i32>} : memref<3x3136xf32, #tpu.memory_space<vmem>>, vector<1x64xf32>,
    %c174 = arith.constant 174 : index
    %c0_291 = arith.constant 0 : index
    %267 = vector.load %arg15[%c174, %c0_291] : memref<352x64xf32, #tpu.memory_space<vmem>>, vector<1x64xf32>
    %c1_292 = arith.constant 1 : index
    %c1664_293 = arith.constant 1664 : index
    %268 = vector.load %arg16[%c1_292, %c1664_293] : memref<3x3136xf32, #tpu.memory_space<vmem>>, vector<1x64xf32>
    tpu.vector_store %arg16[%c1_292, %c1664_293], %267 {strides = array<i32>} : memref<3x3136xf32, #tpu.memory_space<vmem>>, vector<1x64xf32>,
    %c175 = arith.constant 175 : index
    %c0_294 = arith.constant 0 : index
    %269 = vector.load %arg15[%c175, %c0_294] : memref<352x64xf32, #tpu.memory_space<vmem>>, vector<1x64xf32>
    %c1_295 = arith.constant 1 : index
    %c1728_296 = arith.constant 1728 : index
    %270 = vector.load %arg16[%c1_295, %c1728_296] : memref<3x3136xf32, #tpu.memory_space<vmem>>, vector<1x64xf32>
    tpu.vector_store %arg16[%c1_295, %c1728_296], %269 {strides = array<i32>} : memref<3x3136xf32, #tpu.memory_space<vmem>>, vector<1x64xf32>,
    %c180 = arith.constant 180 : index
    %c0_297 = arith.constant 0 : index
    %271 = vector.load %arg15[%c180, %c0_297] : memref<352x64xf32, #tpu.memory_space<vmem>>, vector<1x64xf32>
    %c1_298 = arith.constant 1 : index
    %c1792_299 = arith.constant 1792 : index
    %272 = vector.load %arg16[%c1_298, %c1792_299] : memref<3x3136xf32, #tpu.memory_space<vmem>>, vector<1x64xf32>
    tpu.vector_store %arg16[%c1_298, %c1792_299], %271 {strides = array<i32>} : memref<3x3136xf32, #tpu.memory_space<vmem>>, vector<1x64xf32>,
    %c181 = arith.constant 181 : index
    %c0_300 = arith.constant 0 : index
    %273 = vector.load %arg15[%c181, %c0_300] : memref<352x64xf32, #tpu.memory_space<vmem>>, vector<1x64xf32>
    %c1_301 = arith.constant 1 : index
    %c1856_302 = arith.constant 1856 : index
    %274 = vector.load %arg16[%c1_301, %c1856_302] : memref<3x3136xf32, #tpu.memory_space<vmem>>, vector<1x64xf32>
    tpu.vector_store %arg16[%c1_301, %c1856_302], %273 {strides = array<i32>} : memref<3x3136xf32, #tpu.memory_space<vmem>>, vector<1x64xf32>,
    %c182 = arith.constant 182 : index
    %c0_303 = arith.constant 0 : index
    %275 = vector.load %arg15[%c182, %c0_303] : memref<352x64xf32, #tpu.memory_space<vmem>>, vector<1x64xf32>
    %c1_304 = arith.constant 1 : index
    %c1920_305 = arith.constant 1920 : index
    %276 = vector.load %arg16[%c1_304, %c1920_305] : memref<3x3136xf32, #tpu.memory_space<vmem>>, vector<1x64xf32>
    tpu.vector_store %arg16[%c1_304, %c1920_305], %275 {strides = array<i32>} : memref<3x3136xf32, #tpu.memory_space<vmem>>, vector<1x64xf32>,
    %c183 = arith.constant 183 : index
    %c0_306 = arith.constant 0 : index
    %277 = vector.load %arg15[%c183, %c0_306] : memref<352x64xf32, #tpu.memory_space<vmem>>, vector<1x64xf32>
    %c1_307 = arith.constant 1 : index
    %c1984_308 = arith.constant 1984 : index
    %278 = vector.load %arg16[%c1_307, %c1984_308] : memref<3x3136xf32, #tpu.memory_space<vmem>>, vector<1x64xf32>
    tpu.vector_store %arg16[%c1_307, %c1984_308], %277 {strides = array<i32>} : memref<3x3136xf32, #tpu.memory_space<vmem>>, vector<1x64xf32>,
    %c184 = arith.constant 184 : index
    %c0_309 = arith.constant 0 : index
    %279 = vector.load %arg15[%c184, %c0_309] : memref<352x64xf32, #tpu.memory_space<vmem>>, vector<1x64xf32>
    %c1_310 = arith.constant 1 : index
    %c2048_311 = arith.constant 2048 : index
    %280 = vector.load %arg16[%c1_310, %c2048_311] : memref<3x3136xf32, #tpu.memory_space<vmem>>, vector<1x64xf32>
    tpu.vector_store %arg16[%c1_310, %c2048_311], %279 {strides = array<i32>} : memref<3x3136xf32, #tpu.memory_space<vmem>>, vector<1x64xf32>,
    %c185 = arith.constant 185 : index
    %c0_312 = arith.constant 0 : index
    %281 = vector.load %arg15[%c185, %c0_312] : memref<352x64xf32, #tpu.memory_space<vmem>>, vector<1x64xf32>
    %c1_313 = arith.constant 1 : index
    %c2112_314 = arith.constant 2112 : index
    %282 = vector.load %arg16[%c1_313, %c2112_314] : memref<3x3136xf32, #tpu.memory_space<vmem>>, vector<1x64xf32>
    tpu.vector_store %arg16[%c1_313, %c2112_314], %281 {strides = array<i32>} : memref<3x3136xf32, #tpu.memory_space<vmem>>, vector<1x64xf32>,
    %c186 = arith.constant 186 : index
    %c0_315 = arith.constant 0 : index
    %283 = vector.load %arg15[%c186, %c0_315] : memref<352x64xf32, #tpu.memory_space<vmem>>, vector<1x64xf32>
    %c1_316 = arith.constant 1 : index
    %c2176_317 = arith.constant 2176 : index
    %284 = vector.load %arg16[%c1_316, %c2176_317] : memref<3x3136xf32, #tpu.memory_space<vmem>>, vector<1x64xf32>
    tpu.vector_store %arg16[%c1_316, %c2176_317], %283 {strides = array<i32>} : memref<3x3136xf32, #tpu.memory_space<vmem>>, vector<1x64xf32>,
    %c191 = arith.constant 191 : index
    %c0_318 = arith.constant 0 : index
    %285 = vector.load %arg15[%c191, %c0_318] : memref<352x64xf32, #tpu.memory_space<vmem>>, vector<1x64xf32>
    %c1_319 = arith.constant 1 : index
    %c2240_320 = arith.constant 2240 : index
    %286 = vector.load %arg16[%c1_319, %c2240_320] : memref<3x3136xf32, #tpu.memory_space<vmem>>, vector<1x64xf32>
    tpu.vector_store %arg16[%c1_319, %c2240_320], %285 {strides = array<i32>} : memref<3x3136xf32, #tpu.memory_space<vmem>>, vector<1x64xf32>,
    %c192_321 = arith.constant 192 : index
    %c0_322 = arith.constant 0 : index
    %287 = vector.load %arg15[%c192_321, %c0_322] : memref<352x64xf32, #tpu.memory_space<vmem>>, vector<1x64xf32>
    %c1_323 = arith.constant 1 : index
    %c2304_324 = arith.constant 2304 : index
    %288 = vector.load %arg16[%c1_323, %c2304_324] : memref<3x3136xf32, #tpu.memory_space<vmem>>, vector<1x64xf32>
    tpu.vector_store %arg16[%c1_323, %c2304_324], %287 {strides = array<i32>} : memref<3x3136xf32, #tpu.memory_space<vmem>>, vector<1x64xf32>,
    %c193 = arith.constant 193 : index
    %c0_325 = arith.constant 0 : index
    %289 = vector.load %arg15[%c193, %c0_325] : memref<352x64xf32, #tpu.memory_space<vmem>>, vector<1x64xf32>
    %c1_326 = arith.constant 1 : index
    %c2368_327 = arith.constant 2368 : index
    %290 = vector.load %arg16[%c1_326, %c2368_327] : memref<3x3136xf32, #tpu.memory_space<vmem>>, vector<1x64xf32>
    tpu.vector_store %arg16[%c1_326, %c2368_327], %289 {strides = array<i32>} : memref<3x3136xf32, #tpu.memory_space<vmem>>, vector<1x64xf32>,
    %c194 = arith.constant 194 : index
    %c0_328 = arith.constant 0 : index
    %291 = vector.load %arg15[%c194, %c0_328] : memref<352x64xf32, #tpu.memory_space<vmem>>, vector<1x64xf32>
    %c1_329 = arith.constant 1 : index
    %c2432_330 = arith.constant 2432 : index
    %292 = vector.load %arg16[%c1_329, %c2432_330] : memref<3x3136xf32, #tpu.memory_space<vmem>>, vector<1x64xf32>
    tpu.vector_store %arg16[%c1_329, %c2432_330], %291 {strides = array<i32>} : memref<3x3136xf32, #tpu.memory_space<vmem>>, vector<1x64xf32>,
    %c195 = arith.constant 195 : index
    %c0_331 = arith.constant 0 : index
    %293 = vector.load %arg15[%c195, %c0_331] : memref<352x64xf32, #tpu.memory_space<vmem>>, vector<1x64xf32>
    %c1_332 = arith.constant 1 : index
    %c2496_333 = arith.constant 2496 : index
    %294 = vector.load %arg16[%c1_332, %c2496_333] : memref<3x3136xf32, #tpu.memory_space<vmem>>, vector<1x64xf32>
    tpu.vector_store %arg16[%c1_332, %c2496_333], %293 {strides = array<i32>} : memref<3x3136xf32, #tpu.memory_space<vmem>>, vector<1x64xf32>,
    %c196 = arith.constant 196 : index
    %c0_334 = arith.constant 0 : index
    %295 = vector.load %arg15[%c196, %c0_334] : memref<352x64xf32, #tpu.memory_space<vmem>>, vector<1x64xf32>
    %c1_335 = arith.constant 1 : index
    %c2560_336 = arith.constant 2560 : index
    %296 = vector.load %arg16[%c1_335, %c2560_336] : memref<3x3136xf32, #tpu.memory_space<vmem>>, vector<1x64xf32>
    tpu.vector_store %arg16[%c1_335, %c2560_336], %295 {strides = array<i32>} : memref<3x3136xf32, #tpu.memory_space<vmem>>, vector<1x64xf32>,
    %c197 = arith.constant 197 : index
    %c0_337 = arith.constant 0 : index
    %297 = vector.load %arg15[%c197, %c0_337] : memref<352x64xf32, #tpu.memory_space<vmem>>, vector<1x64xf32>
    %c1_338 = arith.constant 1 : index
    %c2624_339 = arith.constant 2624 : index
    %298 = vector.load %arg16[%c1_338, %c2624_339] : memref<3x3136xf32, #tpu.memory_space<vmem>>, vector<1x64xf32>
    tpu.vector_store %arg16[%c1_338, %c2624_339], %297 {strides = array<i32>} : memref<3x3136xf32, #tpu.memory_space<vmem>>, vector<1x64xf32>,
    %c202 = arith.constant 202 : index
    %c0_340 = arith.constant 0 : index
    %299 = vector.load %arg15[%c202, %c0_340] : memref<352x64xf32, #tpu.memory_space<vmem>>, vector<1x64xf32>
    %c1_341 = arith.constant 1 : index
    %c2688_342 = arith.constant 2688 : index
    %300 = vector.load %arg16[%c1_341, %c2688_342] : memref<3x3136xf32, #tpu.memory_space<vmem>>, vector<1x64xf32>
    tpu.vector_store %arg16[%c1_341, %c2688_342], %299 {strides = array<i32>} : memref<3x3136xf32, #tpu.memory_space<vmem>>, vector<1x64xf32>,
    %c203 = arith.constant 203 : index
    %c0_343 = arith.constant 0 : index
    %301 = vector.load %arg15[%c203, %c0_343] : memref<352x64xf32, #tpu.memory_space<vmem>>, vector<1x64xf32>
    %c1_344 = arith.constant 1 : index
    %c2752_345 = arith.constant 2752 : index
    %302 = vector.load %arg16[%c1_344, %c2752_345] : memref<3x3136xf32, #tpu.memory_space<vmem>>, vector<1x64xf32>
    tpu.vector_store %arg16[%c1_344, %c2752_345], %301 {strides = array<i32>} : memref<3x3136xf32, #tpu.memory_space<vmem>>, vector<1x64xf32>,
    %c204 = arith.constant 204 : index
    %c0_346 = arith.constant 0 : index
    %303 = vector.load %arg15[%c204, %c0_346] : memref<352x64xf32, #tpu.memory_space<vmem>>, vector<1x64xf32>
    %c1_347 = arith.constant 1 : index
    %c2816_348 = arith.constant 2816 : index
    %304 = vector.load %arg16[%c1_347, %c2816_348] : memref<3x3136xf32, #tpu.memory_space<vmem>>, vector<1x64xf32>
    tpu.vector_store %arg16[%c1_347, %c2816_348], %303 {strides = array<i32>} : memref<3x3136xf32, #tpu.memory_space<vmem>>, vector<1x64xf32>,
    %c205 = arith.constant 205 : index
    %c0_349 = arith.constant 0 : index
    %305 = vector.load %arg15[%c205, %c0_349] : memref<352x64xf32, #tpu.memory_space<vmem>>, vector<1x64xf32>
    %c1_350 = arith.constant 1 : index
    %c2880_351 = arith.constant 2880 : index
    %306 = vector.load %arg16[%c1_350, %c2880_351] : memref<3x3136xf32, #tpu.memory_space<vmem>>, vector<1x64xf32>
    tpu.vector_store %arg16[%c1_350, %c2880_351], %305 {strides = array<i32>} : memref<3x3136xf32, #tpu.memory_space<vmem>>, vector<1x64xf32>,
    %c206 = arith.constant 206 : index
    %c0_352 = arith.constant 0 : index
    %307 = vector.load %arg15[%c206, %c0_352] : memref<352x64xf32, #tpu.memory_space<vmem>>, vector<1x64xf32>
    %c1_353 = arith.constant 1 : index
    %c2944_354 = arith.constant 2944 : index
    %308 = vector.load %arg16[%c1_353, %c2944_354] : memref<3x3136xf32, #tpu.memory_space<vmem>>, vector<1x64xf32>
    tpu.vector_store %arg16[%c1_353, %c2944_354], %307 {strides = array<i32>} : memref<3x3136xf32, #tpu.memory_space<vmem>>, vector<1x64xf32>,
    %c207 = arith.constant 207 : index
    %c0_355 = arith.constant 0 : index
    %309 = vector.load %arg15[%c207, %c0_355] : memref<352x64xf32, #tpu.memory_space<vmem>>, vector<1x64xf32>
    %c1_356 = arith.constant 1 : index
    %c3008_357 = arith.constant 3008 : index
    %310 = vector.load %arg16[%c1_356, %c3008_357] : memref<3x3136xf32, #tpu.memory_space<vmem>>, vector<1x64xf32>
    tpu.vector_store %arg16[%c1_356, %c3008_357], %309 {strides = array<i32>} : memref<3x3136xf32, #tpu.memory_space<vmem>>, vector<1x64xf32>,
    %c208 = arith.constant 208 : index
    %c0_358 = arith.constant 0 : index
    %311 = vector.load %arg15[%c208, %c0_358] : memref<352x64xf32, #tpu.memory_space<vmem>>, vector<1x64xf32>
    %c1_359 = arith.constant 1 : index
    %c3072_360 = arith.constant 3072 : index
    %312 = vector.load %arg16[%c1_359, %c3072_360] : memref<3x3136xf32, #tpu.memory_space<vmem>>, vector<1x64xf32>
    tpu.vector_store %arg16[%c1_359, %c3072_360], %311 {strides = array<i32>} : memref<3x3136xf32, #tpu.memory_space<vmem>>, vector<1x64xf32>,
    %c272 = arith.constant 272 : index
    %c0_361 = arith.constant 0 : index
    %313 = vector.load %arg15[%c272, %c0_361] : memref<352x64xf32, #tpu.memory_space<vmem>>, vector<1x64xf32>
    %c2_362 = arith.constant 2 : index
    %c0_363 = arith.constant 0 : index
    %314 = vector.load %arg16[%c2_362, %c0_363] : memref<3x3136xf32, #tpu.memory_space<vmem>>, vector<1x64xf32>
    tpu.vector_store %arg16[%c2_362, %c0_363], %313 {strides = array<i32>} : memref<3x3136xf32, #tpu.memory_space<vmem>>, vector<1x64xf32>,
    %c273 = arith.constant 273 : index
    %c0_364 = arith.constant 0 : index
    %315 = vector.load %arg15[%c273, %c0_364] : memref<352x64xf32, #tpu.memory_space<vmem>>, vector<1x64xf32>
    %c2_365 = arith.constant 2 : index
    %c64_366 = arith.constant 64 : index
    %316 = vector.load %arg16[%c2_365, %c64_366] : memref<3x3136xf32, #tpu.memory_space<vmem>>, vector<1x64xf32>
    tpu.vector_store %arg16[%c2_365, %c64_366], %315 {strides = array<i32>} : memref<3x3136xf32, #tpu.memory_space<vmem>>, vector<1x64xf32>,
    %c274 = arith.constant 274 : index
    %c0_367 = arith.constant 0 : index
    %317 = vector.load %arg15[%c274, %c0_367] : memref<352x64xf32, #tpu.memory_space<vmem>>, vector<1x64xf32>
    %c2_368 = arith.constant 2 : index
    %c128_369 = arith.constant 128 : index
    %318 = vector.load %arg16[%c2_368, %c128_369] : memref<3x3136xf32, #tpu.memory_space<vmem>>, vector<1x64xf32>
    tpu.vector_store %arg16[%c2_368, %c128_369], %317 {strides = array<i32>} : memref<3x3136xf32, #tpu.memory_space<vmem>>, vector<1x64xf32>,
    %c275 = arith.constant 275 : index
    %c0_370 = arith.constant 0 : index
    %319 = vector.load %arg15[%c275, %c0_370] : memref<352x64xf32, #tpu.memory_space<vmem>>, vector<1x64xf32>
    %c2_371 = arith.constant 2 : index
    %c192_372 = arith.constant 192 : index
    %320 = vector.load %arg16[%c2_371, %c192_372] : memref<3x3136xf32, #tpu.memory_space<vmem>>, vector<1x64xf32>
    tpu.vector_store %arg16[%c2_371, %c192_372], %319 {strides = array<i32>} : memref<3x3136xf32, #tpu.memory_space<vmem>>, vector<1x64xf32>,
    %c276 = arith.constant 276 : index
    %c0_373 = arith.constant 0 : index
    %321 = vector.load %arg15[%c276, %c0_373] : memref<352x64xf32, #tpu.memory_space<vmem>>, vector<1x64xf32>
    %c2_374 = arith.constant 2 : index
    %c256_375 = arith.constant 256 : index
    %322 = vector.load %arg16[%c2_374, %c256_375] : memref<3x3136xf32, #tpu.memory_space<vmem>>, vector<1x64xf32>
    tpu.vector_store %arg16[%c2_374, %c256_375], %321 {strides = array<i32>} : memref<3x3136xf32, #tpu.memory_space<vmem>>, vector<1x64xf32>,
    %c277 = arith.constant 277 : index
    %c0_376 = arith.constant 0 : index
    %323 = vector.load %arg15[%c277, %c0_376] : memref<352x64xf32, #tpu.memory_space<vmem>>, vector<1x64xf32>
    %c2_377 = arith.constant 2 : index
    %c320_378 = arith.constant 320 : index
    %324 = vector.load %arg16[%c2_377, %c320_378] : memref<3x3136xf32, #tpu.memory_space<vmem>>, vector<1x64xf32>
    tpu.vector_store %arg16[%c2_377, %c320_378], %323 {strides = array<i32>} : memref<3x3136xf32, #tpu.memory_space<vmem>>, vector<1x64xf32>,
    %c278 = arith.constant 278 : index
    %c0_379 = arith.constant 0 : index
    %325 = vector.load %arg15[%c278, %c0_379] : memref<352x64xf32, #tpu.memory_space<vmem>>, vector<1x64xf32>
    %c2_380 = arith.constant 2 : index
    %c384_381 = arith.constant 384 : index
    %326 = vector.load %arg16[%c2_380, %c384_381] : memref<3x3136xf32, #tpu.memory_space<vmem>>, vector<1x64xf32>
    tpu.vector_store %arg16[%c2_380, %c384_381], %325 {strides = array<i32>} : memref<3x3136xf32, #tpu.memory_space<vmem>>, vector<1x64xf32>,
    %c283 = arith.constant 283 : index
    %c0_382 = arith.constant 0 : index
    %327 = vector.load %arg15[%c283, %c0_382] : memref<352x64xf32, #tpu.memory_space<vmem>>, vector<1x64xf32>
    %c2_383 = arith.constant 2 : index
    %c448_384 = arith.constant 448 : index
    %328 = vector.load %arg16[%c2_383, %c448_384] : memref<3x3136xf32, #tpu.memory_space<vmem>>, vector<1x64xf32>
    tpu.vector_store %arg16[%c2_383, %c448_384], %327 {strides = array<i32>} : memref<3x3136xf32, #tpu.memory_space<vmem>>, vector<1x64xf32>,
    %c284 = arith.constant 284 : index
    %c0_385 = arith.constant 0 : index
    %329 = vector.load %arg15[%c284, %c0_385] : memref<352x64xf32, #tpu.memory_space<vmem>>, vector<1x64xf32>
    %c2_386 = arith.constant 2 : index
    %c512_387 = arith.constant 512 : index
    %330 = vector.load %arg16[%c2_386, %c512_387] : memref<3x3136xf32, #tpu.memory_space<vmem>>, vector<1x64xf32>
    tpu.vector_store %arg16[%c2_386, %c512_387], %329 {strides = array<i32>} : memref<3x3136xf32, #tpu.memory_space<vmem>>, vector<1x64xf32>,
    %c285 = arith.constant 285 : index
    %c0_388 = arith.constant 0 : index
    %331 = vector.load %arg15[%c285, %c0_388] : memref<352x64xf32, #tpu.memory_space<vmem>>, vector<1x64xf32>
    %c2_389 = arith.constant 2 : index
    %c576_390 = arith.constant 576 : index
    %332 = vector.load %arg16[%c2_389, %c576_390] : memref<3x3136xf32, #tpu.memory_space<vmem>>, vector<1x64xf32>
    tpu.vector_store %arg16[%c2_389, %c576_390], %331 {strides = array<i32>} : memref<3x3136xf32, #tpu.memory_space<vmem>>, vector<1x64xf32>,
    %c286 = arith.constant 286 : index
    %c0_391 = arith.constant 0 : index
    %333 = vector.load %arg15[%c286, %c0_391] : memref<352x64xf32, #tpu.memory_space<vmem>>, vector<1x64xf32>
    %c2_392 = arith.constant 2 : index
    %c640_393 = arith.constant 640 : index
    %334 = vector.load %arg16[%c2_392, %c640_393] : memref<3x3136xf32, #tpu.memory_space<vmem>>, vector<1x64xf32>
    tpu.vector_store %arg16[%c2_392, %c640_393], %333 {strides = array<i32>} : memref<3x3136xf32, #tpu.memory_space<vmem>>, vector<1x64xf32>,
    %c287 = arith.constant 287 : index
    %c0_394 = arith.constant 0 : index
    %335 = vector.load %arg15[%c287, %c0_394] : memref<352x64xf32, #tpu.memory_space<vmem>>, vector<1x64xf32>
    %c2_395 = arith.constant 2 : index
    %c704_396 = arith.constant 704 : index
    %336 = vector.load %arg16[%c2_395, %c704_396] : memref<3x3136xf32, #tpu.memory_space<vmem>>, vector<1x64xf32>
    tpu.vector_store %arg16[%c2_395, %c704_396], %335 {strides = array<i32>} : memref<3x3136xf32, #tpu.memory_space<vmem>>, vector<1x64xf32>,
    %c288 = arith.constant 288 : index
    %c0_397 = arith.constant 0 : index
    %337 = vector.load %arg15[%c288, %c0_397] : memref<352x64xf32, #tpu.memory_space<vmem>>, vector<1x64xf32>
    %c2_398 = arith.constant 2 : index
    %c768_399 = arith.constant 768 : index
    %338 = vector.load %arg16[%c2_398, %c768_399] : memref<3x3136xf32, #tpu.memory_space<vmem>>, vector<1x64xf32>
    tpu.vector_store %arg16[%c2_398, %c768_399], %337 {strides = array<i32>} : memref<3x3136xf32, #tpu.memory_space<vmem>>, vector<1x64xf32>,
    %c289 = arith.constant 289 : index
    %c0_400 = arith.constant 0 : index
    %339 = vector.load %arg15[%c289, %c0_400] : memref<352x64xf32, #tpu.memory_space<vmem>>, vector<1x64xf32>
    %c2_401 = arith.constant 2 : index
    %c832_402 = arith.constant 832 : index
    %340 = vector.load %arg16[%c2_401, %c832_402] : memref<3x3136xf32, #tpu.memory_space<vmem>>, vector<1x64xf32>
    tpu.vector_store %arg16[%c2_401, %c832_402], %339 {strides = array<i32>} : memref<3x3136xf32, #tpu.memory_space<vmem>>, vector<1x64xf32>,
    %c294 = arith.constant 294 : index
    %c0_403 = arith.constant 0 : index
    %341 = vector.load %arg15[%c294, %c0_403] : memref<352x64xf32, #tpu.memory_space<vmem>>, vector<1x64xf32>
    %c2_404 = arith.constant 2 : index
    %c896_405 = arith.constant 896 : index
    %342 = vector.load %arg16[%c2_404, %c896_405] : memref<3x3136xf32, #tpu.memory_space<vmem>>, vector<1x64xf32>
    tpu.vector_store %arg16[%c2_404, %c896_405], %341 {strides = array<i32>} : memref<3x3136xf32, #tpu.memory_space<vmem>>, vector<1x64xf32>,
    %c295 = arith.constant 295 : index
    %c0_406 = arith.constant 0 : index
    %343 = vector.load %arg15[%c295, %c0_406] : memref<352x64xf32, #tpu.memory_space<vmem>>, vector<1x64xf32>
    %c2_407 = arith.constant 2 : index
    %c960_408 = arith.constant 960 : index
    %344 = vector.load %arg16[%c2_407, %c960_408] : memref<3x3136xf32, #tpu.memory_space<vmem>>, vector<1x64xf32>
    tpu.vector_store %arg16[%c2_407, %c960_408], %343 {strides = array<i32>} : memref<3x3136xf32, #tpu.memory_space<vmem>>, vector<1x64xf32>,
    %c296 = arith.constant 296 : index
    %c0_409 = arith.constant 0 : index
    %345 = vector.load %arg15[%c296, %c0_409] : memref<352x64xf32, #tpu.memory_space<vmem>>, vector<1x64xf32>
    %c2_410 = arith.constant 2 : index
    %c1024_411 = arith.constant 1024 : index
    %346 = vector.load %arg16[%c2_410, %c1024_411] : memref<3x3136xf32, #tpu.memory_space<vmem>>, vector<1x64xf32>
    tpu.vector_store %arg16[%c2_410, %c1024_411], %345 {strides = array<i32>} : memref<3x3136xf32, #tpu.memory_space<vmem>>, vector<1x64xf32>,
    %c297 = arith.constant 297 : index
    %c0_412 = arith.constant 0 : index
    %347 = vector.load %arg15[%c297, %c0_412] : memref<352x64xf32, #tpu.memory_space<vmem>>, vector<1x64xf32>
    %c2_413 = arith.constant 2 : index
    %c1088_414 = arith.constant 1088 : index
    %348 = vector.load %arg16[%c2_413, %c1088_414] : memref<3x3136xf32, #tpu.memory_space<vmem>>, vector<1x64xf32>
    tpu.vector_store %arg16[%c2_413, %c1088_414], %347 {strides = array<i32>} : memref<3x3136xf32, #tpu.memory_space<vmem>>, vector<1x64xf32>,
    %c298 = arith.constant 298 : index
    %c0_415 = arith.constant 0 : index
    %349 = vector.load %arg15[%c298, %c0_415] : memref<352x64xf32, #tpu.memory_space<vmem>>, vector<1x64xf32>
    %c2_416 = arith.constant 2 : index
    %c1152_417 = arith.constant 1152 : index
    %350 = vector.load %arg16[%c2_416, %c1152_417] : memref<3x3136xf32, #tpu.memory_space<vmem>>, vector<1x64xf32>
    tpu.vector_store %arg16[%c2_416, %c1152_417], %349 {strides = array<i32>} : memref<3x3136xf32, #tpu.memory_space<vmem>>, vector<1x64xf32>,
    %c299 = arith.constant 299 : index
    %c0_418 = arith.constant 0 : index
    %351 = vector.load %arg15[%c299, %c0_418] : memref<352x64xf32, #tpu.memory_space<vmem>>, vector<1x64xf32>
    %c2_419 = arith.constant 2 : index
    %c1216_420 = arith.constant 1216 : index
    %352 = vector.load %arg16[%c2_419, %c1216_420] : memref<3x3136xf32, #tpu.memory_space<vmem>>, vector<1x64xf32>
    tpu.vector_store %arg16[%c2_419, %c1216_420], %351 {strides = array<i32>} : memref<3x3136xf32, #tpu.memory_space<vmem>>, vector<1x64xf32>,
    %c300 = arith.constant 300 : index
    %c0_421 = arith.constant 0 : index
    %353 = vector.load %arg15[%c300, %c0_421] : memref<352x64xf32, #tpu.memory_space<vmem>>, vector<1x64xf32>
    %c2_422 = arith.constant 2 : index
    %c1280_423 = arith.constant 1280 : index
    %354 = vector.load %arg16[%c2_422, %c1280_423] : memref<3x3136xf32, #tpu.memory_space<vmem>>, vector<1x64xf32>
    tpu.vector_store %arg16[%c2_422, %c1280_423], %353 {strides = array<i32>} : memref<3x3136xf32, #tpu.memory_space<vmem>>, vector<1x64xf32>,
    %c305 = arith.constant 305 : index
    %c0_424 = arith.constant 0 : index
    %355 = vector.load %arg15[%c305, %c0_424] : memref<352x64xf32, #tpu.memory_space<vmem>>, vector<1x64xf32>
    %c2_425 = arith.constant 2 : index
    %c1344_426 = arith.constant 1344 : index
    %356 = vector.load %arg16[%c2_425, %c1344_426] : memref<3x3136xf32, #tpu.memory_space<vmem>>, vector<1x64xf32>
    tpu.vector_store %arg16[%c2_425, %c1344_426], %355 {strides = array<i32>} : memref<3x3136xf32, #tpu.memory_space<vmem>>, vector<1x64xf32>,
    %c306 = arith.constant 306 : index
    %c0_427 = arith.constant 0 : index
    %357 = vector.load %arg15[%c306, %c0_427] : memref<352x64xf32, #tpu.memory_space<vmem>>, vector<1x64xf32>
    %c2_428 = arith.constant 2 : index
    %c1408_429 = arith.constant 1408 : index
    %358 = vector.load %arg16[%c2_428, %c1408_429] : memref<3x3136xf32, #tpu.memory_space<vmem>>, vector<1x64xf32>
    tpu.vector_store %arg16[%c2_428, %c1408_429], %357 {strides = array<i32>} : memref<3x3136xf32, #tpu.memory_space<vmem>>, vector<1x64xf32>,
    %c307 = arith.constant 307 : index
    %c0_430 = arith.constant 0 : index
    %359 = vector.load %arg15[%c307, %c0_430] : memref<352x64xf32, #tpu.memory_space<vmem>>, vector<1x64xf32>
    %c2_431 = arith.constant 2 : index
    %c1472_432 = arith.constant 1472 : index
    %360 = vector.load %arg16[%c2_431, %c1472_432] : memref<3x3136xf32, #tpu.memory_space<vmem>>, vector<1x64xf32>
    tpu.vector_store %arg16[%c2_431, %c1472_432], %359 {strides = array<i32>} : memref<3x3136xf32, #tpu.memory_space<vmem>>, vector<1x64xf32>,
    %c308 = arith.constant 308 : index
    %c0_433 = arith.constant 0 : index
    %361 = vector.load %arg15[%c308, %c0_433] : memref<352x64xf32, #tpu.memory_space<vmem>>, vector<1x64xf32>
    %c2_434 = arith.constant 2 : index
    %c1536_435 = arith.constant 1536 : index
    %362 = vector.load %arg16[%c2_434, %c1536_435] : memref<3x3136xf32, #tpu.memory_space<vmem>>, vector<1x64xf32>
    tpu.vector_store %arg16[%c2_434, %c1536_435], %361 {strides = array<i32>} : memref<3x3136xf32, #tpu.memory_space<vmem>>, vector<1x64xf32>,
    %c309 = arith.constant 309 : index
    %c0_436 = arith.constant 0 : index
    %363 = vector.load %arg15[%c309, %c0_436] : memref<352x64xf32, #tpu.memory_space<vmem>>, vector<1x64xf32>
    %c2_437 = arith.constant 2 : index
    %c1600_438 = arith.constant 1600 : index
    %364 = vector.load %arg16[%c2_437, %c1600_438] : memref<3x3136xf32, #tpu.memory_space<vmem>>, vector<1x64xf32>
    tpu.vector_store %arg16[%c2_437, %c1600_438], %363 {strides = array<i32>} : memref<3x3136xf32, #tpu.memory_space<vmem>>, vector<1x64xf32>,
    %c310 = arith.constant 310 : index
    %c0_439 = arith.constant 0 : index
    %365 = vector.load %arg15[%c310, %c0_439] : memref<352x64xf32, #tpu.memory_space<vmem>>, vector<1x64xf32>
    %c2_440 = arith.constant 2 : index
    %c1664_441 = arith.constant 1664 : index
    %366 = vector.load %arg16[%c2_440, %c1664_441] : memref<3x3136xf32, #tpu.memory_space<vmem>>, vector<1x64xf32>
    tpu.vector_store %arg16[%c2_440, %c1664_441], %365 {strides = array<i32>} : memref<3x3136xf32, #tpu.memory_space<vmem>>, vector<1x64xf32>,
    %c311 = arith.constant 311 : index
    %c0_442 = arith.constant 0 : index
    %367 = vector.load %arg15[%c311, %c0_442] : memref<352x64xf32, #tpu.memory_space<vmem>>, vector<1x64xf32>
    %c2_443 = arith.constant 2 : index
    %c1728_444 = arith.constant 1728 : index
    %368 = vector.load %arg16[%c2_443, %c1728_444] : memref<3x3136xf32, #tpu.memory_space<vmem>>, vector<1x64xf32>
    tpu.vector_store %arg16[%c2_443, %c1728_444], %367 {strides = array<i32>} : memref<3x3136xf32, #tpu.memory_space<vmem>>, vector<1x64xf32>,
    %c316 = arith.constant 316 : index
    %c0_445 = arith.constant 0 : index
    %369 = vector.load %arg15[%c316, %c0_445] : memref<352x64xf32, #tpu.memory_space<vmem>>, vector<1x64xf32>
    %c2_446 = arith.constant 2 : index
    %c1792_447 = arith.constant 1792 : index
    %370 = vector.load %arg16[%c2_446, %c1792_447] : memref<3x3136xf32, #tpu.memory_space<vmem>>, vector<1x64xf32>
    tpu.vector_store %arg16[%c2_446, %c1792_447], %369 {strides = array<i32>} : memref<3x3136xf32, #tpu.memory_space<vmem>>, vector<1x64xf32>,
    %c317 = arith.constant 317 : index
    %c0_448 = arith.constant 0 : index
    %371 = vector.load %arg15[%c317, %c0_448] : memref<352x64xf32, #tpu.memory_space<vmem>>, vector<1x64xf32>
    %c2_449 = arith.constant 2 : index
    %c1856_450 = arith.constant 1856 : index
    %372 = vector.load %arg16[%c2_449, %c1856_450] : memref<3x3136xf32, #tpu.memory_space<vmem>>, vector<1x64xf32>
    tpu.vector_store %arg16[%c2_449, %c1856_450], %371 {strides = array<i32>} : memref<3x3136xf32, #tpu.memory_space<vmem>>, vector<1x64xf32>,
    %c318 = arith.constant 318 : index
    %c0_451 = arith.constant 0 : index
    %373 = vector.load %arg15[%c318, %c0_451] : memref<352x64xf32, #tpu.memory_space<vmem>>, vector<1x64xf32>
    %c2_452 = arith.constant 2 : index
    %c1920_453 = arith.constant 1920 : index
    %374 = vector.load %arg16[%c2_452, %c1920_453] : memref<3x3136xf32, #tpu.memory_space<vmem>>, vector<1x64xf32>
    tpu.vector_store %arg16[%c2_452, %c1920_453], %373 {strides = array<i32>} : memref<3x3136xf32, #tpu.memory_space<vmem>>, vector<1x64xf32>,
    %c319 = arith.constant 319 : index
    %c0_454 = arith.constant 0 : index
    %375 = vector.load %arg15[%c319, %c0_454] : memref<352x64xf32, #tpu.memory_space<vmem>>, vector<1x64xf32>
    %c2_455 = arith.constant 2 : index
    %c1984_456 = arith.constant 1984 : index
    %376 = vector.load %arg16[%c2_455, %c1984_456] : memref<3x3136xf32, #tpu.memory_space<vmem>>, vector<1x64xf32>
    tpu.vector_store %arg16[%c2_455, %c1984_456], %375 {strides = array<i32>} : memref<3x3136xf32, #tpu.memory_space<vmem>>, vector<1x64xf32>,
    %c320_457 = arith.constant 320 : index
    %c0_458 = arith.constant 0 : index
    %377 = vector.load %arg15[%c320_457, %c0_458] : memref<352x64xf32, #tpu.memory_space<vmem>>, vector<1x64xf32>
    %c2_459 = arith.constant 2 : index
    %c2048_460 = arith.constant 2048 : index
    %378 = vector.load %arg16[%c2_459, %c2048_460] : memref<3x3136xf32, #tpu.memory_space<vmem>>, vector<1x64xf32>
    tpu.vector_store %arg16[%c2_459, %c2048_460], %377 {strides = array<i32>} : memref<3x3136xf32, #tpu.memory_space<vmem>>, vector<1x64xf32>,
    %c321 = arith.constant 321 : index
    %c0_461 = arith.constant 0 : index
    %379 = vector.load %arg15[%c321, %c0_461] : memref<352x64xf32, #tpu.memory_space<vmem>>, vector<1x64xf32>
    %c2_462 = arith.constant 2 : index
    %c2112_463 = arith.constant 2112 : index
    %380 = vector.load %arg16[%c2_462, %c2112_463] : memref<3x3136xf32, #tpu.memory_space<vmem>>, vector<1x64xf32>
    tpu.vector_store %arg16[%c2_462, %c2112_463], %379 {strides = array<i32>} : memref<3x3136xf32, #tpu.memory_space<vmem>>, vector<1x64xf32>,
    %c322 = arith.constant 322 : index
    %c0_464 = arith.constant 0 : index
    %381 = vector.load %arg15[%c322, %c0_464] : memref<352x64xf32, #tpu.memory_space<vmem>>, vector<1x64xf32>
    %c2_465 = arith.constant 2 : index
    %c2176_466 = arith.constant 2176 : index
    %382 = vector.load %arg16[%c2_465, %c2176_466] : memref<3x3136xf32, #tpu.memory_space<vmem>>, vector<1x64xf32>
    tpu.vector_store %arg16[%c2_465, %c2176_466], %381 {strides = array<i32>} : memref<3x3136xf32, #tpu.memory_space<vmem>>, vector<1x64xf32>,
    %c327 = arith.constant 327 : index
    %c0_467 = arith.constant 0 : index
    %383 = vector.load %arg15[%c327, %c0_467] : memref<352x64xf32, #tpu.memory_space<vmem>>, vector<1x64xf32>
    %c2_468 = arith.constant 2 : index
    %c2240_469 = arith.constant 2240 : index
    %384 = vector.load %arg16[%c2_468, %c2240_469] : memref<3x3136xf32, #tpu.memory_space<vmem>>, vector<1x64xf32>
    tpu.vector_store %arg16[%c2_468, %c2240_469], %383 {strides = array<i32>} : memref<3x3136xf32, #tpu.memory_space<vmem>>, vector<1x64xf32>,
    %c328 = arith.constant 328 : index
    %c0_470 = arith.constant 0 : index
    %385 = vector.load %arg15[%c328, %c0_470] : memref<352x64xf32, #tpu.memory_space<vmem>>, vector<1x64xf32>
    %c2_471 = arith.constant 2 : index
    %c2304_472 = arith.constant 2304 : index
    %386 = vector.load %arg16[%c2_471, %c2304_472] : memref<3x3136xf32, #tpu.memory_space<vmem>>, vector<1x64xf32>
    tpu.vector_store %arg16[%c2_471, %c2304_472], %385 {strides = array<i32>} : memref<3x3136xf32, #tpu.memory_space<vmem>>, vector<1x64xf32>,
    %c329 = arith.constant 329 : index
    %c0_473 = arith.constant 0 : index
    %387 = vector.load %arg15[%c329, %c0_473] : memref<352x64xf32, #tpu.memory_space<vmem>>, vector<1x64xf32>
    %c2_474 = arith.constant 2 : index
    %c2368_475 = arith.constant 2368 : index
    %388 = vector.load %arg16[%c2_474, %c2368_475] : memref<3x3136xf32, #tpu.memory_space<vmem>>, vector<1x64xf32>
    tpu.vector_store %arg16[%c2_474, %c2368_475], %387 {strides = array<i32>} : memref<3x3136xf32, #tpu.memory_space<vmem>>, vector<1x64xf32>,
    %c330 = arith.constant 330 : index
    %c0_476 = arith.constant 0 : index
    %389 = vector.load %arg15[%c330, %c0_476] : memref<352x64xf32, #tpu.memory_space<vmem>>, vector<1x64xf32>
    %c2_477 = arith.constant 2 : index
    %c2432_478 = arith.constant 2432 : index
    %390 = vector.load %arg16[%c2_477, %c2432_478] : memref<3x3136xf32, #tpu.memory_space<vmem>>, vector<1x64xf32>
    tpu.vector_store %arg16[%c2_477, %c2432_478], %389 {strides = array<i32>} : memref<3x3136xf32, #tpu.memory_space<vmem>>, vector<1x64xf32>,
    %c331 = arith.constant 331 : index
    %c0_479 = arith.constant 0 : index
    %391 = vector.load %arg15[%c331, %c0_479] : memref<352x64xf32, #tpu.memory_space<vmem>>, vector<1x64xf32>
    %c2_480 = arith.constant 2 : index
    %c2496_481 = arith.constant 2496 : index
    %392 = vector.load %arg16[%c2_480, %c2496_481] : memref<3x3136xf32, #tpu.memory_space<vmem>>, vector<1x64xf32>
    tpu.vector_store %arg16[%c2_480, %c2496_481], %391 {strides = array<i32>} : memref<3x3136xf32, #tpu.memory_space<vmem>>, vector<1x64xf32>,
    %c332 = arith.constant 332 : index
    %c0_482 = arith.constant 0 : index
    %393 = vector.load %arg15[%c332, %c0_482] : memref<352x64xf32, #tpu.memory_space<vmem>>, vector<1x64xf32>
    %c2_483 = arith.constant 2 : index
    %c2560_484 = arith.constant 2560 : index
    %394 = vector.load %arg16[%c2_483, %c2560_484] : memref<3x3136xf32, #tpu.memory_space<vmem>>, vector<1x64xf32>
    tpu.vector_store %arg16[%c2_483, %c2560_484], %393 {strides = array<i32>} : memref<3x3136xf32, #tpu.memory_space<vmem>>, vector<1x64xf32>,
    %c333 = arith.constant 333 : index
    %c0_485 = arith.constant 0 : index
    %395 = vector.load %arg15[%c333, %c0_485] : memref<352x64xf32, #tpu.memory_space<vmem>>, vector<1x64xf32>
    %c2_486 = arith.constant 2 : index
    %c2624_487 = arith.constant 2624 : index
    %396 = vector.load %arg16[%c2_486, %c2624_487] : memref<3x3136xf32, #tpu.memory_space<vmem>>, vector<1x64xf32>
    tpu.vector_store %arg16[%c2_486, %c2624_487], %395 {strides = array<i32>} : memref<3x3136xf32, #tpu.memory_space<vmem>>, vector<1x64xf32>,
    %c338 = arith.constant 338 : index
    %c0_488 = arith.constant 0 : index
    %397 = vector.load %arg15[%c338, %c0_488] : memref<352x64xf32, #tpu.memory_space<vmem>>, vector<1x64xf32>
    %c2_489 = arith.constant 2 : index
    %c2688_490 = arith.constant 2688 : index
    %398 = vector.load %arg16[%c2_489, %c2688_490] : memref<3x3136xf32, #tpu.memory_space<vmem>>, vector<1x64xf32>
    tpu.vector_store %arg16[%c2_489, %c2688_490], %397 {strides = array<i32>} : memref<3x3136xf32, #tpu.memory_space<vmem>>, vector<1x64xf32>,
    %c339 = arith.constant 339 : index
    %c0_491 = arith.constant 0 : index
    %399 = vector.load %arg15[%c339, %c0_491] : memref<352x64xf32, #tpu.memory_space<vmem>>, vector<1x64xf32>
    %c2_492 = arith.constant 2 : index
    %c2752_493 = arith.constant 2752 : index
    %400 = vector.load %arg16[%c2_492, %c2752_493] : memref<3x3136xf32, #tpu.memory_space<vmem>>, vector<1x64xf32>
    tpu.vector_store %arg16[%c2_492, %c2752_493], %399 {strides = array<i32>} : memref<3x3136xf32, #tpu.memory_space<vmem>>, vector<1x64xf32>,
    %c340 = arith.constant 340 : index
    %c0_494 = arith.constant 0 : index
    %401 = vector.load %arg15[%c340, %c0_494] : memref<352x64xf32, #tpu.memory_space<vmem>>, vector<1x64xf32>
    %c2_495 = arith.constant 2 : index
    %c2816_496 = arith.constant 2816 : index
    %402 = vector.load %arg16[%c2_495, %c2816_496] : memref<3x3136xf32, #tpu.memory_space<vmem>>, vector<1x64xf32>
    tpu.vector_store %arg16[%c2_495, %c2816_496], %401 {strides = array<i32>} : memref<3x3136xf32, #tpu.memory_space<vmem>>, vector<1x64xf32>,
    %c341 = arith.constant 341 : index
    %c0_497 = arith.constant 0 : index
    %403 = vector.load %arg15[%c341, %c0_497] : memref<352x64xf32, #tpu.memory_space<vmem>>, vector<1x64xf32>
    %c2_498 = arith.constant 2 : index
    %c2880_499 = arith.constant 2880 : index
    %404 = vector.load %arg16[%c2_498, %c2880_499] : memref<3x3136xf32, #tpu.memory_space<vmem>>, vector<1x64xf32>
    tpu.vector_store %arg16[%c2_498, %c2880_499], %403 {strides = array<i32>} : memref<3x3136xf32, #tpu.memory_space<vmem>>, vector<1x64xf32>,
    %c342 = arith.constant 342 : index
    %c0_500 = arith.constant 0 : index
    %405 = vector.load %arg15[%c342, %c0_500] : memref<352x64xf32, #tpu.memory_space<vmem>>, vector<1x64xf32>
    %c2_501 = arith.constant 2 : index
    %c2944_502 = arith.constant 2944 : index
    %406 = vector.load %arg16[%c2_501, %c2944_502] : memref<3x3136xf32, #tpu.memory_space<vmem>>, vector<1x64xf32>
    tpu.vector_store %arg16[%c2_501, %c2944_502], %405 {strides = array<i32>} : memref<3x3136xf32, #tpu.memory_space<vmem>>, vector<1x64xf32>,
    %c343 = arith.constant 343 : index
    %c0_503 = arith.constant 0 : index
    %407 = vector.load %arg15[%c343, %c0_503] : memref<352x64xf32, #tpu.memory_space<vmem>>, vector<1x64xf32>
    %c2_504 = arith.constant 2 : index
    %c3008_505 = arith.constant 3008 : index
    %408 = vector.load %arg16[%c2_504, %c3008_505] : memref<3x3136xf32, #tpu.memory_space<vmem>>, vector<1x64xf32>
    tpu.vector_store %arg16[%c2_504, %c3008_505], %407 {strides = array<i32>} : memref<3x3136xf32, #tpu.memory_space<vmem>>, vector<1x64xf32>,
    %c344 = arith.constant 344 : index
    %c0_506 = arith.constant 0 : index
    %409 = vector.load %arg15[%c344, %c0_506] : memref<352x64xf32, #tpu.memory_space<vmem>>, vector<1x64xf32>
    %c2_507 = arith.constant 2 : index
    %c3072_508 = arith.constant 3072 : index
    %410 = vector.load %arg16[%c2_507, %c3072_508] : memref<3x3136xf32, #tpu.memory_space<vmem>>, vector<1x64xf32>
    tpu.vector_store %arg16[%c2_507, %c3072_508], %409 {strides = array<i32>} : memref<3x3136xf32, #tpu.memory_space<vmem>>, vector<1x64xf32>,
    %c0_509 = arith.constant 0 : index
    %c0_510 = arith.constant 0 : index
    %411 = vector.load %arg16[%c0_509, %c0_510] : memref<3x3136xf32, #tpu.memory_space<vmem>>, vector<3x3136xf32>
    %412 = arith.truncf %411 : vector<3x3136xf32> to vector<3x3136xbf16>
    %c0_511 = arith.constant 0 : index
    %c0_512 = arith.constant 0 : index
    %413 = vector.load %arg8[%c0_511, %c0_512] : memref<3136x64xbf16, #tpu.memory_space<vmem>>, vector<3136x64xbf16>
    %cst_513 = arith.constant dense<0.000000e+00> : vector<3x64xf32>
    %414 = tpu.matmul %412, %413, %cst_513 {dimension_numbers = #tpu.dot_dimension_numbers<[1], [0], [0], [1], [0, 0, 1, 1], [], []>} : vector<3x3136xbf16>, vector<3136x64xbf16>, vector<3x64xf32> -> vector<3x64xf32>
    %c0_514 = arith.constant 0 : index
    %c0_515 = arith.constant 0 : index
    %415 = vector.load %arg9[%c0_514, %c0_515] : memref<1x64xf32, #tpu.memory_space<vmem>>, vector<1x64xf32>
    %416 = vector.broadcast %415 : vector<1x64xf32> to vector<3x64xf32>
    %417 = arith.addf %414, %416 : vector<3x64xf32>
    %cst_516 = arith.constant 0.000000e+00 : f32
    %418 = vector.broadcast %cst_516 : f32 to vector<3x64xf32>
    %419 = arith.maximumf %417, %418 : vector<3x64xf32>
    %420 = arith.truncf %419 : vector<3x64xf32> to vector<3x64xbf16>
    %c0_517 = arith.constant 0 : index
    %c0_518 = arith.constant 0 : index
    %421 = vector.load %arg10[%c0_517, %c0_518] : memref<64x128xbf16, #tpu.memory_space<vmem>>, vector<64x128xbf16>
    %cst_519 = arith.constant dense<0.000000e+00> : vector<3x128xf32>
    %422 = tpu.matmul %420, %421, %cst_519 {dimension_numbers = #tpu.dot_dimension_numbers<[1], [0], [0], [1], [0, 0, 1, 1], [], []>} : vector<3x64xbf16>, vector<64x128xbf16>, vector<3x128xf32> -> vector<3x128xf32>
    %c0_520 = arith.constant 0 : index
    %c0_521 = arith.constant 0 : index
    %423 = vector.load %arg11[%c0_520, %c0_521] : memref<1x128xf32, #tpu.memory_space<vmem>>, vector<1x128xf32>
    %424 = vector.broadcast %423 : vector<1x128xf32> to vector<3x128xf32>
    %425 = arith.addf %422, %424 : vector<3x128xf32>
    %c0_522 = arith.constant 0 : index
    %c0_523 = arith.constant 0 : index
    %c0_524 = arith.constant 0 : index
    %426 = vector.load %arg12[%c0_522, %c0_523, %c0_524] : memref<1x3x128xf32, #tpu.memory_space<vmem>>, vector<1x3x128xf32>
    %427 = vector.shape_cast %426 : vector<1x3x128xf32> to vector<3x128xf32>
    %428 = vector.shape_cast %425 : vector<3x128xf32> to vector<1x3x128xf32>
    tpu.vector_store %arg12[%c0_522, %c0_523, %c0_524], %428 {strides = array<i32>} : memref<1x3x128xf32, #tpu.memory_space<vmem>>, vector<1x3x128xf32>,
    return
  }
  func.func @transform_0(%arg0: i32) -> (i32, i32) {
    %c0_i32 = arith.constant 0 : i32
    %c0_i32_0 = arith.constant 0 : i32
    return %arg0, %c0_i32 : i32, i32
  }
  func.func @transform_1(%arg0: i32) -> (i32, i32, i32) {
    %c0_i32 = arith.constant 0 : i32
    %c0_i32_0 = arith.constant 0 : i32
    %c0_i32_1 = arith.constant 0 : i32
    %c0_i32_2 = arith.constant 0 : i32
    return %c0_i32, %c0_i32_0, %c0_i32_1 : i32, i32, i32
  }
  func.func @transform_2(%arg0: i32) -> (i32, i32) {
    %c0_i32 = arith.constant 0 : i32
    %c0_i32_0 = arith.constant 0 : i32
    %c0_i32_1 = arith.constant 0 : i32
    return %c0_i32, %c0_i32_0 : i32, i32
  }
  func.func @transform_3(%arg0: i32) -> (i32, i32, i32) {
    %c0_i32 = arith.constant 0 : i32
    %c0_i32_0 = arith.constant 0 : i32
    %c0_i32_1 = arith.constant 0 : i32
    %c0_i32_2 = arith.constant 0 : i32
    return %c0_i32, %c0_i32_0, %c0_i32_1 : i32, i32, i32
  }
  func.func @transform_4(%arg0: i32) -> (i32, i32) {
    %c0_i32 = arith.constant 0 : i32
    %c0_i32_0 = arith.constant 0 : i32
    %c0_i32_1 = arith.constant 0 : i32
    return %c0_i32, %c0_i32_0 : i32, i32
  }
  func.func @transform_5(%arg0: i32) -> (i32, i32, i32) {
    %c0_i32 = arith.constant 0 : i32
    %c0_i32_0 = arith.constant 0 : i32
    %c0_i32_1 = arith.constant 0 : i32
    %c0_i32_2 = arith.constant 0 : i32
    return %c0_i32, %c0_i32_0, %c0_i32_1 : i32, i32, i32
  }
  func.func @transform_6(%arg0: i32) -> (i32, i32) {
    %c0_i32 = arith.constant 0 : i32
    %c0_i32_0 = arith.constant 0 : i32
    %c0_i32_1 = arith.constant 0 : i32
    return %c0_i32, %c0_i32_0 : i32, i32
  }
  func.func @transform_7(%arg0: i32) -> (i32, i32) {
    %c0_i32 = arith.constant 0 : i32
    %c0_i32_0 = arith.constant 0 : i32
    %c0_i32_1 = arith.constant 0 : i32
    return %c0_i32, %c0_i32_0 : i32, i32
  }
  func.func @transform_8(%arg0: i32) -> (i32, i32) {
    %c0_i32 = arith.constant 0 : i32
    %c0_i32_0 = arith.constant 0 : i32
    %c0_i32_1 = arith.constant 0 : i32
    return %c0_i32, %c0_i32_0 : i32, i32
  }
  func.func @transform_9(%arg0: i32) -> (i32, i32) {
    %c0_i32 = arith.constant 0 : i32
    %c0_i32_0 = arith.constant 0 : i32
    %c0_i32_1 = arith.constant 0 : i32
    return %c0_i32, %c0_i32_0 : i32, i32
  }
  func.func @transform_10(%arg0: i32) -> (i32, i32) {
    %c0_i32 = arith.constant 0 : i32
    %c0_i32_0 = arith.constant 0 : i32
    %c0_i32_1 = arith.constant 0 : i32
    return %c0_i32, %c0_i32_0 : i32, i32
  }
  func.func @transform_11(%arg0: i32) -> (i32, i32, i32) {
    %c0_i32 = arith.constant 0 : i32
    %c0_i32_0 = arith.constant 0 : i32
    %c0_i32_1 = arith.constant 0 : i32
    return %arg0, %c0_i32, %c0_i32_0 : i32, i32, i32
  }
}

</mosaic_0001>

<bundles_post_ra>
// kernel: qnetwork_forward.1
= control target key start
LH: loop header
LB: loop body
LE: loop exit
PB: predicated region body
PF: predicated region fallthrough
CT: control target
= control target key end

     0   :  { %s14505_s17 = smov 0   ;;  %s18343_s0 = inlined_call_operand.vmem [shape: f32[816,256], index: 0, kind: input, shape index: {}]   ;;  %s18344_s1 = inlined_call_operand.vmem [shape: bf16[4,256,128], index: 1, kind: input, shape index: {}]   ;;  %s18345_s2 = inlined_call_operand.vmem [shape: f32[1,128], index: 2, kind: input, shape index: {}]   ;;  %s18346_s3 = inlined_call_operand.vmem [shape: bf16[4,128,64], index: 3, kind: input, shape index: {}]   ;;  %s18347_s4 = inlined_call_operand.vmem [shape: f32[1,64], index: 4, kind: input, shape index: {}]   ;;  %s18348_s5 = inlined_call_operand.vmem [shape: bf16[9,64,64], index: 5, kind: input, shape index: {}]   ;;  %s18349_s6 = inlined_call_operand.vmem [shape: f32[1,64], index: 6, kind: input, shape index: {}]   ;;  %s18350_s7 = inlined_call_operand.vmem [shape: bf16[3136,64], index: 7, kind: input, shape index: {}]   ;;  %s18351_s8 = inlined_call_operand.vmem [shape: f32[1,64], index: 8, kind: input, shape index: {}]   ;;  %s18352_s9 = inlined_call_operand.vmem [shape: bf16[64,128], index: 9, kind: input, shape index: {}]   ;;  %s18353_s10 = inlined_call_operand.vmem [shape: f32[1,128], index: 10, kind: input, shape index: {}]   ;;  %s18354_s11 = inlined_call_operand.vmem [shape: f32[2,3,128], index: 11, kind: output, shape index: {}]  }
   0x1 LB: > { %s14511_s18 = sadd.s32 4294967295, %s14439_s17   ;;  %p11939_p0 = scmp.ge.s32.totalorder %s14439_s17, 1  ;;  %s14439_s17 = sphi %s14505_s17, %s21_s17  }
   0x2   : > { %p339_p1 = scmp.lt.s32.totalorder %s14439_s17, 3 }
   0x4   : > { %p340_p2 = pnand %p11939_p0, %p339_p1 }
   0x6   : > { %343 = sbr.rel (%p340_p2) target bundleno = 2263 (0x8d7), region = 64 }
   0xb   : > { %v14087_v0 = vld [vmem:[%s18344_s1 + $0xb8] sm:$0xff]   ;;  %v14441_v1 = vmov 0   ;;  %v14089_v3 = vld [vmem:[%s18344_s1 + $0xb0] sm:$0xff]   ;;  %v14091_v5 = vld [vmem:[%s18344_s1 + $0xa8] sm:$0xff]   ;;  %s379_s20 = smul.u32 51, %s14511_s18  ;;  %vm2867_vm2 = vcmask 1045504  }
   0xc   : > { %1157 = vmatprep.subr.bf16.mxu0 %v14441_v1  ;;  %1485 = vmatprep.subr.bf16.mxu1 %v14441_v1  ;;  %v14088_v2 = vld [vmem:[%s18344_s1 + $0x38] sm:$0xff]   ;;  %v14090_v4 = vld [vmem:[%s18344_s1 + $0x30] sm:$0xff]   ;;  %v14092_v6 = vld [vmem:[%s18344_s1 + $0x28] sm:$0xff]   ;;  %vm612_vm0 = vsmask.f32 7424  ;;  %vm5181_vm3 = vcmask 523264  }
   0xd   : > { %1158 = vmatpush1.bf16.msra.mxu0 %v14087_v0  ;;  %1486 = vmatpush1.bf16.msra.mxu1 %v14088_v2  ;;  %v14093_v7 = vld [vmem:[%s18344_s1 + $0xa0] sm:$0xff]   ;;  %v14095_v9 = vld [vmem:[%s18344_s1 + $0x98] sm:$0xff]   ;;  %v14097_v11 = vld [vmem:[%s18344_s1 + $0x90] sm:$0xff]   ;;  %p380_p3 = scmp.lt.s32.totalorder %s379_s20, 101  ;;  %vm1900_vm1 = vsmask.f32 6400 }
   0xe   : > { %1159 = vmatprep.subr.bf16.mxu0 %v14441_v1  ;;  %1487 = vmatprep.subr.bf16.mxu1 %v14441_v1  ;;  %v14094_v8 = vld [vmem:[%s18344_s1 + $0x20] sm:$0xff]   ;;  %v14096_v10 = vld [vmem:[%s18344_s1 + $0x18] sm:$0xff]   ;;  %v14098_v12 = vld [vmem:[%s18344_s1 + $0x10] sm:$0xff]   ;;  %vm9042_vm4 = vcmask 516096   ;;  %s14442_s28 = smov 64   ;;  %vm9049_vm5 = vcmask 1040896  }
   0xf   : > { %v14099_v13 = vld [vmem:[%s18344_s1 + $0x88] sm:$0xff]   ;;  %s18451_s20 = smov (!%p380_p3, %s379_s20), 101  ;;  %v14101_v15 = vld [vmem:[%s18344_s1 + $0x80] sm:$0xff]   ;;  %v14103_v17 = vld [vmem:[%s18344_s1 + $0xf8] sm:$0xff]   ;;  %vm14444_vm6 = vmmov 0   ;;  %p386_p4 = scmp.lt.s32.totalorder %s14511_s18, 1 }
  0x10   : > { %v14100_v14 = vld [vmem:[%s18344_s1 + $0x8] sm:$0xff]   ;;  %s12690_s14 = sshll.u32 %s18451_s20, 4  ;;  %v14102_v16 = vld [vmem:[%s18344_s1] sm:$0xff]   ;;  %v14104_v18 = vld [vmem:[%s18344_s1 + $0x78] sm:$0xff]  }
  0x11   : > { %1160 = vmatpush1.bf16.msra.mxu0 %v14089_v3  ;;  %1488 = vmatpush1.bf16.msra.mxu1 %v14090_v4  ;;  %s14583_s22 = scalar_lea.vmem %s18343_s0, %s12690_s14  ;;  %v14105_v25 = vld [vmem:[%s18344_s1 + $0xf0] sm:$0xff]   ;;  %v14107_v32 = vld [vmem:[%s18344_s1 + $0xe8] sm:$0xff]   ;;  %v14109_v37 = vld [vmem:[%s18344_s1 + $0xe0] sm:$0xff]   ;;  %s18453_s18 = smov (!%p386_p4, %s14511_s18), 1 }
  0x12   : > { %1161 = vmatprep.subr.bf16.mxu0 %v14441_v1  ;;  %1489 = vmatprep.subr.bf16.mxu1 %v14441_v1  ;;  %v394_v19 = vld [vmem:[%s14583_s22 + $0x18] sm:$0xff]  ;;  %v396_v20 = vld [vmem:[%s14583_s22 + $0x28] sm:$0xff]  ;;  %v14106_v28 = vld [vmem:[%s18344_s1 + $0x70] sm:$0xff]   ;;  %s11942_s13 = sshll.u32 %s18453_s18, 2 }
  0x13   : > { %v398_v21 = vld [vmem:[%s14583_s22 + $0x38] sm:$0xff]  ;;  %v572_v23 = vld [vmem:[%s14583_s22 + $0x8] sm:$0xfe]  ;;  %v14110_v39 = vld [vmem:[%s18344_s1 + $0x60] sm:$0xff]   ;;  %s389_s19 = scalar_lea.vmem %s18354_s11, %s11942_s13 }
  0x14   : > { %v14596_v22 = vpack.c.bf16 %v398_v21, %v396_v20  ;;  %v392_v24 = vld [vmem:[%s14583_s22 + $0x8] sm:$0xff]  ;;  %v576_v26 = vpack.c.bf16 %v394_v19, %v572_v23  ;;  %v14629_v40 = vld [vmem:[%s14583_s22 + $0x10] sm:$0xff]  ;;  %v571_v41 = vld [vmem:[%s14583_s22] sm:$0xfe] }
  0x15   : > { %1162 = vmatpush1.bf16.msra.mxu0 %v14091_v5  ;;  %1490 = vmatpush1.bf16.msra.mxu1 %v14092_v6  ;;  %v490_v27 = vpack.c.bf16 %v394_v19, %v392_v24  ;;  %v14108_v35 = vld [vmem:[%s18344_s1 + $0x68] sm:$0xff]   ;;  %v14111_v42 = vld [vmem:[%s18344_s1 + $0xd8] sm:$0xff]   ;;  %v575_v43 = vpack.c.bf16 %v14629_v40, %v571_v41  ;;  %v395_v45 = vld [vmem:[%s14583_s22 + $0x20] sm:$0xff] }
  0x16   : > { %1163 = vmatprep.subr.bf16.mxu0 %v14441_v1  ;;  %1491 = vmatprep.subr.bf16.mxu1 %v14441_v1  ;;  %v633_v29 = vshll.u32 %v14596_v22, 16  ;;  %v626_v30 = vshrl.u32 %v576_v26, 16  ;;  %v628_v31 = vshll.u32 %v576_v26, 16  ;;  %v14112_v44 = vld [vmem:[%s18344_s1 + $0x58] sm:$0xff]   ;;  %v397_v46 = vld [vmem:[%s14583_s22 + $0x30] sm:$0xff]  ;;  %v400_v47 = vld [vmem:[%s14583_s22 + $0x48] sm:$0xff] }
  0x17   : > { %1517 = vmatprep.mubr.bf16.mxu1 %v490_v27  ;;  %v402_v48 = vld [vmem:[%s14583_s22 + $0x58] sm:$0xff]  ;;  %v14113_v49 = vld [vmem:[%s18344_s1 + $0xd0] sm:$0xff]   ;;  %v14649_v50 = vpack.c.bf16 %v397_v46, %v395_v45  ;;  %v616_v51 = vshll.u32 %v575_v43, 16  ;;  %v14115_v54 = vld [vmem:[%s18344_s1 + $0xc8] sm:$0xff]   ;;  %v614_v55 = vshrl.u32 %v575_v43, 16  ;;  %v645_v61 = vshrl.u32 %v14596_v22, 16 }
  0x18   : > { %v630_v33 = vrot.slane %v628_v31, 1  ;;  %v14612_v34 = vrot.slane %v633_v29, 1  ;;  %v14114_v52 = vld [vmem:[%s18344_s1 + $0x50] sm:$0xff]   ;;  %v14656_v53 = vpack.c.bf16 %v402_v48, %v400_v47  ;;  %v14116_v58 = vld [vmem:[%s18344_s1 + $0x48] sm:$0xff]   ;;  %v399_v59 = vld [vmem:[%s14583_s22 + $0x40] sm:$0xff] }
  0x19   : > { %1164 = vmatpush1.bf16.msra.mxu0 %v14093_v7  ;;  %1492 = vmatpush1.bf16.msra.mxu1 %v14094_v8  ;;  %v618_v56 = vrot.slane %v616_v51, 1  ;;  %v621_v57 = vshll.u32 %v14649_v50, 16  ;;  %v401_v60 = vld [vmem:[%s14583_s22 + $0x50] sm:$0xff]  ;;  %v404_v63 = vld [vmem:[%s14583_s22 + $0x68] sm:$0xff]  ;;  %v406_v0 = vld [vmem:[%s14583_s22 + $0x78] sm:$0xff] }
  0x1a   : > { %1165 = vmatprep.subr.bf16.mxu0 %v14441_v1  ;;  %1493 = vmatprep.subr.bf16.mxu1 %v14441_v1  ;;  %v631_v36 = vor.u32 %v630_v33, %v626_v30  ;;  %v649_v62 = vshll.u32 %v14656_v53, 16  ;;  %v14117_v2 = vld [vmem:[%s18344_s1 + $0xc0] sm:$0xff]   ;;  %v14679_v6 = vpack.c.bf16 %v401_v60, %v399_v59  ;;  %v14683_v8 = vpack.c.bf16 %v406_v0, %v404_v63  ;;  %v408_v23 = vld [vmem:[%s14583_s22 + $0x88] sm:$0xff]  ;;  %v410_v24 = vld [vmem:[%s14583_s22 + $0x98] sm:$0xff] }
  0x1b   : > { %v14118_v3 = vld [vmem:[%s18344_s1 + $0x40] sm:$0xff]   ;;  %v619_v4 = vor.u32 %v618_v56, %v614_v55  ;;  %v623_v5 = vrot.slane %v621_v57, 1  ;;  %v661_v19 = vshrl.u32 %v14656_v53, 16  ;;  %v14121_v27 = vld [vmem:[%s18344_s1 + $0x130] sm:$0xff]   ;;  %v14124_v41 = vld [vmem:[%s18344_s1 + $0x1a8] sm:$0xff]  }
  0x1c   : > { %v636_v38 = vsel %vm612_vm0, %v631_v36, %v14612_v34  ;;  %v391_v7 = vld [vmem:[%s14583_s22] sm:$0xff]  ;;  %v665_v20 = vshll.u32 %v14683_v8, 16  ;;  %v14122_v31 = vld [vmem:[%s18344_s1 + $0x1b0] sm:$0xff]   ;;  %v653_v33 = vshrl.u32 %v14679_v6, 16  ;;  %v677_v36 = vshrl.u32 %v14683_v8, 16  ;;  %v414_v43 = vld [vmem:[%s14583_s22 + $0xb8] sm:$0xff] }
  0x1d   : > { %1166 = vmatpush1.bf16.msra.mxu0 %v14095_v9  ;;  %1494 = vmatpush1.bf16.msra.mxu1 %v14096_v10  ;;  %v647_v9 = vor.u32 %v645_v61, %v14612_v34  ;;  %v651_v10 = vrot.slane %v649_v62, 1  ;;  %v14125_v51 = vld [vmem:[%s18344_s1 + $0x120] sm:$0xff]   ;;  %v413_v59 = vld [vmem:[%s14583_s22 + $0xb0] sm:$0xff]  ;;  %v416_v60 = vld [vmem:[%s14583_s22 + $0xc8] sm:$0xff] }
  0x1e   : > { %1167 = vmatprep.subr.bf16.mxu0 %v14441_v1  ;;  %1495 = vmatprep.subr.bf16.mxu1 %v14441_v1  ;;  %v667_v30 = vrot.slane %v665_v20, 1  ;;  %v411_v55 = vld [vmem:[%s14583_s22 + $0xa0] sm:$0xff]  ;;  %v14127_v61 = vld [vmem:[%s18344_s1 + $0x118] sm:$0xff]   ;;  %v14132_v20 = vld [vmem:[%s18344_s1 + $0x188] sm:$0xff]  }
  0x1f   : > { %1189 = vmatprep.mubr.bf16.mxu0 %v636_v38  ;;  %v652_v21 = vsel %vm612_vm0, %v647_v9, %v651_v10  ;;  %v663_v29 = vor.u32 %v661_v19, %v651_v10  ;;  %v409_v38 = vld [vmem:[%s14583_s22 + $0x90] sm:$0xff]  ;;  %v418_v62 = vld [vmem:[%s14583_s22 + $0xd8] sm:$0xff] }
  0x20   : > { %v679_v47 = vor.u32 %v677_v36, %v667_v30  ;;  %v14128_v63 = vld [vmem:[%s18344_s1 + $0x198] sm:$0xff]   ;;  %v14129_v9 = vld [vmem:[%s18344_s1 + $0x110] sm:$0xff]   ;;  %v424_v36 = vld [vmem:[%s14583_s22 + $0x108] sm:$0xff] }
  0x21   : > { %1168 = vmatpush1.bf16.msra.mxu0 %v14097_v11  ;;  %1496 = vmatpush1.bf16.msra.mxu1 %v14098_v12  ;;  %v14119_v11 = vld [vmem:[%s18344_s1 + $0x138] sm:$0xff]  }
  0x22   : > { %1169 = vmatprep.subr.bf16.mxu0 %v14441_v1  ;;  %1497 = vmatprep.subr.bf16.mxu1 %v14441_v1  ;;  %v14120_v12 = vld [vmem:[%s18344_s1 + $0x1b8] sm:$0xff]  }
  0x23   : > { %v422_v19 = vld [vmem:[%s14583_s22 + $0xf8] sm:$0xff] }
  0x25   : > { %1170 = vmatpush1.bf16.msra.mxu0 %v14099_v13  ;;  %1498 = vmatpush1.bf16.msra.mxu1 %v14100_v14  ;;  %v624_v13 = vsel %vm612_vm0, %v619_v4, %v623_v5  ;;  %v489_v14 = vpack.c.bf16 %v14629_v40, %v391_v7  ;;  %v14123_v40 = vld [vmem:[%s18344_s1 + $0x128] sm:$0xff]   ;;  %v14773_v7 = vpack.c.bf16 %v418_v62, %v416_v60 }
  0x26   : > { %1171 = vmatprep.subr.bf16.mxu0 %v14441_v1  ;;  %1499 = vmatprep.subr.bf16.mxu1 %v14441_v1  ;;  %v14140_v60 = vld [vmem:[%s18344_s1 + $0x1e8] sm:$0xff]  }
  0x29   : > { %1172 = vmatpush1.bf16.msra.mxu0 %v14101_v15  ;;  %1500 = vmatpush1.bf16.msra.mxu1 %v14102_v16  ;;  %v637_v15 = vshrl.u32 %v14649_v50, 16  ;;  %v641_v16 = vshll.u32 %v14679_v6, 16 }
  0x2a   : > { %1173 = vmatprep.subr.bf16.mxu0 %v14441_v1  ;;  %1501 = vmatprep.subr.bf16.mxu1 %v14441_v1 }
  0x2b   : > { %v643_v26 = vrot.slane %v641_v16, 1  ;;  %v713_v16 = vshll.u32 %v14773_v7, 16 }
  0x2d   : > { %1174 = vmatpush2.bf16.msra.mxu0 %v14103_v17  ;;  %1502 = vmatpush2.bf16.msra.mxu1 %v14104_v18  ;;  %v403_v17 = vld [vmem:[%s14583_s22 + $0x60] sm:$0xff]  ;;  %v405_v18 = vld [vmem:[%s14583_s22 + $0x70] sm:$0xff] }
  0x2e   : > { %1175 = vmatprep.subr.bf16.mxu0 %v14441_v1  ;;  %1503 = vmatprep.subr.bf16.mxu1 %v14441_v1 }
  0x31   : > { %1176 = vmatpush2.bf16.msra.mxu0 %v14105_v25  ;;  %1504 = vmatpush2.bf16.msra.mxu1 %v14106_v28  ;;  %v639_v25 = vor.u32 %v637_v15, %v623_v5  ;;  %v14709_v28 = vpack.c.bf16 %v405_v18, %v403_v17  ;;  %v14131_v17 = vld [vmem:[%s18344_s1 + $0x108] sm:$0xff]  }
  0x32   : > { %1177 = vmatprep.subr.bf16.mxu0 %v14441_v1  ;;  %1505 = vmatprep.subr.bf16.mxu1 %v14441_v1  ;;  %v420_v18 = vld [vmem:[%s14583_s22 + $0xe8] sm:$0xff] }
  0x33   : > { %v644_v34 = vsel %vm612_vm0, %v639_v25, %v643_v26 }
  0x35   : > { %1178 = vmatpush2.bf16.msra.mxu0 %v14107_v32  ;;  %1506 = vmatpush2.bf16.msra.mxu1 %v14108_v35  ;;  %v14714_v32 = vpack.c.bf16 %v410_v24, %v408_v23  ;;  %v657_v35 = vshll.u32 %v14709_v28, 16 }
  0x36   : > { %1179 = vmatprep.subr.bf16.mxu0 %v14441_v1  ;;  %1507 = vmatprep.subr.bf16.mxu1 %v14441_v1 }
  0x37   : > { %v659_v45 = vrot.slane %v657_v35, 1  ;;  %v693_v57 = vshrl.u32 %v14714_v32, 16  ;;  %v725_v35 = vshrl.u32 %v14773_v7, 16 }
  0x39   : > { %1180 = vmatpush2.bf16.msra.mxu0 %v14109_v37  ;;  %1508 = vmatpush2.bf16.msra.mxu1 %v14110_v39  ;;  %v407_v37 = vld [vmem:[%s14583_s22 + $0x80] sm:$0xff]  ;;  %v668_v39 = vsel %vm612_vm0, %v663_v29, %v667_v30 }
  0x3a   : > { %1181 = vmatprep.subr.bf16.mxu0 %v14441_v1  ;;  %1509 = vmatprep.subr.bf16.mxu1 %v14441_v1  ;;  %v14738_v46 = vpack.c.bf16 %v409_v38, %v407_v37  ;;  %v14133_v29 = vld [vmem:[%s18344_s1 + $0x100] sm:$0xff]   ;;  %v426_v37 = vld [vmem:[%s14583_s22 + $0x118] sm:$0xff] }
  0x3b   : > { %v14134_v30 = vld [vmem:[%s18344_s1 + $0x180] sm:$0xff]  }
  0x3c   : > { %v685_v10 = vshrl.u32 %v14738_v46, 16 }
  0x3d   : > { %1182 = vmatpush2.bf16.msra.mxu0 %v14111_v42  ;;  %1510 = vmatpush2.bf16.msra.mxu1 %v14112_v44  ;;  %v412_v42 = vld [vmem:[%s14583_s22 + $0xa8] sm:$0xff]  ;;  %v655_v44 = vor.u32 %v653_v33, %v643_v26  ;;  %v715_v26 = vrot.slane %v713_v16, 1 }
  0x3e   : > { %1183 = vmatprep.subr.bf16.mxu0 %v14441_v1  ;;  %1511 = vmatprep.subr.bf16.mxu1 %v14441_v1 }
  0x41   : > { %1184 = vmatpush2.bf16.msra.mxu0 %v14113_v49  ;;  %1512 = vmatpush2.bf16.msra.mxu1 %v14114_v52  ;;  %v14741_v49 = vpack.c.bf16 %v414_v43, %v412_v42  ;;  %v669_v52 = vshrl.u32 %v14709_v28, 16 }
  0x42   : > { %1185 = vmatprep.subr.bf16.mxu0 %v14441_v1  ;;  %1513 = vmatprep.subr.bf16.mxu1 %v14441_v1 }
  0x43   : > { %v671_v0 = vor.u32 %v669_v52, %v659_v45  ;;  %v425_v52 = vld [vmem:[%s14583_s22 + $0x110] sm:$0xff] }
  0x45   : > { %1186 = vmatpush2.bf16.msra.mxu0 %v14115_v54  ;;  %1514 = vmatpush2.bf16.msra.mxu1 %v14116_v58  ;;  %v673_v54 = vshll.u32 %v14738_v46, 16  ;;  %v697_v58 = vshll.u32 %v14741_v49, 16 }
  0x46   : > { %1187 = vmatprep.subr.bf16.mxu0 %v14441_v1  ;;  %1515 = vmatprep.subr.bf16.mxu1 %v14441_v1 }
  0x47   : > { %v699_v5 = vrot.slane %v697_v58, 1 }
  0x49   : > { %1188 = vmatpush2.bf16.msra.mxu0 %v14117_v2  ;;  %1516 = vmatpush2.bf16.msra.mxu1 %v14118_v3  ;;  %v675_v2 = vrot.slane %v673_v54, 1  ;;  %v14770_v3 = vpack.c.bf16 %v413_v59, %v411_v55  ;;  %v428_v55 = vld [vmem:[%s14583_s22 + $0x128] sm:$0xff] }
  0x4a   : > { %2495 = vmatprep.subr.bf16.mxu0 %v14441_v1  ;;  %3112 = vmatprep.subr.bf16.mxu1 %v14441_v1  ;;  %v14139_v59 = vld [vmem:[%s18344_s1 + $0x168] sm:$0xff]  }
  0x4c   : > { %1190 = vmatmul.mubr.bf16.vlgmr.msra.gmra.mxu0 %v624_v13  ;;  %1518 = vmatmul.mubr.bf16.vlgmr.msra.gmra.mxu1 %v489_v14  ;;  %v415_v13 = vld [vmem:[%s14583_s22 + $0xc0] sm:$0xff]  ;;  %v417_v14 = vld [vmem:[%s14583_s22 + $0xd0] sm:$0xff] }
  0x4d   : > { %2496 = vmatpush1.bf16.msra.mxu0 %v14119_v11  ;;  %3113 = vmatpush1.bf16.msra.mxu1 %v14120_v12  ;;  %v689_v11 = vshll.u32 %v14770_v3, 16  ;;  %v709_v12 = vshrl.u32 %v14741_v49, 16  ;;  %v14802_v24 = vpack.c.bf16 %v417_v14, %v415_v13  ;;  %v14143_v14 = vld [vmem:[%s18344_s1 + $0x158] sm:$0xff]  }
  0x4e   : > { %1197 = vmatprep.mubr.bf16.mxu0 %v652_v21  ;;  %1525 = vmatprep.mubr.bf16.mxu1 %v14596_v22  ;;  %v681_v22 = vshll.u32 %v14714_v32, 16  ;;  %v687_v21 = vor.u32 %v685_v10, %v675_v2  ;;  %v432_v10 = vld [vmem:[%s14583_s22 + $0x148] sm:$0xff] }
  0x4f   : > { %2497 = vmatprep.subr.bf16.mxu0 %v14441_v1  ;;  %3114 = vmatprep.subr.bf16.mxu1 %v14441_v1  ;;  %v691_v23 = vrot.slane %v689_v11, 1  ;;  %v711_v25 = vor.u32 %v709_v12, %v699_v5  ;;  %v434_v11 = vld [vmem:[%s14583_s22 + $0x158] sm:$0xff] }
  0x50   : > { %v683_v48 = vrot.slane %v681_v22, 1  ;;  %v14135_v22 = vld [vmem:[%s18344_s1 + $0x178] sm:$0xff]  }
  0x51   : > { %2498 = vmatpush1.bf16.msra.mxu0 %v14121_v27  ;;  %3115 = vmatpush1.bf16.msra.mxu1 %v14122_v31  ;;  %v14805_v27 = vpack.c.bf16 %v422_v19, %v420_v18  ;;  %v701_v31 = vshrl.u32 %v14770_v3, 16  ;;  %v692_v33 = vsel %vm612_vm0, %v687_v21, %v691_v23  ;;  %v716_v38 = vsel %vm612_vm0, %v711_v25, %v715_v26 }
  0x52   : > { %2499 = vmatprep.subr.bf16.mxu0 %v14441_v1  ;;  %3116 = vmatprep.subr.bf16.mxu1 %v14441_v1  ;;  %v684_v56 = vsel %vm612_vm0, %v679_v47, %v683_v48  ;;  %v695_v4 = vor.u32 %v693_v57, %v683_v48  ;;  %v14837_v47 = vpack.c.bf16 %v426_v37, %v424_v36  ;;  %v14137_v48 = vld [vmem:[%s18344_s1 + $0x170] sm:$0xff]   ;;  %v14147_v36 = vld [vmem:[%s18344_s1 + $0x148] sm:$0xff]  }
  0x53   : > { %v703_v42 = vor.u32 %v701_v31, %v691_v23  ;;  %v741_v54 = vshrl.u32 %v14805_v27, 16  ;;  %v14900_v21 = vpack.c.bf16 %v434_v11, %v432_v10  ;;  %v433_v31 = vld [vmem:[%s14583_s22 + $0x150] sm:$0xff] }
  0x54   : > { %1198 = vmatmul.mubr.bf16.gmra.mxu0 %v644_v34  ;;  %1526 = vmatmul.mubr.bf16.gmra.mxu1 %v14649_v50  ;;  %v14126_v50 = vld [vmem:[%s18344_s1 + $0x1a0] sm:$0xff]   ;;  %v700_v15 = vsel %vm612_vm0, %v695_v4, %v699_v5  ;;  %v705_v34 = vshll.u32 %v14802_v24, 16  ;;  %v745_v58 = vshll.u32 %v14837_v47, 16  ;;  %v757_v13 = vshrl.u32 %v14837_v47, 16 }
  0x55   : > { %1205 = vmatprep.mubr.bf16.mxu0 %v668_v39  ;;  %1533 = vmatprep.mubr.bf16.mxu1 %v14656_v53  ;;  %v660_v53 = vsel %vm612_vm0, %v655_v44, %v659_v45  ;;  %v729_v39 = vshll.u32 %v14805_v27, 16  ;;  %v727_v44 = vor.u32 %v725_v35, %v715_v26  ;;  %v427_v5 = vld [vmem:[%s14583_s22 + $0x120] sm:$0xff]  ;;  %v438_v35 = vld [vmem:[%s14583_s22 + $0x178] sm:$0xff] }
  0x56   : > { %2500 = vmatpush1.bf16.msra.mxu0 %v14123_v40  ;;  %3117 = vmatpush1.bf16.msra.mxu1 %v14124_v41  ;;  %v14136_v40 = vld [vmem:[%s18344_s1 + $0x1f8] sm:$0xff]   ;;  %v707_v43 = vrot.slane %v705_v34, 1  ;;  %v436_v34 = vld [vmem:[%s14583_s22 + $0x168] sm:$0xff] }
  0x57   : > { %2501 = vmatprep.subr.bf16.mxu0 %v14441_v1  ;;  %3118 = vmatprep.subr.bf16.mxu1 %v14441_v1  ;;  %v731_v45 = vrot.slane %v729_v39, 1 }
  0x59   : > { %v732_v57 = vsel %vm612_vm0, %v727_v44, %v731_v45 }
  0x5a   : > { %2502 = vmatpush1.bf16.msra.mxu0 %v14125_v51  ;;  %3119 = vmatpush1.bf16.msra.mxu1 %v14126_v50  ;;  %v717_v51 = vshrl.u32 %v14802_v24, 16 }
  0x5b   : > { %2503 = vmatprep.subr.bf16.mxu0 %v14441_v1  ;;  %3120 = vmatprep.subr.bf16.mxu1 %v14441_v1 }
  0x5c   : > { %1206 = vmatmul.mubr.bf16.gmra.mxu0 %v660_v53  ;;  %1534 = vmatmul.mubr.bf16.gmra.mxu1 %v14679_v6  ;;  %v14130_v6 = vld [vmem:[%s18344_s1 + $0x190] sm:$0xff]   ;;  %v708_v53 = vsel %vm612_vm0, %v703_v42, %v707_v43  ;;  %v719_v62 = vor.u32 %v717_v51, %v707_v43  ;;  %v14149_v42 = vld [vmem:[%s18344_s1 + $0x140] sm:$0xff]  }
  0x5d   : > { %1213 = vmatprep.mubr.bf16.mxu0 %v684_v56  ;;  %1541 = vmatprep.mubr.bf16.mxu1 %v14683_v8  ;;  %v676_v8 = vsel %vm612_vm0, %v671_v0, %v675_v2  ;;  %v430_v56 = vld [vmem:[%s14583_s22 + $0x138] sm:$0xff]  ;;  %v743_v0 = vor.u32 %v741_v54, %v731_v45  ;;  %v747_v2 = vrot.slane %v745_v58, 1  ;;  %v14936_v45 = vpack.c.bf16 %v438_v35, %v436_v34  ;;  %v440_v54 = vld [vmem:[%s14583_s22 + $0x188] sm:$0xff] }
  0x5e   : > { %2504 = vmatpush1.bf16.msra.mxu0 %v14127_v61  ;;  %3121 = vmatpush1.bf16.msra.mxu1 %v14128_v63  ;;  %v14869_v4 = vpack.c.bf16 %v430_v56, %v428_v55  ;;  %v442_v55 = vld [vmem:[%s14583_s22 + $0x198] sm:$0xff] }
  0x5f   : > { %2505 = vmatprep.subr.bf16.mxu0 %v14441_v1  ;;  %3122 = vmatprep.subr.bf16.mxu1 %v14441_v1  ;;  %v759_v23 = vor.u32 %v757_v13, %v747_v2 }
  0x60   : > { %v761_v16 = vshll.u32 %v14869_v4, 16 }
  0x62   : > { %2506 = vmatpush1.bf16.msra.mxu0 %v14129_v9  ;;  %3123 = vmatpush1.bf16.msra.mxu1 %v14130_v6  ;;  %v429_v9 = vld [vmem:[%s14583_s22 + $0x130] sm:$0xff]  ;;  %v14141_v6 = vld [vmem:[%s18344_s1 + $0x160] sm:$0xff]   ;;  %v763_v25 = vrot.slane %v761_v16, 1 }
  0x63   : > { %2507 = vmatprep.subr.bf16.mxu0 %v14441_v1  ;;  %3124 = vmatprep.subr.bf16.mxu1 %v14441_v1  ;;  %v14895_v18 = vpack.c.bf16 %v429_v9, %v427_v5  ;;  %v439_v9 = vld [vmem:[%s14583_s22 + $0x180] sm:$0xff] }
  0x64   : > { %1214 = vmatmul.mubr.bf16.gmra.mxu0 %v676_v8  ;;  %1542 = vmatmul.mubr.bf16.gmra.mxu1 %v14709_v28  ;;  %v419_v28 = vld [vmem:[%s14583_s22 + $0xe0] sm:$0xff]  ;;  %v764_v37 = vsel %vm612_vm0, %v759_v23, %v763_v25  ;;  %v445_v23 = vld [vmem:[%s14583_s22 + $0x1b0] sm:$0xff] }
  0x65   : > { %1221 = vmatprep.mubr.bf16.mxu0 %v700_v15  ;;  %1549 = vmatprep.mubr.bf16.mxu1 %v14714_v32  ;;  %v421_v32 = vld [vmem:[%s14583_s22 + $0xf0] sm:$0xff]  ;;  %v748_v15 = vsel %vm612_vm0, %v743_v0, %v747_v2 }
  0x66   : > { %2508 = vmatpush1.bf16.msra.mxu0 %v14131_v17  ;;  %3125 = vmatpush1.bf16.msra.mxu1 %v14132_v20  ;;  %v14832_v41 = vpack.c.bf16 %v421_v32, %v419_v28  ;;  %v14144_v17 = vld [vmem:[%s18344_s1 + $0x1d8] sm:$0xff]   ;;  %v753_v28 = vshll.u32 %v14895_v18, 16 }
  0x67   : > { %2509 = vmatprep.subr.bf16.mxu0 %v14441_v1  ;;  %3126 = vmatprep.subr.bf16.mxu1 %v14441_v1 }
  0x68   : > { %v721_v50 = vshll.u32 %v14832_v41, 16 }
  0x6a   : > { %2510 = vmatpush1.bf16.msra.mxu0 %v14133_v29  ;;  %3127 = vmatpush1.bf16.msra.mxu1 %v14134_v30  ;;  %v723_v63 = vrot.slane %v721_v50, 1  ;;  %v773_v29 = vshrl.u32 %v14869_v4, 16  ;;  %v431_v30 = vld [vmem:[%s14583_s22 + $0x140] sm:$0xff]  ;;  %v793_v50 = vshll.u32 %v14936_v45, 16 }
  0x6b   : > { %2511 = vmatprep.subr.bf16.mxu0 %v14441_v1  ;;  %3128 = vmatprep.subr.bf16.mxu1 %v14441_v1 }
  0x6c   : > { %1222 = vmatmul.mubr.bf16.gmra.mxu0 %v692_v33  ;;  %1550 = vmatmul.mubr.bf16.gmra.mxu1 %v14738_v46  ;;  %v423_v46 = vld [vmem:[%s14583_s22 + $0x100] sm:$0xff]  ;;  %v724_v12 = vsel %vm612_vm0, %v719_v62, %v723_v63  ;;  %v777_v33 = vshll.u32 %v14900_v21, 16  ;;  %v775_v43 = vor.u32 %v773_v29, %v763_v25  ;;  %v448_v25 = vld [vmem:[%s14583_s22 + $0x1c8] sm:$0xff] }
  0x6d   : > { %1229 = vmatprep.mubr.bf16.mxu0 %v716_v38  ;;  %1557 = vmatprep.mubr.bf16.mxu1 %v14741_v49  ;;  %v14138_v49 = vld [vmem:[%s18344_s1 + $0x1f0] sm:$0xff]   ;;  %v14864_v61 = vpack.c.bf16 %v425_v52, %v423_v46  ;;  %v14148_v38 = vld [vmem:[%s18344_s1 + $0x1c8] sm:$0xff]   ;;  %v435_v52 = vld [vmem:[%s14583_s22 + $0x160] sm:$0xff] }
  0x6e   : > { %2512 = vmatpush2.bf16.msra.mxu0 %v14135_v22  ;;  %3129 = vmatpush2.bf16.msra.mxu1 %v14136_v40  ;;  %v755_v22 = vrot.slane %v753_v28, 1  ;;  %v14930_v40 = vpack.c.bf16 %v433_v31, %v431_v30  ;;  %v779_v44 = vrot.slane %v777_v33, 1 }
  0x6f   : > { %2513 = vmatprep.subr.bf16.mxu0 %v14441_v1  ;;  %3130 = vmatprep.subr.bf16.mxu1 %v14441_v1  ;;  %v737_v8 = vshll.u32 %v14864_v61, 16  ;;  %v749_v26 = vshrl.u32 %v14864_v61, 16 }
  0x70   : > { %v769_v51 = vshll.u32 %v14930_v40, 16  ;;  %v780_v46 = vsel %vm612_vm0, %v775_v43, %v779_v44 }
  0x71   : > { %v739_v20 = vrot.slane %v737_v8, 1 }
  0x72   : > { %2514 = vmatpush2.bf16.msra.mxu0 %v14137_v48  ;;  %3131 = vmatpush2.bf16.msra.mxu1 %v14138_v49  ;;  %v789_v49 = vshrl.u32 %v14900_v21, 16  ;;  %v771_v56 = vrot.slane %v769_v51, 1 }
  0x73   : > { %2515 = vmatprep.subr.bf16.mxu0 %v14441_v1  ;;  %3132 = vmatprep.subr.bf16.mxu1 %v14441_v1  ;;  %v751_v39 = vor.u32 %v749_v26, %v739_v20  ;;  %v450_v26 = vld [vmem:[%s14583_s22 + $0x1d8] sm:$0xff] }
  0x74   : > { %1230 = vmatmul.mubr.bf16.gmra.mxu0 %v708_v53  ;;  %1558 = vmatmul.mubr.bf16.gmra.mxu1 %v14770_v3  ;;  %v733_v3 = vshrl.u32 %v14832_v41, 16  ;;  %v437_v53 = vld [vmem:[%s14583_s22 + $0x170] sm:$0xff]  ;;  %v791_v58 = vor.u32 %v789_v49, %v779_v44  ;;  %v518_v30 = vpack.c.bf16 %v450_v26, %v448_v25  ;;  %v464_v25 = vld [vmem:[%s14583_s22 + $0x248] sm:$0xff]  ;;  %v466_v26 = vld [vmem:[%s14583_s22 + $0x258] sm:$0xff] }
  0x75   : > { %1237 = vmatprep.mubr.bf16.mxu0 %v732_v57  ;;  %1565 = vmatprep.mubr.bf16.mxu1 %v14773_v7  ;;  %v14142_v7 = vld [vmem:[%s18344_s1 + $0x1e0] sm:$0xff]   ;;  %v756_v48 = vsel %vm612_vm0, %v751_v39, %v755_v22  ;;  %v511_v57 = vpack.c.bf16 %v437_v53, %v435_v52  ;;  %v452_v39 = vld [vmem:[%s14583_s22 + $0x1e8] sm:$0xff]  ;;  %v453_v53 = vld [vmem:[%s14583_s22 + $0x1f0] sm:$0xff] }
  0x76   : > { %2516 = vmatpush2.bf16.msra.mxu0 %v14139_v59  ;;  %3133 = vmatpush2.bf16.msra.mxu1 %v14140_v60  ;;  %v735_v19 = vor.u32 %v733_v3, %v723_v63  ;;  %v795_v59 = vrot.slane %v793_v50, 1  ;;  %v514_v60 = vpack.c.bf16 %v442_v55, %v440_v54  ;;  %v781_v63 = vshrl.u32 %v14930_v40, 16  ;;  %v444_v3 = vld [vmem:[%s14583_s22 + $0x1a8] sm:$0xff]  ;;  %v451_v52 = vld [vmem:[%s14583_s22 + $0x1e0] sm:$0xff]  ;;  %v458_v55 = vld [vmem:[%s14583_s22 + $0x218] sm:$0xff] }
  0x77   : > { %2517 = vmatprep.subr.bf16.mxu0 %v14441_v1  ;;  %3134 = vmatprep.subr.bf16.mxu1 %v14441_v1  ;;  %v785_v0 = vshll.u32 %v511_v57, 16  ;;  %v853_v49 = vshrl.u32 %v518_v30, 16  ;;  %v456_v54 = vld [vmem:[%s14583_s22 + $0x208] sm:$0xff] }
  0x78   : > { %v740_v32 = vsel %vm612_vm0, %v735_v19, %v739_v20  ;;  %v796_v2 = vsel %vm612_vm0, %v791_v58, %v795_v59  ;;  %v809_v5 = vshll.u32 %v514_v60, 16  ;;  %v821_v19 = vshrl.u32 %v514_v60, 16  ;;  %v443_v20 = vld [vmem:[%s14583_s22 + $0x1a0] sm:$0xff] }
  0x79   : > { %v787_v8 = vrot.slane %v785_v0, 1 }
  0x7a   : > { %2518 = vmatpush2.bf16.msra.mxu0 %v14141_v6  ;;  %3135 = vmatpush2.bf16.msra.mxu1 %v14142_v7  ;;  %v441_v6 = vld [vmem:[%s14583_s22 + $0x190] sm:$0xff]  ;;  %v446_v7 = vld [vmem:[%s14583_s22 + $0x1b8] sm:$0xff] }
  0x7b   : > { %2519 = vmatprep.subr.bf16.mxu0 %v14441_v1  ;;  %3136 = vmatprep.subr.bf16.mxu1 %v14441_v1  ;;  %v513_v10 = vpack.c.bf16 %v441_v6, %v439_v9  ;;  %v516_v13 = vpack.c.bf16 %v446_v7, %v444_v3  ;;  %v455_v9 = vld [vmem:[%s14583_s22 + $0x200] sm:$0xff]  ;;  %v457_v6 = vld [vmem:[%s14583_s22 + $0x210] sm:$0xff]  ;;  %v460_v3 = vld [vmem:[%s14583_s22 + $0x228] sm:$0xff] }
  0x7c   : > { %1238 = vmatmul.mubr.bf16.gmra.mxu0 %v724_v12  ;;  %1566 = vmatmul.mubr.bf16.gmra.mxu1 %v14802_v24  ;;  %v14145_v24 = vld [vmem:[%s18344_s1 + $0x150] sm:$0xff]   ;;  %v811_v12 = vrot.slane %v809_v5, 1  ;;  %v462_v7 = vld [vmem:[%s14583_s22 + $0x238] sm:$0xff] }
  0x7d   : > { %1245 = vmatprep.mubr.bf16.mxu0 %v748_v15  ;;  %1573 = vmatprep.mubr.bf16.mxu1 %v14805_v27  ;;  %v14146_v27 = vld [vmem:[%s18344_s1 + $0x1d0] sm:$0xff]   ;;  %v797_v15 = vshrl.u32 %v511_v57, 16  ;;  %v801_v16 = vshll.u32 %v513_v10, 16  ;;  %v837_v35 = vshrl.u32 %v516_v13, 16 }
  0x7e   : > { %2520 = vmatpush2.bf16.msra.mxu0 %v14143_v14  ;;  %3137 = vmatpush2.bf16.msra.mxu1 %v14144_v17  ;;  %v823_v28 = vor.u32 %v821_v19, %v811_v12 }
  0x7f   : > { %2521 = vmatprep.subr.bf16.mxu0 %v14441_v1  ;;  %3138 = vmatprep.subr.bf16.mxu1 %v14441_v1  ;;  %v803_v29 = vrot.slane %v801_v16, 1 }
  0x82   : > { %2522 = vmatpush2.bf16.msra.mxu0 %v14145_v24  ;;  %3139 = vmatpush2.bf16.msra.mxu1 %v14146_v27  ;;  %v515_v24 = vpack.c.bf16 %v445_v23, %v443_v20  ;;  %v459_v20 = vld [vmem:[%s14583_s22 + $0x220] sm:$0xff]  ;;  %v461_v23 = vld [vmem:[%s14583_s22 + $0x230] sm:$0xff] }
  0x83   : > { %2523 = vmatprep.subr.bf16.mxu0 %v14441_v1  ;;  %3140 = vmatprep.subr.bf16.mxu1 %v14441_v1 }
  0x84   : > { %1246 = vmatmul.mubr.bf16.gmra.mxu0 %v740_v32  ;;  %1574 = vmatmul.mubr.bf16.gmra.mxu1 %v14832_v41  ;;  %v14150_v41 = vld [vmem:[%s18344_s1 + $0x1c0] sm:$0xff]   ;;  %v813_v32 = vshrl.u32 %v513_v10, 16  ;;  %v817_v33 = vshll.u32 %v515_v24, 16 }
  0x85   : > { %1253 = vmatprep.mubr.bf16.mxu0 %v764_v37  ;;  %1581 = vmatprep.mubr.bf16.mxu1 %v14837_v47  ;;  %v765_v47 = vshrl.u32 %v14895_v18, 16  ;;  %v447_v37 = vld [vmem:[%s14583_s22 + $0x1c0] sm:$0xff] }
  0x86   : > { %2524 = vmatpush2.bf16.msra.mxu0 %v14147_v36  ;;  %3141 = vmatpush2.bf16.msra.mxu1 %v14148_v38  ;;  %v841_v36 = vshll.u32 %v518_v30, 16  ;;  %v449_v38 = vld [vmem:[%s14583_s22 + $0x1d0] sm:$0xff] }
  0x87   : > { %2525 = vmatprep.subr.bf16.mxu0 %v14441_v1  ;;  %3142 = vmatprep.subr.bf16.mxu1 %v14441_v1  ;;  %v767_v1 = vor.u32 %v765_v47, %v755_v22  ;;  %v454_v22 = vld [vmem:[%s14583_s22 + $0x1f8] sm:$0xff]  ;;  %v517_v43 = vpack.c.bf16 %v449_v38, %v447_v37  ;;  %v829_v47 = vshrl.u32 %v515_v24, 16  ;;  %v463_v37 = vld [vmem:[%s14583_s22 + $0x240] sm:$0xff]  ;;  %v465_v38 = vld [vmem:[%s14583_s22 + $0x250] sm:$0xff] }
  0x89   : > { %v772_v62 = vsel %vm612_vm0, %v767_v1, %v771_v56  ;;  %v833_v51 = vshll.u32 %v517_v43, 16 }
  0x8a   : > { %2526 = vmatpush2.bf16.msra.mxu0 %v14149_v42  ;;  %3143 = vmatpush2.bf16.msra.mxu1 %v14150_v41  ;;  %v819_v42 = vrot.slane %v817_v33, 1  ;;  %v520_v41 = vpack.c.bf16 %v454_v22, %v452_v39  ;;  %v468_v39 = vld [vmem:[%s14583_s22 + $0x268] sm:$0xff]  ;;  %v470_v22 = vld [vmem:[%s14583_s22 + $0x278] sm:$0xff] }
  0x8c   : > { %1254 = vmatmul.mubr.bf16.gmra.mxu0 %v756_v48  ;;  %1582 = vmatmul.mubr.bf16.gmra.mxu1 %v14864_v61  ;;  %v805_v61 = vshrl.u32 %v14936_v45, 16  ;;  %v857_v50 = vshll.u32 %v520_v41, 16  ;;  %v831_v1 = vor.u32 %v829_v47, %v819_v42 }
  0x8d   : > { %1261 = vmatprep.mubr.bf16.mxu0 %v780_v46  ;;  %1589 = vmatprep.mubr.bf16.mxu1 %v14869_v4  ;;  %v783_v4 = vor.u32 %v781_v63, %v771_v56  ;;  %v835_v56 = vrot.slane %v833_v51, 1  ;;  %v845_v63 = vshrl.u32 %v517_v43, 16 }
  0x8e   : > { %v807_v11 = vor.u32 %v805_v61, %v795_v59  ;;  %v859_v59 = vrot.slane %v857_v50, 1  ;;  %v869_v61 = vshrl.u32 %v520_v41, 16 }
  0x8f   : > { %v788_v14 = vsel %vm612_vm0, %v783_v4, %v787_v8  ;;  %v847_v4 = vor.u32 %v845_v63, %v835_v56  ;;  %v473_v63 = vld [vmem:[%s14583_s22 + $0x290] sm:$0xff] }
  0x90   : > { %v812_v17 = vsel %vm612_vm0, %v807_v11, %v811_v12  ;;  %v871_v11 = vor.u32 %v869_v61, %v859_v59 }
  0x94   : > { %1262 = vmatmul.mubr.bf16.gmra.mxu0 %v772_v62  ;;  %1590 = vmatmul.mubr.bf16.gmra.mxu1 %v14895_v18  ;;  %v825_v18 = vshll.u32 %v516_v13, 16  ;;  %v836_v62 = vsel %vm612_vm0, %v831_v1, %v835_v56 }
  0x95   : > { %1269 = vmatprep.mubr.bf16.mxu0 %v796_v2  ;;  %1597 = vmatprep.mubr.bf16.mxu1 %v14900_v21  ;;  %v799_v21 = vor.u32 %v797_v15, %v787_v8 }
  0x96   : > { %v827_v27 = vrot.slane %v825_v18, 1 }
  0x97   : > { %v804_v31 = vsel %vm612_vm0, %v799_v21, %v803_v29 }
  0x98   : > { %v828_v34 = vsel %vm612_vm0, %v823_v28, %v827_v27  ;;  %v839_v44 = vor.u32 %v837_v35, %v827_v27 }
  0x9c   : > { %1270 = vmatmul.mubr.bf16.gmra.mxu0 %v788_v14  ;;  %1598 = vmatmul.mubr.bf16.gmra.mxu1 %v14930_v40  ;;  %v815_v40 = vor.u32 %v813_v32, %v803_v29 }
  0x9d   : > { %1277 = vmatprep.mubr.bf16.mxu0 %v812_v17  ;;  %1605 = vmatprep.mubr.bf16.mxu1 %v14936_v45  ;;  %v843_v45 = vrot.slane %v841_v36, 1 }
  0x9e   : > { %v820_v48 = vsel %vm612_vm0, %v815_v40, %v819_v42 }
  0x9f   : > { %v844_v46 = vsel %vm612_vm0, %v839_v44, %v843_v45  ;;  %v855_v58 = vor.u32 %v853_v49, %v843_v45 }
  0xa1   : > { %v860_v2 = vsel %vm612_vm0, %v855_v58, %v859_v59 }
  0xa4   : > { %1278 = vmatmul.mubr.bf16.gmra.mxu0 %v804_v31  ;;  %1606 = vmatmul.mubr.bf16.gmra.mxu1 %v511_v57  ;;  %v519_v57 = vpack.c.bf16 %v453_v53, %v451_v52  ;;  %v467_v52 = vld [vmem:[%s14583_s22 + $0x260] sm:$0xff]  ;;  %v469_v53 = vld [vmem:[%s14583_s22 + $0x270] sm:$0xff] }
  0xa5   : > { %1285 = vmatprep.mubr.bf16.mxu0 %v828_v34  ;;  %1613 = vmatprep.mubr.bf16.mxu1 %v514_v60  ;;  %v522_v60 = vpack.c.bf16 %v458_v55, %v456_v54  ;;  %v472_v54 = vld [vmem:[%s14583_s22 + $0x288] sm:$0xff]  ;;  %v474_v55 = vld [vmem:[%s14583_s22 + $0x298] sm:$0xff] }
  0xa6   : > { %v849_v0 = vshll.u32 %v519_v57, 16  ;;  %v861_v15 = vshrl.u32 %v519_v57, 16 }
  0xa7   : > { %v873_v5 = vshll.u32 %v522_v60, 16  ;;  %v885_v19 = vshrl.u32 %v522_v60, 16 }
  0xa8   : > { %v851_v8 = vrot.slane %v849_v0, 1 }
  0xa9   : > { %v875_v12 = vrot.slane %v873_v5, 1 }
  0xaa   : > { %v852_v14 = vsel %vm612_vm0, %v847_v4, %v851_v8  ;;  %v863_v21 = vor.u32 %v861_v15, %v851_v8  ;;  %v475_v8 = vld [vmem:[%s14583_s22 + $0x2a0] sm:$0xff]  ;;  %v482_v15 = vld [vmem:[%s14583_s22 + $0x2d8] sm:$0xff] }
  0xab   : > { %v876_v17 = vsel %vm612_vm0, %v871_v11, %v875_v12  ;;  %v887_v28 = vor.u32 %v885_v19, %v875_v12  ;;  %v480_v11 = vld [vmem:[%s14583_s22 + $0x2c8] sm:$0xff]  ;;  %v479_v19 = vld [vmem:[%s14583_s22 + $0x2c0] sm:$0xff] }
  0xac   : > { %1286 = vmatmul.mubr.bf16.gmra.mxu0 %v820_v48  ;;  %1614 = vmatmul.mubr.bf16.gmra.mxu1 %v513_v10  ;;  %v521_v10 = vpack.c.bf16 %v457_v6, %v455_v9 }
  0xad   : > { %1293 = vmatprep.mubr.bf16.mxu0 %v844_v46  ;;  %1621 = vmatprep.mubr.bf16.mxu1 %v516_v13  ;;  %v524_v13 = vpack.c.bf16 %v462_v7, %v460_v3  ;;  %v476_v3 = vld [vmem:[%s14583_s22 + $0x2a8] sm:$0xff]  ;;  %v478_v7 = vld [vmem:[%s14583_s22 + $0x2b8] sm:$0xff] }
  0xae   : > { %v865_v16 = vshll.u32 %v521_v10, 16  ;;  %v877_v32 = vshrl.u32 %v521_v10, 16 }
  0xaf   : > { %v889_v18 = vshll.u32 %v524_v13, 16  ;;  %v901_v35 = vshrl.u32 %v524_v13, 16 }
  0xb0   : > { %v867_v29 = vrot.slane %v865_v16, 1 }
  0xb1   : > { %v891_v27 = vrot.slane %v889_v18, 1 }
  0xb2   : > { %v868_v31 = vsel %vm612_vm0, %v863_v21, %v867_v29  ;;  %v879_v40 = vor.u32 %v877_v32, %v867_v29  ;;  %v15045_v29 = vpack.c.bf16 %v482_v15, %v480_v11  ;;  %v486_v32 = vld [vmem:[%s14583_s22 + $0x2f8] sm:$0xff]  ;;  %v1717_v11 = vld [vmem:[%s14583_s22 + $0x10] sm:$0xf8] }
  0xb3   : > { %v892_v34 = vsel %vm612_vm0, %v887_v28, %v891_v27  ;;  %v903_v44 = vor.u32 %v901_v35, %v891_v27  ;;  %v483_v35 = vld [vmem:[%s14583_s22 + $0x2e0] sm:$0xff] }
  0xb4   : > { %1294 = vmatmul.mubr.bf16.gmra.mxu0 %v836_v62  ;;  %1622 = vmatmul.mubr.bf16.gmra.mxu1 %v515_v24  ;;  %v523_v24 = vpack.c.bf16 %v461_v23, %v459_v20  ;;  %v471_v62 = vld [vmem:[%s14583_s22 + $0x280] sm:$0xff]  ;;  %v481_v23 = vld [vmem:[%s14583_s22 + $0x2d0] sm:$0xff] }
  0xb5   : > { %1301 = vmatprep.mubr.bf16.mxu0 %v860_v2  ;;  %1629 = vmatprep.mubr.bf16.mxu1 %v518_v30  ;;  %v526_v30 = vpack.c.bf16 %v466_v26, %v464_v25  ;;  %v15029_v4 = vpack.c.bf16 %v473_v63, %v471_v62  ;;  %v1718_v62 = vld [vmem:[%s14583_s22 + $0x18] sm:$0xf8] }
  0xb6   : > { %v881_v33 = vshll.u32 %v523_v24, 16  ;;  %v893_v47 = vshrl.u32 %v523_v24, 16 }
  0xb7   : > { %v905_v36 = vshll.u32 %v526_v30, 16  ;;  %v917_v49 = vshrl.u32 %v526_v30, 16  ;;  %v929_v18 = vshll.u32 %v15029_v4, 16  ;;  %v941_v27 = vshrl.u32 %v15029_v4, 16 }
  0xb8   : > { %v883_v42 = vrot.slane %v881_v33, 1 }
  0xb9   : > { %v907_v45 = vrot.slane %v905_v36, 1  ;;  %v931_v33 = vrot.slane %v929_v18, 1  ;;  %v485_v36 = vld [vmem:[%s14583_s22 + $0x2f0] sm:$0xff] }
  0xba   : > { %v884_v48 = vsel %vm612_vm0, %v879_v40, %v883_v42  ;;  %v895_v1 = vor.u32 %v893_v47, %v883_v42  ;;  %v574_v47 = vld [vmem:[%s14583_s22 + $0x318] sm:$0x1] }
  0xbb   : > { %v908_v46 = vsel %vm612_vm0, %v903_v44, %v907_v45  ;;  %v919_v58 = vor.u32 %v917_v49, %v907_v45 }
  0xbc   : > { %1302 = vmatmul.mubr.bf16.gmra.mxu0 %v852_v14  ;;  %1630 = vmatmul.mubr.bf16.gmra.mxu1 %v517_v43  ;;  %v15003_v43 = vpack.c.bf16 %v465_v38, %v463_v37  ;;  %v15034_v14 = vpack.c.bf16 %v478_v7, %v476_v3 }
  0xbd   : > { %1309 = vmatprep.mubr.bf16.mxu0 %v876_v17  ;;  %1637 = vmatprep.mubr.bf16.mxu1 %v520_v41  ;;  %v15005_v41 = vpack.c.bf16 %v470_v22, %v468_v39  ;;  %v969_v39 = vshll.u32 %v15045_v29, 16 }
  0xbe   : > { %v897_v51 = vshll.u32 %v15003_v43, 16  ;;  %v909_v2 = vshrl.u32 %v15003_v43, 16  ;;  %v953_v21 = vshll.u32 %v15034_v14, 16  ;;  %v965_v40 = vshrl.u32 %v15034_v14, 16 }
  0xbf   : > { %v921_v50 = vshll.u32 %v15005_v41, 16  ;;  %v933_v9 = vshrl.u32 %v15005_v41, 16  ;;  %v971_v49 = vrot.slane %v969_v39, 1  ;;  %v1728_v39 = vld [vmem:[%s14583_s22 + $0x68] sm:$0xff] }
  0xc0   : > { %v899_v56 = vrot.slane %v897_v51, 1  ;;  %v955_v38 = vrot.slane %v953_v21, 1 }
  0xc1   : > { %v923_v59 = vrot.slane %v921_v50, 1 }
  0xc2   : > { %v900_v0 = vsel %vm612_vm0, %v895_v1, %v899_v56  ;;  %v911_v12 = vor.u32 %v909_v2, %v899_v56  ;;  %v967_v63 = vor.u32 %v965_v40, %v955_v38  ;;  %v1720_v2 = vld [vmem:[%s14583_s22 + $0x28] sm:$0xff] }
  0xc3   : > { %v924_v5 = vsel %vm612_vm0, %v919_v58, %v923_v59  ;;  %v935_v16 = vor.u32 %v933_v9, %v923_v59  ;;  %v943_v58 = vor.u32 %v941_v27, %v931_v33  ;;  %v1724_v9 = vld [vmem:[%s14583_s22 + $0x48] sm:$0xff] }
  0xc4   : > { %1310 = vmatmul.mubr.bf16.gmra.mxu0 %v868_v31  ;;  %1638 = vmatmul.mubr.bf16.gmra.mxu1 %v519_v57  ;;  %v15015_v57 = vpack.c.bf16 %v469_v53, %v467_v52  ;;  %v484_v31 = vld [vmem:[%s14583_s22 + $0x2e8] sm:$0xff]  ;;  %v15076_v52 = vld [vmem:[%s14583_s22 + $0x300] sm:$0xff]  ;;  %v573_v53 = vld [vmem:[%s14583_s22 + $0x310] sm:$0x1] }
  0xc5   : > { %1317 = vmatprep.mubr.bf16.mxu0 %v892_v34  ;;  %1645 = vmatprep.mubr.bf16.mxu1 %v522_v60  ;;  %v15017_v60 = vpack.c.bf16 %v474_v55, %v472_v54  ;;  %v15063_v45 = vpack.c.bf16 %v486_v32, %v484_v31  ;;  %v981_v54 = vshrl.u32 %v15045_v29, 16  ;;  %v15087_v59 = vpack.c.bf16 %v573_v53, %v15076_v52  ;;  %v2777_v32 = vld [vmem:[%s14583_s22 + $0x18] sm:$0xf0] }
  0xc6   : > { %v913_v61 = vshll.u32 %v15015_v57, 16  ;;  %v925_v26 = vshrl.u32 %v15015_v57, 16 }
  0xc7   : > { %v937_v6 = vshll.u32 %v15017_v60, 16  ;;  %v949_v28 = vshrl.u32 %v15017_v60, 16  ;;  %v985_v55 = vshll.u32 %v15063_v45, 16  ;;  %v993_v7 = vshll.u32 %v15087_v59, 16 }
  0xc8   : > { %v983_v21 = vor.u32 %v981_v54, %v971_v49 }
  0xc9   : > { %v939_v17 = vrot.slane %v937_v6, 1 }
  0xcb   : > { %v951_v22 = vor.u32 %v949_v28, %v939_v17 }
  0xcc   : > { %1318 = vmatmul.mubr.bf16.gmra.mxu0 %v884_v48  ;;  %1646 = vmatmul.mubr.bf16.gmra.mxu1 %v521_v10  ;;  %v477_v10 = vld [vmem:[%s14583_s22 + $0x2b0] sm:$0xff]  ;;  %v15065_v48 = vpack.c.bf16 %v485_v36, %v483_v35 }
  0xcd   : > { %1325 = vmatprep.mubr.bf16.mxu0 %v908_v46  ;;  %1653 = vmatprep.mubr.bf16.mxu1 %v524_v13  ;;  %v915_v13 = vrot.slane %v913_v61, 1  ;;  %v15039_v20 = vpack.c.bf16 %v477_v10, %v475_v8  ;;  %v972_v8 = vsel %vm612_vm0, %v967_v63, %v971_v49  ;;  %v1818_v10 = vpack.c.bf16 %v1720_v2, %v1718_v62 }
  0xce   : > { %v977_v1 = vshll.u32 %v15065_v48, 16  ;;  %v989_v15 = vshrl.u32 %v15065_v48, 16 }
  0xcf   : > { %v916_v25 = vsel %vm612_vm0, %v911_v12, %v915_v13  ;;  %v945_v34 = vshll.u32 %v15039_v20, 16  ;;  %v927_v37 = vor.u32 %v925_v26, %v915_v13  ;;  %v957_v44 = vshrl.u32 %v15039_v20, 16  ;;  %v15104_v12 = vld [vmem:[%s14583_s22 + $0x20] sm:$0xff] }
  0xd0   : > { %v15097_v3 = vrot.slane %v977_v1, 1  ;;  %v1817_v26 = vpack.c.bf16 %v15104_v12, %v1717_v11  ;;  %v1919_v28 = vshrl.u32 %v1818_v10, 16  ;;  %v1922_v27 = vshll.u32 %v1818_v10, 16 }
  0xd1   : > { %v932_v51 = vsel %vm612_vm0, %v927_v37, %v931_v33  ;;  %v947_v46 = vrot.slane %v945_v34, 1 }
  0xd2   : > { %v1902_v35 = vshrl.u32 %v1817_v26, 16  ;;  %v15128_v36 = vrot.slane %v1919_v28, 1  ;;  %v1905_v37 = vshll.u32 %v1817_v26, 16  ;;  %v991_v10 = vor.u32 %v989_v15, %v15097_v3 }
  0xd3   : > { %v948_v6 = vsel %vm612_vm0, %v943_v58, %v947_v46  ;;  %v959_v18 = vor.u32 %v957_v44, %v947_v46  ;;  %v1727_v44 = vld [vmem:[%s14583_s22 + $0x60] sm:$0xff]  ;;  %v2776_v46 = vld [vmem:[%s14583_s22 + $0x10] sm:$0xf0] }
  0xd4   : > { %1326 = vmatmul.mubr.bf16.gmra.mxu0 %v900_v0  ;;  %1654 = vmatmul.mubr.bf16.gmra.mxu1 %v523_v24  ;;  %v940_v24 = vsel %vm612_vm0, %v935_v16, %v939_v17  ;;  %v1721_v17 = vld [vmem:[%s14583_s22 + $0x30] sm:$0xff]  ;;  %v15145_v1 = vrot.slane %v1905_v37, 2  ;;  %v1735_v37 = vld [vmem:[%s14583_s22 + $0xa0] sm:$0xff] }
  0xd5   : > { %1333 = vmatprep.mubr.bf16.mxu0 %v924_v5  ;;  %1661 = vmatprep.mubr.bf16.mxu1 %v526_v30  ;;  %v15050_v30 = vpack.c.bf16 %v481_v23, %v479_v19  ;;  %v1722_v5 = vld [vmem:[%s14583_s22 + $0x38] sm:$0xff]  ;;  %v1723_v19 = vld [vmem:[%s14583_s22 + $0x40] sm:$0xff]  ;;  %v15114_v23 = vrot.slane %v993_v7, 1 }
  0xd6   : > { %v15109_v16 = vpack.c.bf16 %v1724_v9, %v1722_v5  ;;  %v15121_v31 = vpack.c.bf16 %v1723_v19, %v1721_v17  ;;  %v1732_v9 = vld [vmem:[%s14583_s22 + $0x88] sm:$0xff] }
  0xd7   : > { %v961_v42 = vshll.u32 %v15050_v30, 16  ;;  %v973_v0 = vshrl.u32 %v15050_v30, 16 }
  0xd8   : > { %v1930_v34 = vshll.u32 %v15109_v16, 16  ;;  %v1910_v40 = vshrl.u32 %v15121_v31, 16  ;;  %v1913_v63 = vshll.u32 %v15121_v31, 16 }
  0xd9   : > { %v15073_v50 = vrot.slane %v961_v42, 1  ;;  %v1725_v42 = vld [vmem:[%s14583_s22 + $0x50] sm:$0xff] }
  0xda   : > { %v1932_v53 = vrot.slane %v1930_v34, 2  ;;  %v15154_v62 = vrot.slane %v1910_v40, 1  ;;  %v15172_v11 = vrot.slane %v1913_v63, 2 }
  0xdb   : > { %v964_v33 = vsel %vm612_vm0, %v959_v18, %v15073_v50  ;;  %v1734_v18 = vld [vmem:[%s14583_s22 + $0x98] sm:$0xff] }
  0xdc   : > { %1334 = vmatmul.mubr.bf16.gmra.mxu0 %v916_v25  ;;  %1662 = vmatmul.mubr.bf16.gmra.mxu1 %v15003_v43  ;;  %v15068_v43 = vld [vmem:[%s14583_s22 + $0x308] sm:$0xff] }
  0xdd   : > { %1341 = vmatprep.mubr.bf16.mxu0 %v940_v24  ;;  %1669 = vmatprep.mubr.bf16.mxu1 %v15005_v41  ;;  %v956_v41 = vsel %vm612_vm0, %v951_v22, %v955_v38  ;;  %v15083_v56 = vpack.c.bf16 %v574_v47, %v15068_v43  ;;  %v1005_v24 = vshrl.u32 %v15087_v59, 16  ;;  %v1726_v38 = vld [vmem:[%s14583_s22 + $0x58] sm:$0xff]  ;;  %v15132_v22 = vrot.slane %v1922_v27, 2 }
  0xde   : > { %v2781_v47 = vpack.c.bf16 %v1720_v2, %v2777_v32  ;;  %v15141_v54 = vpack.c.bf16 %v1728_v39, %v1726_v38  ;;  %v2780_v2 = vpack.c.bf16 %v15104_v12, %v2776_v46  ;;  %v538_v32 = vpack.c.bf16 %v15068_v43, %v15068_v43  ;;  %v1740_v39 = vld [vmem:[%s14583_s22 + $0xc8] sm:$0xff]  ;;  %v15212_v43 = vld [vmem:[%s18346_s3 + $0x78] sm:$0xff]  }
  0xdf   : > { %v1001_v61 = vshll.u32 %v15083_v56, 16  ;;  %v1008_v25 = vshrl.u32 %v15083_v56, 16  ;;  %13327 = vmatprep.subr.bf16.mxu0 %v15212_v43 }
  0xe0   : > { %v15149_v58 = vrot.slane %v2781_v47, 2  ;;  %v1945_v5 = vshrl.u32 %v15141_v54, 16  ;;  %v15178_v19 = vrot.slane %v2780_v2, 2  ;;  %v1925_v47 = vor.u32 %v15132_v22, %v15128_v36 }
  0xe1   : > { %v15106_v13 = vrot.slane %v1001_v61, 1  ;;  %v2869_v61 = vrot.slane %v15121_v31, 2  ;;  %v1007_v22 = vor.u32 %v1005_v24, %v15114_v23  ;;  %v537_v2 = vpack.c.bf16 %v15076_v52, %v15076_v52  ;;  %v1749_v31 = vld [vmem:[%s14583_s22 + $0x110] sm:$0xff] }
  0xe3   : > { %v1010_v28 = vor.u32 %v1008_v25, %v15106_v13  ;;  %v1738_v25 = vld [vmem:[%s14583_s22 + $0xb8] sm:$0xff] }
  0xe4   : > { %1342 = vmatmul.mubr.bf16.gmra.mxu0 %v932_v51  ;;  %1670 = vmatmul.mubr.bf16.gmra.mxu1 %v15015_v57  ;;  %v987_v57 = vrot.slane %v985_v55, 1  ;;  %v975_v51 = vor.u32 %v973_v0, %v15073_v50  ;;  %v15143_v55 = vrot.slane %v1902_v35, 1  ;;  %v2872_v50 = vrot.slane %v15109_v16, 2 }
  0xe5   : > { %1349 = vmatprep.mubr.bf16.mxu0 %v956_v41  ;;  %1677 = vmatprep.mubr.bf16.mxu1 %v15017_v60  ;;  %v997_v60 = vshrl.u32 %v15063_v45, 16  ;;  %v15235_v36 = vpack.c.bf16 %v1740_v39, %v1738_v25 }
  0xe7   : > { %v999_v49 = vor.u32 %v997_v60, %v987_v57  ;;  %v1731_v60 = vld [vmem:[%s14583_s22 + $0x80] sm:$0xff] }
  0xe9   : > { %v1004_v0 = vsel %vm612_vm0, %v999_v49, %v15106_v13 }
  0xec   : > { %1350 = vmatmul.mubr.bf16.gmra.mxu0 %v948_v6  ;;  %1678 = vmatmul.mubr.bf16.gmra.mxu1 %v15029_v4  ;;  %v1927_v4 = vshrl.u32 %v15109_v16, 16  ;;  %v1948_v6 = vshll.u32 %v15141_v54, 16 }
  0xed   : > { %1357 = vmatprep.mubr.bf16.mxu0 %v972_v8  ;;  %1685 = vmatprep.mubr.bf16.mxu1 %v15034_v14  ;;  %v988_v14 = vsel %vm612_vm0, %v983_v21, %v987_v57  ;;  %v1730_v57 = vld [vmem:[%s14583_s22 + $0x78] sm:$0xff]  ;;  %v1729_v8 = vld [vmem:[%s14583_s22 + $0x70] sm:$0xff]  ;;  %v1736_v21 = vld [vmem:[%s14583_s22 + $0xa8] sm:$0xff] }
  0xee   : > { %v1929_v41 = vrot.slane %v1927_v4, 1  ;;  %v15175_v17 = vpack.c.bf16 %v1732_v9, %v1730_v57  ;;  %v15183_v26 = vpack.c.bf16 %v1731_v60, %v1729_v8  ;;  %v15200_v35 = vpack.c.bf16 %v1736_v21, %v1734_v18 }
  0xef   : > { %v2873_v8 = vsel %vm2867_vm2, %v15149_v58, %v2872_v50  ;;  %v1999_v60 = vshrl.u32 %v15235_v36, 16  ;;  %v1908_v21 = vor.u32 %v15145_v1, %v15143_v55  ;;  %v2002_v58 = vshll.u32 %v15235_v36, 16 }
  0xf0   : > { %v1963_v4 = vshrl.u32 %v15175_v17, 16  ;;  %v1966_v34 = vshll.u32 %v15175_v17, 16  ;;  %v1954_v56 = vshrl.u32 %v15183_v26, 16  ;;  %v1957_v13 = vshll.u32 %v15183_v26, 16 }
  0xf1   : > { %v1981_v49 = vshrl.u32 %v15200_v35, 16  ;;  %v15285_v25 = vrot.slane %v1999_v60, 1 }
  0xf2   : > { %v15215_v40 = vrot.slane %v1963_v4, 1  ;;  %v15222_v46 = vrot.slane %v1966_v34, 2  ;;  %v15232_v63 = vrot.slane %v1954_v56, 1 }
  0xf4   : > { %1358 = vmatmul.mubr.bf16.gmra.mxu0 %v964_v33  ;;  %1686 = vmatmul.mubr.bf16.gmra.mxu1 %v15039_v20  ;;  %v15147_v20 = vpack.c.bf16 %v1727_v44, %v1725_v42  ;;  %v2876_v33 = vrot.slane %v15141_v54, 2  ;;  %v1737_v44 = vld [vmem:[%s14583_s22 + $0xb0] sm:$0xff]  ;;  %v15319_v16 = vor.u32 %v15222_v46, %v15215_v40  ;;  %v1752_v46 = vld [vmem:[%s14583_s22 + $0x128] sm:$0xff] }
  0xf5   : > { %1365 = vmatprep.mubr.bf16.mxu0 %v988_v14  ;;  %1693 = vmatprep.mubr.bf16.mxu1 %v15045_v29  ;;  %v980_v29 = vsel %vm612_vm0, %v975_v51, %v15097_v3  ;;  %v1950_v3 = vrot.slane %v1948_v6, 2  ;;  %v1733_v14 = vld [vmem:[%s14583_s22 + $0x90] sm:$0xff]  ;;  %v1933_v51 = vor.u32 %v1932_v53, %v1929_v41  ;;  %v2880_v41 = vrot.slane %v15175_v17, 2  ;;  %v1742_v6 = vld [vmem:[%s14583_s22 + $0xd8] sm:$0xff] }
  0xf6   : > { %v1936_v7 = vshrl.u32 %v15147_v20, 16  ;;  %v1939_v12 = vshll.u32 %v15147_v20, 16  ;;  %v2874_v38 = vrot.slane %v15147_v20, 2  ;;  %v15217_v42 = vpack.c.bf16 %v1735_v37, %v1733_v14  ;;  %v1757_v17 = vld [vmem:[%s14583_s22 + $0x150] sm:$0xff] }
  0xf7   : > { %v15241_v53 = vrot.slane %v1957_v13, 2  ;;  %v1934_v59 = vsel %vm1900_vm1, %v1925_v47, %v1933_v51  ;;  %v2884_v13 = vrot.slane %v15200_v35, 2  ;;  %v2870_v47 = vsel %vm2867_vm2, %v15178_v19, %v2869_v61 }
  0xf8   : > { %v15186_v15 = vrot.slane %v1936_v7, 1  ;;  %v15193_v27 = vrot.slane %v1939_v12, 2  ;;  %v1972_v57 = vshrl.u32 %v15217_v42, 16  ;;  %v1975_v24 = vshll.u32 %v15217_v42, 16  ;;  %v1744_v7 = vld [vmem:[%s14583_s22 + $0xe8] sm:$0xff]  ;;  %v1743_v12 = vld [vmem:[%s14583_s22 + $0xe0] sm:$0xff] }
  0xf9   : > { %v15277_v1 = vpack.c.bf16 %v1744_v7, %v1742_v6  ;;  %v1748_v6 = vld [vmem:[%s14583_s22 + $0x108] sm:$0xff]  ;;  %v2877_v19 = vsel %vm2867_vm2, %v2872_v50, %v2876_v33  ;;  %v18355_v50 = vrot.slane %v15235_v36, 2 }
  0xfa   : > { %v15274_v37 = vrot.slane %v1972_v57, 1 }
  0xfc   : > { %1366 = vmatmul.mubr.bf16.gmra.mxu0 %v980_v29  ;;  %1694 = vmatmul.mubr.bf16.gmra.mxu1 %v15050_v30  ;;  %v15181_v30 = vrot.slane %v1945_v5, 1  ;;  %v1739_v29 = vld [vmem:[%s14583_s22 + $0xc0] sm:$0xff]  ;;  %v2878_v5 = vrot.slane %v15183_v26, 2  ;;  %v1762_v26 = vld [vmem:[%s14583_s22 + $0x178] sm:$0xff] }
  0xfd   : > { %1373 = vmatprep.mubr.bf16.mxu0 %v1004_v0  ;;  %1701 = vmatprep.mubr.bf16.mxu1 %v15063_v45  ;;  %v996_v45 = vsel %vm612_vm0, %v991_v10, %v15114_v23  ;;  %v1984_v0 = vshll.u32 %v15200_v35, 16  ;;  %v15248_v9 = vpack.c.bf16 %v1739_v29, %v1737_v44  ;;  %v15251_v23 = vrot.slane %v1981_v49, 1  ;;  %v1741_v10 = vld [vmem:[%s14583_s22 + $0xd0] sm:$0xff] }
  0xfe   : > { %v1951_v4 = vor.u32 %v1950_v3, %v15181_v30  ;;  %v2882_v3 = vrot.slane %v15217_v42, 2  ;;  %v15292_v49 = vrot.slane %v2002_v58, 2 }
  0xff   : > { %v15260_v52 = vrot.slane %v1984_v0, 2  ;;  %v1993_v55 = vshll.u32 %v15248_v9, 16 }
 0x101   : > { %v15299_v57 = vrot.slane %v1993_v55, 2  ;;  %v15375_v54 = vor.u32 %v15260_v52, %v15251_v23 }
 0x104   : > { %1374 = vmatmul.mubr.bf16.gmra.mxu0 %v996_v45  ;;  %1702 = vmatmul.mubr.bf16.gmra.mxu1 %v15065_v48  ;;  %v15230_v48 = vld [vmem:[%s18346_s3 + $0x38] sm:$0xff]  }
 0x105   : > { %1381 = vmatprep.mubr.bf16.mxu0 %v1010_v28  ;;  %1709 = vmatprep.mubr.bf16.mxu1 %v538_v32  ;;  %v1916_v28 = vor.u32 %v15172_v11, %v15154_v62  ;;  %v1990_v32 = vshrl.u32 %v15248_v9, 16  ;;  %v15280_v62 = vrot.slane %v1975_v24, 2  ;;  %v15282_v11 = vpack.c.bf16 %v1743_v12, %v1741_v10  ;;  %v1746_v24 = vld [vmem:[%s14583_s22 + $0xf8] sm:$0xff]  ;;  %v1745_v10 = vld [vmem:[%s14583_s22 + $0xf0] sm:$0xff] }
 0x106   : > { %13391 = vmatprep.subr.bf16.mxu1 %v15230_v48 }
 0x107   : > { %v1917_v44 = vsel %vm1900_vm1, %v1908_v21, %v1916_v28  ;;  %v15294_v29 = vrot.slane %v1990_v32, 1  ;;  %v2008_v60 = vshrl.u32 %v15282_v11, 16 }
 0x10c   : > { %v1191_v18 = vpop.f32.mrf.mxu0  ;;  %1382 = vmatmul.mubr.bf16.gmra.mxu0 %v1007_v22  ;;  %v1519_v45 = vpop.f32.mrf.mxu1  ;;  %1710 = vmatmul.mubr.bf16.gmra.mxu1 %v537_v2  ;;  %v1952_v2 = vsel %vm1900_vm1, %v1933_v51, %v1951_v4  ;;  %v1747_v51 = vld [vmem:[%s14583_s22 + $0x100] sm:$0xff] }
 0x10d   : > { %2527 = vmatprep.mubr.bf16.mxu0 %v1934_v59  ;;  %v15272_v34 = vadd.f32 %v1519_v45, %v1191_v18  ;;  %3144 = vmatprep.mubr.bf16.mxu1 %v2873_v8  ;;  %v2017_v59 = vshrl.u32 %v15277_v1, 16  ;;  %v2020_v8 = vshll.u32 %v15277_v1, 16  ;;  %v15315_v18 = vor.u32 %v15193_v27, %v15186_v15  ;;  %v1750_v27 = vld [vmem:[%s14583_s22 + $0x118] sm:$0xff] }
 0x10e   : > { %v1193_v14 = vpop.f32.mrf.mxu0  ;;  %v1521_v56 = vpop.f32.mrf.mxu1  ;;  %v2011_v45 = vshll.u32 %v15282_v11, 16  ;;  %v15326_v15 = vpack.c.bf16 %v1748_v6, %v1746_v24  ;;  %v15332_v40 = vpack.c.bf16 %v1747_v51, %v1745_v10  ;;  %v1754_v51 = vld [vmem:[%s14583_s22 + $0x138] sm:$0xff] }
 0x10f   : > { %v2886_v14 = vrot.slane %v15248_v9, 2  ;;  %v15330_v56 = vrot.slane %v2017_v59, 1 }
 0x110   : > { %v1194_v30 = vpop.f32.mrf.mxu0  ;;  %v1522_v39 = vpop.f32.mrf.mxu1  ;;  %v15350_v59 = vrot.slane %v2011_v45, 2  ;;  %v2035_v6 = vshrl.u32 %v15326_v15, 16  ;;  %v2029_v10 = vshll.u32 %v15332_v40, 16  ;;  %v15371_v45 = vor.u32 %v15241_v53, %v15232_v63  ;;  %v1755_v53 = vld [vmem:[%s14583_s22 + $0x140] sm:$0xff] }
 0x111   : > { %v15296_v0 = vadd.f32 %v1522_v39, %v1194_v30  ;;  %v1943_v39 = vsel %vm1900_vm1, %v1916_v28, %v15315_v18 }
 0x112   : > { %v1196_v22 = vpop.f32.mrf.mxu0  ;;  %v1524_v7 = vpop.f32.mrf.mxu1  ;;  %v15389_v52 = vrot.slane %v2035_v6, 1  ;;  %v2879_v6 = vsel %vm2867_vm2, %v2874_v38, %v2878_v5 }
 0x113   : > { %v2038_v7 = vshll.u32 %v15326_v15, 16 }
 0x114   : > { %v1199_v12 = vpop.f32.mrf.mxu0  ;;  %2528 = vmatmul.mubr.bf16.vlgmr.msra.gmra.mxu0 %v1917_v44  ;;  %v1527_v21 = vpop.f32.mrf.mxu1  ;;  %3145 = vmatmul.mubr.bf16.vlgmr.msra.gmra.mxu1 %v2870_v47  ;;  %v15338_v44 = vrot.slane %v2020_v8, 2  ;;  %v15340_v47 = vrot.slane %v2008_v60, 1  ;;  %v1751_v8 = vld [vmem:[%s14583_s22 + $0x120] sm:$0xff]  ;;  %v2026_v60 = vshrl.u32 %v15332_v40, 16 }
 0x115   : > { %2535 = vmatprep.mubr.bf16.mxu0 %v1952_v2  ;;  %v15323_v58 = vadd.f32 %v1527_v21, %v1199_v12  ;;  %3152 = vmatprep.mubr.bf16.mxu1 %v2877_v19  ;;  %v18356_v2 = vrot.slane %v15277_v1, 2  ;;  %v15356_v19 = vpack.c.bf16 %v1752_v46, %v1750_v27  ;;  %v1756_v12 = vld [vmem:[%s14583_s22 + $0x148] sm:$0xff]  ;;  %v15378_v27 = vpack.c.bf16 %v1751_v8, %v1749_v31  ;;  %v14154_v31 = vld [vmem:[%s18346_s3 + $0x30] sm:$0xff]  }
 0x116   : > { %v1201_v32 = vpop.f32.mrf.mxu0  ;;  %13328 = vmatpush3.bf16.msra.mxu0 %v15212_v43  ;;  %v1529_v55 = vpop.f32.mrf.mxu1  ;;  %13392 = vmatpush3.bf16.msra.mxu1 %v15230_v48  ;;  %v2875_v43 = vsel %vm2867_vm2, %v2869_v61, %v2874_v38  ;;  %v1970_v48 = vsel %vm1900_vm1, %v1951_v4, %v15319_v16  ;;  %v2881_v4 = vsel %vm2867_vm2, %v2876_v33, %v2880_v41 }
 0x117   : > { %v1753_v55 = vld [vmem:[%s14583_s22 + $0x130] sm:$0xff]  ;;  %v2056_v63 = vshll.u32 %v15356_v19, 16  ;;  %13393 = vmatprep.subr.bf16.mxu1 %v14154_v31  ;;  %v15490_v35 = vor.u32 %v15338_v44, %v15330_v56  ;;  %v1766_v44 = vld [vmem:[%s14583_s22 + $0x198] sm:$0xff] }
 0x118   : > { %v1202_v30 = vpop.f32.mrf.mxu0  ;;  %v1530_v22 = vpop.f32.mrf.mxu1 }
 0x119   : > { %v15352_v28 = vadd.f32 %v1530_v22, %v1202_v30  ;;  %v14153_v22 = vld [vmem:[%s18346_s3 + $0x70] sm:$0xff]  }
 0x11a   : > { %v1204_v24 = vpop.f32.mrf.mxu0  ;;  %v1532_v61 = vpop.f32.mrf.mxu1  ;;  %13329 = vmatprep.subr.bf16.mxu0 %v14153_v22  ;;  %13394 = vmatpush3.bf16.msra.mxu1 %v14154_v31 }
 0x11b   : > { %18357 = vst [vmem:[#allocation6_spill] sm:$0xff] %v15352_v28  ;;  %v15395_v24 = vpack.c.bf16 %v1756_v12, %v1754_v51  ;;  %v1961_v61 = vsel %vm1900_vm1, %v15315_v18, %v15371_v45  ;;  %v1988_v51 = vsel %vm1900_vm1, %v15319_v16, %v15375_v54  ;;  %v2044_v18 = vshrl.u32 %v15378_v27, 16  ;;  %13330 = vmatpush3.bf16.msra.mxu0 %v14153_v22 }
 0x11c   : > { %v1207_v21 = vpop.f32.mrf.mxu0  ;;  %2536 = vmatmul.mubr.bf16.gmra.mxu0 %v1943_v39  ;;  %v1535_v32 = vpop.f32.mrf.mxu1  ;;  %3153 = vmatmul.mubr.bf16.gmra.mxu1 %v2875_v43  ;;  %v2053_v39 = vshrl.u32 %v15356_v19, 16  ;;  %v15391_v43 = vrot.slane %v2038_v7, 2  ;;  %v2047_v16 = vshll.u32 %v15378_v27, 16  ;;  %v1759_v7 = vld [vmem:[%s14583_s22 + $0x160] sm:$0xff] }
 0x11d   : > { %2543 = vmatprep.mubr.bf16.mxu0 %v1970_v48  ;;  %v15381_v46 = vadd.f32 %v1535_v32, %v1207_v21  ;;  %3160 = vmatprep.mubr.bf16.mxu1 %v2881_v4  ;;  %v15393_v48 = vrot.slane %v2026_v60, 1  ;;  %v15409_v4 = vrot.slane %v2029_v10, 2  ;;  %v15416_v21 = vpack.c.bf16 %v1755_v53, %v1753_v55 }
 0x11e   : > { %v1209_v30 = vpop.f32.mrf.mxu0  ;;  %v1537_v23 = vpop.f32.mrf.mxu1  ;;  %v15420_v10 = vrot.slane %v2053_v39, 1  ;;  %v15422_v32 = vrot.slane %v2056_v63, 2  ;;  %v2885_v55 = vsel %vm2867_vm2, %v2880_v41, %v2884_v13  ;;  %v2071_v53 = vshrl.u32 %v15395_v24, 16  ;;  %v1758_v39 = vld [vmem:[%s14583_s22 + $0x158] sm:$0xff] }
 0x11f   : > { %18358 = vst [vmem:[#allocation7_spill] sm:$0xff] %v15381_v46  ;;  %v2074_v22 = vshll.u32 %v15395_v24, 16  ;;  %v1760_v23 = vld [vmem:[%s14583_s22 + $0x168] sm:$0xff]  ;;  %v2065_v12 = vshll.u32 %v15416_v21, 16  ;;  %v15444_v33 = vrot.slane %v2044_v18, 1  ;;  %v2883_v18 = vsel %vm2867_vm2, %v2878_v5, %v2882_v3 }
 0x120   : > { %v1210_v8 = vpop.f32.mrf.mxu0  ;;  %v1538_v60 = vpop.f32.mrf.mxu1 }
 0x121   : > { %v15418_v20 = vadd.f32 %v1538_v60, %v1210_v8  ;;  %v1978_v8 = vor.u32 %v15280_v62, %v15274_v37  ;;  %v2062_v60 = vshrl.u32 %v15416_v21, 16  ;;  %v15446_v37 = vrot.slane %v2047_v16, 2 }
 0x122   : > { %v1212_v38 = vpop.f32.mrf.mxu0  ;;  %v1540_v30 = vpop.f32.mrf.mxu1  ;;  %v15448_v62 = vpack.c.bf16 %v1760_v23, %v1758_v39  ;;  %v15459_v16 = vrot.slane %v2071_v53, 1  ;;  %v15461_v39 = vrot.slane %v2074_v22, 2  ;;  %v15463_v23 = vpack.c.bf16 %v1759_v7, %v1757_v17  ;;  %v1761_v17 = vld [vmem:[%s14583_s22 + $0x170] sm:$0xff] }
 0x123   : > { %18359 = vst [vmem:[#allocation8_spill] sm:$0xff] %v15418_v20  ;;  %v2005_v30 = vor.u32 %v15292_v49, %v15285_v25  ;;  %v1764_v25 = vld [vmem:[%s14583_s22 + $0x188] sm:$0xff]  ;;  %v2889_v7 = vsel %vm2867_vm2, %v2884_v13, %v18355_v50 }
 0x124   : > { %v1215_v63 = vpop.f32.mrf.mxu0  ;;  %2544 = vmatmul.mubr.bf16.gmra.mxu0 %v1961_v61  ;;  %v1543_v31 = vpop.f32.mrf.mxu1  ;;  %3161 = vmatmul.mubr.bf16.gmra.mxu1 %v2879_v6  ;;  %v2089_v53 = vshrl.u32 %v15448_v62, 16  ;;  %v2092_v22 = vshll.u32 %v15448_v62, 16  ;;  %v2080_v13 = vshrl.u32 %v15463_v23, 16 }
 0x125   : > { %2551 = vmatprep.mubr.bf16.mxu0 %v1988_v51  ;;  %v15438_v38 = vadd.f32 %v1543_v31, %v1215_v63  ;;  %3168 = vmatprep.mubr.bf16.mxu1 %v2885_v55  ;;  %v1979_v51 = vsel %vm1900_vm1, %v15371_v45, %v1978_v8  ;;  %v2006_v31 = vsel %vm1900_vm1, %v15375_v54, %v2005_v30 }
 0x126   : > { %v1217_v41 = vpop.f32.mrf.mxu0  ;;  %v1545_v61 = vpop.f32.mrf.mxu1 }
 0x127   : > { %18360 = vst [vmem:[#allocation9_spill] sm:$0xff] %v15438_v38  ;;  %v15469_v41 = vrot.slane %v2062_v60, 1  ;;  %v15471_v61 = vrot.slane %v2065_v12, 2  ;;  %v15486_v12 = vor.u32 %v15299_v57, %v15294_v29 }
 0x128   : > { %v1218_v6 = vpop.f32.mrf.mxu0  ;;  %v1546_v49 = vpop.f32.mrf.mxu1 }
 0x129   : > { %v15465_v45 = vadd.f32 %v1546_v49, %v1218_v6  ;;  %v1763_v6 = vld [vmem:[%s14583_s22 + $0x180] sm:$0xff]  ;;  %v2083_v49 = vshll.u32 %v15463_v23, 16  ;;  %v1997_v50 = vsel %vm1900_vm1, %v1978_v8, %v15486_v12 }
 0x12a   : > { %v1220_v63 = vpop.f32.mrf.mxu0  ;;  %v1548_v5 = vpop.f32.mrf.mxu1  ;;  %v15502_v56 = vpack.c.bf16 %v1763_v6, %v1761_v17 }
 0x12b   : > { %18361 = vst [vmem:[#allocation10_spill] sm:$0xff] %v15465_v45  ;;  %v15498_v5 = vpack.c.bf16 %v1764_v25, %v1762_v26  ;;  %v2887_v25 = vsel %vm2867_vm2, %v2882_v3, %v2886_v14  ;;  %v2024_v26 = vsel %vm1900_vm1, %v2005_v30, %v15490_v35  ;;  %v15519_v17 = vrot.slane %v2083_v49, 2 }
 0x12c   : > { %v1223_v54 = vpop.f32.mrf.mxu0  ;;  %2552 = vmatmul.mubr.bf16.gmra.mxu0 %v1979_v51  ;;  %v1551_v60 = vpop.f32.mrf.mxu1  ;;  %3169 = vmatmul.mubr.bf16.gmra.mxu1 %v2883_v18  ;;  %v18364_v3 = vrot.slane %v15235_v36, 2  ;;  %v15543_v36 = vor.u32 %v15391_v43, %v15389_v52 }
 0x12d   : > { %2559 = vmatprep.mubr.bf16.mxu0 %v2006_v31  ;;  %v15494_v63 = vadd.f32 %v1551_v60, %v1223_v54  ;;  %3176 = vmatprep.mubr.bf16.mxu1 %v2889_v7  ;;  %v15500_v31 = vrot.slane %v2089_v53, 1  ;;  %v15507_v54 = vrot.slane %v2092_v22, 2  ;;  %v1768_v60 = vld [vmem:[%s14583_s22 + $0x1a8] sm:$0xff]  ;;  %v15517_v53 = vrot.slane %v2080_v13, 1 }
 0x12e   : > { %v1225_v51 = vpop.f32.mrf.mxu0  ;;  %v1553_v18 = vpop.f32.mrf.mxu1  ;;  %v2893_v30 = vsel %vm2867_vm2, %v18364_v3, %v18356_v2  ;;  %v2098_v13 = vshrl.u32 %v15502_v56, 16  ;;  %v15533_v49 = vpack.c.bf16 %v1768_v60, %v1766_v44  ;;  %v1770_v44 = vld [vmem:[%s14583_s22 + $0x1b8] sm:$0xff] }
 0x12f   : > { %18362 = vst [vmem:[#allocation11_spill] sm:$0xff] %v15494_v63  ;;  %v2107_v51 = vshrl.u32 %v15498_v5, 16  ;;  %v2110_v18 = vshll.u32 %v15498_v5, 16 }
 0x130   : > { %v1226_v55 = vpop.f32.mrf.mxu0  ;;  %v1554_v7 = vpop.f32.mrf.mxu1  ;;  %v15559_v43 = vrot.slane %v2098_v13, 1 }
 0x131   : > { %v15521_v8 = vadd.f32 %v1554_v7, %v1226_v55  ;;  %v2101_v55 = vshll.u32 %v15502_v56, 16  ;;  %v1765_v7 = vld [vmem:[%s14583_s22 + $0x190] sm:$0xff] }
 0x132   : > { %v1228_v22 = vpop.f32.mrf.mxu0  ;;  %v1556_v42 = vpop.f32.mrf.mxu1 }
 0x133   : > { %18363 = vst [vmem:[#allocation12_spill] sm:$0xff] %v15521_v8  ;;  %v1767_v22 = vld [vmem:[%s14583_s22 + $0x1a0] sm:$0xff]  ;;  %v15539_v42 = vor.u32 %v15350_v59, %v15340_v47  ;;  %v1772_v47 = vld [vmem:[%s14583_s22 + $0x1c8] sm:$0xff]  ;;  %v15561_v3 = vrot.slane %v2101_v55, 2  ;;  %v18366_v55 = vrot.slane %v15282_v11, 2 }
 0x134   : > { %v1231_v6 = vpop.f32.mrf.mxu0  ;;  %2560 = vmatmul.mubr.bf16.gmra.mxu0 %v1997_v50  ;;  %v1559_v57 = vpop.f32.mrf.mxu1  ;;  %3177 = vmatmul.mubr.bf16.gmra.mxu1 %v2887_v25  ;;  %v15549_v50 = vrot.slane %v2107_v51, 1  ;;  %v15551_v25 = vrot.slane %v2110_v18, 2  ;;  %v14155_v59 = vld [vmem:[%s18346_s3 + $0x68] sm:$0xff]   ;;  %v1769_v18 = vld [vmem:[%s14583_s22 + $0x1b0] sm:$0xff]  ;;  %v1771_v51 = vld [vmem:[%s14583_s22 + $0x1c0] sm:$0xff] }
 0x135   : > { %2567 = vmatprep.mubr.bf16.mxu0 %v2024_v26  ;;  %v15547_v60 = vadd.f32 %v1559_v57, %v1231_v6  ;;  %3184 = vmatprep.mubr.bf16.mxu1 %v2893_v30  ;;  %v15553_v26 = vpack.c.bf16 %v1767_v22, %v1765_v7  ;;  %v14156_v57 = vld [vmem:[%s18346_s3 + $0x28] sm:$0xff]   ;;  %v2015_v13 = vsel %vm1900_vm1, %v15486_v12, %v15539_v42  ;;  %v2128_v22 = vshll.u32 %v15533_v49, 16 }
 0x136   : > { %v1233_v29 = vpop.f32.mrf.mxu0  ;;  %v1561_v52 = vpop.f32.mrf.mxu1  ;;  %13331 = vmatprep.subr.bf16.mxu0 %v14155_v59  ;;  %v2891_v7 = vsel %vm2867_vm2, %v2886_v14, %v18366_v55  ;;  %13395 = vmatprep.subr.bf16.mxu1 %v14156_v57  ;;  %v2042_v12 = vsel %vm1900_vm1, %v15490_v35, %v15543_v36  ;;  %v1774_v55 = vld [vmem:[%s14583_s22 + $0x1d8] sm:$0xff]  ;;  %v1776_v8 = vld [vmem:[%s14583_s22 + $0x1e8] sm:$0xff]  ;;  %v1775_v35 = vld [vmem:[%s14583_s22 + $0x1e0] sm:$0xff]  ;;  %v15600_v45 = vpack.c.bf16 %v1771_v51, %v1769_v18 }
 0x137   : > { %18365 = vst [vmem:[#allocation13_spill] sm:$0xff] %v15547_v60  ;;  %v2125_v29 = vshrl.u32 %v15533_v49, 16  ;;  %v15578_v52 = vpack.c.bf16 %v1772_v47, %v1770_v44  ;;  %13332 = vmatpush3.bf16.msra.mxu0 %v14155_v59  ;;  %v2116_v9 = vshrl.u32 %v15553_v26, 16  ;;  %v2119_v14 = vshll.u32 %v15553_v26, 16  ;;  %13396 = vmatpush3.bf16.msra.mxu1 %v14156_v57 }
 0x138   : > { %v1234_v6 = vpop.f32.mrf.mxu0  ;;  %v1562_v30 = vpop.f32.mrf.mxu1  ;;  %v18368_v47 = vrot.slane %v15326_v15, 2  ;;  %v18369_v59 = vrot.slane %v15277_v1, 2  ;;  %v2032_v57 = vor.u32 %v15409_v4, %v15393_v48  ;;  %v15606_v1 = vor.u32 %v15422_v32, %v15420_v10  ;;  %v1778_v4 = vld [vmem:[%s14583_s22 + $0x1f8] sm:$0xff] }
 0x139   : > { %v15581_v2 = vadd.f32 %v1562_v30, %v1234_v6  ;;  %v15596_v30 = vrot.slane %v2125_v29, 1  ;;  %v2143_v29 = vshrl.u32 %v15578_v52, 16  ;;  %v15613_v51 = vrot.slane %v2116_v9, 1 }
 0x13a   : > { %v1236_v60 = vpop.f32.mrf.mxu0  ;;  %v1564_v44 = vpop.f32.mrf.mxu1  ;;  %v2897_v6 = vsel %vm2867_vm2, %v18369_v59, %v18368_v47  ;;  %v15615_v18 = vrot.slane %v2119_v14, 2  ;;  %v18372_v9 = vrot.slane %v15282_v11, 2  ;;  %v1780_v11 = vld [vmem:[%s14583_s22 + $0x208] sm:$0xff] }
 0x13b   : > { %18367 = vst [vmem:[#allocation14_spill] sm:$0xff] %v15581_v2  ;;  %v1773_v2 = vld [vmem:[%s14583_s22 + $0x1d0] sm:$0xff]  ;;  %v15608_v44 = vrot.slane %v2128_v22, 2  ;;  %v1779_v60 = vld [vmem:[%s14583_s22 + $0x200] sm:$0xff] }
 0x13c   : > { %v1239_v63 = vpop.f32.mrf.mxu0  ;;  %2568 = vmatmul.mubr.bf16.gmra.mxu0 %v2015_v13  ;;  %v1567_v38 = vpop.f32.mrf.mxu1  ;;  %3185 = vmatmul.mubr.bf16.gmra.mxu1 %v2891_v7  ;;  %v15617_v13 = vpack.c.bf16 %v1776_v8, %v1774_v55  ;;  %v15621_v10 = vpack.c.bf16 %v1775_v35, %v1773_v2  ;;  %v2033_v8 = vsel %vm1900_vm1, %v15539_v42, %v2032_v57  ;;  %v15632_v55 = vrot.slane %v2143_v29, 1 }
 0x13d   : > { %2575 = vmatprep.mubr.bf16.mxu0 %v2042_v12  ;;  %v15611_v47 = vadd.f32 %v1567_v38, %v1239_v63  ;;  %3192 = vmatprep.mubr.bf16.mxu1 %v2897_v6  ;;  %v2146_v38 = vshll.u32 %v15578_v52, 16  ;;  %v2134_v63 = vshrl.u32 %v15600_v45, 16  ;;  %v18371_v12 = vrot.slane %v15332_v40, 2 }
 0x13e   : > { %v1241_v59 = vpop.f32.mrf.mxu0  ;;  %v1569_v7 = vpop.f32.mrf.mxu1  ;;  %v2137_v2 = vshll.u32 %v15600_v45, 16  ;;  %v2161_v42 = vshrl.u32 %v15617_v13, 16  ;;  %v18375_v29 = vrot.slane %v15326_v15, 2 }
 0x13f   : > { %18370 = vst [vmem:[#allocation15_spill] sm:$0xff] %v15611_v47  ;;  %v2895_v14 = vsel %vm2867_vm2, %v18372_v9, %v18371_v12  ;;  %v2060_v59 = vsel %vm1900_vm1, %v15543_v36, %v15606_v1  ;;  %v2164_v7 = vshll.u32 %v15617_v13, 16  ;;  %v18374_v12 = vrot.slane %v15356_v19, 2 }
 0x140   : > { %v1242_v32 = vpop.f32.mrf.mxu0  ;;  %v1570_v22 = vpop.f32.mrf.mxu1  ;;  %v15657_v15 = vrot.slane %v2146_v38, 2  ;;  %v15666_v28 = vrot.slane %v2137_v2, 2 }
 0x141   : > { %v15635_v6 = vadd.f32 %v1570_v22, %v1242_v32  ;;  %v2901_v9 = vsel %vm2867_vm2, %v18375_v29, %v18374_v12  ;;  %v2152_v32 = vshrl.u32 %v15621_v10, 16  ;;  %v2155_v22 = vshll.u32 %v15621_v10, 16 }
 0x142   : > { %v1244_v35 = vpop.f32.mrf.mxu0  ;;  %v1572_v48 = vpop.f32.mrf.mxu1  ;;  %v15659_v12 = vrot.slane %v2134_v63, 1  ;;  %v15661_v29 = vpack.c.bf16 %v1780_v11, %v1778_v4 }
 0x143   : > { %18373 = vst [vmem:[#allocation16_spill] sm:$0xff] %v15635_v6  ;;  %v1777_v35 = vld [vmem:[%s14583_s22 + $0x1f0] sm:$0xff]  ;;  %v2050_v6 = vor.u32 %v15446_v37, %v15444_v33  ;;  %v2077_v48 = vor.u32 %v15461_v39, %v15459_v16  ;;  %v15671_v16 = vrot.slane %v2161_v42, 1  ;;  %v15673_v39 = vrot.slane %v2164_v7, 2 }
 0x144   : > { %v1247_v36 = vpop.f32.mrf.mxu0  ;;  %2576 = vmatmul.mubr.bf16.gmra.mxu0 %v2033_v8  ;;  %v1575_v47 = vpop.f32.mrf.mxu1  ;;  %3193 = vmatmul.mubr.bf16.gmra.mxu1 %v2895_v14  ;;  %v2920_v8 = vrot.slane %v15578_v52, 2  ;;  %v15668_v33 = vpack.c.bf16 %v1779_v60, %v1777_v35  ;;  %v2918_v14 = vrot.slane %v15600_v45, 2  ;;  %v15675_v38 = vrot.slane %v2152_v32, 1 }
 0x145   : > { %2583 = vmatprep.mubr.bf16.mxu0 %v2060_v59  ;;  %v15663_v20 = vadd.f32 %v1575_v47, %v1247_v36  ;;  %3200 = vmatprep.mubr.bf16.mxu1 %v2901_v9  ;;  %v2924_v47 = vrot.slane %v15617_v13, 2  ;;  %v2051_v2 = vsel %vm1900_vm1, %v2032_v57, %v2050_v6  ;;  %v18376_v60 = vrot.slane %v15378_v27, 2 }
 0x146   : > { %v1249_v46 = vpop.f32.mrf.mxu0  ;;  %v1577_v37 = vpop.f32.mrf.mxu1  ;;  %v18377_v59 = vrot.slane %v15332_v40, 2  ;;  %v2179_v7 = vshrl.u32 %v15661_v29, 16  ;;  %v2182_v35 = vshll.u32 %v15661_v29, 16  ;;  %v2170_v57 = vshrl.u32 %v15668_v33, 16 }
 0x147   : > { %v15678_v46 = vrot.slane %v2155_v22, 2  ;;  %v2078_v22 = vsel %vm1900_vm1, %v15606_v1, %v2077_v48  ;;  %v18378_v37 = vrot.slane %v15395_v24, 2  ;;  %v18379_v40 = vrot.slane %v15356_v19, 2 }
 0x148   : > { %v1250_v4 = vpop.f32.mrf.mxu0  ;;  %v1578_v63 = vpop.f32.mrf.mxu1  ;;  %v2899_v11 = vsel %vm2867_vm2, %v18377_v59, %v18376_v60  ;;  %v2173_v19 = vshll.u32 %v15668_v33, 16 }
 0x149   : > { %v15688_v9 = vadd.f32 %v1578_v63, %v1250_v4  ;;  %v2905_v60 = vsel %vm2867_vm2, %v18379_v40, %v18378_v37  ;;  %v2068_v4 = vor.u32 %v15471_v61, %v15469_v41  ;;  %v15710_v40 = vrot.slane %v2179_v7, 1  ;;  %v14158_v41 = vld [vmem:[%s18346_s3 + $0x20] sm:$0xff]  }
 0x14a   : > { %v1252_v32 = vpop.f32.mrf.mxu0  ;;  %v1580_v36 = vpop.f32.mrf.mxu1  ;;  %v18382_v7 = vrot.slane %v15448_v62, 2  ;;  %13397 = vmatprep.subr.bf16.mxu1 %v14158_v41 }
 0x14b   : > { %v2095_v32 = vor.u32 %v15507_v54, %v15500_v31  ;;  %v18380_v54 = vrot.slane %v15416_v21, 2  ;;  %13398 = vmatpush3.bf16.msra.mxu1 %v14158_v41 }
 0x14c   : > { %v1255_v59 = vpop.f32.mrf.mxu0  ;;  %2584 = vmatmul.mubr.bf16.gmra.mxu0 %v2051_v2  ;;  %v1583_v42 = vpop.f32.mrf.mxu1  ;;  %3201 = vmatmul.mubr.bf16.gmra.mxu1 %v2899_v11  ;;  %v14157_v2 = vld [vmem:[%s18346_s3 + $0x60] sm:$0xff]  }
 0x14d   : > { %2591 = vmatprep.mubr.bf16.mxu0 %v2078_v22  ;;  %v15701_v1 = vadd.f32 %v1583_v42, %v1255_v59  ;;  %3208 = vmatprep.mubr.bf16.mxu1 %v2905_v60  ;;  %v2069_v22 = vsel %vm1900_vm1, %v2050_v6, %v2068_v4  ;;  %v18381_v42 = vrot.slane %v15378_v27, 2  ;;  %v2096_v59 = vsel %vm1900_vm1, %v2077_v48, %v2095_v32 }
 0x14e   : > { %v1257_v63 = vpop.f32.mrf.mxu0  ;;  %v1585_v36 = vpop.f32.mrf.mxu1  ;;  %13333 = vmatprep.subr.bf16.mxu0 %v14157_v2  ;;  %v2086_v27 = vor.u32 %v15519_v17, %v15517_v53 }
 0x14f   : > { %v2903_v60 = vsel %vm2867_vm2, %v18381_v42, %v18380_v54  ;;  %13334 = vmatpush3.bf16.msra.mxu0 %v14157_v2  ;;  %v18383_v63 = vrot.slane %v15395_v24, 2  ;;  %v2113_v24 = vor.u32 %v15551_v25, %v15549_v50  ;;  %v15734_v54 = vrot.slane %v2182_v35, 2 }
 0x150   : > { %v1258_v37 = vpop.f32.mrf.mxu0  ;;  %v1586_v11 = vpop.f32.mrf.mxu1  ;;  %v18385_v50 = vrot.slane %v15416_v21, 2 }
 0x151   : > { %v15715_v61 = vadd.f32 %v1586_v11, %v1258_v37  ;;  %v2909_v36 = vsel %vm2867_vm2, %v18383_v63, %v18382_v7  ;;  %v18384_v7 = vrot.slane %v15463_v23, 2  ;;  %v2114_v35 = vsel %vm1900_vm1, %v2095_v32, %v2113_v24 }
 0x152   : > { %v1260_v31 = vpop.f32.mrf.mxu0  ;;  %v1588_v6 = vpop.f32.mrf.mxu1  ;;  %v2104_v32 = vor.u32 %v15561_v3, %v15559_v43  ;;  %v2185_v52 = vor.u32 %v15734_v54, %v15710_v40 }
 0x153   : > { %v1784_v6 = vld [vmem:[%s14583_s22 + $0x228] sm:$0xff]  ;;  %v2907_v25 = vsel %vm2867_vm2, %v18385_v50, %v18384_v7 }
 0x154   : > { %v1263_v37 = vpop.f32.mrf.mxu0  ;;  %2592 = vmatmul.mubr.bf16.gmra.mxu0 %v2069_v22  ;;  %v1591_v11 = vpop.f32.mrf.mxu1  ;;  %3209 = vmatmul.mubr.bf16.gmra.mxu1 %v2903_v60  ;;  %v15736_v22 = vrot.slane %v2170_v57, 1  ;;  %v2087_v60 = vsel %vm1900_vm1, %v2068_v4, %v2086_v27  ;;  %v15749_v57 = vrot.slane %v2173_v19, 2  ;;  %v14159_v4 = vld [vmem:[%s18346_s3 + $0x18] sm:$0xff]   ;;  %v1781_v19 = vld [vmem:[%s14583_s22 + $0x210] sm:$0xff] }
 0x155   : > { %2599 = vmatprep.mubr.bf16.mxu0 %v2096_v59  ;;  %v15730_v48 = vadd.f32 %v1591_v11, %v1263_v37  ;;  %3216 = vmatprep.mubr.bf16.mxu1 %v2909_v36  ;;  %v1782_v59 = vld [vmem:[%s14583_s22 + $0x218] sm:$0xff]  ;;  %v18386_v36 = vrot.slane %v15498_v5, 2  ;;  %v18387_v37 = vrot.slane %v15448_v62, 2  ;;  %v2131_v62 = vor.u32 %v15608_v44, %v15596_v30 }
 0x156   : > { %v1265_v2 = vpop.f32.mrf.mxu0  ;;  %v1593_v31 = vpop.f32.mrf.mxu1  ;;  %13399 = vmatprep.subr.bf16.mxu1 %v14159_v4  ;;  %v15768_v7 = vpack.c.bf16 %v1784_v6, %v1782_v59  ;;  %v2176_v45 = vor.u32 %v15749_v57, %v15736_v22 }
 0x157   : > { %v2913_v11 = vsel %vm2867_vm2, %v18387_v37, %v18386_v36  ;;  %v1783_v31 = vld [vmem:[%s14583_s22 + $0x220] sm:$0xff]  ;;  %13400 = vmatpush3.bf16.msra.mxu1 %v14159_v4  ;;  %v2132_v6 = vsel %vm1900_vm1, %v2113_v24, %v2131_v62 }
 0x158   : > { %v1266_v41 = vpop.f32.mrf.mxu0  ;;  %v1594_v42 = vpop.f32.mrf.mxu1  ;;  %v2197_v4 = vshrl.u32 %v15768_v7, 16  ;;  %v15783_v36 = vpack.c.bf16 %v1783_v31, %v1781_v19  ;;  %v2122_v19 = vor.u32 %v15615_v18, %v15613_v51  ;;  %v14165_v51 = vld [vmem:[%s18346_s3] sm:$0xff]  }
 0x159   : > { %v15741_v53 = vadd.f32 %v1594_v42, %v1266_v41 }
 0x15a   : > { %v1268_v17 = vpop.f32.mrf.mxu0  ;;  %v1596_v63 = vpop.f32.mrf.mxu1 }
 0x15b   : > { %v2928_v17 = vrot.slane %v15661_v29, 2  ;;  %v18389_v63 = vrot.slane %v15463_v23, 2  ;;  %v18391_v23 = vrot.slane %v15498_v5, 2  ;;  %v2200_v5 = vshll.u32 %v15768_v7, 16 }
 0x15c   : > { %v1271_v2 = vpop.f32.mrf.mxu0  ;;  %2600 = vmatmul.mubr.bf16.gmra.mxu0 %v2087_v60  ;;  %v1599_v21 = vpop.f32.mrf.mxu1  ;;  %3217 = vmatmul.mubr.bf16.gmra.mxu1 %v2907_v25  ;;  %v14161_v60 = vld [vmem:[%s18346_s3 + $0x10] sm:$0xff]   ;;  %v2105_v25 = vsel %vm1900_vm1, %v2086_v27, %v2104_v32  ;;  %v14163_v27 = vld [vmem:[%s18346_s3 + $0x8] sm:$0xff]  }
 0x15d   : > { %2607 = vmatprep.mubr.bf16.mxu0 %v2114_v35  ;;  %v15763_v41 = vadd.f32 %v1599_v21, %v1271_v2  ;;  %3224 = vmatprep.mubr.bf16.mxu1 %v2913_v11  ;;  %v18388_v35 = vrot.slane %v15502_v56, 2  ;;  %v18390_v11 = vrot.slane %v15533_v49, 2  ;;  %v14164_v49 = vld [vmem:[%s18346_s3 + $0x48] sm:$0xff]   ;;  %v2929_v54 = vsel %vm2867_vm2, %v2924_v47, %v2928_v17 }
 0x15e   : > { %v1273_v42 = vpop.f32.mrf.mxu0  ;;  %v1601_v50 = vpop.f32.mrf.mxu1  ;;  %13401 = vmatprep.subr.bf16.mxu1 %v14161_v60 }
 0x15f   : > { %v2911_v30 = vsel %vm2867_vm2, %v18389_v63, %v18388_v35  ;;  %13402 = vmatpush3.bf16.msra.mxu1 %v14161_v60  ;;  %v2917_v2 = vsel %vm2867_vm2, %v18391_v23, %v18390_v11  ;;  %v2149_v60 = vor.u32 %v15657_v15, %v15632_v55  ;;  %v2188_v50 = vshrl.u32 %v15783_v36, 16 }
 0x160   : > { %v1274_v3 = vpop.f32.mrf.mxu0  ;;  %v1602_v43 = vpop.f32.mrf.mxu1  ;;  %13403 = vmatprep.subr.bf16.mxu1 %v14163_v27  ;;  %v2123_v55 = vsel %vm1900_vm1, %v2104_v32, %v2122_v19  ;;  %v18392_v63 = vrot.slane %v15553_v26, 2  ;;  %v2921_v23 = vsel %vm2867_vm2, %v18390_v11, %v2920_v8 }
 0x161   : > { %v15779_v44 = vadd.f32 %v1602_v43, %v1274_v3  ;;  %v14160_v3 = vld [vmem:[%s18346_s3 + $0x58] sm:$0xff]  }
 0x162   : > { %v1276_v59 = vpop.f32.mrf.mxu0  ;;  %v1604_v37 = vpop.f32.mrf.mxu1  ;;  %13335 = vmatprep.subr.bf16.mxu0 %v14160_v3 }
 0x163   : > { %13404 = vmatpush3.bf16.msra.mxu1 %v14163_v27  ;;  %13336 = vmatpush3.bf16.msra.mxu0 %v14160_v3  ;;  %v2191_v27 = vshll.u32 %v15783_v36, 16  ;;  %v14162_v37 = vld [vmem:[%s18346_s3 + $0x50] sm:$0xff]   ;;  %v2199_v3 = vrot.slane %v2197_v4, 1 }
 0x164   : > { %v1279_v21 = vpop.f32.mrf.mxu0  ;;  %2608 = vmatmul.mubr.bf16.gmra.mxu0 %v2105_v25  ;;  %v1607_v24 = vpop.f32.mrf.mxu1  ;;  %3225 = vmatmul.mubr.bf16.gmra.mxu1 %v2911_v30  ;;  %v18393_v30 = vrot.slane %v15502_v56, 2 }
 0x165   : > { %2615 = vmatprep.mubr.bf16.mxu0 %v2132_v6  ;;  %v15795_v31 = vadd.f32 %v1607_v24, %v1279_v21  ;;  %3232 = vmatprep.mubr.bf16.mxu1 %v2917_v2  ;;  %v2150_v6 = vsel %vm1900_vm1, %v2131_v62, %v2149_v60  ;;  %v2140_v62 = vor.u32 %v15666_v28, %v15659_v12  ;;  %v2193_v22 = vrot.slane %v2191_v27, 2 }
 0x166   : > { %v1281_v42 = vpop.f32.mrf.mxu0  ;;  %v1609_v18 = vpop.f32.mrf.mxu1  ;;  %13405 = vmatprep.subr.bf16.mxu1 %v14165_v51  ;;  %v2915_v59 = vsel %vm2867_vm2, %v18393_v30, %v18392_v63  ;;  %13337 = vmatprep.subr.bf16.mxu0 %v14162_v37 }
 0x167   : > { %13406 = vmatpush3.bf16.msra.mxu1 %v14165_v51  ;;  %v2167_v42 = vor.u32 %v15673_v39, %v15671_v16  ;;  %13338 = vmatpush3.bf16.msra.mxu0 %v14162_v37  ;;  %v18394_v16 = vmov %v18392_v63  ;;  %v2925_v63 = vsel %vm2867_vm2, %v2920_v8, %v2924_v47 }
 0x168   : > { %v1282_v43 = vpop.f32.mrf.mxu0  ;;  %v1610_v25 = vpop.f32.mrf.mxu1  ;;  %13339 = vmatprep.subr.bf16.mxu0 %v14164_v49  ;;  %v2919_v39 = vsel %vm2867_vm2, %v18394_v16, %v2918_v14 }
 0x169   : > { %v15808_v15 = vadd.f32 %v1610_v25, %v1282_v43  ;;  %v2141_v25 = vsel %vm1900_vm1, %v2122_v19, %v2140_v62  ;;  %v2168_v4 = vsel %vm1900_vm1, %v2149_v60, %v2167_v42  ;;  %v2158_v60 = vor.u32 %v15678_v46, %v15675_v38 }
 0x16a   : > { %v1284_v35 = vpop.f32.mrf.mxu0  ;;  %v1612_v32 = vpop.f32.mrf.mxu1  ;;  %v18395_v38 = vrot.slane %v15621_v10, 2 }
 0x16b   : > { %13340 = vmatpush3.bf16.msra.mxu0 %v14164_v49  ;;  %v14166_v35 = vld [vmem:[%s18346_s3 + $0x40] sm:$0xff]  }
 0x16c   : > { %v1287_v2 = vpop.f32.mrf.mxu0  ;;  %2616 = vmatmul.mubr.bf16.gmra.mxu0 %v2123_v55  ;;  %v1615_v56 = vpop.f32.mrf.mxu1  ;;  %3233 = vmatmul.mubr.bf16.gmra.mxu1 %v2915_v59  ;;  %v2202_v55 = vrot.slane %v2200_v5, 2  ;;  %v1786_v5 = vld [vmem:[%s14583_s22 + $0x238] sm:$0xff]  ;;  %v1788_v59 = vld [vmem:[%s14583_s22 + $0x248] sm:$0xff]  ;;  %v2923_v46 = vsel %vm2867_vm2, %v2918_v14, %v18395_v38  ;;  %v2926_v14 = vrot.slane %v15668_v33, 2  ;;  %v2190_v33 = vrot.slane %v2188_v50, 1 }
 0x16d   : > { %2623 = vmatprep.mubr.bf16.mxu0 %v2150_v6  ;;  %v15827_v21 = vadd.f32 %v1615_v56, %v1287_v2  ;;  %3240 = vmatprep.mubr.bf16.mxu1 %v2921_v23  ;;  %v2159_v23 = vsel %vm1900_vm1, %v2140_v62, %v2158_v60  ;;  %v15868_v49 = vpack.c.bf16 %v1788_v59, %v1786_v5 }
 0x16e   : > { %v1289_v24 = vpop.f32.mrf.mxu0  ;;  %v1617_v51 = vpop.f32.mrf.mxu1  ;;  %13341 = vmatprep.subr.bf16.mxu0 %v14166_v35 }
 0x16f   : > { %13342 = vmatpush3.bf16.msra.mxu0 %v14166_v35  ;;  %v2186_v24 = vsel %vm1900_vm1, %v2167_v42, %v2185_v52  ;;  %v2203_v42 = vor.u32 %v2202_v55, %v2199_v3  ;;  %v2215_v13 = vshrl.u32 %v15868_v49, 16  ;;  %v2218_v47 = vshll.u32 %v15868_v49, 16  ;;  %v1792_v35 = vld [vmem:[%s14583_s22 + $0x268] sm:$0xff] }
 0x170   : > { %v1290_v18 = vpop.f32.mrf.mxu0  ;;  %v1618_v43 = vpop.f32.mrf.mxu1  ;;  %v2177_v3 = vsel %vm1900_vm1, %v2158_v60, %v2176_v45  ;;  %v18396_v55 = vmov %v18395_v38  ;;  %v1791_v38 = vld [vmem:[%s14583_s22 + $0x260] sm:$0xff] }
 0x171   : > { %v15835_v28 = vadd.f32 %v1618_v43, %v1290_v18  ;;  %v2217_v50 = vrot.slane %v2215_v13, 1  ;;  %v2220_v59 = vrot.slane %v2218_v47, 2 }
 0x172   : > { %v1292_v12 = vpop.f32.mrf.mxu0  ;;  %v1620_v19 = vpop.f32.mrf.mxu1 }
 0x173   : > { %v1787_v12 = vld [vmem:[%s14583_s22 + $0x240] sm:$0xff] }
 0x174   : > { %v1295_v30 = vpop.f32.mrf.mxu0  ;;  %2624 = vmatmul.mubr.bf16.gmra.mxu0 %v2141_v25  ;;  %v1623_v26 = vpop.f32.mrf.mxu1  ;;  %3241 = vmatmul.mubr.bf16.gmra.mxu1 %v2919_v39  ;;  %v1785_v25 = vld [vmem:[%s14583_s22 + $0x230] sm:$0xff]  ;;  %v2932_v39 = vrot.slane %v15768_v7, 2 }
 0x175   : > { %2631 = vmatprep.mubr.bf16.mxu0 %v2168_v4  ;;  %v15855_v6 = vadd.f32 %v1623_v26, %v1295_v30  ;;  %3248 = vmatprep.mubr.bf16.mxu1 %v2925_v63  ;;  %v1790_v4 = vld [vmem:[%s14583_s22 + $0x258] sm:$0xff]  ;;  %v2927_v63 = vsel %vm2867_vm2, %v18396_v55, %v2926_v14  ;;  %v2204_v30 = vsel %vm1900_vm1, %v2185_v52, %v2203_v42 }
 0x176   : > { %v1297_v37 = vpop.f32.mrf.mxu0  ;;  %v1625_v8 = vpop.f32.mrf.mxu1  ;;  %v15896_v26 = vpack.c.bf16 %v1787_v12, %v1785_v25  ;;  %v2933_v10 = vsel %vm2867_vm2, %v2928_v17, %v2932_v39  ;;  %v2194_v52 = vor.u32 %v2193_v22, %v2190_v33  ;;  %v2221_v17 = vor.u32 %v2220_v59, %v2217_v50 }
 0x177   : > { %v15900_v37 = vpack.c.bf16 %v1792_v35, %v1790_v4 }
 0x178   : > { %v1298_v32 = vpop.f32.mrf.mxu0  ;;  %v1626_v11 = vpop.f32.mrf.mxu1  ;;  %v2195_v13 = vsel %vm1900_vm1, %v2176_v45, %v2194_v52  ;;  %v2222_v22 = vsel %vm1900_vm1, %v2203_v42, %v2221_v17 }
 0x179   : > { %v15860_v2 = vadd.f32 %v1626_v11, %v1298_v32  ;;  %v2930_v32 = vrot.slane %v15783_v36, 2  ;;  %v2206_v11 = vshrl.u32 %v15896_v26, 16  ;;  %v2936_v36 = vrot.slane %v15868_v49, 2 }
 0x17a   : > { %v1300_v56 = vpop.f32.mrf.mxu0  ;;  %v1628_v40 = vpop.f32.mrf.mxu1 }
 0x17b   : > { %v1789_v56 = vld [vmem:[%s14583_s22 + $0x250] sm:$0xff]  ;;  %v2236_v40 = vshll.u32 %v15900_v37, 16  ;;  %v2931_v12 = vsel %vm2867_vm2, %v2926_v14, %v2930_v32  ;;  %v2937_v55 = vsel %vm2867_vm2, %v2932_v39, %v2936_v36 }
 0x17c   : > { %v1303_v62 = vpop.f32.mrf.mxu0  ;;  %2632 = vmatmul.mubr.bf16.gmra.mxu0 %v2159_v23  ;;  %v1631_v51 = vpop.f32.mrf.mxu1  ;;  %3249 = vmatmul.mubr.bf16.gmra.mxu1 %v2923_v46  ;;  %v2209_v23 = vshll.u32 %v15896_v26, 16  ;;  %v15918_v47 = vpack.c.bf16 %v1791_v38, %v1789_v56  ;;  %v1798_v56 = vld [vmem:[%s14583_s22 + $0x298] sm:$0xff]  ;;  %v1800_v38 = vld [vmem:[%s14583_s22 + $0x2a8] sm:$0xff] }
 0x17d   : > { %2639 = vmatprep.mubr.bf16.mxu0 %v2186_v24  ;;  %v15878_v18 = vadd.f32 %v1631_v51, %v1303_v62  ;;  %3256 = vmatprep.mubr.bf16.mxu1 %v2929_v54  ;;  %v2233_v24 = vshrl.u32 %v15900_v37, 16  ;;  %v1794_v54 = vld [vmem:[%s14583_s22 + $0x278] sm:$0xff]  ;;  %v1796_v62 = vld [vmem:[%s14583_s22 + $0x288] sm:$0xff] }
 0x17e   : > { %v1305_v43 = vpop.f32.mrf.mxu0  ;;  %v1633_v16 = vpop.f32.mrf.mxu1  ;;  %v2211_v4 = vrot.slane %v2209_v23, 2  ;;  %v15921_v35 = vpack.c.bf16 %v1796_v62, %v1794_v54  ;;  %v2224_v14 = vshrl.u32 %v15918_v47, 16  ;;  %v2940_v23 = vrot.slane %v15900_v37, 2 }
 0x17f   : > { %v2208_v16 = vrot.slane %v2206_v11, 1 }
 0x180   : > { %v1306_v19 = vpop.f32.mrf.mxu0  ;;  %v1634_v57 = vpop.f32.mrf.mxu1  ;;  %v2251_v42 = vshrl.u32 %v15921_v35, 16  ;;  %v2254_v50 = vshll.u32 %v15921_v35, 16 }
 0x181   : > { %v15898_v7 = vadd.f32 %v1634_v57, %v1306_v19  ;;  %v2235_v57 = vrot.slane %v2233_v24, 1  ;;  %v2226_v24 = vrot.slane %v2224_v14, 1 }
 0x182   : > { %v1308_v5 = vpop.f32.mrf.mxu0  ;;  %v1636_v27 = vpop.f32.mrf.mxu1 }
 0x183   : > { %v2212_v5 = vor.u32 %v2211_v4, %v2208_v16  ;;  %v2934_v27 = vrot.slane %v15896_v26, 2  ;;  %v15946_v16 = vpack.c.bf16 %v1800_v38, %v1798_v56 }
 0x184   : > { %v1311_v60 = vpop.f32.mrf.mxu0  ;;  %2640 = vmatmul.mubr.bf16.gmra.mxu0 %v2177_v3  ;;  %v1639_v8 = vpop.f32.mrf.mxu1  ;;  %3257 = vmatmul.mubr.bf16.gmra.mxu1 %v2927_v63  ;;  %v2238_v3 = vrot.slane %v2236_v40, 2  ;;  %v2227_v63 = vshll.u32 %v15918_v47, 16 }
 0x185   : > { %2647 = vmatprep.mubr.bf16.mxu0 %v2204_v30  ;;  %v15910_v46 = vadd.f32 %v1639_v8, %v1311_v60  ;;  %3264 = vmatprep.mubr.bf16.mxu1 %v2933_v10  ;;  %v1793_v60 = vld [vmem:[%s14583_s22 + $0x270] sm:$0xff]  ;;  %v1795_v8 = vld [vmem:[%s14583_s22 + $0x280] sm:$0xff]  ;;  %v2213_v62 = vsel %vm1900_vm1, %v2194_v52, %v2212_v5 }
 0x186   : > { %v1313_v29 = vpop.f32.mrf.mxu0  ;;  %v1641_v51 = vpop.f32.mrf.mxu1  ;;  %v2239_v10 = vor.u32 %v2238_v3, %v2235_v57  ;;  %v2229_v40 = vrot.slane %v2227_v63, 2  ;;  %v2938_v3 = vrot.slane %v15918_v47, 2  ;;  %v2269_v63 = vshrl.u32 %v15946_v16, 16  ;;  %v1804_v47 = vld [vmem:[%s14583_s22 + $0x2c8] sm:$0xff] }
 0x187   : > { %v2253_v51 = vrot.slane %v2251_v42, 1 }
 0x188   : > { %v1314_v43 = vpop.f32.mrf.mxu0  ;;  %v1642_v25 = vpop.f32.mrf.mxu1  ;;  %v2240_v37 = vsel %vm1900_vm1, %v2221_v17, %v2239_v10  ;;  %v2230_v52 = vor.u32 %v2229_v40, %v2226_v24  ;;  %v2939_v38 = vsel %vm2867_vm2, %v2934_v27, %v2938_v3 }
 0x189   : > { %v15923_v19 = vadd.f32 %v1642_v25, %v1314_v43  ;;  %v2256_v43 = vrot.slane %v2254_v50, 2  ;;  %v2944_v50 = vrot.slane %v15921_v35, 2 }
 0x18a   : > { %v1316_v33 = vpop.f32.mrf.mxu0  ;;  %v1644_v49 = vpop.f32.mrf.mxu1 }
 0x18b   : > { %v2941_v33 = vsel %vm2867_vm2, %v2936_v36, %v2940_v23  ;;  %v2257_v49 = vor.u32 %v2256_v43, %v2253_v51  ;;  %v2271_v51 = vrot.slane %v2269_v63, 1  ;;  %v1808_v63 = vld [vmem:[%s14583_s22 + $0x2e8] sm:$0xff] }
 0x18c   : > { %v1319_v45 = vpop.f32.mrf.mxu0  ;;  %2648 = vmatmul.mubr.bf16.gmra.mxu0 %v2195_v13  ;;  %v1647_v30 = vpop.f32.mrf.mxu1  ;;  %3265 = vmatmul.mubr.bf16.gmra.mxu1 %v2931_v12  ;;  %v15940_v13 = vpack.c.bf16 %v1795_v8, %v1793_v60  ;;  %v2935_v12 = vsel %vm2867_vm2, %v2930_v32, %v2934_v27  ;;  %v2231_v8 = vsel %vm1900_vm1, %v2212_v5, %v2230_v52 }
 0x18d   : > { %2655 = vmatprep.mubr.bf16.mxu0 %v2222_v22  ;;  %v15931_v59 = vadd.f32 %v1647_v30, %v1319_v45  ;;  %3272 = vmatprep.mubr.bf16.mxu1 %v2937_v55  ;;  %v1797_v55 = vld [vmem:[%s14583_s22 + $0x290] sm:$0xff]  ;;  %v1799_v45 = vld [vmem:[%s14583_s22 + $0x2a0] sm:$0xff]  ;;  %v2272_v30 = vshll.u32 %v15946_v16, 16  ;;  %v2945_v5 = vsel %vm2867_vm2, %v2940_v23, %v2944_v50 }
 0x18e   : > { %v1321_v39 = vpop.f32.mrf.mxu0  ;;  %v1649_v11 = vpop.f32.mrf.mxu1  ;;  %v2242_v32 = vshrl.u32 %v15940_v13, 16  ;;  %v2245_v17 = vshll.u32 %v15940_v13, 16 }
 0x18f   : > { %v1802_v39 = vld [vmem:[%s14583_s22 + $0x2b8] sm:$0xff]  ;;  %v15962_v11 = vpack.c.bf16 %v1799_v45, %v1797_v55  ;;  %v2274_v35 = vrot.slane %v2272_v30, 2  ;;  %v1803_v45 = vld [vmem:[%s14583_s22 + $0x2c0] sm:$0xff] }
 0x190   : > { %v1322_v29 = vpop.f32.mrf.mxu0  ;;  %v1650_v54 = vpop.f32.mrf.mxu1  ;;  %v2244_v24 = vrot.slane %v2242_v32, 1  ;;  %v2247_v40 = vrot.slane %v2245_v17, 2  ;;  %v15968_v43 = vpack.c.bf16 %v1804_v47, %v1802_v39 }
 0x191   : > { %v15942_v25 = vadd.f32 %v1650_v54, %v1322_v29  ;;  %v2258_v29 = vsel %vm1900_vm1, %v2239_v10, %v2257_v49  ;;  %v2260_v27 = vshrl.u32 %v15962_v11, 16  ;;  %v2263_v10 = vshll.u32 %v15962_v11, 16 }
 0x192   : > { %v1324_v26 = vpop.f32.mrf.mxu0  ;;  %v1652_v4 = vpop.f32.mrf.mxu1  ;;  %v2275_v23 = vor.u32 %v2274_v35, %v2271_v51  ;;  %v2287_v17 = vshrl.u32 %v15968_v43, 16  ;;  %v2290_v55 = vshll.u32 %v15968_v43, 16 }
 0x193   : > { %v2248_v4 = vor.u32 %v2247_v40, %v2244_v24  ;;  %v2262_v47 = vrot.slane %v2260_v27, 1 }
 0x194   : > { %v1327_v22 = vpop.f32.mrf.mxu0  ;;  %2656 = vmatmul.mubr.bf16.gmra.mxu0 %v2213_v62  ;;  %v1655_v57 = vpop.f32.mrf.mxu1  ;;  %3273 = vmatmul.mubr.bf16.gmra.mxu1 %v2935_v12  ;;  %v2292_v51 = vrot.slane %v2290_v55, 2 }
 0x195   : > { %2663 = vmatprep.mubr.bf16.mxu0 %v2240_v37  ;;  %v15954_v14 = vadd.f32 %v1655_v57, %v1327_v22  ;;  %3280 = vmatprep.mubr.bf16.mxu1 %v2941_v33  ;;  %v2942_v33 = vrot.slane %v15940_v13, 2  ;;  %v1801_v22 = vld [vmem:[%s14583_s22 + $0x2b0] sm:$0xff] }
 0x196   : > { %v1329_v36 = vpop.f32.mrf.mxu0  ;;  %v1657_v42 = vpop.f32.mrf.mxu1 }
 0x197   : > { %v1806_v36 = vld [vmem:[%s14583_s22 + $0x2d8] sm:$0xff]  ;;  %v2948_v42 = vrot.slane %v15946_v16, 2  ;;  %v2289_v16 = vrot.slane %v2287_v17, 1  ;;  %v2946_v17 = vrot.slane %v15962_v11, 2 }
 0x198   : > { %v1330_v60 = vpop.f32.mrf.mxu0  ;;  %v1658_v56 = vpop.f32.mrf.mxu1 }
 0x199   : > { %v15966_v54 = vadd.f32 %v1658_v56, %v1330_v60  ;;  %v2265_v60 = vrot.slane %v2263_v10, 2  ;;  %v2943_v56 = vsel %vm2867_vm2, %v2938_v3, %v2942_v33  ;;  %v2293_v55 = vor.u32 %v2292_v51, %v2289_v16 }
 0x19a   : > { %v1332_v62 = vpop.f32.mrf.mxu0  ;;  %v1660_v26 = vpop.f32.mrf.mxu1  ;;  %v2947_v11 = vsel %vm2867_vm2, %v2942_v33, %v2946_v17 }
 0x19b   : > { %v2276_v62 = vsel %vm1900_vm1, %v2257_v49, %v2275_v23  ;;  %v2949_v26 = vsel %vm2867_vm2, %v2944_v50, %v2948_v42  ;;  %v2294_v16 = vsel %vm1900_vm1, %v2275_v23, %v2293_v55 }
 0x19c   : > { %v1335_v12 = vpop.f32.mrf.mxu0  ;;  %2664 = vmatmul.mubr.bf16.gmra.mxu0 %v2231_v8  ;;  %v1663_v37 = vpop.f32.mrf.mxu1  ;;  %3281 = vmatmul.mubr.bf16.gmra.mxu1 %v2939_v38  ;;  %v2249_v8 = vsel %vm1900_vm1, %v2230_v52, %v2248_v4  ;;  %v15985_v38 = vpack.c.bf16 %v1803_v45, %v1801_v22  ;;  %v2266_v52 = vor.u32 %v2265_v60, %v2262_v47  ;;  %v1807_v22 = vld [vmem:[%s14583_s22 + $0x2e0] sm:$0xff] }
 0x19d   : > { %2671 = vmatprep.mubr.bf16.mxu0 %v2258_v29  ;;  %v15975_v57 = vadd.f32 %v1663_v37, %v1335_v12  ;;  %3288 = vmatprep.mubr.bf16.mxu1 %v2945_v5  ;;  %v15987_v29 = vpack.c.bf16 %v1808_v63, %v1806_v36  ;;  %v1805_v37 = vld [vmem:[%s14583_s22 + $0x2d0] sm:$0xff]  ;;  %v2952_v36 = vrot.slane %v15968_v43, 2  ;;  %v1810_v63 = vld [vmem:[%s14583_s22 + $0x2f8] sm:$0xff] }
 0x19e   : > { %v1337_v32 = vpop.f32.mrf.mxu0  ;;  %v1665_v30 = vpop.f32.mrf.mxu1  ;;  %v2278_v12 = vshrl.u32 %v15985_v38, 16  ;;  %v2281_v27 = vshll.u32 %v15985_v38, 16  ;;  %v2267_v47 = vsel %vm1900_vm1, %v2248_v4, %v2266_v52  ;;  %v16006_v60 = vpack.c.bf16 %v1807_v22, %v1805_v37 }
 0x19f   : > { %v2305_v49 = vshrl.u32 %v15987_v29, 16  ;;  %v2308_v10 = vshll.u32 %v15987_v29, 16  ;;  %v1812_v30 = vld [vmem:[%s14583_s22 + $0x308] sm:$0xff]  ;;  %v2950_v23 = vrot.slane %v15985_v38, 2 }
 0x1a0   : > { %v1338_v39 = vpop.f32.mrf.mxu0  ;;  %v1666_v13 = vpop.f32.mrf.mxu1  ;;  %v16012_v43 = vpack.c.bf16 %v1812_v30, %v1810_v63  ;;  %v2956_v30 = vrot.slane %v15987_v29, 2 }
 0x1a1   : > { %v15989_v24 = vadd.f32 %v1666_v13, %v1338_v39 }
 0x1a2   : > { %v1340_v40 = vpop.f32.mrf.mxu0  ;;  %v1668_v35 = vpop.f32.mrf.mxu1  ;;  %v2323_v37 = vshrl.u32 %v16012_v43, 16  ;;  %v2326_v22 = vshll.u32 %v16012_v43, 16 }
 0x1a3   : > { %v2307_v40 = vrot.slane %v2305_v49, 1 }
 0x1a4   : > { %v1343_v5 = vpop.f32.mrf.mxu0  ;;  %2672 = vmatmul.mubr.bf16.gmra.mxu0 %v2249_v8  ;;  %v1671_v3 = vpop.f32.mrf.mxu1  ;;  %3289 = vmatmul.mubr.bf16.gmra.mxu1 %v2943_v56  ;;  %v2280_v8 = vrot.slane %v2278_v12, 1  ;;  %v2283_v56 = vrot.slane %v2281_v27, 2  ;;  %v2299_v12 = vshll.u32 %v16006_v60, 16  ;;  %v2328_v29 = vrot.slane %v2326_v22, 2 }
 0x1a5   : > { %2679 = vmatprep.mubr.bf16.mxu0 %v2276_v62  ;;  %v15999_v32 = vadd.f32 %v1671_v3, %v1343_v5  ;;  %3296 = vmatprep.mubr.bf16.mxu1 %v2949_v26  ;;  %v2310_v62 = vrot.slane %v2308_v10, 2  ;;  %v2953_v5 = vsel %vm2867_vm2, %v2948_v42, %v2952_v36  ;;  %v2296_v3 = vshrl.u32 %v16006_v60, 16 }
 0x1a6   : > { %v1345_v50 = vpop.f32.mrf.mxu0  ;;  %v1673_v45 = vpop.f32.mrf.mxu1  ;;  %v2284_v33 = vor.u32 %v2283_v56, %v2280_v8  ;;  %v2301_v38 = vrot.slane %v2299_v12, 2 }
 0x1a7   : > { %v2311_v49 = vor.u32 %v2310_v62, %v2307_v40  ;;  %v1809_v50 = vld [vmem:[%s14583_s22 + $0x2f0] sm:$0xff]  ;;  %v1811_v45 = vld [vmem:[%s14583_s22 + $0x300] sm:$0xff]  ;;  %v2298_v8 = vrot.slane %v2296_v3, 1  ;;  %v2951_v62 = vsel %vm2867_vm2, %v2946_v17, %v2950_v23  ;;  %v2957_v3 = vsel %vm2867_vm2, %v2952_v36, %v2956_v30 }
 0x1a8   : > { %v1346_v39 = vpop.f32.mrf.mxu0  ;;  %v1674_v13 = vpop.f32.mrf.mxu1  ;;  %v2285_v40 = vsel %vm1900_vm1, %v2266_v52, %v2284_v33 }
 0x1a9   : > { %v16008_v35 = vadd.f32 %v1674_v13, %v1346_v39  ;;  %v16026_v39 = vld [vmem:[%s14583_s22 + $0x318] sm:$0xff]  ;;  %v2302_v52 = vor.u32 %v2301_v38, %v2298_v8  ;;  %v2960_v38 = vrot.slane %v16012_v43, 2 }
 0x1aa   : > { %v1348_v26 = vpop.f32.mrf.mxu0  ;;  %v1676_v51 = vpop.f32.mrf.mxu1 }
 0x1ab   : > { %v2312_v26 = vsel %vm1900_vm1, %v2293_v55, %v2311_v49  ;;  %v2954_v55 = vrot.slane %v16006_v60, 2  ;;  %v2779_v60 = vld [vmem:[%s14583_s22 + $0x328] sm:$0xf]  ;;  %v2961_v43 = vsel %vm2867_vm2, %v2956_v30, %v2960_v38 }
 0x1ac   : > { %v1351_v4 = vpop.f32.mrf.mxu0  ;;  %2680 = vmatmul.mubr.bf16.gmra.mxu0 %v2267_v47  ;;  %v1679_v27 = vpop.f32.mrf.mxu1  ;;  %3297 = vmatmul.mubr.bf16.gmra.mxu1 %v2947_v11  ;;  %v1816_v47 = vld [vmem:[%s14583_s22 + $0x328] sm:$0x7]  ;;  %v16032_v11 = vpack.c.bf16 %v1811_v45, %v1809_v50 }
 0x1ad   : > { %2687 = vmatprep.mubr.bf16.mxu0 %v2294_v16  ;;  %v16018_v10 = vadd.f32 %v1679_v27, %v1351_v4  ;;  %3304 = vmatprep.mubr.bf16.mxu1 %v2953_v5  ;;  %v2325_v5 = vrot.slane %v2323_v37, 1  ;;  %v1866_v4 = vpack.c.bf16 %v1816_v47, %v16026_v39  ;;  %v1813_v47 = vld [vmem:[%s14583_s22 + $0x310] sm:$0xff] }
 0x1ae   : > { %v1353_v42 = vpop.f32.mrf.mxu0  ;;  %v1681_v63 = vpop.f32.mrf.mxu1  ;;  %v2317_v37 = vshll.u32 %v16032_v11, 16 }
 0x1af   : > { %v2314_v42 = vshrl.u32 %v16032_v11, 16  ;;  %v2329_v36 = vor.u32 %v2328_v29, %v2325_v5  ;;  %v2341_v45 = vshrl.u32 %v1866_v4, 16  ;;  %v2344_v63 = vshll.u32 %v1866_v4, 16 }
 0x1b0   : > { %v1354_v13 = vpop.f32.mrf.mxu0  ;;  %v1682_v56 = vpop.f32.mrf.mxu1 }
 0x1b1   : > { %v16034_v16 = vadd.f32 %v1682_v56, %v1354_v13  ;;  %v1815_v13 = vld [vmem:[%s14583_s22 + $0x320] sm:$0x7]  ;;  %v2330_v29 = vsel %vm1900_vm1, %v2311_v49, %v2329_v36  ;;  %v2343_v4 = vrot.slane %v2341_v45, 1  ;;  %v2958_v49 = vrot.slane %v16032_v11, 2 }
 0x1b2   : > { %v1356_v51 = vpop.f32.mrf.mxu0  ;;  %v1684_v27 = vpop.f32.mrf.mxu1 }
 0x1b3   : > { %v2316_v51 = vrot.slane %v2314_v42, 1  ;;  %v2319_v27 = vrot.slane %v2317_v37, 2 }
 0x1b4   : > { %v1359_v12 = vpop.f32.mrf.mxu0  ;;  %2688 = vmatmul.mubr.bf16.gmra.mxu0 %v2285_v40  ;;  %v1687_v17 = vpop.f32.mrf.mxu1  ;;  %3305 = vmatmul.mubr.bf16.gmra.mxu1 %v2951_v62  ;;  %v2303_v40 = vsel %vm1900_vm1, %v2284_v33, %v2302_v52 }
 0x1b5   : > { %2695 = vmatprep.mubr.bf16.mxu0 %v2312_v26  ;;  %v16041_v22 = vadd.f32 %v1687_v17, %v1359_v12  ;;  %3312 = vmatprep.mubr.bf16.mxu1 %v2957_v3  ;;  %v2955_v26 = vsel %vm2867_vm2, %v2950_v23, %v2954_v55  ;;  %v1865_v12 = vpack.c.bf16 %v1815_v13, %v1813_v47  ;;  %v2346_v3 = vrot.slane %v2344_v63, 2 }
 0x1b6   : > { %v1361_v50 = vpop.f32.mrf.mxu0  ;;  %v1689_v8 = vpop.f32.mrf.mxu1  ;;  %v2320_v23 = vor.u32 %v2319_v27, %v2316_v51 }
 0x1b7   : > { %18397 = vst [vmem:[#allocation17_spill] sm:$0xff] %v16041_v22  ;;  %v2783_v8 = vpack.c.bf16 %v2779_v60, %v16026_v39  ;;  %v2332_v42 = vshrl.u32 %v1865_v12, 16  ;;  %v2335_v37 = vshll.u32 %v1865_v12, 16  ;;  %v2347_v45 = vor.u32 %v2346_v3, %v2343_v4 }
 0x1b8   : > { %v1362_v56 = vpop.f32.mrf.mxu0  ;;  %v1690_v62 = vpop.f32.mrf.mxu1 }
 0x1b9   : > { %v16049_v17 = vadd.f32 %v1690_v62, %v1362_v56  ;;  %v2964_v30 = vrot.slane %v2783_v8, 2  ;;  %v2778_v62 = vld [vmem:[%s14583_s22 + $0x320] sm:$0xf]  ;;  %v2348_v27 = vsel %vm1900_vm1, %v2329_v36, %v2347_v45 }
 0x1ba   : > { %v1364_v5 = vpop.f32.mrf.mxu0  ;;  %v1692_v50 = vpop.f32.mrf.mxu1  ;;  %v2782_v12 = vpack.c.bf16 %v2778_v62, %v1813_v47 }
 0x1bb   : > { %v2334_v5 = vrot.slane %v2332_v42, 1  ;;  %v2965_v11 = vsel %vm2867_vm2, %v2960_v38, %v2964_v30 }
 0x1bc   : > { %v1367_v33 = vpop.f32.mrf.mxu0  ;;  %2696 = vmatmul.mubr.bf16.gmra.mxu0 %v2303_v40  ;;  %v1695_v22 = vpop.f32.mrf.mxu1  ;;  %3313 = vmatmul.mubr.bf16.gmra.mxu1 %v2955_v26  ;;  %v2321_v40 = vsel %vm1900_vm1, %v2302_v52, %v2320_v23  ;;  %v2337_v26 = vrot.slane %v2335_v37, 2 }
 0x1bd   : > { %2703 = vmatprep.mubr.bf16.mxu0 %v2330_v29  ;;  %v16054_v13 = vadd.f32 %v1695_v22, %v1367_v33  ;;  %3320 = vmatprep.mubr.bf16.mxu1 %v2961_v43  ;;  %v2959_v22 = vsel %vm2867_vm2, %v2954_v55, %v2958_v49  ;;  %v2962_v33 = vrot.slane %v2782_v12, 2 }
 0x1be   : > { %v1369_v56 = vpop.f32.mrf.mxu0  ;;  %v1697_v63 = vpop.f32.mrf.mxu1  ;;  %v2338_v43 = vor.u32 %v2337_v26, %v2334_v5 }
 0x1bf   : > { %v2963_v38 = vsel %vm2867_vm2, %v2958_v49, %v2962_v33 }
 0x1c0   : > { %v1370_v39 = vpop.f32.mrf.mxu0  ;;  %v1698_v60 = vpop.f32.mrf.mxu1  ;;  %v2339_v36 = vsel %vm1900_vm1, %v2320_v23, %v2338_v43  ;;  %v16075_v23 = vld [vmem:[%s18346_s3 + $0xb8] sm:$0xff]  }
 0x1c1   : > { %v16059_v29 = vadd.f32 %v1698_v60, %v1370_v39  ;;  %13455 = vmatprep.subr.bf16.mxu0 %v16075_v23 }
 0x1c2   : > { %v1372_v51 = vpop.f32.mrf.mxu0  ;;  %v1700_v50 = vpop.f32.mrf.mxu1 }
 0x1c3   : > { %v16085_v50 = vld [vmem:[%s18345_s2] ss:$0 sm:$0xff] }
 0x1c4   : > { %v1375_v4 = vpop.f32.mrf.mxu0  ;;  %2704 = vmatmul.mubr.bf16.gmra.mxu0 %v2321_v40  ;;  %v1703_v3 = vpop.f32.mrf.mxu1  ;;  %3321 = vmatmul.mubr.bf16.gmra.mxu1 %v2959_v22 }
 0x1c5   : > { %2711 = vmatprep.mubr.bf16.mxu0 %v2348_v27  ;;  %v16064_v52 = vadd.f32 %v1703_v3, %v1375_v4  ;;  %3328 = vmatprep.mubr.bf16.mxu1 %v2965_v11 }
 0x1c6   : > { %v1377_v8 = vpop.f32.mrf.mxu0  ;;  %v1705_v42 = vpop.f32.mrf.mxu1 }
 0x1c8   : > { %v1378_v37 = vpop.f32.mrf.mxu0  ;;  %v1706_v55 = vpop.f32.mrf.mxu1 }
 0x1c9   : > { %v16067_v47 = vadd.f32 %v1706_v55, %v1378_v37 }
 0x1ca   : > { %v1380_v56 = vpop.f32.mrf.mxu0  ;;  %v1708_v63 = vpop.f32.mrf.mxu1 }
 0x1cc   : > { %v1383_v62 = vpop.f32.mrf.mxu0  ;;  %2712 = vmatmul.mubr.bf16.gmra.mxu0 %v2339_v36  ;;  %v1711_v39 = vpop.f32.mrf.mxu1  ;;  %3329 = vmatmul.mubr.bf16.gmra.mxu1 %v2963_v38 }
 0x1cd   : > { %2719 = vmatprep.mubr.bf16.mxu0 %v2347_v45  ;;  %v16070_v60 = vadd.f32 %v1711_v39, %v1383_v62  ;;  %3336 = vmatprep.mubr.bf16.mxu1 %v2964_v30  ;;  %v14168_v30 = vld [vmem:[%s18346_s3 + $0xf8] sm:$0xff]  }
 0x1ce   : > { %v1385_v40 = vpop.f32.mrf.mxu0  ;;  %v1713_v5 = vpop.f32.mrf.mxu1  ;;  %13519 = vmatprep.subr.bf16.mxu1 %v14168_v30 }
 0x1d0   : > { %v1386_v26 = vpop.f32.mrf.mxu0  ;;  %v1714_v51 = vpop.f32.mrf.mxu1 }
 0x1d2   : > { %v1387_v22 = vpop.f32.mrf.mxu0  ;;  %v1715_v49 = vpop.f32.mrf.mxu1 }
 0x1d3   : > { %v18398_v22 = vld [vmem:[#allocation6_spill] sm:$0xff] }
 0x1d4   : > { %v2529_v27 = vpop.f32.mrf.mxu0  ;;  %2720 = vmatmul.mubr.bf16.gmra.mxu0 %v2338_v43  ;;  %v3146_v12 = vpop.f32.mrf.mxu1  ;;  %3337 = vmatmul.mubr.bf16.gmra.mxu1 %v2962_v33 }
 0x1d5   : > { %v2727_v45 = vadd.f32 %v2529_v27, %v15272_v34 }
 0x1d6   : > { %v2531_v11 = vpop.f32.mrf.mxu0  ;;  %v3148_v3 = vpop.f32.mrf.mxu1 }
 0x1d7   : > { %v3344_v4 = vadd.f32 %v3146_v12, %v2727_v45 }
 0x1d8   : > { %v2532_v8 = vpop.f32.mrf.mxu0  ;;  %v3149_v42 = vpop.f32.mrf.mxu1 }
 0x1d9   : > { %v3400_v43 = vadd.f32 %v16085_v50, %v3344_v4  ;;  %v2728_v34 = vadd.f32 %v2532_v8, %v15296_v0 }
 0x1da   : > { %v2534_v33 = vpop.f32.mrf.mxu0  ;;  %v3151_v36 = vpop.f32.mrf.mxu1 }
 0x1db   : > { %v3449_v37 = vmax.f32 %v3400_v43, 0.0  ;;  %v3345_v55 = vadd.f32 %v3149_v42, %v2728_v34  ;;  %v18399_v43 = vld [vmem:[#allocation7_spill] sm:$0xff] }
 0x1dc   : > { %v2537_v56 = vpop.f32.mrf.mxu0  ;;  %v3154_v62 = vpop.f32.mrf.mxu1 }
 0x1dd   : > { %3498 = vst [vmem:[#allocation2] sm:$0xff] %v3449_v37  ;;  %v3401_v38 = vadd.f32 %v16085_v50, %v3345_v55  ;;  %v2729_v63 = vadd.f32 %v2537_v56, %v15323_v58 }
 0x1de   : > { %v2539_v39 = vpop.f32.mrf.mxu0  ;;  %v3156_v26 = vpop.f32.mrf.mxu1 }
 0x1df   : > { %v3450_v40 = vmax.f32 %v3401_v38, 0.0  ;;  %v3346_v5 = vadd.f32 %v3154_v62, %v2729_v63  ;;  %v18400_v63 = vld [vmem:[#allocation8_spill] sm:$0xff] }
 0x1e0   : > { %v2540_v51 = vpop.f32.mrf.mxu0  ;;  %v3157_v27 = vpop.f32.mrf.mxu1 }
 0x1e1   : > { %3499 = vst [vmem:[#allocation2 + $0x8] sm:$0xff] %v3450_v40  ;;  %v3402_v0 = vadd.f32 %v16085_v50, %v3346_v5  ;;  %v2730_v49 = vadd.f32 %v2540_v51, %v18398_v22  ;;  %v3594_v45 = vpack.c.bf16 %v3450_v40, %v3449_v37  ;;  %v14170_v5 = vld [vmem:[%s18346_s3 + $0xf0] sm:$0xff]  }
 0x1e2   : > { %v2542_v12 = vpop.f32.mrf.mxu0  ;;  %v3159_v3 = vpop.f32.mrf.mxu1 }
 0x1e3   : > { %v3451_v11 = vmax.f32 %v3402_v0, 0.0  ;;  %v3347_v4 = vadd.f32 %v3157_v27, %v2730_v49  ;;  %13407 = vmatprep.mubr.bf16.mxu1 %v3594_v45 }
 0x1e4   : > { %v2545_v8 = vpop.f32.mrf.mxu0  ;;  %v3162_v42 = vpop.f32.mrf.mxu1 }
 0x1e5   : > { %3500 = vst [vmem:[#allocation2 + $0x10] sm:$0xff] %v3451_v11  ;;  %v3403_v58 = vadd.f32 %v16085_v50, %v3347_v4  ;;  %v2731_v34 = vadd.f32 %v2545_v8, %v18399_v43  ;;  %v18401_v4 = vld [vmem:[#allocation9_spill] sm:$0xff] }
 0x1e6   : > { %v2547_v33 = vpop.f32.mrf.mxu0  ;;  %v3164_v56 = vpop.f32.mrf.mxu1 }
 0x1e7   : > { %v3452_v55 = vmax.f32 %v3403_v58, 0.0  ;;  %v3348_v36 = vadd.f32 %v3162_v42, %v2731_v34  ;;  %v14172_v58 = vld [vmem:[%s18346_s3 + $0xe8] sm:$0xff]  }
 0x1e8   : > { %v2548_v38 = vpop.f32.mrf.mxu0  ;;  %v3165_v39 = vpop.f32.mrf.mxu1  ;;  %v3634_v27 = vld [vmem:[#allocation2 + $0x1] sm:$0xff] }
 0x1e9   : > { %3501 = vst [vmem:[#allocation2 + $0x18] sm:$0xff] %v3452_v55  ;;  %v3404_v37 = vadd.f32 %v16085_v50, %v3348_v36  ;;  %v2732_v62 = vadd.f32 %v2548_v38, %v18400_v63  ;;  %v3595_v40 = vpack.c.bf16 %v3452_v55, %v3451_v11  ;;  %v18402_v36 = vld [vmem:[#allocation10_spill] sm:$0xff] }
 0x1ea   : > { %v2550_v26 = vpop.f32.mrf.mxu0  ;;  %v3167_v22 = vpop.f32.mrf.mxu1 }
 0x1eb   : > { %v3453_v51 = vmax.f32 %v3404_v37, 0.0  ;;  %v3349_v0 = vadd.f32 %v3165_v39, %v2732_v62  ;;  %13408 = vmatmul.mubr.bf16.vlgmr.msra.gmra.mxu1 %v3595_v40 }
 0x1ec   : > { %v2553_v49 = vpop.f32.mrf.mxu0  ;;  %v3635_v45 = vld [vmem:[#allocation2 + $0x9] sm:$0xff]  ;;  %13520 = vmatpush3.bf16.msra.mxu1 %v14168_v30  ;;  %v3170_v8 = vpop.f32.mrf.mxu1 }
 0x1ed   : > { %3502 = vst [vmem:[#allocation2 + $0x20] sm:$0xff] %v3453_v51  ;;  %v3405_v12 = vadd.f32 %v16085_v50, %v3349_v0  ;;  %v2733_v3 = vadd.f32 %v2553_v49, %v18401_v4  ;;  %v3681_v11 = vpack.c.bf16 %v3635_v45, %v3634_v27  ;;  %13521 = vmatprep.subr.bf16.mxu1 %v14170_v5  ;;  %v18403_v49 = vld [vmem:[#allocation11_spill] sm:$0xff] }
 0x1ee   : > { %v2555_v43 = vpop.f32.mrf.mxu0  ;;  %v3172_v33 = vpop.f32.mrf.mxu1 }
 0x1ef   : > { %v3454_v34 = vmax.f32 %v3405_v12, 0.0  ;;  %v3350_v42 = vadd.f32 %v3170_v8, %v2733_v3  ;;  %13343 = vmatprep.mubr.bf16.mxu0 %v3681_v11 }
 0x1f0   : > { %v2556_v55 = vpop.f32.mrf.mxu0  ;;  %13522 = vmatpush3.bf16.msra.mxu1 %v14170_v5  ;;  %v3173_v38 = vpop.f32.mrf.mxu1  ;;  %v3636_v0 = vld [vmem:[#allocation2 + $0x11] sm:$0xff] }
 0x1f1   : > { %3503 = vst [vmem:[#allocation2 + $0x28] sm:$0xff] %v3454_v34  ;;  %v3406_v30 = vadd.f32 %v16085_v50, %v3350_v42  ;;  %v2734_v56 = vadd.f32 %v2556_v55, %v18402_v36  ;;  %v3596_v37 = vpack.c.bf16 %v3454_v34, %v3453_v51  ;;  %13523 = vmatprep.subr.bf16.mxu1 %v14172_v58  ;;  %v14169_v51 = vld [vmem:[%s18346_s3 + $0xb0] sm:$0xff]   ;;  %v14174_v36 = vld [vmem:[%s18346_s3 + $0xe0] sm:$0xff]  }
 0x1f2   : > { %v2558_v63 = vpop.f32.mrf.mxu0  ;;  %v3175_v40 = vpop.f32.mrf.mxu1  ;;  %v18404_v34 = vld [vmem:[#allocation12_spill] sm:$0xff] }
 0x1f3   : > { %v3455_v62 = vmax.f32 %v3406_v30, 0.0  ;;  %v3351_v39 = vadd.f32 %v3173_v38, %v2734_v56  ;;  %13411 = vmatprep.mubr.bf16.mxu1 %v3596_v37  ;;  %v14171_v30 = vld [vmem:[%s18346_s3 + $0xa8] sm:$0xff]  }
 0x1f4   : > { %v2561_v26 = vpop.f32.mrf.mxu0  ;;  %v3637_v22 = vld [vmem:[#allocation2 + $0x19] sm:$0xff]  ;;  %13524 = vmatpush3.bf16.msra.mxu1 %v14172_v58  ;;  %v3178_v45 = vpop.f32.mrf.mxu1 }
 0x1f5   : > { %3504 = vst [vmem:[#allocation2 + $0x30] sm:$0xff] %v3455_v62  ;;  %v3407_v5 = vadd.f32 %v16085_v50, %v3351_v39  ;;  %v2735_v27 = vadd.f32 %v2561_v26, %v18403_v49  ;;  %v3682_v12 = vpack.c.bf16 %v3637_v22, %v3636_v0  ;;  %13525 = vmatprep.subr.bf16.mxu1 %v14174_v36  ;;  %v18405_v26 = vld [vmem:[#allocation13_spill] sm:$0xff] }
 0x1f6   : > { %v2563_v4 = vpop.f32.mrf.mxu0  ;;  %v3180_v11 = vpop.f32.mrf.mxu1  ;;  %v14173_v49 = vld [vmem:[%s18346_s3 + $0xa0] sm:$0xff]  }
 0x1f7   : > { %v3456_v3 = vmax.f32 %v3407_v5, 0.0  ;;  %v3352_v8 = vadd.f32 %v3178_v45, %v2735_v27  ;;  %13344 = vmatmul.mubr.bf16.vlgmr.msra.gmra.mxu0 %v3682_v12 }
 0x1f8   : > { %v2564_v43 = vpop.f32.mrf.mxu0  ;;  %13456 = vmatpush3.bf16.msra.mxu0 %v16075_v23  ;;  %v3181_v33 = vpop.f32.mrf.mxu1  ;;  %v3638_v39 = vld [vmem:[#allocation2 + $0x21] sm:$0xff]  ;;  %13526 = vmatpush3.bf16.msra.mxu1 %v14174_v36 }
 0x1f9   : > { %3505 = vst [vmem:[#allocation2 + $0x38] sm:$0xff] %v3456_v3  ;;  %v3408_v58 = vadd.f32 %v16085_v50, %v3352_v8  ;;  %v2736_v42 = vadd.f32 %v2564_v43, %v18404_v34  ;;  %v3597_v55 = vpack.c.bf16 %v3456_v3, %v3455_v62  ;;  %13457 = vmatprep.subr.bf16.mxu0 %v14169_v51  ;;  %v18406_v8 = vld [vmem:[#allocation14_spill] sm:$0xff]  ;;  %v14175_v34 = vld [vmem:[%s18346_s3 + $0x98] sm:$0xff]  }
 0x1fa   : > { %v2566_v56 = vpop.f32.mrf.mxu0  ;;  %v3183_v23 = vpop.f32.mrf.mxu1 }
 0x1fb   : > { %v3457_v38 = vmax.f32 %v3408_v58, 0.0  ;;  %v3353_v37 = vadd.f32 %v3181_v33, %v2736_v42  ;;  %13412 = vmatmul.mubr.bf16.gmra.mxu1 %v3597_v55 }
 0x1fc   : > { %v2569_v63 = vpop.f32.mrf.mxu0  ;;  %v3639_v40 = vld [vmem:[#allocation2 + $0x29] sm:$0xff]  ;;  %13458 = vmatpush3.bf16.msra.mxu0 %v14169_v51  ;;  %v3186_v22 = vpop.f32.mrf.mxu1 }
 0x1fd   : > { %3506 = vst [vmem:[#allocation2 + $0x40] sm:$0xff] %v3457_v38  ;;  %v3409_v62 = vadd.f32 %v16085_v50, %v3353_v37  ;;  %v2737_v0 = vadd.f32 %v2569_v63, %v18405_v26  ;;  %v3683_v5 = vpack.c.bf16 %v3639_v40, %v3638_v39  ;;  %13459 = vmatprep.subr.bf16.mxu0 %v14171_v30  ;;  %v18407_v63 = vld [vmem:[#allocation15_spill] sm:$0xff] }
 0x1fe   : > { %v2571_v27 = vpop.f32.mrf.mxu0  ;;  %v3188_v4 = vpop.f32.mrf.mxu1 }
 0x1ff   : > { %v3458_v45 = vmax.f32 %v3409_v62, 0.0  ;;  %v3354_v12 = vadd.f32 %v3186_v22, %v2737_v0  ;;  %13347 = vmatprep.mubr.bf16.mxu0 %v3683_v5  ;;  %v14176_v62 = vld [vmem:[%s18346_s3 + $0xd8] sm:$0xff]  }
 0x200   : > { %v2572_v3 = vpop.f32.mrf.mxu0  ;;  %13460 = vmatpush3.bf16.msra.mxu0 %v14171_v30  ;;  %v3189_v43 = vpop.f32.mrf.mxu1  ;;  %v3640_v37 = vld [vmem:[#allocation2 + $0x31] sm:$0xff]  ;;  %13527 = vmatprep.subr.bf16.mxu1 %v14176_v62 }
 0x201   : > { %3507 = vst [vmem:[#allocation2 + $0x48] sm:$0xff] %v3458_v45  ;;  %v3410_v51 = vadd.f32 %v16085_v50, %v3354_v12  ;;  %v2738_v11 = vadd.f32 %v2572_v3, %v18406_v8  ;;  %v3598_v58 = vpack.c.bf16 %v3458_v45, %v3457_v38  ;;  %13461 = vmatprep.subr.bf16.mxu0 %v14173_v49  ;;  %v18408_v45 = vld [vmem:[#allocation16_spill] sm:$0xff] }
 0x202   : > { %v2574_v42 = vpop.f32.mrf.mxu0  ;;  %v3191_v36 = vpop.f32.mrf.mxu1  ;;  %13528 = vmatpush3.bf16.msra.mxu1 %v14176_v62 }
 0x203   : > { %v3459_v33 = vmax.f32 %v3410_v51, 0.0  ;;  %v3355_v55 = vadd.f32 %v3189_v43, %v2738_v11  ;;  %13415 = vmatprep.mubr.bf16.mxu1 %v3598_v58 }
 0x204   : > { %v2577_v56 = vpop.f32.mrf.mxu0  ;;  %v3641_v30 = vld [vmem:[#allocation2 + $0x39] sm:$0xff]  ;;  %13462 = vmatpush3.bf16.msra.mxu0 %v14173_v49  ;;  %v3194_v38 = vpop.f32.mrf.mxu1 }
 0x205   : > { %3508 = vst [vmem:[#allocation2 + $0x50] sm:$0xff] %v3459_v33  ;;  %v3411_v23 = vadd.f32 %v16085_v50, %v3355_v55  ;;  %v2739_v39 = vadd.f32 %v2577_v56, %v18407_v63  ;;  %v3684_v40 = vpack.c.bf16 %v3641_v30, %v3640_v37  ;;  %13463 = vmatprep.subr.bf16.mxu0 %v14175_v34  ;;  %v14177_v30 = vld [vmem:[%s18346_s3 + $0x90] sm:$0xff]  }
 0x206   : > { %v2579_v26 = vpop.f32.mrf.mxu0  ;;  %v3196_v5 = vpop.f32.mrf.mxu1 }
 0x207   : > { %v3460_v0 = vmax.f32 %v3411_v23, 0.0  ;;  %v3356_v22 = vadd.f32 %v3194_v38, %v2739_v39  ;;  %13348 = vmatmul.mubr.bf16.gmra.mxu0 %v3684_v40 }
 0x208   : > { %v2580_v27 = vpop.f32.mrf.mxu0  ;;  %13464 = vmatpush3.bf16.msra.mxu0 %v14175_v34  ;;  %v3197_v4 = vpop.f32.mrf.mxu1  ;;  %v3642_v42 = vld [vmem:[#allocation2 + $0x41] sm:$0xff] }
 0x209   : > { %3509 = vst [vmem:[#allocation2 + $0x58] sm:$0xff] %v3460_v0  ;;  %v3412_v49 = vadd.f32 %v16085_v50, %v3356_v22  ;;  %v2740_v12 = vadd.f32 %v2580_v27, %v18408_v45  ;;  %v3599_v3 = vpack.c.bf16 %v3460_v0, %v3459_v33  ;;  %13465 = vmatprep.subr.bf16.mxu0 %v14177_v30  ;;  %v14178_v0 = vld [vmem:[%s18346_s3 + $0xd0] sm:$0xff]  }
 0x20a   : > { %v2582_v51 = vpop.f32.mrf.mxu0  ;;  %v3199_v43 = vpop.f32.mrf.mxu1  ;;  %13529 = vmatprep.subr.bf16.mxu1 %v14178_v0 }
 0x20b   : > { %v3461_v8 = vmax.f32 %v3412_v49, 0.0  ;;  %v3357_v11 = vadd.f32 %v3197_v4, %v2740_v12  ;;  %13416 = vmatmul.mubr.bf16.gmra.mxu1 %v3599_v3  ;;  %v14180_v43 = vld [vmem:[%s18346_s3 + $0xc8] sm:$0xff]  }
 0x20c   : > { %v2585_v58 = vpop.f32.mrf.mxu0  ;;  %v3643_v55 = vld [vmem:[#allocation2 + $0x49] sm:$0xff]  ;;  %v3202_v56 = vpop.f32.mrf.mxu1  ;;  %13466 = vmatpush3.bf16.msra.mxu0 %v14177_v30  ;;  %13530 = vmatpush3.bf16.msra.mxu1 %v14178_v0 }
 0x20d   : > { %3510 = vst [vmem:[#allocation2 + $0x60] sm:$0xff] %v3461_v8  ;;  %v3413_v36 = vadd.f32 %v16085_v50, %v3357_v11  ;;  %v2741_v34 = vadd.f32 %v2585_v58, %v15663_v20  ;;  %v3685_v37 = vpack.c.bf16 %v3643_v55, %v3642_v42  ;;  %13531 = vmatprep.subr.bf16.mxu1 %v14180_v43  ;;  %v14179_v30 = vld [vmem:[%s18346_s3 + $0x88] sm:$0xff]  }
 0x20e   : > { %v2587_v33 = vpop.f32.mrf.mxu0  ;;  %v3204_v39 = vpop.f32.mrf.mxu1  ;;  %13467 = vmatprep.subr.bf16.mxu0 %v14179_v30 }
 0x20f   : > { %v3462_v23 = vmax.f32 %v3413_v36, 0.0  ;;  %v3358_v63 = vadd.f32 %v3202_v56, %v2741_v34  ;;  %13351 = vmatprep.mubr.bf16.mxu0 %v3685_v37 }
 0x210   : > { %v2588_v38 = vpop.f32.mrf.mxu0  ;;  %v3205_v20 = vpop.f32.mrf.mxu1  ;;  %v3644_v12 = vld [vmem:[#allocation2 + $0x51] sm:$0xff]  ;;  %13532 = vmatpush3.bf16.msra.mxu1 %v14180_v43  ;;  %13468 = vmatpush3.bf16.msra.mxu0 %v14179_v30 }
 0x211   : > { %3511 = vst [vmem:[#allocation2 + $0x68] sm:$0xff] %v3462_v23  ;;  %v3414_v40 = vadd.f32 %v16085_v50, %v3358_v63  ;;  %v2742_v62 = vadd.f32 %v2588_v38, %v15688_v9  ;;  %v3600_v26 = vpack.c.bf16 %v3462_v23, %v3461_v8  ;;  %v14182_v23 = vld [vmem:[%s18346_s3 + $0xc0] sm:$0xff]  }
 0x212   : > { %v2590_v22 = vpop.f32.mrf.mxu0  ;;  %v3207_v49 = vpop.f32.mrf.mxu1  ;;  %13533 = vmatprep.subr.bf16.mxu1 %v14182_v23 }
 0x213   : > { %v3463_v5 = vmax.f32 %v3414_v40, 0.0  ;;  %v3359_v27 = vadd.f32 %v3205_v20, %v2742_v62  ;;  %13419 = vmatprep.mubr.bf16.mxu1 %v3600_v26 }
 0x214   : > { %v2593_v45 = vpop.f32.mrf.mxu0  ;;  %v3645_v4 = vld [vmem:[#allocation2 + $0x59] sm:$0xff]  ;;  %v3210_v51 = vpop.f32.mrf.mxu1  ;;  %13534 = vmatpush3.bf16.msra.mxu1 %v14182_v23 }
 0x215   : > { %3512 = vst [vmem:[#allocation2 + $0x70] sm:$0xff] %v3463_v5  ;;  %v3415_v3 = vadd.f32 %v16085_v50, %v3359_v27  ;;  %v2743_v9 = vadd.f32 %v2593_v45, %v15701_v1  ;;  %v3686_v8 = vpack.c.bf16 %v3645_v4, %v3644_v12  ;;  %v14181_v12 = vld [vmem:[%s18346_s3 + $0x80] sm:$0xff]  }
 0x216   : > { %v2595_v11 = vpop.f32.mrf.mxu0  ;;  %v3212_v55 = vpop.f32.mrf.mxu1  ;;  %13469 = vmatprep.subr.bf16.mxu0 %v14181_v12 }
 0x217   : > { %v3464_v58 = vmax.f32 %v3415_v3, 0.0  ;;  %v3360_v42 = vadd.f32 %v3210_v51, %v2743_v9  ;;  %13352 = vmatmul.mubr.bf16.gmra.mxu0 %v3686_v8 }
 0x218   : > { %v2596_v36 = vpop.f32.mrf.mxu0  ;;  %v3213_v37 = vpop.f32.mrf.mxu1  ;;  %v3646_v62 = vld [vmem:[#allocation2 + $0x61] sm:$0xff]  ;;  %13470 = vmatpush3.bf16.msra.mxu0 %v14181_v12 }
 0x219   : > { %3513 = vst [vmem:[#allocation2 + $0x78] sm:$0xff] %v3464_v58  ;;  %v3416_v34 = vadd.f32 %v16085_v50, %v3360_v42  ;;  %v2744_v56 = vadd.f32 %v2596_v36, %v15715_v61  ;;  %v3601_v1 = vpack.c.bf16 %v3464_v58, %v3463_v5 }
 0x21a   : > { %v2598_v33 = vpop.f32.mrf.mxu0  ;;  %v3215_v38 = vpop.f32.mrf.mxu1 }
 0x21b   : > { %v3465_v63 = vmax.f32 %v3416_v34, 0.0  ;;  %v3361_v39 = vadd.f32 %v3213_v37, %v2744_v56  ;;  %13420 = vmatmul.mubr.bf16.gmra.mxu1 %v3601_v1 }
 0x21c   : > { %v2601_v40 = vpop.f32.mrf.mxu0  ;;  %v3647_v61 = vld [vmem:[#allocation2 + $0x69] sm:$0xff]  ;;  %v3218_v0 = vpop.f32.mrf.mxu1 }
 0x21d   : > { %3514 = vst [vmem:[#allocation2 + $0x80] sm:$0xff] %v3465_v63  ;;  %v3417_v20 = vadd.f32 %v16085_v50, %v3361_v39  ;;  %v2745_v26 = vadd.f32 %v2601_v40, %v15730_v48  ;;  %v3687_v22 = vpack.c.bf16 %v3647_v61, %v3646_v62 }
 0x21e   : > { %v2603_v5 = vpop.f32.mrf.mxu0  ;;  %v3220_v45 = vpop.f32.mrf.mxu1 }
 0x21f   : > { %v3466_v27 = vmax.f32 %v3417_v20, 0.0  ;;  %v3362_v49 = vadd.f32 %v3218_v0, %v2745_v26  ;;  %13355 = vmatprep.mubr.bf16.mxu0 %v3687_v22 }
 0x220   : > { %v2604_v4 = vpop.f32.mrf.mxu0  ;;  %v3221_v51 = vpop.f32.mrf.mxu1  ;;  %v3648_v55 = vld [vmem:[#allocation2 + $0x71] sm:$0xff] }
 0x221   : > { %3515 = vst [vmem:[#allocation2 + $0x88] sm:$0xff] %v3466_v27  ;;  %v3418_v3 = vadd.f32 %v16085_v50, %v3362_v49  ;;  %v2746_v9 = vadd.f32 %v2604_v4, %v15741_v53  ;;  %v3602_v48 = vpack.c.bf16 %v3466_v27, %v3465_v63 }
 0x222   : > { %v2606_v8 = vpop.f32.mrf.mxu0  ;;  %v3223_v58 = vpop.f32.mrf.mxu1 }
 0x223   : > { %v3467_v11 = vmax.f32 %v3418_v3, 0.0  ;;  %v3363_v43 = vadd.f32 %v3221_v51, %v2746_v9  ;;  %13423 = vmatprep.mubr.bf16.mxu1 %v3602_v48 }
 0x224   : > { %v2609_v42 = vpop.f32.mrf.mxu0  ;;  %v3649_v36 = vld [vmem:[#allocation2 + $0x79] sm:$0xff]  ;;  %v3226_v37 = vpop.f32.mrf.mxu1 }
 0x225   : > { %3516 = vst [vmem:[#allocation2 + $0x90] sm:$0xff] %v3467_v11  ;;  %v3419_v34 = vadd.f32 %v16085_v50, %v3363_v43  ;;  %v2747_v56 = vadd.f32 %v2609_v42, %v15763_v41  ;;  %v3688_v1 = vpack.c.bf16 %v3649_v36, %v3648_v55 }
 0x226   : > { %v2611_v53 = vpop.f32.mrf.mxu0  ;;  %v3228_v23 = vpop.f32.mrf.mxu1 }
 0x227   : > { %v3468_v30 = vmax.f32 %v3419_v34, 0.0  ;;  %v3364_v33 = vadd.f32 %v3226_v37, %v2747_v56  ;;  %13356 = vmatmul.mubr.bf16.gmra.mxu0 %v3688_v1 }
 0x228   : > { %v2612_v63 = vpop.f32.mrf.mxu0  ;;  %v3229_v40 = vpop.f32.mrf.mxu1  ;;  %v3650_v22 = vld [vmem:[#allocation2 + $0x81] sm:$0xff] }
 0x229   : > { %3517 = vst [vmem:[#allocation2 + $0x98] sm:$0xff] %v3468_v30  ;;  %v3420_v39 = vadd.f32 %v16085_v50, %v3364_v33  ;;  %v2748_v38 = vadd.f32 %v2612_v63, %v15779_v44  ;;  %v3603_v62 = vpack.c.bf16 %v3468_v30, %v3467_v11 }
 0x22a   : > { %v2614_v61 = vpop.f32.mrf.mxu0  ;;  %v3231_v0 = vpop.f32.mrf.mxu1 }
 0x22b   : > { %v3469_v20 = vmax.f32 %v3420_v39, 0.0  ;;  %v3365_v26 = vadd.f32 %v3229_v40, %v2748_v38  ;;  %13424 = vmatmul.mubr.bf16.gmra.mxu1 %v3603_v62 }
 0x22c   : > { %v2617_v41 = vpop.f32.mrf.mxu0  ;;  %v3651_v5 = vld [vmem:[#allocation2 + $0x89] sm:$0xff]  ;;  %v3234_v45 = vpop.f32.mrf.mxu1 }
 0x22d   : > { %3518 = vst [vmem:[#allocation2 + $0xa0] sm:$0xff] %v3469_v20  ;;  %v3421_v27 = vadd.f32 %v16085_v50, %v3365_v26  ;;  %v2749_v49 = vadd.f32 %v2617_v41, %v15795_v31  ;;  %v3689_v12 = vpack.c.bf16 %v3651_v5, %v3650_v22 }
 0x22e   : > { %v2619_v4 = vpop.f32.mrf.mxu0  ;;  %v3236_v9 = vpop.f32.mrf.mxu1 }
 0x22f   : > { %v3470_v3 = vmax.f32 %v3421_v27, 0.0  ;;  %v3366_v44 = vadd.f32 %v3234_v45, %v2749_v49  ;;  %13359 = vmatprep.mubr.bf16.mxu0 %v3689_v12 }
 0x230   : > { %v2620_v51 = vpop.f32.mrf.mxu0  ;;  %v3237_v11 = vpop.f32.mrf.mxu1  ;;  %v3652_v34 = vld [vmem:[#allocation2 + $0x91] sm:$0xff] }
 0x231   : > { %3519 = vst [vmem:[#allocation2 + $0xa8] sm:$0xff] %v3470_v3  ;;  %v3422_v48 = vadd.f32 %v16085_v50, %v3366_v44  ;;  %v2750_v8 = vadd.f32 %v2620_v51, %v15808_v15  ;;  %v3604_v43 = vpack.c.bf16 %v3470_v3, %v3469_v20 }
 0x232   : > { %v2622_v58 = vpop.f32.mrf.mxu0  ;;  %v3239_v36 = vpop.f32.mrf.mxu1 }
 0x233   : > { %v3471_v42 = vmax.f32 %v3422_v48, 0.0  ;;  %v3367_v55 = vadd.f32 %v3237_v11, %v2750_v8  ;;  %13427 = vmatprep.mubr.bf16.mxu1 %v3604_v43 }
 0x234   : > { %v2625_v31 = vpop.f32.mrf.mxu0  ;;  %v3653_v56 = vld [vmem:[#allocation2 + $0x99] sm:$0xff]  ;;  %v3242_v53 = vpop.f32.mrf.mxu1 }
 0x235   : > { %3520 = vst [vmem:[#allocation2 + $0xb0] sm:$0xff] %v3471_v42  ;;  %v3423_v37 = vadd.f32 %v16085_v50, %v3367_v55  ;;  %v2751_v1 = vadd.f32 %v2625_v31, %v15827_v21  ;;  %v3690_v30 = vpack.c.bf16 %v3653_v56, %v3652_v34 }
 0x236   : > { %v2627_v33 = vpop.f32.mrf.mxu0  ;;  %v3244_v63 = vpop.f32.mrf.mxu1 }
 0x237   : > { %v3472_v23 = vmax.f32 %v3423_v37, 0.0  ;;  %v3368_v15 = vadd.f32 %v3242_v53, %v2751_v1  ;;  %13360 = vmatmul.mubr.bf16.gmra.mxu0 %v3690_v30 }
 0x238   : > { %v2628_v39 = vpop.f32.mrf.mxu0  ;;  %v3245_v62 = vpop.f32.mrf.mxu1  ;;  %v3654_v22 = vld [vmem:[#allocation2 + $0xa1] sm:$0xff] }
 0x239   : > { %3521 = vst [vmem:[#allocation2 + $0xb8] sm:$0xff] %v3472_v23  ;;  %v3424_v38 = vadd.f32 %v16085_v50, %v3368_v15  ;;  %v2752_v40 = vadd.f32 %v2628_v39, %v15835_v28  ;;  %v3605_v61 = vpack.c.bf16 %v3472_v23, %v3471_v42 }
 0x23a   : > { %v2630_v20 = vpop.f32.mrf.mxu0  ;;  %v3247_v41 = vpop.f32.mrf.mxu1 }
 0x23b   : > { %v3473_v26 = vmax.f32 %v3424_v38, 0.0  ;;  %v3369_v0 = vadd.f32 %v3245_v62, %v2752_v40  ;;  %13428 = vmatmul.mubr.bf16.gmra.mxu1 %v3605_v61 }
 0x23c   : > { %v2633_v21 = vpop.f32.mrf.mxu0  ;;  %v3655_v5 = vld [vmem:[#allocation2 + $0xa9] sm:$0xff]  ;;  %v3250_v45 = vpop.f32.mrf.mxu1 }
 0x23d   : > { %3522 = vst [vmem:[#allocation2 + $0xc0] sm:$0xff] %v3473_v26  ;;  %v3425_v27 = vadd.f32 %v16085_v50, %v3369_v0  ;;  %v2753_v49 = vadd.f32 %v2633_v21, %v15855_v6  ;;  %v3691_v12 = vpack.c.bf16 %v3655_v5, %v3654_v22 }
 0x23e   : > { %v2635_v4 = vpop.f32.mrf.mxu0  ;;  %v3252_v44 = vpop.f32.mrf.mxu1 }
 0x23f   : > { %v3474_v3 = vmax.f32 %v3425_v27, 0.0  ;;  %v3370_v28 = vadd.f32 %v3250_v45, %v2753_v49  ;;  %13363 = vmatprep.mubr.bf16.mxu0 %v3691_v12 }
 0x240   : > { %v2636_v9 = vpop.f32.mrf.mxu0  ;;  %v3253_v8 = vpop.f32.mrf.mxu1  ;;  %v3656_v36 = vld [vmem:[#allocation2 + $0xb1] sm:$0xff] }
 0x241   : > { %3523 = vst [vmem:[#allocation2 + $0xc8] sm:$0xff] %v3474_v3  ;;  %v3426_v51 = vadd.f32 %v16085_v50, %v3370_v28  ;;  %v2754_v48 = vadd.f32 %v2636_v9, %v15860_v2  ;;  %v3606_v11 = vpack.c.bf16 %v3474_v3, %v3473_v26 }
 0x242   : > { %v2638_v43 = vpop.f32.mrf.mxu0  ;;  %v3255_v55 = vpop.f32.mrf.mxu1 }
 0x243   : > { %v3475_v58 = vmax.f32 %v3426_v51, 0.0  ;;  %v3371_v42 = vadd.f32 %v3253_v8, %v2754_v48  ;;  %13431 = vmatprep.mubr.bf16.mxu1 %v3606_v11 }
 0x244   : > { %v2641_v6 = vpop.f32.mrf.mxu0  ;;  %v3657_v31 = vld [vmem:[#allocation2 + $0xb9] sm:$0xff]  ;;  %v3258_v37 = vpop.f32.mrf.mxu1 }
 0x245   : > { %3524 = vst [vmem:[#allocation2 + $0xd0] sm:$0xff] %v3475_v58  ;;  %v3427_v34 = vadd.f32 %v16085_v50, %v3371_v42  ;;  %v2755_v56 = vadd.f32 %v2641_v6, %v15878_v18  ;;  %v3692_v1 = vpack.c.bf16 %v3657_v31, %v3656_v36 }
 0x246   : > { %v2643_v53 = vpop.f32.mrf.mxu0  ;;  %v3260_v33 = vpop.f32.mrf.mxu1 }
 0x247   : > { %v3476_v30 = vmax.f32 %v3427_v34, 0.0  ;;  %v3372_v2 = vadd.f32 %v3258_v37, %v2755_v56  ;;  %13364 = vmatmul.mubr.bf16.gmra.mxu0 %v3692_v1 }
 0x248   : > { %v2644_v23 = vpop.f32.mrf.mxu0  ;;  %v3261_v39 = vpop.f32.mrf.mxu1  ;;  %v3658_v26 = vld [vmem:[#allocation2 + $0xc1] sm:$0xff] }
 0x249   : > { %3525 = vst [vmem:[#allocation2 + $0xd8] sm:$0xff] %v3476_v30  ;;  %v3428_v15 = vadd.f32 %v16085_v50, %v3372_v2  ;;  %v2756_v63 = vadd.f32 %v2644_v23, %v15898_v7  ;;  %v3607_v38 = vpack.c.bf16 %v3476_v30, %v3475_v58 }
 0x24a   : > { %v2646_v40 = vpop.f32.mrf.mxu0  ;;  %v3263_v20 = vpop.f32.mrf.mxu1 }
 0x24b   : > { %v3477_v62 = vmax.f32 %v3428_v15, 0.0  ;;  %v3373_v61 = vadd.f32 %v3261_v39, %v2756_v63  ;;  %13432 = vmatmul.mubr.bf16.gmra.mxu1 %v3607_v38 }
 0x24c   : > { %v2649_v18 = vpop.f32.mrf.mxu0  ;;  %v3659_v0 = vld [vmem:[#allocation2 + $0xc9] sm:$0xff]  ;;  %v3266_v22 = vpop.f32.mrf.mxu1 }
 0x24d   : > { %3526 = vst [vmem:[#allocation2 + $0xe0] sm:$0xff] %v3477_v62  ;;  %v3429_v41 = vadd.f32 %v16085_v50, %v3373_v61  ;;  %v2757_v21 = vadd.f32 %v2649_v18, %v15910_v46  ;;  %v3693_v5 = vpack.c.bf16 %v3659_v0, %v3658_v26 }
 0x24e   : > { %v2651_v27 = vpop.f32.mrf.mxu0  ;;  %v3268_v45 = vpop.f32.mrf.mxu1 }
 0x24f   : > { %v3478_v49 = vmax.f32 %v3429_v41, 0.0  ;;  %v3374_v7 = vadd.f32 %v3266_v22, %v2757_v21  ;;  %13367 = vmatprep.mubr.bf16.mxu0 %v3693_v5 }
 0x250   : > { %v2652_v12 = vpop.f32.mrf.mxu0  ;;  %v3269_v28 = vpop.f32.mrf.mxu1  ;;  %v3660_v11 = vld [vmem:[#allocation2 + $0xd1] sm:$0xff] }
 0x251   : > { %3527 = vst [vmem:[#allocation2 + $0xe8] sm:$0xff] %v3478_v49  ;;  %v3430_v4 = vadd.f32 %v16085_v50, %v3374_v7  ;;  %v2758_v3 = vadd.f32 %v2652_v12, %v15923_v19  ;;  %v3608_v44 = vpack.c.bf16 %v3478_v49, %v3477_v62 }
 0x252   : > { %v2654_v9 = vpop.f32.mrf.mxu0  ;;  %v3271_v8 = vpop.f32.mrf.mxu1 }
 0x253   : > { %v3479_v51 = vmax.f32 %v3430_v4, 0.0  ;;  %v3375_v48 = vadd.f32 %v3269_v28, %v2758_v3  ;;  %13435 = vmatprep.mubr.bf16.mxu1 %v3608_v44 }
 0x254   : > { %v2657_v46 = vpop.f32.mrf.mxu0  ;;  %v3661_v43 = vld [vmem:[#allocation2 + $0xd9] sm:$0xff]  ;;  %v3274_v55 = vpop.f32.mrf.mxu1 }
 0x255   : > { %3528 = vst [vmem:[#allocation2 + $0xf0] sm:$0xff] %v3479_v51  ;;  %v3431_v58 = vadd.f32 %v16085_v50, %v3375_v48  ;;  %v2759_v42 = vadd.f32 %v2657_v46, %v15931_v59  ;;  %v3694_v6 = vpack.c.bf16 %v3661_v43, %v3660_v11 }
 0x256   : > { %v2659_v36 = vpop.f32.mrf.mxu0  ;;  %v3276_v34 = vpop.f32.mrf.mxu1 }
 0x257   : > { %v3480_v31 = vmax.f32 %v3431_v58, 0.0  ;;  %v3376_v19 = vadd.f32 %v3274_v55, %v2759_v42  ;;  %13368 = vmatmul.mubr.bf16.gmra.mxu0 %v3694_v6 }
 0x258   : > { %v2660_v56 = vpop.f32.mrf.mxu0  ;;  %v3277_v53 = vpop.f32.mrf.mxu1  ;;  %v3662_v63 = vld [vmem:[#allocation2 + $0xe1] sm:$0xff] }
 0x259   : > { %3529 = vst [vmem:[#allocation2 + $0xf8] sm:$0xff] %v3480_v31  ;;  %v3432_v37 = vadd.f32 %v16085_v50, %v3376_v19  ;;  %v2760_v1 = vadd.f32 %v2660_v56, %v15942_v25  ;;  %v3609_v30 = vpack.c.bf16 %v3480_v31, %v3479_v51 }
 0x25a   : > { %v2662_v2 = vpop.f32.mrf.mxu0  ;;  %v3279_v15 = vpop.f32.mrf.mxu1 }
 0x25b   : > { %v3481_v33 = vmax.f32 %v3432_v37, 0.0  ;;  %v3377_v23 = vadd.f32 %v3277_v53, %v2760_v1  ;;  %13436 = vmatmul.mubr.bf16.gmra.mxu1 %v3609_v30 }
 0x25c   : > { %v2665_v59 = vpop.f32.mrf.mxu0  ;;  %v3663_v39 = vld [vmem:[#allocation2 + $0xe9] sm:$0xff]  ;;  %v3282_v62 = vpop.f32.mrf.mxu1 }
 0x25d   : > { %3530 = vst [vmem:[#allocation2 + $0x100] sm:$0xff] %v3481_v33  ;;  %v3433_v38 = vadd.f32 %v16085_v50, %v3377_v23  ;;  %v2761_v40 = vadd.f32 %v2665_v59, %v15954_v14  ;;  %v3695_v61 = vpack.c.bf16 %v3663_v39, %v3662_v63 }
 0x25e   : > { %v2667_v20 = vpop.f32.mrf.mxu0  ;;  %v3284_v26 = vpop.f32.mrf.mxu1 }
 0x25f   : > { %v3482_v18 = vmax.f32 %v3433_v38, 0.0  ;;  %v3378_v25 = vadd.f32 %v3282_v62, %v2761_v40  ;;  %13371 = vmatprep.mubr.bf16.mxu0 %v3695_v61 }
 0x260   : > { %v2668_v0 = vpop.f32.mrf.mxu0  ;;  %v3285_v22 = vpop.f32.mrf.mxu1  ;;  %v3664_v12 = vld [vmem:[#allocation2 + $0xf1] sm:$0xff] }
 0x261   : > { %3531 = vst [vmem:[#allocation2 + $0x108] sm:$0xff] %v3482_v18  ;;  %v3434_v41 = vadd.f32 %v16085_v50, %v3378_v25  ;;  %v2762_v21 = vadd.f32 %v2668_v0, %v15966_v54  ;;  %v3610_v5 = vpack.c.bf16 %v3482_v18, %v3481_v33 }
 0x262   : > { %v2670_v27 = vpop.f32.mrf.mxu0  ;;  %v3287_v45 = vpop.f32.mrf.mxu1 }
 0x263   : > { %v3483_v49 = vmax.f32 %v3434_v41, 0.0  ;;  %v3379_v7 = vadd.f32 %v3285_v22, %v2762_v21  ;;  %13439 = vmatprep.mubr.bf16.mxu1 %v3610_v5 }
 0x264   : > { %v2673_v14 = vpop.f32.mrf.mxu0  ;;  %v3665_v4 = vld [vmem:[#allocation2 + $0xf9] sm:$0xff]  ;;  %v3290_v44 = vpop.f32.mrf.mxu1 }
 0x265   : > { %3532 = vst [vmem:[#allocation2 + $0x110] sm:$0xff] %v3483_v49  ;;  %v3435_v3 = vadd.f32 %v16085_v50, %v3379_v7  ;;  %v2763_v28 = vadd.f32 %v2673_v14, %v15975_v57  ;;  %v3696_v9 = vpack.c.bf16 %v3665_v4, %v3664_v12 }
 0x266   : > { %v2675_v51 = vpop.f32.mrf.mxu0  ;;  %v3292_v8 = vpop.f32.mrf.mxu1 }
 0x267   : > { %v3484_v48 = vmax.f32 %v3435_v3, 0.0  ;;  %v3380_v54 = vadd.f32 %v3290_v44, %v2763_v28  ;;  %13372 = vmatmul.mubr.bf16.gmra.mxu0 %v3696_v9 }
 0x268   : > { %v2676_v46 = vpop.f32.mrf.mxu0  ;;  %v3293_v58 = vpop.f32.mrf.mxu1  ;;  %v3666_v19 = vld [vmem:[#allocation2 + $0x101] sm:$0xff] }
 0x269   : > { %3533 = vst [vmem:[#allocation2 + $0x118] sm:$0xff] %v3484_v48  ;;  %v3436_v11 = vadd.f32 %v16085_v50, %v3380_v54  ;;  %v2764_v43 = vadd.f32 %v2676_v46, %v15989_v24  ;;  %v3611_v42 = vpack.c.bf16 %v3484_v48, %v3483_v49  ;;  %v16213_v49 = vld [vmem:[%s18345_s2] ss:$0 sm:$0xff] }
 0x26a   : > { %v2678_v55 = vpop.f32.mrf.mxu0  ;;  %v3295_v31 = vpop.f32.mrf.mxu1  ;;  %v18409_v48 = vld [vmem:[#allocation17_spill] sm:$0xff] }
 0x26b   : > { %v3485_v6 = vmax.f32 %v3436_v11, 0.0  ;;  %v3381_v36 = vadd.f32 %v3293_v58, %v2764_v43  ;;  %13440 = vmatmul.mubr.bf16.gmra.mxu1 %v3611_v42 }
 0x26c   : > { %v2681_v57 = vpop.f32.mrf.mxu0  ;;  %v3667_v34 = vld [vmem:[#allocation2 + $0x109] sm:$0xff]  ;;  %v3298_v1 = vpop.f32.mrf.mxu1 }
 0x26d   : > { %3534 = vst [vmem:[#allocation2 + $0x120] sm:$0xff] %v3485_v6  ;;  %v3437_v56 = vadd.f32 %v16085_v50, %v3381_v36  ;;  %v2765_v37 = vadd.f32 %v2681_v57, %v15999_v32  ;;  %v3697_v53 = vpack.c.bf16 %v3667_v34, %v3666_v19 }
 0x26e   : > { %v2683_v30 = vpop.f32.mrf.mxu0  ;;  %v3300_v33 = vpop.f32.mrf.mxu1 }
 0x26f   : > { %v3486_v2 = vmax.f32 %v3437_v56, 0.0  ;;  %v3382_v24 = vadd.f32 %v3298_v1, %v2765_v37  ;;  %13375 = vmatprep.mubr.bf16.mxu0 %v3697_v53 }
 0x270   : > { %v2684_v23 = vpop.f32.mrf.mxu0  ;;  %v3301_v63 = vpop.f32.mrf.mxu1  ;;  %v3668_v20 = vld [vmem:[#allocation2 + $0x111] sm:$0xff] }
 0x271   : > { %3535 = vst [vmem:[#allocation2 + $0x128] sm:$0xff] %v3486_v2  ;;  %v3438_v15 = vadd.f32 %v16085_v50, %v3382_v24  ;;  %v2766_v59 = vadd.f32 %v2684_v23, %v16008_v35  ;;  %v3612_v39 = vpack.c.bf16 %v3486_v2, %v3485_v6 }
 0x272   : > { %v2686_v38 = vpop.f32.mrf.mxu0  ;;  %v3303_v61 = vpop.f32.mrf.mxu1 }
 0x273   : > { %v3487_v40 = vmax.f32 %v3438_v15, 0.0  ;;  %v3383_v62 = vadd.f32 %v3301_v63, %v2766_v59  ;;  %13443 = vmatprep.mubr.bf16.mxu1 %v3612_v39 }
 0x274   : > { %v2689_v32 = vpop.f32.mrf.mxu0  ;;  %v3669_v18 = vld [vmem:[#allocation2 + $0x119] sm:$0xff]  ;;  %v3306_v0 = vpop.f32.mrf.mxu1 }
 0x275   : > { %3536 = vst [vmem:[#allocation2 + $0x130] sm:$0xff] %v3487_v40  ;;  %v3439_v25 = vadd.f32 %v16085_v50, %v3383_v62  ;;  %v2767_v26 = vadd.f32 %v2689_v32, %v16018_v10  ;;  %v3698_v41 = vpack.c.bf16 %v3669_v18, %v3668_v20 }
 0x276   : > { %v2691_v21 = vpop.f32.mrf.mxu0  ;;  %v3308_v5 = vpop.f32.mrf.mxu1 }
 0x277   : > { %v3488_v22 = vmax.f32 %v3439_v25, 0.0  ;;  %v3384_v35 = vadd.f32 %v3306_v0, %v2767_v26  ;;  %13376 = vmatmul.mubr.bf16.gmra.mxu0 %v3698_v41 }
 0x278   : > { %v2692_v27 = vpop.f32.mrf.mxu0  ;;  %v3309_v45 = vpop.f32.mrf.mxu1  ;;  %v3670_v44 = vld [vmem:[#allocation2 + $0x121] sm:$0xff] }
 0x279   : > { %3537 = vst [vmem:[#allocation2 + $0x138] sm:$0xff] %v3488_v22  ;;  %v3440_v7 = vadd.f32 %v16213_v49, %v3384_v35  ;;  %v2768_v50 = vadd.f32 %v2692_v27, %v16034_v16  ;;  %v3613_v10 = vpack.c.bf16 %v3488_v22, %v3487_v40 }
 0x27a   : > { %v2694_v14 = vpop.f32.mrf.mxu0  ;;  %v3311_v3 = vpop.f32.mrf.mxu1 }
 0x27b   : > { %v3489_v12 = vmax.f32 %v3440_v7, 0.0  ;;  %v3385_v4 = vadd.f32 %v3309_v45, %v2768_v50  ;;  %13444 = vmatmul.mubr.bf16.gmra.mxu1 %v3613_v10 }
 0x27c   : > { %v2697_v28 = vpop.f32.mrf.mxu0  ;;  %v3671_v9 = vld [vmem:[#allocation2 + $0x129] sm:$0xff]  ;;  %v3314_v8 = vpop.f32.mrf.mxu1 }
 0x27d   : > { %3538 = vst [vmem:[#allocation2 + $0x140] sm:$0xff] %v3489_v12  ;;  %v3441_v51 = vadd.f32 %v16213_v49, %v3385_v4  ;;  %v2769_v54 = vadd.f32 %v2697_v28, %v18409_v48  ;;  %v3699_v46 = vpack.c.bf16 %v3671_v9, %v3670_v44 }
 0x27e   : > { %v2699_v11 = vpop.f32.mrf.mxu0  ;;  %v3316_v58 = vpop.f32.mrf.mxu1 }
 0x27f   : > { %v3490_v43 = vmax.f32 %v3441_v51, 0.0  ;;  %v3386_v16 = vadd.f32 %v3314_v8, %v2769_v54  ;;  %13379 = vmatprep.mubr.bf16.mxu0 %v3699_v46 }
 0x280   : > { %v2700_v42 = vpop.f32.mrf.mxu0  ;;  %v3317_v36 = vpop.f32.mrf.mxu1  ;;  %v3672_v1 = vld [vmem:[#allocation2 + $0x131] sm:$0xff] }
 0x281   : > { %3539 = vst [vmem:[#allocation2 + $0x148] sm:$0xff] %v3490_v43  ;;  %v3442_v55 = vadd.f32 %v16213_v49, %v3386_v16  ;;  %v2770_v6 = vadd.f32 %v2700_v42, %v16049_v17  ;;  %v3614_v31 = vpack.c.bf16 %v3490_v43, %v3489_v12 }
 0x282   : > { %v2702_v57 = vpop.f32.mrf.mxu0  ;;  %v3319_v56 = vpop.f32.mrf.mxu1 }
 0x283   : > { %v3491_v19 = vmax.f32 %v3442_v55, 0.0  ;;  %v3387_v34 = vadd.f32 %v3317_v36, %v2770_v6  ;;  %13447 = vmatprep.mubr.bf16.mxu1 %v3614_v31  ;;  %v4676_v57 = vld [vmem:[#allocation2 + $0x24] sm:$0xff] }
 0x284   : > { %v2705_v37 = vpop.f32.mrf.mxu0  ;;  %v3673_v53 = vld [vmem:[#allocation2 + $0x139] sm:$0xff]  ;;  %v3322_v24 = vpop.f32.mrf.mxu1 }
 0x285   : > { %3540 = vst [vmem:[#allocation2 + $0x150] sm:$0xff] %v3491_v19  ;;  %v3443_v30 = vadd.f32 %v16213_v49, %v3387_v34  ;;  %v2771_v2 = vadd.f32 %v2705_v37, %v16054_v13  ;;  %v3700_v33 = vpack.c.bf16 %v3673_v53, %v3672_v1  ;;  %v4678_v34 = vld [vmem:[#allocation2 + $0x34] sm:$0xff]  ;;  %v4675_v53 = vld [vmem:[#allocation2 + $0x1c] sm:$0xff] }
 0x286   : > { %v2707_v23 = vpop.f32.mrf.mxu0  ;;  %v3324_v59 = vpop.f32.mrf.mxu1 }
 0x287   : > { %v3492_v15 = vmax.f32 %v3443_v30, 0.0  ;;  %v3388_v17 = vadd.f32 %v3322_v24, %v2771_v2  ;;  %13380 = vmatmul.mubr.bf16.gmra.mxu0 %v3700_v33  ;;  %v4721_v2 = vpack.c.bf16 %v4676_v57, %v4675_v53  ;;  %v4677_v24 = vld [vmem:[#allocation2 + $0x2c] sm:$0xff] }
 0x288   : > { %v2708_v63 = vpop.f32.mrf.mxu0  ;;  %v3325_v40 = vpop.f32.mrf.mxu1  ;;  %v3674_v25 = vld [vmem:[#allocation2 + $0x141] sm:$0xff]  ;;  %v4722_v33 = vpack.c.bf16 %v4678_v34, %v4677_v24  ;;  %v4267_v23 = vld [vmem:[#allocation2 + $0x13] sm:$0xff] }
 0x289   : > { %3541 = vst [vmem:[#allocation2 + $0x158] sm:$0xff] %v3492_v15  ;;  %v3444_v39 = vadd.f32 %v16213_v49, %v3388_v17  ;;  %v2772_v38 = vadd.f32 %v2708_v63, %v16059_v29  ;;  %v3615_v62 = vpack.c.bf16 %v3492_v15, %v3491_v19  ;;  %v4266_v17 = vld [vmem:[#allocation2 + $0xb] sm:$0xff]  ;;  %v4283_v53 = vld [vmem:[#allocation2 + $0x93] sm:$0xff] }
 0x28a   : > { %v2710_v61 = vpop.f32.mrf.mxu0  ;;  %v3327_v18 = vpop.f32.mrf.mxu1  ;;  %v4313_v59 = vpack.c.bf16 %v4267_v23, %v4266_v17  ;;  %v4680_v63 = vld [vmem:[#allocation2 + $0x44] sm:$0xff]  ;;  %v4693_v34 = vld [vmem:[#allocation2 + $0xac] sm:$0xff]  ;;  %v4698_v17 = vld [vmem:[#allocation2 + $0xd4] sm:$0xff] }
 0x28b   : > { %v3493_v32 = vmax.f32 %v3444_v39, 0.0  ;;  %v3389_v20 = vadd.f32 %v3325_v40, %v2772_v38  ;;  %13448 = vmatmul.mubr.bf16.gmra.mxu1 %v3615_v62  ;;  %v4682_v39 = vld [vmem:[#allocation2 + $0x54] sm:$0xff]  ;;  %v4679_v38 = vld [vmem:[#allocation2 + $0x3c] sm:$0xff]  ;;  %v4681_v62 = vld [vmem:[#allocation2 + $0x4c] sm:$0xff] }
 0x28c   : > { %v2713_v13 = vpop.f32.mrf.mxu0  ;;  %v3675_v26 = vld [vmem:[#allocation2 + $0x149] sm:$0xff]  ;;  %v3330_v21 = vpop.f32.mrf.mxu1  ;;  %v4723_v40 = vpack.c.bf16 %v4680_v63, %v4679_v38  ;;  %v4268_v18 = vld [vmem:[#allocation2 + $0x1b] sm:$0xff] }
 0x28d   : > { %3542 = vst [vmem:[#allocation2 + $0x160] sm:$0xff] %v3493_v32  ;;  %v3445_v0 = vadd.f32 %v16213_v49, %v3389_v20  ;;  %v2773_v41 = vadd.f32 %v2713_v13, %v16064_v52  ;;  %v3701_v22 = vpack.c.bf16 %v3675_v26, %v3674_v25  ;;  %v4674_v52 = vld [vmem:[#allocation2 + $0x14] sm:$0xff]  ;;  %v4269_v61 = vld [vmem:[#allocation2 + $0x23] sm:$0xff]  ;;  %v4270_v26 = vld [vmem:[#allocation2 + $0x2b] sm:$0xff] }
 0x28e   : > { %v2715_v35 = vpop.f32.mrf.mxu0  ;;  %v3332_v27 = vpop.f32.mrf.mxu1  ;;  %v4271_v20 = vld [vmem:[#allocation2 + $0x33] sm:$0xff]  ;;  %v4314_v25 = vpack.c.bf16 %v4269_v61, %v4268_v18 }
 0x28f   : > { %v3494_v5 = vmax.f32 %v3445_v0, 0.0  ;;  %v3390_v29 = vadd.f32 %v3330_v21, %v2773_v41  ;;  %13383 = vmatprep.mubr.bf16.mxu0 %v3701_v22  ;;  %v14183_v13 = vld [vmem:[%s18348_s5 + $0x38] sm:$0xff]   ;;  %v4315_v0 = vpack.c.bf16 %v4271_v20, %v4270_v26  ;;  %v4684_v41 = vld [vmem:[#allocation2 + $0x64] sm:$0xff]  ;;  %v4697_v38 = vld [vmem:[#allocation2 + $0xcc] sm:$0xff] }
 0x290   : > { %v2716_v7 = vpop.f32.mrf.mxu0  ;;  %v3333_v10 = vpop.f32.mrf.mxu1  ;;  %v3676_v9 = vld [vmem:[#allocation2 + $0x151] sm:$0xff]  ;;  %13583 = vmatprep.subr.bf16.mxu0 %v14183_v13  ;;  %v4683_v22 = vld [vmem:[#allocation2 + $0x5c] sm:$0xff] }
 0x291   : > { %3543 = vst [vmem:[#allocation2 + $0x168] sm:$0xff] %v3494_v5  ;;  %v3446_v50 = vadd.f32 %v16213_v49, %v3390_v29  ;;  %v2774_v45 = vadd.f32 %v2716_v7, %v16067_v47  ;;  %v3616_v14 = vpack.c.bf16 %v3494_v5, %v3493_v32  ;;  %v4673_v47 = vld [vmem:[#allocation2 + $0xc] sm:$0xff]  ;;  %v4724_v32 = vpack.c.bf16 %v4682_v39, %v4681_v62  ;;  %v4686_v21 = vld [vmem:[#allocation2 + $0x74] sm:$0xff]  ;;  %v4273_v29 = vld [vmem:[#allocation2 + $0x43] sm:$0xff] }
 0x292   : > { %v2718_v12 = vpop.f32.mrf.mxu0  ;;  %v3335_v28 = vpop.f32.mrf.mxu1  ;;  %v4720_v43 = vpack.c.bf16 %v4674_v52, %v4673_v47  ;;  %v4725_v35 = vpack.c.bf16 %v4684_v41, %v4683_v22  ;;  %v4685_v5 = vld [vmem:[#allocation2 + $0x6c] sm:$0xff]  ;;  %v4732_v62 = vpack.c.bf16 %v4698_v17, %v4697_v38  ;;  %v4700_v22 = vld [vmem:[#allocation2 + $0xe4] sm:$0xff] }
 0x293   : > { %v3495_v4 = vmax.f32 %v3446_v50, 0.0  ;;  %v3391_v3 = vadd.f32 %v3333_v10, %v2774_v45  ;;  %13451 = vmatprep.mubr.bf16.mxu1 %v3616_v14  ;;  %v4726_v27 = vpack.c.bf16 %v4686_v21, %v4685_v5  ;;  %v4275_v7 = vld [vmem:[#allocation2 + $0x53] sm:$0xff]  ;;  %v4272_v50 = vld [vmem:[#allocation2 + $0x3b] sm:$0xff]  ;;  %v4274_v10 = vld [vmem:[#allocation2 + $0x4b] sm:$0xff] }
 0x294   : > { %v2721_v44 = vpop.f32.mrf.mxu0  ;;  %v3677_v51 = vld [vmem:[#allocation2 + $0x159] sm:$0xff]  ;;  %v3338_v8 = vpop.f32.mrf.mxu1  ;;  %v4316_v45 = vpack.c.bf16 %v4273_v29, %v4272_v50  ;;  %v4317_v14 = vpack.c.bf16 %v4275_v7, %v4274_v10  ;;  %v4688_v12 = vld [vmem:[#allocation2 + $0x84] sm:$0xff]  ;;  %v4709_v17 = vld [vmem:[#allocation2 + $0x12c] sm:$0xff] }
 0x295   : > { %3544 = vst [vmem:[#allocation2 + $0x170] sm:$0xff] %v3495_v4  ;;  %v3447_v48 = vadd.f32 %v16213_v49, %v3391_v3  ;;  %v2775_v54 = vadd.f32 %v2721_v44, %v16070_v60  ;;  %v3702_v46 = vpack.c.bf16 %v3677_v51, %v3676_v9  ;;  %v3617_v11 = vpack.c.bf16 %v3495_v4, %v3495_v4  ;;  %v4690_v3 = vld [vmem:[#allocation2 + $0x94] sm:$0xff]  ;;  %v4687_v28 = vld [vmem:[#allocation2 + $0x7c] sm:$0xff]  ;;  %v4689_v44 = vld [vmem:[#allocation2 + $0x8c] sm:$0xff] }
 0x296   : > { %v2723_v16 = vpop.f32.mrf.mxu0  ;;  %v3340_v55 = vpop.f32.mrf.mxu1  ;;  %v4727_v52 = vpack.c.bf16 %v4688_v12, %v4687_v28  ;;  %v4277_v9 = vld [vmem:[#allocation2 + $0x63] sm:$0xff]  ;;  %v4728_v51 = vpack.c.bf16 %v4690_v3, %v4689_v44  ;;  %v4287_v20 = vld [vmem:[#allocation2 + $0xb3] sm:$0xff] }
 0x297   : > { %v3496_v58 = vmax.f32 %v3447_v48, 0.0  ;;  %v3392_v42 = vadd.f32 %v3338_v8, %v2775_v54  ;;  %13384 = vmatmul.mubr.bf16.gmra.mxu0 %v3702_v46  ;;  %13452 = vmatmul.mubr.bf16.gmra.mxu1 %v3617_v11  ;;  %v4279_v8 = vld [vmem:[#allocation2 + $0x73] sm:$0xff]  ;;  %v4276_v11 = vld [vmem:[#allocation2 + $0x5b] sm:$0xff]  ;;  %v4278_v16 = vld [vmem:[#allocation2 + $0x6b] sm:$0xff] }
 0x298   : > { %13535 = vmatprep.mubr.bf16.mxu1 %v4720_v43  ;;  %v2724_v6 = vpop.f32.mrf.mxu0  ;;  %v3341_v31 = vpop.f32.mrf.mxu1  ;;  %v3678_v37 = vld [vmem:[#allocation2 + $0x161] sm:$0xff]  ;;  %v4318_v43 = vpack.c.bf16 %v4277_v9, %v4276_v11  ;;  %v4702_v29 = vld [vmem:[#allocation2 + $0xf4] sm:$0xff] }
 0x299   : > { %3545 = vst [vmem:[#allocation2 + $0x178] sm:$0xff] %v3496_v58  ;;  %v3448_v36 = vadd.f32 %v16213_v49, %v3392_v42  ;;  %v4319_v42 = vpack.c.bf16 %v4279_v8, %v4278_v16  ;;  %v4692_v55 = vld [vmem:[#allocation2 + $0xa4] sm:$0xff]  ;;  %v4694_v31 = vld [vmem:[#allocation2 + $0xb4] sm:$0xff]  ;;  %v4699_v7 = vld [vmem:[#allocation2 + $0xdc] sm:$0xff] }
 0x29a   : > { %v2725_v19 = vpop.f32.mrf.mxu0  ;;  %v3342_v56 = vpop.f32.mrf.mxu1  ;;  %v4733_v50 = vpack.c.bf16 %v4700_v22, %v4699_v7  ;;  %v4289_v10 = vld [vmem:[#allocation2 + $0xc3] sm:$0xff]  ;;  %v4291_v12 = vld [vmem:[#allocation2 + $0xd3] sm:$0xff] }
 0x29b   : > { %v3497_v60 = vmax.f32 %v3448_v36, 0.0  ;;  %v4691_v19 = vld [vmem:[#allocation2 + $0x9c] sm:$0xff]  ;;  %v4704_v9 = vld [vmem:[#allocation2 + $0x104] sm:$0xff]  ;;  %v4299_v38 = vld [vmem:[#allocation2 + $0x113] sm:$0xff] }
 0x29c   : > { %v3679_v1 = vld [vmem:[#allocation2 + $0x169] sm:$0xff] }
 0x29d   : > { %3546 = vst [vmem:[#allocation2 + $0x180] sm:$0xff] %v3497_v60  ;;  %v3703_v30 = vpack.c.bf16 %v3679_v1, %v3678_v37  ;;  %v4729_v60 = vpack.c.bf16 %v4692_v55, %v4691_v19  ;;  %v4281_v56 = vld [vmem:[#allocation2 + $0x83] sm:$0xff]  ;;  %v4730_v37 = vpack.c.bf16 %v4694_v31, %v4693_v34  ;;  %v14184_v1 = vld [vmem:[%s18348_s5 + $0x30] sm:$0xff]   ;;  %v4292_v31 = vld [vmem:[#allocation2 + $0xdb] sm:$0xff] }
 0x29e   : > { %v14185_v19 = vld [vmem:[%s18348_s5 + $0x28] sm:$0xff]  }
 0x29f   : > { %13387 = vmatprep.mubr.bf16.mxu0 %v3703_v30  ;;  %13536 = vmatmul.mubr.bf16.vlgmr.msra.gmra.mxu1 %v4721_v2  ;;  %v4280_v30 = vld [vmem:[#allocation2 + $0x7b] sm:$0xff] }
 0x2a0   : > { %v3680_v15 = vld [vmem:[#allocation2 + $0x171] sm:$0xff]  ;;  %13539 = vmatprep.mubr.bf16.mxu1 %v4722_v33  ;;  %v4320_v24 = vpack.c.bf16 %v4281_v56, %v4280_v30 }
 0x2a1   : > { %v3704_v49 = vpack.c.bf16 %v3680_v15, %v3680_v15  ;;  %v4282_v33 = vld [vmem:[#allocation2 + $0x8b] sm:$0xff] }
 0x2a2   : > { %v4321_v23 = vpack.c.bf16 %v4283_v53, %v4282_v33  ;;  %v4696_v15 = vld [vmem:[#allocation2 + $0xc4] sm:$0xff]  ;;  %v4710_v33 = vld [vmem:[#allocation2 + $0x134] sm:$0xff] }
 0x2a3   : > { %13388 = vmatmul.mubr.bf16.gmra.mxu0 %v3704_v49  ;;  %v4294_v56 = vld [vmem:[#allocation2 + $0xeb] sm:$0xff] }
 0x2a4   : > { %13471 = vmatprep.mubr.bf16.mxu0 %v4313_v59  ;;  %v4695_v59 = vld [vmem:[#allocation2 + $0xbc] sm:$0xff]  ;;  %v4708_v53 = vld [vmem:[#allocation2 + $0x124] sm:$0xff] }
 0x2a5   : > { %v4731_v39 = vpack.c.bf16 %v4696_v15, %v4695_v59  ;;  %v4707_v15 = vld [vmem:[#allocation2 + $0x11c] sm:$0xff] }
 0x2a6   : > { %v4297_v59 = vld [vmem:[#allocation2 + $0x103] sm:$0xff] }
 0x2a7   : > { %13540 = vmatmul.mubr.bf16.gmra.mxu1 %v4723_v40  ;;  %v4285_v40 = vld [vmem:[#allocation2 + $0xa3] sm:$0xff] }
 0x2a8   : > { %13543 = vmatprep.mubr.bf16.mxu1 %v4724_v32 }
 0x2ab   : > { %13472 = vmatmul.mubr.bf16.vlgmr.msra.gmra.mxu0 %v4314_v25  ;;  %v13409_v4 = vpop.f32.mrf.mxu1 }
 0x2ac   : > { %13475 = vmatprep.mubr.bf16.mxu0 %v4315_v0  ;;  %13584 = vmatpush3.bf16.msra.mxu0 %v14183_v13  ;;  %v4284_v13 = vld [vmem:[#allocation2 + $0x9b] sm:$0xff]  ;;  %v4286_v0 = vld [vmem:[#allocation2 + $0xab] sm:$0xff] }
 0x2ad   : > { %v4076_v48 = vpop.f32.mrf.mxu1  ;;  %13585 = vmatprep.subr.bf16.mxu0 %v14184_v1  ;;  %v4322_v26 = vpack.c.bf16 %v4285_v40, %v4284_v13  ;;  %v4323_v21 = vpack.c.bf16 %v4287_v20, %v4286_v0  ;;  %v4296_v40 = vld [vmem:[#allocation2 + $0xfb] sm:$0xff]  ;;  %v4712_v13 = vld [vmem:[#allocation2 + $0x144] sm:$0xff] }
 0x2ae   : > { %v4711_v0 = vld [vmem:[#allocation2 + $0x13c] sm:$0xff] }
 0x2af   : > { %13544 = vmatmul.mubr.bf16.gmra.mxu1 %v4725_v35  ;;  %v13410_v6 = vpop.f32.mrf.mxu1  ;;  %v4739_v22 = vpack.c.bf16 %v4712_v13, %v4711_v0  ;;  %v4310_v13 = vld [vmem:[#allocation2 + $0x16b] sm:$0xff] }
 0x2b0   : > { %13547 = vmatprep.mubr.bf16.mxu1 %v4726_v27  ;;  %13586 = vmatpush3.bf16.msra.mxu0 %v14184_v1 }
 0x2b1   : > { %v16244_v2 = vpop.f32.mrf.mxu1  ;;  %13587 = vmatprep.subr.bf16.mxu0 %v14185_v19 }
 0x2b3   : > { %13476 = vmatmul.mubr.bf16.gmra.mxu0 %v4316_v45  ;;  %v4701_v45 = vld [vmem:[#allocation2 + $0xec] sm:$0xff] }
 0x2b4   : > { %13479 = vmatprep.mubr.bf16.mxu0 %v4317_v14  ;;  %v4734_v14 = vpack.c.bf16 %v4702_v29, %v4701_v45  ;;  %13588 = vmatpush3.bf16.msra.mxu0 %v14185_v19  ;;  %v4303_v45 = vld [vmem:[#allocation2 + $0x133] sm:$0xff] }
 0x2b7   : > { %v13345_v54 = vpop.f32.mrf.mxu0  ;;  %13548 = vmatmul.mubr.bf16.gmra.mxu1 %v4727_v52  ;;  %v4290_v52 = vld [vmem:[#allocation2 + $0xcb] sm:$0xff] }
 0x2b8   : > { %v16235_v46 = vadd.f32 %v13409_v4, %v13345_v54  ;;  %13551 = vmatprep.mubr.bf16.mxu1 %v4728_v51  ;;  %v4288_v4 = vld [vmem:[#allocation2 + $0xbb] sm:$0xff]  ;;  %v4325_v44 = vpack.c.bf16 %v4291_v12, %v4290_v52 }
 0x2b9   : > { %v3804_v47 = vpop.f32.mrf.mxu0  ;;  %v4324_v28 = vpack.c.bf16 %v4289_v10, %v4288_v4  ;;  %v4703_v54 = vld [vmem:[#allocation2 + $0xfc] sm:$0xff] }
 0x2ba   : > { %v16237_v58 = vadd.f32 %v4076_v48, %v3804_v47  ;;  %v4706_v48 = vld [vmem:[#allocation2 + $0x114] sm:$0xff]  ;;  %v4735_v11 = vpack.c.bf16 %v4704_v9, %v4703_v54  ;;  %v4705_v47 = vld [vmem:[#allocation2 + $0x10c] sm:$0xff]  ;;  %v4716_v9 = vld [vmem:[#allocation2 + $0x164] sm:$0xff] }
 0x2bb   : > { %v13346_v36 = vpop.f32.mrf.mxu0  ;;  %13480 = vmatmul.mubr.bf16.gmra.mxu0 %v4318_v43  ;;  %v13413_v49 = vpop.f32.mrf.mxu1  ;;  %v4293_v43 = vld [vmem:[#allocation2 + $0xe3] sm:$0xff]  ;;  %v4736_v16 = vpack.c.bf16 %v4706_v48, %v4705_v47  ;;  %v4718_v54 = vld [vmem:[#allocation2 + $0x174] sm:$0xff] }
 0x2bc   : > { %v16239_v57 = vadd.f32 %v13410_v6, %v13346_v36  ;;  %13483 = vmatprep.mubr.bf16.mxu0 %v4319_v42  ;;  %v4295_v6 = vld [vmem:[#allocation2 + $0xf3] sm:$0xff]  ;;  %v4326_v34 = vpack.c.bf16 %v4293_v43, %v4292_v31  ;;  %v4715_v47 = vld [vmem:[#allocation2 + $0x15c] sm:$0xff] }
 0x2bd   : > { %v16246_v63 = vpop.f32.mrf.mxu0  ;;  %v4092_v61 = vpop.f32.mrf.mxu1  ;;  %v4327_v1 = vpack.c.bf16 %v4295_v6, %v4294_v56  ;;  %v4741_v43 = vpack.c.bf16 %v4716_v9, %v4715_v47  ;;  %v4307_v6 = vld [vmem:[#allocation2 + $0x153] sm:$0xff]  ;;  %v4304_v31 = vld [vmem:[#allocation2 + $0x13b] sm:$0xff] }
 0x2bf   : > { %13552 = vmatmul.mubr.bf16.gmra.mxu1 %v4729_v60  ;;  %v13414_v35 = vpop.f32.mrf.mxu1 }
 0x2c0   : > { %13555 = vmatprep.mubr.bf16.mxu1 %v4730_v37 }
 0x2c1   : > { %v16254_v3 = vpop.f32.mrf.mxu1 }
 0x2c3   : > { %13484 = vmatmul.mubr.bf16.gmra.mxu0 %v4320_v24 }
 0x2c4   : > { %13487 = vmatprep.mubr.bf16.mxu0 %v4321_v23 }
 0x2c7   : > { %v13349_v32 = vpop.f32.mrf.mxu0  ;;  %13556 = vmatmul.mubr.bf16.gmra.mxu1 %v4731_v39  ;;  %v4738_v39 = vpack.c.bf16 %v4710_v33, %v4709_v17 }
 0x2c8   : > { %v16248_v18 = vadd.f32 %v13413_v49, %v13349_v32  ;;  %13559 = vmatprep.mubr.bf16.mxu1 %v4732_v62  ;;  %v4737_v49 = vpack.c.bf16 %v4708_v53, %v4707_v15  ;;  %v4298_v32 = vld [vmem:[#allocation2 + $0x10b] sm:$0xff]  ;;  %v4309_v15 = vld [vmem:[#allocation2 + $0x163] sm:$0xff] }
 0x2c9   : > { %v3820_v25 = vpop.f32.mrf.mxu0  ;;  %v4329_v20 = vpack.c.bf16 %v4299_v38, %v4298_v32  ;;  %v4308_v38 = vld [vmem:[#allocation2 + $0x15b] sm:$0xff] }
 0x2ca   : > { %v16250_v41 = vadd.f32 %v4092_v61, %v3820_v25  ;;  %v4328_v61 = vpack.c.bf16 %v4297_v59, %v4296_v40  ;;  %v4311_v59 = vld [vmem:[#allocation2 + $0x173] sm:$0xff]  ;;  %v14186_v40 = vld [vmem:[%s18348_s5 + $0x20] sm:$0xff]  }
 0x2cb   : > { %v13350_v5 = vpop.f32.mrf.mxu0  ;;  %13488 = vmatmul.mubr.bf16.gmra.mxu0 %v4322_v26  ;;  %v13417_v51 = vpop.f32.mrf.mxu1  ;;  %v4714_v26 = vld [vmem:[#allocation2 + $0x154] sm:$0xff]  ;;  %13589 = vmatprep.subr.bf16.mxu0 %v14186_v40 }
 0x2cc   : > { %v16252_v27 = vadd.f32 %v13414_v35, %v13350_v5  ;;  %13491 = vmatprep.mubr.bf16.mxu0 %v4323_v21  ;;  %v4713_v35 = vld [vmem:[#allocation2 + $0x14c] sm:$0xff]  ;;  %v4301_v5 = vld [vmem:[#allocation2 + $0x123] sm:$0xff]  ;;  %13590 = vmatpush3.bf16.msra.mxu0 %v14186_v40 }
 0x2cd   : > { %v16256_v8 = vpop.f32.mrf.mxu0  ;;  %v4108_v42 = vpop.f32.mrf.mxu1  ;;  %v4740_v29 = vpack.c.bf16 %v4714_v26, %v4713_v35  ;;  %v4335_v26 = vpack.c.bf16 %v4311_v59, %v4310_v13 }
 0x2cf   : > { %13560 = vmatmul.mubr.bf16.gmra.mxu1 %v4733_v50  ;;  %v13418_v30 = vpop.f32.mrf.mxu1 }
 0x2d0   : > { %13563 = vmatprep.mubr.bf16.mxu1 %v4734_v14  ;;  %v4300_v14 = vld [vmem:[#allocation2 + $0x11b] sm:$0xff] }
 0x2d1   : > { %v16267_v62 = vpop.f32.mrf.mxu1  ;;  %v4330_v4 = vpack.c.bf16 %v4301_v5, %v4300_v14  ;;  %v14189_v5 = vld [vmem:[%s18348_s5 + $0x8] sm:$0xff]  }
 0x2d3   : > { %13492 = vmatmul.mubr.bf16.gmra.mxu0 %v4324_v28  ;;  %v4302_v28 = vld [vmem:[#allocation2 + $0x12b] sm:$0xff] }
 0x2d4   : > { %13495 = vmatprep.mubr.bf16.mxu0 %v4325_v44  ;;  %v4331_v44 = vpack.c.bf16 %v4303_v45, %v4302_v28 }
 0x2d7   : > { %v13353_v55 = vpop.f32.mrf.mxu0  ;;  %13564 = vmatmul.mubr.bf16.gmra.mxu1 %v4735_v11 }
 0x2d8   : > { %v16258_v36 = vadd.f32 %v13417_v51, %v13353_v55  ;;  %13567 = vmatprep.mubr.bf16.mxu1 %v4736_v16  ;;  %v4717_v16 = vld [vmem:[#allocation2 + $0x16c] sm:$0xff] }
 0x2d9   : > { %v3836_v60 = vpop.f32.mrf.mxu0  ;;  %v4742_v55 = vpack.c.bf16 %v4718_v54, %v4717_v16 }
 0x2da   : > { %v16263_v37 = vadd.f32 %v4108_v42, %v3836_v60  ;;  %v4305_v42 = vld [vmem:[#allocation2 + $0x143] sm:$0xff] }
 0x2db   : > { %v13354_v24 = vpop.f32.mrf.mxu0  ;;  %13496 = vmatmul.mubr.bf16.gmra.mxu0 %v4326_v34  ;;  %v13421_v25 = vpop.f32.mrf.mxu1  ;;  %v4332_v60 = vpack.c.bf16 %v4305_v42, %v4304_v31  ;;  %v4306_v34 = vld [vmem:[#allocation2 + $0x14b] sm:$0xff] }
 0x2dc   : > { %v16265_v23 = vadd.f32 %v13418_v30, %v13354_v24  ;;  %13499 = vmatprep.mubr.bf16.mxu0 %v4327_v1  ;;  %v4333_v56 = vpack.c.bf16 %v4307_v6, %v4306_v34  ;;  %v4719_v1 = vld [vmem:[#allocation2 + $0x17c] sm:$0xff] }
 0x2dd   : > { %v16269_v21 = vpop.f32.mrf.mxu0  ;;  %v4124_v7 = vpop.f32.mrf.mxu1  ;;  %v14187_v30 = vld [vmem:[%s18348_s5 + $0x18] sm:$0xff]   ;;  %v4743_v33 = vpack.c.bf16 %v4719_v1, %v4719_v1 }
 0x2de   : > { %13635 = vmatprep.subr.bf16.mxu1 %v14187_v30 }
 0x2df   : > { %13568 = vmatmul.mubr.bf16.gmra.mxu1 %v4737_v49  ;;  %v13422_v51 = vpop.f32.mrf.mxu1 }
 0x2e0   : > { %13571 = vmatprep.mubr.bf16.mxu1 %v4738_v39  ;;  %13636 = vmatpush3.bf16.msra.mxu1 %v14187_v30 }
 0x2e1   : > { %v16277_v19 = vpop.f32.mrf.mxu1 }
 0x2e3   : > { %13500 = vmatmul.mubr.bf16.gmra.mxu0 %v4328_v61  ;;  %v14188_v61 = vld [vmem:[%s18348_s5 + $0x10] sm:$0xff]  }
 0x2e4   : > { %13503 = vmatprep.mubr.bf16.mxu0 %v4329_v20  ;;  %v4334_v20 = vpack.c.bf16 %v4309_v15, %v4308_v38  ;;  %13637 = vmatprep.subr.bf16.mxu1 %v14188_v61 }
 0x2e5   : > { %13638 = vmatpush3.bf16.msra.mxu1 %v14188_v61 }
 0x2e6   : > { %13639 = vmatprep.subr.bf16.mxu1 %v14189_v5 }
 0x2e7   : > { %v13357_v50 = vpop.f32.mrf.mxu0  ;;  %13572 = vmatmul.mubr.bf16.gmra.mxu1 %v4739_v22 }
 0x2e8   : > { %v16271_v10 = vadd.f32 %v13421_v25, %v13357_v50  ;;  %13575 = vmatprep.mubr.bf16.mxu1 %v4740_v29  ;;  %v4312_v29 = vld [vmem:[#allocation2 + $0x17b] sm:$0xff] }
 0x2e9   : > { %v3852_v12 = vpop.f32.mrf.mxu0  ;;  %v4336_v45 = vpack.c.bf16 %v4312_v29, %v4312_v29  ;;  %13640 = vmatpush3.bf16.msra.mxu1 %v14189_v5 }
 0x2ea   : > { %v16273_v52 = vadd.f32 %v4124_v7, %v3852_v12  ;;  %v14190_v7 = vld [vmem:[%s18348_s5] sm:$0xff]  }
 0x2eb   : > { %v13358_v48 = vpop.f32.mrf.mxu0  ;;  %13504 = vmatmul.mubr.bf16.gmra.mxu0 %v4330_v4  ;;  %v13425_v53 = vpop.f32.mrf.mxu1  ;;  %13641 = vmatprep.subr.bf16.mxu1 %v14190_v7 }
 0x2ec   : > { %v16275_v11 = vadd.f32 %v13422_v51, %v13358_v48  ;;  %13507 = vmatprep.mubr.bf16.mxu0 %v4331_v44 }
 0x2ed   : > { %v16282_v24 = vpop.f32.mrf.mxu0  ;;  %v4140_v49 = vpop.f32.mrf.mxu1  ;;  %13642 = vmatpush3.bf16.msra.mxu1 %v14190_v7 }
 0x2ef   : > { %13576 = vmatmul.mubr.bf16.gmra.mxu1 %v4741_v43  ;;  %v13426_v0 = vpop.f32.mrf.mxu1  ;;  %v16315_v43 = vld [vmem:[%s18348_s5 + $0x58] sm:$0xff]  }
 0x2f0   : > { %13579 = vmatprep.mubr.bf16.mxu1 %v4742_v55  ;;  %13687 = vmatprep.subr.bf16.mxu0 %v16315_v43 }
 0x2f1   : > { %v16302_v50 = vpop.f32.mrf.mxu1 }
 0x2f3   : > { %13508 = vmatmul.mubr.bf16.gmra.mxu0 %v4332_v60 }
 0x2f4   : > { %13511 = vmatprep.mubr.bf16.mxu0 %v4333_v56 }
 0x2f7   : > { %v13361_v17 = vpop.f32.mrf.mxu0  ;;  %13580 = vmatmul.mubr.bf16.gmra.mxu1 %v4743_v33 }
 0x2f8   : > { %v16284_v39 = vadd.f32 %v13425_v53, %v13361_v17 }
 0x2f9   : > { %v3868_v32 = vpop.f32.mrf.mxu0 }
 0x2fa   : > { %v16292_v25 = vadd.f32 %v4140_v49, %v3868_v32 }
 0x2fb   : > { %v13362_v22 = vpop.f32.mrf.mxu0  ;;  %13512 = vmatmul.mubr.bf16.gmra.mxu0 %v4334_v20  ;;  %v13429_v14 = vpop.f32.mrf.mxu1 }
 0x2fc   : > { %v16294_v35 = vadd.f32 %v13426_v0, %v13362_v22  ;;  %13515 = vmatprep.mubr.bf16.mxu0 %v4335_v26 }
 0x2fd   : > { %v16304_v12 = vpop.f32.mrf.mxu0  ;;  %v4156_v4 = vpop.f32.mrf.mxu1 }
 0x2ff   : > { %v13430_v48 = vpop.f32.mrf.mxu1 }
 0x301   : > { %v16317_v16 = vpop.f32.mrf.mxu1 }
 0x303   : > { %13516 = vmatmul.mubr.bf16.gmra.mxu0 %v4336_v45 }
 0x307   : > { %v13365_v28 = vpop.f32.mrf.mxu0 }
 0x308   : > { %v16306_v44 = vadd.f32 %v13429_v14, %v13365_v28 }
 0x309   : > { %v3884_v9 = vpop.f32.mrf.mxu0 }
 0x30a   : > { %v16308_v51 = vadd.f32 %v4156_v4, %v3884_v9 }
 0x30b   : > { %v13366_v54 = vpop.f32.mrf.mxu0  ;;  %v13433_v42 = vpop.f32.mrf.mxu1 }
 0x30c   : > { %v16310_v47 = vadd.f32 %v13430_v48, %v13366_v54 }
 0x30d   : > { %v16320_v55 = vpop.f32.mrf.mxu0  ;;  %v4172_v6 = vpop.f32.mrf.mxu1 }
 0x30f   : > { %v13434_v1 = vpop.f32.mrf.mxu1 }
 0x311   : > { %v16328_v33 = vpop.f32.mrf.mxu1 }
 0x317   : > { %v13369_v31 = vpop.f32.mrf.mxu0 }
 0x318   : > { %v16322_v60 = vadd.f32 %v13433_v42, %v13369_v31 }
 0x319   : > { %v3900_v34 = vpop.f32.mrf.mxu0 }
 0x31a   : > { %v16324_v56 = vadd.f32 %v4172_v6, %v3900_v34 }
 0x31b   : > { %v13370_v53 = vpop.f32.mrf.mxu0  ;;  %v13437_v15 = vpop.f32.mrf.mxu1 }
 0x31c   : > { %v16326_v30 = vadd.f32 %v13434_v1, %v13370_v53 }
 0x31d   : > { %v16330_v49 = vpop.f32.mrf.mxu0  ;;  %v4188_v17 = vpop.f32.mrf.mxu1 }
 0x31f   : > { %v13438_v40 = vpop.f32.mrf.mxu1 }
 0x321   : > { %v16338_v26 = vpop.f32.mrf.mxu1 }
 0x327   : > { %v13373_v59 = vpop.f32.mrf.mxu0 }
 0x328   : > { %v16332_v38 = vadd.f32 %v13437_v15, %v13373_v59 }
 0x329   : > { %v3916_v61 = vpop.f32.mrf.mxu0 }
 0x32a   : > { %v16334_v32 = vadd.f32 %v4188_v17, %v3916_v61 }
 0x32b   : > { %v13374_v20 = vpop.f32.mrf.mxu0  ;;  %v13441_v0 = vpop.f32.mrf.mxu1 }
 0x32c   : > { %v16336_v13 = vadd.f32 %v13438_v40, %v13374_v20  ;;  %v16363_v20 = vld [vmem:[%s18348_s5 + $0x78] sm:$0xff]  }
 0x32d   : > { %v4204_v22 = vpop.f32.mrf.mxu1  ;;  %v16340_v5 = vpop.f32.mrf.mxu0  ;;  %13739 = vmatprep.subr.bf16.mxu1 %v16363_v20 }
 0x32e   : > { %18410 = vst [vmem:[#allocation6_spill] sm:$0xff] %v16336_v13 }
 0x32f   : > { %v13442_v7 = vpop.f32.mrf.mxu1 }
 0x331   : > { %v16346_v28 = vpop.f32.mrf.mxu1 }
 0x332   : > { %18413 = vst [vmem:[#allocation9_spill] sm:$0xff] %v16346_v28 }
 0x337   : > { %v13377_v29 = vpop.f32.mrf.mxu0 }
 0x338   : > { %v16342_v45 = vadd.f32 %v13441_v0, %v13377_v29 }
 0x339   : > { %v3932_v14 = vpop.f32.mrf.mxu0 }
 0x33a   : > { %18411 = vst [vmem:[#allocation7_spill] sm:$0xff] %v16342_v45  ;;  %v16344_v4 = vadd.f32 %v4204_v22, %v3932_v14 }
 0x33b   : > { %v13378_v9 = vpop.f32.mrf.mxu0  ;;  %v13445_v54 = vpop.f32.mrf.mxu1 }
 0x33c   : > { %18412 = vst [vmem:[#allocation8_spill] sm:$0xff] %v16344_v4  ;;  %v16348_v48 = vadd.f32 %v13442_v7, %v13378_v9 }
 0x33d   : > { %v4220_v42 = vpop.f32.mrf.mxu1  ;;  %v16350_v6 = vpop.f32.mrf.mxu0 }
 0x33e   : > { %18414 = vst [vmem:[#allocation10_spill] sm:$0xff] %v16348_v48  ;;  %18415 = vst [vmem:[#allocation11_spill] sm:$0xff] %v16350_v6 }
 0x33f   : > { %v13446_v31 = vpop.f32.mrf.mxu1 }
 0x341   : > { %v16354_v15 = vpop.f32.mrf.mxu1 }
 0x342   : > { %18417 = vst [vmem:[#allocation13_spill] sm:$0xff] %v16354_v15 }
 0x347   : > { %v13381_v34 = vpop.f32.mrf.mxu0 }
 0x348   : > { %v16352_v1 = vadd.f32 %v13445_v54, %v13381_v34 }
 0x349   : > { %v3948_v53 = vpop.f32.mrf.mxu0 }
 0x34a   : > { %18416 = vst [vmem:[#allocation12_spill] sm:$0xff] %v16352_v1  ;;  %v16356_v17 = vadd.f32 %v4220_v42, %v3948_v53 }
 0x34b   : > { %v13382_v59 = vpop.f32.mrf.mxu0  ;;  %v13449_v40 = vpop.f32.mrf.mxu1 }
 0x34c   : > { %18418 = vst [vmem:[#allocation14_spill] sm:$0xff] %v16356_v17  ;;  %v16358_v61 = vadd.f32 %v13446_v31, %v13382_v59 }
 0x34d   : > { %v4236_v0 = vpop.f32.mrf.mxu1  ;;  %v16366_v29 = vpop.f32.mrf.mxu0 }
 0x34e   : > { %18419 = vst [vmem:[#allocation15_spill] sm:$0xff] %v16358_v61  ;;  %18420 = vst [vmem:[#allocation16_spill] sm:$0xff] %v16366_v29 }
 0x34f   : > { %v13450_v22 = vpop.f32.mrf.mxu1 }
 0x351   : > { %v16368_v7 = vpop.f32.mrf.mxu1 }
 0x352   : > { %18421 = vst [vmem:[#allocation17_spill] sm:$0xff] %v16368_v7 }
 0x357   : > { %v13385_v14 = vpop.f32.mrf.mxu0  ;;  %v13453_v9 = vpop.f32.mrf.mxu1 }
 0x358   : > { %v16370_v54 = vadd.f32 %v13449_v40, %v13385_v14 }
 0x359   : > { %v3964_v42 = vpop.f32.mrf.mxu0  ;;  %v4252_v31 = vpop.f32.mrf.mxu1 }
 0x35a   : > { %18422 = vst [vmem:[#allocation18_spill] sm:$0xff] %v16370_v54  ;;  %v16372_v34 = vadd.f32 %v4236_v0, %v3964_v42 }
 0x35b   : > { %v13386_v53 = vpop.f32.mrf.mxu0  ;;  %v13454_v59 = vpop.f32.mrf.mxu1 }
 0x35c   : > { %18423 = vst [vmem:[#allocation19_spill] sm:$0xff] %v16372_v34  ;;  %v16374_v61 = vadd.f32 %v13450_v22, %v13386_v53 }
 0x35d   : > { %v16376_v15 = vpop.f32.mrf.mxu1  ;;  %v16378_v1 = vpop.f32.mrf.mxu0 }
 0x35e   : > { %18424 = vst [vmem:[#allocation20_spill] sm:$0xff] %v16374_v61  ;;  %18425 = vst [vmem:[#allocation21_spill] sm:$0xff] %v16376_v15  ;;  %v16390_v61 = vld [vmem:[%s18347_s4] ss:$0 sm:$0xff] }
 0x35f   : > { %v13537_v17 = vpop.f32.mrf.mxu1  ;;  %18426 = vst [vmem:[#allocation22_spill] sm:$0xff] %v16378_v1 }
 0x361   : > { %v4843_v29 = vpop.f32.mrf.mxu1 }
 0x363   : > { %v13389_v48 = vpop.f32.mrf.mxu0  ;;  %v13538_v7 = vpop.f32.mrf.mxu1 }
 0x364   : > { %v16380_v28 = vadd.f32 %v13453_v9, %v13389_v48 }
 0x365   : > { %v3980_v40 = vpop.f32.mrf.mxu0  ;;  %v4846_v14 = vpop.f32.mrf.mxu1 }
 0x366   : > { %18427 = vst [vmem:[#allocation23_spill] sm:$0xff] %v16380_v28  ;;  %v16382_v54 = vadd.f32 %v4252_v31, %v3980_v40 }
 0x367   : > { %v13390_v0 = vpop.f32.mrf.mxu0  ;;  %v13541_v42 = vpop.f32.mrf.mxu1 }
 0x368   : > { %18428 = vst [vmem:[#allocation24_spill] sm:$0xff] %v16382_v54 }
 0x369   : > { %v16384_v34 = vpop.f32.mrf.mxu0  ;;  %v4859_v22 = vpop.f32.mrf.mxu1 }
 0x36a   : > { %18429 = vst [vmem:[#allocation25_spill] sm:$0xff] %v16384_v34  ;;  %v4080_v34 = vadd.f32 %v16244_v2, %v16246_v63 }
 0x36b   : > { %v13473_v53 = vpop.f32.mrf.mxu0  ;;  %v13542_v59 = vpop.f32.mrf.mxu1 }
 0x36c   : > { %v4628_v15 = vadd.f32 %v13473_v53, %v16235_v46 }
 0x36d   : > { %v4436_v48 = vpop.f32.mrf.mxu0  ;;  %v4862_v9 = vpop.f32.mrf.mxu1 }
 0x36e   : > { %v5035_v28 = vadd.f32 %v13537_v17, %v4628_v15  ;;  %v4626_v31 = vadd.f32 %v4436_v48, %v16237_v58 }
 0x36f   : > { %v13474_v40 = vpop.f32.mrf.mxu0  ;;  %v13545_v0 = vpop.f32.mrf.mxu1 }
 0x370   : > { %v5089_v54 = vadd.f32 %v16390_v61, %v5035_v28  ;;  %v5033_v1 = vadd.f32 %v4843_v29, %v4626_v31  ;;  %v4629_v46 = vadd.f32 %v13474_v40, %v16239_v57 }
 0x371   : > { %v4439_v53 = vpop.f32.mrf.mxu0  ;;  %v4875_v6 = vpop.f32.mrf.mxu1 }
 0x372   : > { %v5136_v4 = vmax.f32 %v5089_v54, 0.0  ;;  %v5087_v45 = vadd.f32 %v16390_v61, %v5033_v1  ;;  %v5036_v13 = vadd.f32 %v13538_v7, %v4629_v46  ;;  %v4627_v15 = vadd.f32 %v4439_v53, %v4080_v34 }
 0x373   : > { %v13477_v17 = vpop.f32.mrf.mxu0  ;;  %v13546_v58 = vpop.f32.mrf.mxu1 }
 0x374   : > { %5184 = vst.msk [vmem:[#allocation3 + $0x10] sm:$0xff] %vm5181_vm3, %v5136_v4  ;;  %v5134_v48 = vmax.f32 %v5087_v45, 0.0  ;;  %v5090_v2 = vadd.f32 %v16390_v61, %v5036_v13  ;;  %v5034_v63 = vadd.f32 %v4846_v14, %v4627_v15  ;;  %v4632_v28 = vadd.f32 %v13477_v17, %v16248_v18 }
 0x375   : > { %v4452_v29 = vpop.f32.mrf.mxu0  ;;  %v16401_v57 = vpop.f32.mrf.mxu1  ;;  %v4096_v4 = vadd.f32 %v16254_v3, %v16256_v8 }
 0x376   : > { %5182 = vst.msk [vmem:[#allocation3] sm:$0xff] %vm5181_vm3, %v5134_v48  ;;  %v5137_v54 = vmax.f32 %v5090_v2, 0.0  ;;  %v5088_v1 = vadd.f32 %v16390_v61, %v5034_v63  ;;  %v5039_v7 = vadd.f32 %v13541_v42, %v4632_v28  ;;  %v4630_v34 = vadd.f32 %v4452_v29, %v16250_v41 }
 0x377   : > { %v13478_v45 = vpop.f32.mrf.mxu0  ;;  %v16408_v31 = vpop.f32.mrf.mxu1 }
 0x378   : > { %5185 = vst.msk [vmem:[#allocation3 + $0x18] sm:$0xff] %vm5181_vm3, %v5137_v54  ;;  %v5135_v18 = vmax.f32 %v5088_v1, 0.0  ;;  %v5093_v13 = vadd.f32 %v16390_v61, %v5039_v7  ;;  %v5037_v14 = vadd.f32 %v4859_v22, %v4630_v34  ;;  %v4633_v40 = vadd.f32 %v13478_v45, %v16252_v27 }
 0x379   : > { %v4455_v46 = vpop.f32.mrf.mxu0  ;;  %v16413_v53 = vpop.f32.mrf.mxu1  ;;  %v4112_v7 = vadd.f32 %v16267_v62, %v16269_v21 }
 0x37a   : > { %5183 = vst.msk [vmem:[#allocation3 + $0x8] sm:$0xff] %vm5181_vm3, %v5135_v18  ;;  %v5140_v41 = vmax.f32 %v5093_v13, 0.0  ;;  %v5091_v42 = vadd.f32 %v16390_v61, %v5037_v14  ;;  %v5040_v3 = vadd.f32 %v13542_v59, %v4633_v40  ;;  %v4631_v8 = vadd.f32 %v4455_v46, %v4096_v4 }
 0x37b   : > { %v13481_v15 = vpop.f32.mrf.mxu0  ;;  %v16417_v17 = vpop.f32.mrf.mxu1 }
 0x37c   : > { %5188 = vst.msk [vmem:[#allocation3 + $0x30] sm:$0xff] %vm5181_vm3, %v5140_v41  ;;  %v5138_v48 = vmax.f32 %v5091_v42, 0.0  ;;  %v5094_v22 = vadd.f32 %v16390_v61, %v5040_v3  ;;  %v5038_v2 = vadd.f32 %v4862_v9, %v4631_v8  ;;  %v4636_v27 = vadd.f32 %v13481_v15, %v16258_v36  ;;  %v5231_v8 = vld [vmem:[#allocation3 + $0x10] sm:$0xff] }
 0x37d   : > { %v4468_v63 = vpop.f32.mrf.mxu0  ;;  %v16422_v28 = vpop.f32.mrf.mxu1  ;;  %v5229_v3 = vld [vmem:[#allocation3] sm:$0xff] }
 0x37e   : > { %5186 = vst.msk [vmem:[#allocation3 + $0x20] sm:$0xff] %vm5181_vm3, %v5138_v48  ;;  %v5141_v29 = vmax.f32 %v5094_v22, 0.0  ;;  %v5092_v59 = vadd.f32 %v16390_v61, %v5038_v2  ;;  %v5043_v54 = vadd.f32 %v13545_v0, %v4636_v27  ;;  %v4634_v1 = vadd.f32 %v4468_v63, %v16263_v37 }
 0x37f   : > { %v13482_v34 = vpop.f32.mrf.mxu0  ;;  %v16429_v4 = vpop.f32.mrf.mxu1  ;;  %v5232_v13 = vld [vmem:[#allocation3 + $0x18] sm:$0xff] }
 0x380   : > { %5189 = vst.msk [vmem:[#allocation3 + $0x38] sm:$0xff] %vm5181_vm3, %v5141_v29  ;;  %v5139_v36 = vmax.f32 %v5092_v59, 0.0  ;;  %v5097_v9 = vadd.f32 %v16390_v61, %v5043_v54  ;;  %v5041_v45 = vadd.f32 %v4875_v6, %v4634_v1  ;;  %v4637_v18 = vadd.f32 %v13482_v34, %v16265_v23 }
 0x381   : > { %v4471_v14 = vpop.f32.mrf.mxu0  ;;  %v5303_v40 = vld [vmem:[#allocation3 + $0x1] sm:$0xff]  ;;  %v5304_v0 = vld [vmem:[#allocation3 + $0x9] sm:$0xff]  ;;  %v16434_v37 = vpop.f32.mrf.mxu1  ;;  %v5274_v23 = vpack.c.bf16 %v5232_v13, %v5231_v8 }
 0x382   : > { %v5230_v46 = vld [vmem:[#allocation3 + $0x8] sm:$0xff]  ;;  %5187 = vst.msk [vmem:[#allocation3 + $0x28] sm:$0xff] %vm5181_vm3, %v5139_v36  ;;  %v5144_v62 = vmax.f32 %v5097_v9, 0.0  ;;  %v5095_v21 = vadd.f32 %v16390_v61, %v5041_v45  ;;  %v5044_v41 = vadd.f32 %v13546_v58, %v4637_v18  ;;  %v4635_v42 = vadd.f32 %v4471_v14, %v4112_v7  ;;  %v5305_v36 = vld [vmem:[#allocation3 + $0x11] sm:$0xff] }
 0x383   : > { %v13485_v15 = vpop.f32.mrf.mxu0  ;;  %v5347_v6 = vpack.c.bf16 %v5304_v0, %v5303_v40  ;;  %v5273_v48 = vpack.c.bf16 %v5230_v46, %v5229_v3  ;;  %v16438_v22 = vpop.f32.mrf.mxu1  ;;  %v14196_v58 = vld [vmem:[%s18348_s5 + $0x70] sm:$0xff]   ;;  %v4128_v9 = vadd.f32 %v16277_v19, %v16282_v24  ;;  %v14197_v24 = vld [vmem:[%s18348_s5 + $0x68] sm:$0xff]  }
 0x384   : > { %5192 = vst.msk [vmem:[#allocation3 + $0x50] sm:$0xff] %vm5181_vm3, %v5144_v62  ;;  %v5142_v2 = vmax.f32 %v5095_v21, 0.0  ;;  %v5098_v27 = vadd.f32 %v16390_v61, %v5044_v41  ;;  %v5042_v63 = vadd.f32 %v16401_v57, %v4635_v42  ;;  %v4640_v29 = vadd.f32 %v13485_v15, %v16271_v10  ;;  %v14192_v14 = vld [vmem:[%s18348_s5 + $0x50] sm:$0xff]   ;;  %v5235_v15 = vld [vmem:[#allocation3 + $0x30] sm:$0xff] }
 0x385   : > { %13591 = vmatprep.mubr.msk.bf16.mxu0 %vm5181_vm3, %v5347_v6  ;;  %13643 = vmatprep.mubr.msk.bf16.mxu1 %vm5181_vm3, %v5273_v48  ;;  %v4484_v59 = vpop.f32.mrf.mxu0  ;;  %v5306_v54 = vld [vmem:[#allocation3 + $0x19] sm:$0xff]  ;;  %v16449_v1 = vpop.f32.mrf.mxu1 }
 0x386   : > { %5190 = vst.msk [vmem:[#allocation3 + $0x40] sm:$0xff] %vm5181_vm3, %v5142_v2  ;;  %v5145_v7 = vmax.f32 %v5098_v27, 0.0  ;;  %v5096_v34 = vadd.f32 %v16390_v61, %v5042_v63  ;;  %v5047_v57 = vadd.f32 %v16408_v31, %v4640_v29  ;;  %v4638_v10 = vadd.f32 %v4484_v59, %v16273_v52  ;;  %13644 = vmatmul.mubr.msk.bf16.vlgmr.msra.gmra.mxu1 %vm5181_vm3, %v5274_v23  ;;  %v5233_v8 = vld [vmem:[#allocation3 + $0x20] sm:$0xff] }
 0x387   : > { %v13486_v45 = vpop.f32.mrf.mxu0  ;;  %v5348_v18 = vpack.c.bf16 %v5306_v54, %v5305_v36  ;;  %v16458_v13 = vpop.f32.mrf.mxu1  ;;  %13740 = vmatpush3.bf16.msra.mxu1 %v16363_v20  ;;  %v5236_v19 = vld [vmem:[#allocation3 + $0x38] sm:$0xff]  ;;  %v14193_v63 = vld [vmem:[%s18348_s5 + $0x48] sm:$0xff]  }
 0x388   : > { %5193 = vst.msk [vmem:[#allocation3 + $0x58] sm:$0xff] %vm5181_vm3, %v5145_v7  ;;  %v5143_v31 = vmax.f32 %v5096_v34, 0.0  ;;  %v5101_v52 = vadd.f32 %v16390_v61, %v5047_v57  ;;  %v5045_v40 = vadd.f32 %v16413_v53, %v4638_v10  ;;  %v4641_v0 = vadd.f32 %v13486_v45, %v16275_v11  ;;  %13741 = vmatprep.subr.bf16.mxu1 %v14196_v58  ;;  %v14198_v54 = vld [vmem:[%s18348_s5 + $0x60] sm:$0xff]  }
 0x389   : > { %13592 = vmatmul.mubr.msk.bf16.vlgmr.msra.gmra.mxu0 %vm5181_vm3, %v5348_v18  ;;  %v4487_v46 = vpop.f32.mrf.mxu0  ;;  %v5307_v62 = vld [vmem:[#allocation3 + $0x21] sm:$0xff]  ;;  %v5308_v20 = vld [vmem:[#allocation3 + $0x29] sm:$0xff]  ;;  %v16472_v41 = vpop.f32.mrf.mxu1  ;;  %v5276_v2 = vpack.c.bf16 %v5236_v19, %v5235_v15  ;;  %v5309_v36 = vld [vmem:[#allocation3 + $0x31] sm:$0xff] }
 0x38a   : > { %v5234_v21 = vld [vmem:[#allocation3 + $0x28] sm:$0xff]  ;;  %5191 = vst.msk [vmem:[#allocation3 + $0x48] sm:$0xff] %vm5181_vm3, %v5143_v31  ;;  %v5148_v42 = vmax.f32 %v5101_v52, 0.0  ;;  %v5099_v53 = vadd.f32 %v16390_v61, %v5045_v40  ;;  %v5048_v11 = vadd.f32 %v16417_v17, %v4641_v0  ;;  %v4639_v3 = vadd.f32 %v4487_v46, %v4128_v9  ;;  %13688 = vmatpush3.bf16.msra.mxu0 %v16315_v43  ;;  %v14194_v52 = vld [vmem:[%s18348_s5 + $0x40] sm:$0xff]  }
 0x38b   : > { %v13489_v6 = vpop.f32.mrf.mxu0  ;;  %v5349_v48 = vpack.c.bf16 %v5308_v20, %v5307_v62  ;;  %v5275_v23 = vpack.c.bf16 %v5234_v21, %v5233_v8  ;;  %v16478_v27 = vpop.f32.mrf.mxu1  ;;  %13689 = vmatprep.subr.bf16.mxu0 %v14192_v14  ;;  %13742 = vmatpush3.bf16.msra.mxu1 %v14196_v58  ;;  %v4144_v9 = vadd.f32 %v16302_v50, %v16304_v12 }
 0x38c   : > { %5196 = vst.msk [vmem:[#allocation3 + $0x70] sm:$0xff] %vm5181_vm3, %v5148_v42  ;;  %v5146_v17 = vmax.f32 %v5099_v53, 0.0  ;;  %v5102_v29 = vadd.f32 %v16390_v61, %v5048_v11  ;;  %v5046_v43 = vadd.f32 %v16422_v28, %v4639_v3  ;;  %v4644_v59 = vadd.f32 %v13489_v6, %v16284_v39  ;;  %13743 = vmatprep.subr.bf16.mxu1 %v14197_v24  ;;  %v16521_v6 = vld [vmem:[%s18348_s5 + $0x98] sm:$0xff]  }
 0x38d   : > { %13595 = vmatprep.mubr.msk.bf16.mxu0 %vm5181_vm3, %v5349_v48  ;;  %13647 = vmatprep.mubr.msk.bf16.mxu1 %vm5181_vm3, %v5275_v23  ;;  %v4500_v7 = vpop.f32.mrf.mxu0  ;;  %v5310_v58 = vld [vmem:[#allocation3 + $0x39] sm:$0xff]  ;;  %v16492_v34 = vpop.f32.mrf.mxu1 }
 0x38e   : > { %5194 = vst.msk [vmem:[#allocation3 + $0x60] sm:$0xff] %vm5181_vm3, %v5146_v17  ;;  %v5149_v57 = vmax.f32 %v5102_v29, 0.0  ;;  %v5100_v28 = vadd.f32 %v16390_v61, %v5046_v43  ;;  %v5051_v39 = vadd.f32 %v16429_v4, %v4644_v59  ;;  %v4642_v10 = vadd.f32 %v4500_v7, %v16292_v25  ;;  %13648 = vmatmul.mubr.msk.bf16.gmra.mxu1 %vm5181_vm3, %v5276_v2  ;;  %v5237_v42 = vld [vmem:[#allocation3 + $0x40] sm:$0xff] }
 0x38f   : > { %13690 = vmatpush3.bf16.msra.mxu0 %v14192_v14  ;;  %v13490_v45 = vpop.f32.mrf.mxu0  ;;  %v5350_v18 = vpack.c.bf16 %v5310_v58, %v5309_v36  ;;  %v16501_v31 = vpop.f32.mrf.mxu1  ;;  %13744 = vmatpush3.bf16.msra.mxu1 %v14197_v24  ;;  %v5240_v50 = vld [vmem:[#allocation3 + $0x58] sm:$0xff] }
 0x390   : > { %13691 = vmatprep.subr.bf16.mxu0 %v14193_v63  ;;  %5197 = vst.msk [vmem:[#allocation3 + $0x78] sm:$0xff] %vm5181_vm3, %v5149_v57  ;;  %v5147_v25 = vmax.f32 %v5100_v28, 0.0  ;;  %v5105_v4 = vadd.f32 %v16390_v61, %v5051_v39  ;;  %v5049_v14 = vadd.f32 %v16434_v37, %v4642_v10  ;;  %v4645_v40 = vadd.f32 %v13490_v45, %v16294_v35  ;;  %v5239_v35 = vld [vmem:[#allocation3 + $0x50] sm:$0xff] }
 0x391   : > { %13745 = vmatprep.subr.bf16.mxu1 %v14198_v54  ;;  %13596 = vmatmul.mubr.msk.bf16.gmra.mxu0 %vm5181_vm3, %v5350_v18  ;;  %v4503_v12 = vpop.f32.mrf.mxu0  ;;  %v5311_v0 = vld [vmem:[#allocation3 + $0x41] sm:$0xff]  ;;  %v5312_v19 = vld [vmem:[#allocation3 + $0x49] sm:$0xff]  ;;  %v16511_v62 = vpop.f32.mrf.mxu1  ;;  %v5278_v8 = vpack.c.bf16 %v5240_v50, %v5239_v35 }
 0x392   : > { %v5238_v46 = vld [vmem:[#allocation3 + $0x48] sm:$0xff]  ;;  %5195 = vst.msk [vmem:[#allocation3 + $0x68] sm:$0xff] %vm5181_vm3, %v5147_v25  ;;  %v5152_v24 = vmax.f32 %v5105_v4, 0.0  ;;  %v5103_v20 = vadd.f32 %v16390_v61, %v5049_v14  ;;  %v5052_v21 = vadd.f32 %v16438_v22, %v4645_v40  ;;  %v4643_v37 = vadd.f32 %v4503_v12, %v4144_v9 }
 0x393   : > { %13692 = vmatpush3.bf16.msra.mxu0 %v14193_v63  ;;  %v13493_v53 = vpop.f32.mrf.mxu0  ;;  %v5351_v11 = vpack.c.bf16 %v5312_v19, %v5311_v0  ;;  %v5277_v3 = vpack.c.bf16 %v5238_v46, %v5237_v42  ;;  %v16516_v15 = vpop.f32.mrf.mxu1  ;;  %13746 = vmatpush3.bf16.msra.mxu1 %v14198_v54  ;;  %v5243_v40 = vld [vmem:[#allocation3 + $0x70] sm:$0xff] }
 0x394   : > { %13693 = vmatprep.subr.bf16.mxu0 %v14194_v52  ;;  %5200 = vst.msk [vmem:[#allocation3 + $0x90] sm:$0xff] %vm5181_vm3, %v5152_v24  ;;  %v5150_v22 = vmax.f32 %v5103_v20, 0.0  ;;  %v5106_v48 = vadd.f32 %v16390_v61, %v5052_v21  ;;  %v5050_v23 = vadd.f32 %v16449_v1, %v4643_v37  ;;  %v4648_v2 = vadd.f32 %v13493_v53, %v16306_v44  ;;  %v5313_v44 = vld [vmem:[#allocation3 + $0x51] sm:$0xff] }
 0x395   : > { %13599 = vmatprep.mubr.msk.bf16.mxu0 %vm5181_vm3, %v5351_v11  ;;  %13651 = vmatprep.mubr.msk.bf16.mxu1 %vm5181_vm3, %v5277_v3  ;;  %v4516_v63 = vpop.f32.mrf.mxu0  ;;  %v5314_v17 = vld [vmem:[#allocation3 + $0x59] sm:$0xff]  ;;  %v16529_v29 = vpop.f32.mrf.mxu1  ;;  %v4160_v1 = vadd.f32 %v16317_v16, %v16320_v55 }
 0x396   : > { %5198 = vst.msk [vmem:[#allocation3 + $0x80] sm:$0xff] %vm5181_vm3, %v5150_v22  ;;  %v5153_v43 = vmax.f32 %v5106_v48, 0.0  ;;  %v5104_v59 = vadd.f32 %v16390_v61, %v5050_v23  ;;  %v5055_v54 = vadd.f32 %v16458_v13, %v4648_v2  ;;  %v4646_v7 = vadd.f32 %v4516_v63, %v16308_v51  ;;  %13652 = vmatmul.mubr.msk.bf16.gmra.mxu1 %vm5181_vm3, %v5278_v8 }
 0x397   : > { %13694 = vmatpush3.bf16.msra.mxu0 %v14194_v52  ;;  %v13494_v58 = vpop.f32.mrf.mxu0  ;;  %v5352_v57 = vpack.c.bf16 %v5314_v17, %v5313_v44  ;;  %v16538_v28 = vpop.f32.mrf.mxu1  ;;  %v5244_v36 = vld [vmem:[#allocation3 + $0x78] sm:$0xff] }
 0x398   : > { %13791 = vmatprep.subr.bf16.mxu0 %v16521_v6  ;;  %5201 = vst.msk [vmem:[#allocation3 + $0x98] sm:$0xff] %vm5181_vm3, %v5153_v43  ;;  %v5151_v39 = vmax.f32 %v5104_v59, 0.0  ;;  %v5109_v13 = vadd.f32 %v16390_v61, %v5055_v54  ;;  %v5053_v51 = vadd.f32 %v16472_v41, %v4646_v7  ;;  %v4649_v10 = vadd.f32 %v13494_v58, %v16310_v47  ;;  %v5241_v41 = vld [vmem:[#allocation3 + $0x60] sm:$0xff] }
 0x399   : > { %13600 = vmatmul.mubr.msk.bf16.gmra.mxu0 %vm5181_vm3, %v5352_v57  ;;  %v4519_v9 = vpop.f32.mrf.mxu0  ;;  %v5315_v16 = vld [vmem:[#allocation3 + $0x61] sm:$0xff]  ;;  %v5316_v55 = vld [vmem:[#allocation3 + $0x69] sm:$0xff]  ;;  %v16546_v18 = vpop.f32.mrf.mxu1  ;;  %v5280_v0 = vpack.c.bf16 %v5244_v36, %v5243_v40 }
 0x39a   : > { %v5242_v45 = vld [vmem:[#allocation3 + $0x68] sm:$0xff]  ;;  %5199 = vst.msk [vmem:[#allocation3 + $0x88] sm:$0xff] %vm5181_vm3, %v5151_v39  ;;  %v5156_v52 = vmax.f32 %v5109_v13, 0.0  ;;  %v5107_v25 = vadd.f32 %v16390_v61, %v5053_v51  ;;  %v5056_v4 = vadd.f32 %v16478_v27, %v4649_v10  ;;  %v4647_v14 = vadd.f32 %v4519_v9, %v4160_v1 }
 0x39b   : > { %v13497_v47 = vpop.f32.mrf.mxu0  ;;  %v5353_v50 = vpack.c.bf16 %v5316_v55, %v5315_v16  ;;  %v5279_v12 = vpack.c.bf16 %v5242_v45, %v5241_v41  ;;  %v16551_v19 = vpop.f32.mrf.mxu1  ;;  %v5247_v58 = vld [vmem:[#allocation3 + $0x90] sm:$0xff]  ;;  %v4192_v41 = vadd.f32 %v16338_v26, %v16340_v5 }
 0x39c   : > { %5204 = vst.msk [vmem:[#allocation3 + $0xb0] sm:$0xff] %vm5181_vm3, %v5156_v52  ;;  %v5154_v46 = vmax.f32 %v5107_v25, 0.0  ;;  %v5110_v24 = vadd.f32 %v16390_v61, %v5056_v4  ;;  %v5054_v20 = vadd.f32 %v16492_v34, %v4647_v14  ;;  %v4652_v21 = vadd.f32 %v13497_v47, %v16322_v60  ;;  %v5317_v60 = vld [vmem:[#allocation3 + $0x71] sm:$0xff] }
 0x39d   : > { %13603 = vmatprep.mubr.msk.bf16.mxu0 %vm5181_vm3, %v5353_v50  ;;  %13655 = vmatprep.mubr.msk.bf16.mxu1 %vm5181_vm3, %v5279_v12  ;;  %v4532_v27 = vpop.f32.mrf.mxu0  ;;  %v5318_v37 = vld [vmem:[#allocation3 + $0x79] sm:$0xff]  ;;  %v16559_v42 = vpop.f32.mrf.mxu1  ;;  %v4176_v34 = vadd.f32 %v16328_v33, %v16330_v49 }
 0x39e   : > { %5202 = vst.msk [vmem:[#allocation3 + $0xa0] sm:$0xff] %vm5181_vm3, %v5154_v46  ;;  %v5157_v35 = vmax.f32 %v5110_v24, 0.0  ;;  %v5108_v53 = vadd.f32 %v16390_v61, %v5054_v20  ;;  %v5059_v11 = vadd.f32 %v16501_v31, %v4652_v21  ;;  %v4650_v3 = vadd.f32 %v4532_v27, %v16324_v56  ;;  %13656 = vmatmul.mubr.msk.bf16.gmra.mxu1 %vm5181_vm3, %v5280_v0  ;;  %v18430_v0 = vld [vmem:[#allocation6_spill] sm:$0xff] }
 0x39f   : > { %v13498_v8 = vpop.f32.mrf.mxu0  ;;  %v5354_v22 = vpack.c.bf16 %v5318_v37, %v5317_v60  ;;  %v16568_v48 = vpop.f32.mrf.mxu1  ;;  %v5248_v56 = vld [vmem:[#allocation3 + $0x98] sm:$0xff] }
 0x3a0   : > { %5205 = vst.msk [vmem:[#allocation3 + $0xb8] sm:$0xff] %vm5181_vm3, %v5157_v35  ;;  %v5155_v23 = vmax.f32 %v5108_v53, 0.0  ;;  %v5113_v2 = vadd.f32 %v16390_v61, %v5059_v11  ;;  %v5057_v63 = vadd.f32 %v16511_v62, %v4650_v3  ;;  %v4653_v31 = vadd.f32 %v13498_v8, %v16326_v30  ;;  %v5245_v62 = vld [vmem:[#allocation3 + $0x80] sm:$0xff] }
 0x3a1   : > { %13604 = vmatmul.mubr.msk.bf16.gmra.mxu0 %vm5181_vm3, %v5354_v22  ;;  %v4535_v17 = vpop.f32.mrf.mxu0  ;;  %v5319_v43 = vld [vmem:[#allocation3 + $0x81] sm:$0xff]  ;;  %v5320_v59 = vld [vmem:[#allocation3 + $0x89] sm:$0xff]  ;;  %v16575_v49 = vpop.f32.mrf.mxu1  ;;  %v5282_v13 = vpack.c.bf16 %v5248_v56, %v5247_v58  ;;  %v18434_v58 = vld [vmem:[#allocation9_spill] sm:$0xff] }
 0x3a2   : > { %v5246_v33 = vld [vmem:[#allocation3 + $0x88] sm:$0xff]  ;;  %5203 = vst.msk [vmem:[#allocation3 + $0xa8] sm:$0xff] %vm5181_vm3, %v5155_v23  ;;  %v5160_v54 = vmax.f32 %v5113_v2, 0.0  ;;  %v5111_v7 = vadd.f32 %v16390_v61, %v5057_v63  ;;  %v5060_v44 = vadd.f32 %v16516_v15, %v4653_v31  ;;  %v4651_v1 = vadd.f32 %v4535_v17, %v4176_v34 }
 0x3a3   : > { %v13501_v30 = vpop.f32.mrf.mxu0  ;;  %v5355_v57 = vpack.c.bf16 %v5320_v59, %v5319_v43  ;;  %v5281_v39 = vpack.c.bf16 %v5246_v33, %v5245_v62  ;;  %v16580_v51 = vpop.f32.mrf.mxu1  ;;  %v5251_v3 = vld [vmem:[#allocation3 + $0xb0] sm:$0xff]  ;;  %v18431_v56 = vld [vmem:[#allocation7_spill] sm:$0xff] }
 0x3a4   : > { %5208 = vst.msk [vmem:[#allocation3 + $0xd0] sm:$0xff] %vm5181_vm3, %v5160_v54  ;;  %v5158_v10 = vmax.f32 %v5111_v7, 0.0  ;;  %v5114_v36 = vadd.f32 %v16390_v61, %v5060_v44  ;;  %v5058_v9 = vadd.f32 %v16529_v29, %v4651_v1  ;;  %v4656_v16 = vadd.f32 %v13501_v30, %v16332_v38  ;;  %v5321_v38 = vld [vmem:[#allocation3 + $0x91] sm:$0xff]  ;;  %v18433_v62 = vld [vmem:[#allocation11_spill] sm:$0xff] }
 0x3a5   : > { %13607 = vmatprep.mubr.msk.bf16.mxu0 %vm5181_vm3, %v5355_v57  ;;  %13659 = vmatprep.mubr.msk.bf16.mxu1 %vm5181_vm3, %v5281_v39  ;;  %v4548_v15 = vpop.f32.mrf.mxu0  ;;  %v5322_v55 = vld [vmem:[#allocation3 + $0x99] sm:$0xff]  ;;  %v16588_v45 = vpop.f32.mrf.mxu1  ;;  %v16598_v29 = vld [vmem:[%s18348_s5 + $0xb8] sm:$0xff]   ;;  %v4208_v30 = vadd.f32 %v18434_v58, %v18433_v62 }
 0x3a6   : > { %5206 = vst.msk [vmem:[#allocation3 + $0xc0] sm:$0xff] %vm5181_vm3, %v5158_v10  ;;  %v5161_v52 = vmax.f32 %v5114_v36, 0.0  ;;  %v5112_v25 = vadd.f32 %v16390_v61, %v5058_v9  ;;  %v5063_v4 = vadd.f32 %v16538_v28, %v4656_v16  ;;  %v4654_v14 = vadd.f32 %v4548_v15, %v16334_v32  ;;  %13660 = vmatmul.mubr.msk.bf16.gmra.mxu1 %vm5181_vm3, %v5282_v13  ;;  %v5249_v11 = vld [vmem:[#allocation3 + $0xa0] sm:$0xff]  ;;  %v18432_v44 = vld [vmem:[#allocation8_spill] sm:$0xff] }
 0x3a7   : > { %v13502_v40 = vpop.f32.mrf.mxu0  ;;  %v5356_v47 = vpack.c.bf16 %v5322_v55, %v5321_v38  ;;  %v16602_v50 = vpop.f32.mrf.mxu1  ;;  %v5252_v24 = vld [vmem:[#allocation3 + $0xb8] sm:$0xff]  ;;  %13843 = vmatprep.subr.bf16.mxu1 %v16598_v29 }
 0x3a8   : > { %5209 = vst.msk [vmem:[#allocation3 + $0xd8] sm:$0xff] %vm5181_vm3, %v5161_v52  ;;  %v5159_v28 = vmax.f32 %v5112_v25, 0.0  ;;  %v5117_v32 = vadd.f32 %v16390_v61, %v5063_v4  ;;  %v5061_v12 = vadd.f32 %v16546_v18, %v4654_v14  ;;  %v4657_v46 = vadd.f32 %v13502_v40, %v18430_v0 }
 0x3a9   : > { %13608 = vmatmul.mubr.msk.bf16.gmra.mxu0 %vm5181_vm3, %v5356_v47  ;;  %v4551_v20 = vpop.f32.mrf.mxu0  ;;  %v5323_v26 = vld [vmem:[#allocation3 + $0xa1] sm:$0xff]  ;;  %v5324_v5 = vld [vmem:[#allocation3 + $0xa9] sm:$0xff]  ;;  %v16610_v27 = vpop.f32.mrf.mxu1  ;;  %v5284_v22 = vpack.c.bf16 %v5252_v24, %v5251_v3 }
 0x3aa   : > { %v5250_v21 = vld [vmem:[#allocation3 + $0xa8] sm:$0xff]  ;;  %5207 = vst.msk [vmem:[#allocation3 + $0xc8] sm:$0xff] %vm5181_vm3, %v5159_v28  ;;  %v5164_v37 = vmax.f32 %v5117_v32, 0.0  ;;  %v5115_v35 = vadd.f32 %v16390_v61, %v5061_v12  ;;  %v5064_v18 = vadd.f32 %v16551_v19, %v4657_v46  ;;  %v4655_v53 = vadd.f32 %v4551_v20, %v4192_v41 }
 0x3ab   : > { %v13505_v60 = vpop.f32.mrf.mxu0  ;;  %v5357_v34 = vpack.c.bf16 %v5324_v5, %v5323_v26  ;;  %v5283_v8 = vpack.c.bf16 %v5250_v21, %v5249_v11  ;;  %v16615_v23 = vpop.f32.mrf.mxu1  ;;  %v5255_v28 = vld [vmem:[#allocation3 + $0xd0] sm:$0xff] }
 0x3ac   : > { %5212 = vst.msk [vmem:[#allocation3 + $0xf0] sm:$0xff] %vm5181_vm3, %v5164_v37  ;;  %v5162_v2 = vmax.f32 %v5115_v35, 0.0  ;;  %v5118_v63 = vadd.f32 %v16390_v61, %v5064_v18  ;;  %v5062_v31 = vadd.f32 %v16559_v42, %v4655_v53  ;;  %v4660_v17 = vadd.f32 %v13505_v60, %v18431_v56  ;;  %v5325_v42 = vld [vmem:[#allocation3 + $0xb1] sm:$0xff]  ;;  %v18437_v60 = vld [vmem:[#allocation14_spill] sm:$0xff] }
 0x3ad   : > { %13611 = vmatprep.mubr.msk.bf16.mxu0 %vm5181_vm3, %v5357_v34  ;;  %13663 = vmatprep.mubr.msk.bf16.mxu1 %vm5181_vm3, %v5283_v8  ;;  %v4564_v19 = vpop.f32.mrf.mxu0  ;;  %v5326_v43 = vld [vmem:[#allocation3 + $0xb9] sm:$0xff]  ;;  %v16623_v59 = vpop.f32.mrf.mxu1  ;;  %v18436_v21 = vld [vmem:[#allocation12_spill] sm:$0xff] }
 0x3ae   : > { %5210 = vst.msk [vmem:[#allocation3 + $0xe0] sm:$0xff] %vm5181_vm3, %v5162_v2  ;;  %v5165_v33 = vmax.f32 %v5118_v63, 0.0  ;;  %v5116_v54 = vadd.f32 %v16390_v61, %v5062_v31  ;;  %v5067_v7 = vadd.f32 %v16568_v48, %v4660_v17  ;;  %v4658_v1 = vadd.f32 %v4564_v19, %v18432_v44  ;;  %13664 = vmatmul.mubr.msk.bf16.gmra.mxu1 %vm5181_vm3, %v5284_v22  ;;  %v18435_v48 = vld [vmem:[#allocation10_spill] sm:$0xff]  ;;  %v18438_v8 = vld [vmem:[#allocation16_spill] sm:$0xff]  ;;  %v18439_v22 = vld [vmem:[#allocation13_spill] sm:$0xff] }
 0x3af   : > { %v13506_v57 = vpop.f32.mrf.mxu0  ;;  %v5358_v39 = vpack.c.bf16 %v5326_v43, %v5325_v42  ;;  %v16632_v13 = vpop.f32.mrf.mxu1  ;;  %v5256_v15 = vld [vmem:[#allocation3 + $0xd8] sm:$0xff]  ;;  %v4224_v2 = vadd.f32 %v18439_v22, %v18438_v8 }
 0x3b0   : > { %5213 = vst.msk [vmem:[#allocation3 + $0xf8] sm:$0xff] %vm5181_vm3, %v5165_v33  ;;  %v5163_v10 = vmax.f32 %v5116_v54, 0.0  ;;  %v5121_v36 = vadd.f32 %v16390_v61, %v5067_v7  ;;  %v5065_v9 = vadd.f32 %v16575_v49, %v4658_v1  ;;  %v4661_v16 = vadd.f32 %v13506_v57, %v18435_v48  ;;  %v5253_v49 = vld [vmem:[#allocation3 + $0xc0] sm:$0xff] }
 0x3b1   : > { %13612 = vmatmul.mubr.msk.bf16.gmra.mxu0 %vm5181_vm3, %v5358_v39  ;;  %v4567_v55 = vpop.f32.mrf.mxu0  ;;  %v5327_v52 = vld [vmem:[#allocation3 + $0xc1] sm:$0xff]  ;;  %v5328_v25 = vld [vmem:[#allocation3 + $0xc9] sm:$0xff]  ;;  %v16639_v14 = vpop.f32.mrf.mxu1  ;;  %v5286_v46 = vpack.c.bf16 %v5256_v15, %v5255_v28 }
 0x3b2   : > { %v5254_v4 = vld [vmem:[#allocation3 + $0xc8] sm:$0xff]  ;;  %5211 = vst.msk [vmem:[#allocation3 + $0xe8] sm:$0xff] %vm5181_vm3, %v5163_v10  ;;  %v5168_v38 = vmax.f32 %v5121_v36, 0.0  ;;  %v5119_v41 = vadd.f32 %v16390_v61, %v5065_v9  ;;  %v5068_v40 = vadd.f32 %v16580_v51, %v4661_v16  ;;  %v4659_v47 = vadd.f32 %v4567_v55, %v4208_v30 }
 0x3b3   : > { %v13509_v32 = vpop.f32.mrf.mxu0  ;;  %v5359_v12 = vpack.c.bf16 %v5328_v25, %v5327_v52  ;;  %v5285_v0 = vpack.c.bf16 %v5254_v4, %v5253_v49  ;;  %v16644_v24 = vpop.f32.mrf.mxu1  ;;  %v5259_v10 = vld [vmem:[#allocation3 + $0xf0] sm:$0xff]  ;;  %v18441_v4 = vld [vmem:[#allocation18_spill] sm:$0xff]  ;;  %v18442_v28 = vld [vmem:[#allocation19_spill] sm:$0xff] }
 0x3b4   : > { %5216 = vst.msk [vmem:[#allocation3 + $0x110] sm:$0xff] %vm5181_vm3, %v5168_v38  ;;  %v5166_v20 = vmax.f32 %v5119_v41, 0.0  ;;  %v5122_v26 = vadd.f32 %v16390_v61, %v5068_v40  ;;  %v5066_v5 = vadd.f32 %v16588_v45, %v4659_v47  ;;  %v4664_v37 = vadd.f32 %v13509_v32, %v18436_v21  ;;  %v5329_v45 = vld [vmem:[#allocation3 + $0xd1] sm:$0xff] }
 0x3b5   : > { %13615 = vmatprep.mubr.msk.bf16.mxu0 %vm5181_vm3, %v5359_v12  ;;  %13667 = vmatprep.mubr.msk.bf16.mxu1 %vm5181_vm3, %v5285_v0  ;;  %v4580_v51 = vpop.f32.mrf.mxu0  ;;  %v5330_v35 = vld [vmem:[#allocation3 + $0xd9] sm:$0xff]  ;;  %v16652_v18 = vpop.f32.mrf.mxu1 }
 0x3b6   : > { %5214 = vst.msk [vmem:[#allocation3 + $0x100] sm:$0xff] %vm5181_vm3, %v5166_v20  ;;  %v5169_v53 = vmax.f32 %v5122_v26, 0.0  ;;  %v5120_v11 = vadd.f32 %v16390_v61, %v5066_v5  ;;  %v5071_v3 = vadd.f32 %v16602_v50, %v4664_v37  ;;  %v4662_v34 = vadd.f32 %v4580_v51, %v18437_v60  ;;  %13668 = vmatmul.mubr.msk.bf16.gmra.mxu1 %vm5181_vm3, %v5286_v46  ;;  %v18440_v50 = vld [vmem:[#allocation15_spill] sm:$0xff]  ;;  %v18443_v12 = vld [vmem:[#allocation22_spill] sm:$0xff]  ;;  %v18444_v0 = vld [vmem:[#allocation17_spill] sm:$0xff] }
 0x3b7   : > { %v13510_v63 = vpop.f32.mrf.mxu0  ;;  %v5360_v31 = vpack.c.bf16 %v5330_v35, %v5329_v45  ;;  %v16661_v56 = vpop.f32.mrf.mxu1  ;;  %v5260_v54 = vld [vmem:[#allocation3 + $0xf8] sm:$0xff]  ;;  %v4240_v46 = vadd.f32 %v18444_v0, %v18443_v12  ;;  %v18445_v51 = vld [vmem:[#allocation20_spill] sm:$0xff] }
 0x3b8   : > { %5217 = vst.msk [vmem:[#allocation3 + $0x118] sm:$0xff] %vm5181_vm3, %v5169_v53  ;;  %v5167_v17 = vmax.f32 %v5120_v11, 0.0  ;;  %v5125_v19 = vadd.f32 %v16390_v61, %v5071_v3  ;;  %v5069_v43 = vadd.f32 %v16610_v27, %v4662_v34  ;;  %v4665_v33 = vadd.f32 %v13510_v63, %v18440_v50  ;;  %v5257_v27 = vld [vmem:[#allocation3 + $0xe0] sm:$0xff] }
 0x3b9   : > { %13616 = vmatmul.mubr.msk.bf16.gmra.mxu0 %vm5181_vm3, %v5360_v31  ;;  %v4583_v7 = vpop.f32.mrf.mxu0  ;;  %v5331_v44 = vld [vmem:[#allocation3 + $0xe1] sm:$0xff]  ;;  %v5332_v1 = vld [vmem:[#allocation3 + $0xe9] sm:$0xff]  ;;  %v16668_v62 = vpop.f32.mrf.mxu1  ;;  %v5288_v16 = vpack.c.bf16 %v5260_v54, %v5259_v10  ;;  %v18448_v10 = vld [vmem:[#allocation25_spill] sm:$0xff] }
 0x3ba   : > { %v5258_v42 = vld [vmem:[#allocation3 + $0xe8] sm:$0xff]  ;;  %5215 = vst.msk [vmem:[#allocation3 + $0x108] sm:$0xff] %vm5181_vm3, %v5167_v17  ;;  %v5172_v58 = vmax.f32 %v5125_v19, 0.0  ;;  %v5123_v30 = vadd.f32 %v16390_v61, %v5069_v43  ;;  %v5072_v57 = vadd.f32 %v16615_v23, %v4665_v33  ;;  %v4663_v39 = vadd.f32 %v4583_v7, %v4224_v2 }
 0x3bb   : > { %v13513_v36 = vpop.f32.mrf.mxu0  ;;  %v5361_v9 = vpack.c.bf16 %v5332_v1, %v5331_v44  ;;  %v5287_v48 = vpack.c.bf16 %v5258_v42, %v5257_v27  ;;  %v13582_v15 = vpop.f32.mrf.mxu1  ;;  %v5263_v63 = vld [vmem:[#allocation3 + $0x110] sm:$0xff]  ;;  %v18446_v54 = vld [vmem:[#allocation23_spill] sm:$0xff] }
 0x3bc   : > { %5220 = vst.msk [vmem:[#allocation3 + $0x130] sm:$0xff] %vm5181_vm3, %v5172_v58  ;;  %v5170_v55 = vmax.f32 %v5123_v30, 0.0  ;;  %v5126_v52 = vadd.f32 %v16390_v61, %v5072_v57  ;;  %v5070_v25 = vadd.f32 %v16623_v59, %v4663_v39  ;;  %v4668_v38 = vadd.f32 %v13513_v36, %v18441_v4  ;;  %v5333_v59 = vld [vmem:[#allocation3 + $0xf1] sm:$0xff] }
 0x3bd   : > { %13619 = vmatprep.mubr.msk.bf16.mxu0 %vm5181_vm3, %v5361_v9  ;;  %13671 = vmatprep.mubr.msk.bf16.mxu1 %vm5181_vm3, %v5287_v48  ;;  %v4596_v23 = vpop.f32.mrf.mxu0  ;;  %v5334_v41 = vld [vmem:[#allocation3 + $0xf9] sm:$0xff]  ;;  %v18447_v30 = vld [vmem:[#allocation24_spill] sm:$0xff] }
 0x3be   : > { %5218 = vst.msk [vmem:[#allocation3 + $0x120] sm:$0xff] %vm5181_vm3, %v5170_v55  ;;  %v5173_v40 = vmax.f32 %v5126_v52, 0.0  ;;  %v5124_v47 = vadd.f32 %v16390_v61, %v5070_v25  ;;  %v5075_v49 = vadd.f32 %v16632_v13, %v4668_v38  ;;  %v4666_v32 = vadd.f32 %v4596_v23, %v18442_v28  ;;  %13672 = vmatmul.mubr.msk.bf16.gmra.mxu1 %vm5181_vm3, %v5288_v16  ;;  %v5261_v2 = vld [vmem:[#allocation3 + $0x100] sm:$0xff]  ;;  %v18449_v36 = vld [vmem:[#allocation21_spill] sm:$0xff] }
 0x3bf   : > { %v13514_v20 = vpop.f32.mrf.mxu0  ;;  %v5362_v26 = vpack.c.bf16 %v5334_v41, %v5333_v59  ;;  %v5264_v13 = vld [vmem:[#allocation3 + $0x118] sm:$0xff]  ;;  %v4256_v9 = vadd.f32 %v18449_v36, %v18448_v10  ;;  %v6402_v10 = vld [vmem:[#allocation3 + $0x4b] sm:$0xff] }
 0x3c0   : > { %5221 = vst.msk [vmem:[#allocation3 + $0x138] sm:$0xff] %vm5181_vm3, %v5173_v40  ;;  %v5171_v5 = vmax.f32 %v5124_v47, 0.0  ;;  %v5129_v21 = vadd.f32 %v16390_v61, %v5075_v49  ;;  %v5073_v37 = vadd.f32 %v16639_v14, %v4666_v32  ;;  %v4669_v35 = vadd.f32 %v13514_v20, %v18445_v51  ;;  %v5022_v49 = vpop.f32.mrf.mxu1  ;;  %v6400_v36 = vld [vmem:[#allocation3 + $0x3b] sm:$0xff] }
 0x3c1   : > { %13620 = vmatmul.mubr.msk.bf16.gmra.mxu0 %vm5181_vm3, %v5362_v26  ;;  %v4599_v53 = vpop.f32.mrf.mxu0  ;;  %v5335_v11 = vld [vmem:[#allocation3 + $0x101] sm:$0xff]  ;;  %v5336_v3 = vld [vmem:[#allocation3 + $0x109] sm:$0xff]  ;;  %v5290_v19 = vpack.c.bf16 %v5264_v13, %v5263_v63 }
 0x3c2   : > { %v5262_v60 = vld [vmem:[#allocation3 + $0x108] sm:$0xff]  ;;  %5219 = vst.msk [vmem:[#allocation3 + $0x128] sm:$0xff] %vm5181_vm3, %v5171_v5  ;;  %v5176_v34 = vmax.f32 %v5129_v21, 0.0  ;;  %v5127_v45 = vadd.f32 %v16390_v61, %v5073_v37  ;;  %v5076_v8 = vadd.f32 %v16644_v24, %v4669_v35  ;;  %v4667_v22 = vadd.f32 %v4599_v53, %v4240_v46 }
 0x3c3   : > { %v13517_v14 = vpop.f32.mrf.mxu0  ;;  %v5363_v31 = vpack.c.bf16 %v5336_v3, %v5335_v11  ;;  %v5289_v17 = vpack.c.bf16 %v5262_v60, %v5261_v2  ;;  %v5267_v32 = vld [vmem:[#allocation3 + $0x130] sm:$0xff] }
 0x3c4   : > { %5224 = vst.msk [vmem:[#allocation3 + $0x150] sm:$0xff] %vm5181_vm3, %v5176_v34  ;;  %v5174_v43 = vmax.f32 %v5127_v45, 0.0  ;;  %v5130_v50 = vadd.f32 %v16390_v61, %v5076_v8  ;;  %v5074_v33 = vadd.f32 %v16652_v18, %v4667_v22  ;;  %v4672_v7 = vadd.f32 %v13517_v14, %v18446_v54  ;;  %v5337_v18 = vld [vmem:[#allocation3 + $0x111] sm:$0xff]  ;;  %v5976_v8 = vld [vmem:[#allocation3 + $0x2] sm:$0xff] }
 0x3c5   : > { %13623 = vmatprep.mubr.msk.bf16.mxu0 %vm5181_vm3, %v5363_v31  ;;  %13675 = vmatprep.mubr.msk.bf16.mxu1 %vm5181_vm3, %v5289_v17  ;;  %v4612_v24 = vpop.f32.mrf.mxu0  ;;  %v5338_v44 = vld [vmem:[#allocation3 + $0x119] sm:$0xff]  ;;  %v6394_v3 = vld [vmem:[#allocation3 + $0xb] sm:$0xff] }
 0x3c6   : > { %5222 = vst.msk [vmem:[#allocation3 + $0x140] sm:$0xff] %vm5181_vm3, %v5174_v43  ;;  %v5177_v1 = vmax.f32 %v5130_v50, 0.0  ;;  %v5128_v42 = vadd.f32 %v16390_v61, %v5074_v33  ;;  %v5079_v58 = vadd.f32 %v16661_v56, %v4672_v7  ;;  %v4670_v57 = vadd.f32 %v4612_v24, %v18447_v30  ;;  %13676 = vmatmul.mubr.msk.bf16.gmra.mxu1 %vm5181_vm3, %v5290_v19  ;;  %v5265_v47 = vld [vmem:[#allocation3 + $0x120] sm:$0xff]  ;;  %v6395_v45 = vld [vmem:[#allocation3 + $0x13] sm:$0xff]  ;;  %v5977_v14 = vld [vmem:[#allocation3 + $0xa] sm:$0xff] }
 0x3c7   : > { %v13518_v39 = vpop.f32.mrf.mxu0  ;;  %v5364_v27 = vpack.c.bf16 %v5338_v44, %v5337_v18  ;;  %v5268_v55 = vld [vmem:[#allocation3 + $0x138] sm:$0xff]  ;;  %v6438_v22 = vpack.c.bf16 %v6395_v45, %v6394_v3  ;;  %v6020_v17 = vpack.c.bf16 %v5977_v14, %v5976_v8  ;;  %v6397_v19 = vld [vmem:[#allocation3 + $0x23] sm:$0xff]  ;;  %v6398_v43 = vld [vmem:[#allocation3 + $0x2b] sm:$0xff] }
 0x3c8   : > { %5225 = vst.msk [vmem:[#allocation3 + $0x158] sm:$0xff] %vm5181_vm3, %v5177_v1  ;;  %v5175_v48 = vmax.f32 %v5128_v42, 0.0  ;;  %v5133_v16 = vadd.f32 %v16390_v61, %v5079_v58  ;;  %v5077_v15 = vadd.f32 %v16668_v62, %v4670_v57  ;;  %v5292_v12 = vpack.c.bf16 %v5268_v55, %v5267_v32  ;;  %v5341_v0 = vld [vmem:[#allocation3 + $0x131] sm:$0xff]  ;;  %v6396_v50 = vld [vmem:[#allocation3 + $0x1b] sm:$0xff]  ;;  %v14204_v24 = vld [vmem:[%s18348_s5 + $0xb0] sm:$0xff]  }
 0x3c9   : > { %13624 = vmatmul.mubr.msk.bf16.gmra.mxu0 %vm5181_vm3, %v5364_v27  ;;  %v4615_v56 = vpop.f32.mrf.mxu0  ;;  %v5339_v52 = vld [vmem:[#allocation3 + $0x121] sm:$0xff]  ;;  %v5340_v25 = vld [vmem:[#allocation3 + $0x129] sm:$0xff]  ;;  %v6439_v33 = vpack.c.bf16 %v6397_v19, %v6396_v50  ;;  %v6399_v54 = vld [vmem:[#allocation3 + $0x33] sm:$0xff] }
 0x3ca   : > { %v5266_v4 = vld [vmem:[#allocation3 + $0x128] sm:$0xff]  ;;  %5223 = vst.msk [vmem:[#allocation3 + $0x148] sm:$0xff] %vm5181_vm3, %v5175_v48  ;;  %v5180_v38 = vmax.f32 %v5133_v16, 0.0  ;;  %v5131_v23 = vadd.f32 %v16390_v61, %v5077_v15  ;;  %v4671_v41 = vadd.f32 %v4615_v56, %v4256_v9  ;;  %v5365_v40 = vpack.c.bf16 %v5340_v25, %v5339_v52  ;;  %v14432_v61 = vld [vmem:[%s18347_s4] ss:$0 sm:$0xff]  ;;  %v5979_v7 = vld [vmem:[#allocation3 + $0x1a] sm:$0xff] }
 0x3cb   : > { %v5291_v28 = vpack.c.bf16 %v5266_v4, %v5265_v47  ;;  %v5271_v60 = vld [vmem:[#allocation3 + $0x150] sm:$0xff]  ;;  %v6440_v44 = vpack.c.bf16 %v6399_v54, %v6398_v43  ;;  %v5980_v1 = vld [vmem:[#allocation3 + $0x22] sm:$0xff]  ;;  %v5983_v16 = vld [vmem:[#allocation3 + $0x3a] sm:$0xff] }
 0x3cc   : > { %5228 = vst.msk [vmem:[#allocation3 + $0x170] sm:$0xff] %vm5181_vm3, %v5180_v38  ;;  %v5178_v62 = vmax.f32 %v5131_v23, 0.0  ;;  %v5078_v59 = vadd.f32 %v5022_v49, %v4671_v41  ;;  %13627 = vmatprep.mubr.msk.bf16.mxu0 %vm5181_vm3, %v5365_v40  ;;  %v5981_v42 = vld [vmem:[#allocation3 + $0x2a] sm:$0xff]  ;;  %v5978_v58 = vld [vmem:[#allocation3 + $0x12] sm:$0xff]  ;;  %v14205_v39 = vld [vmem:[%s18348_s5 + $0xa8] sm:$0xff]  }
 0x3cd   : > { %13679 = vmatprep.mubr.msk.bf16.mxu1 %vm5181_vm3, %v5291_v28  ;;  %v5342_v46 = vld [vmem:[#allocation3 + $0x139] sm:$0xff]  ;;  %v6021_v30 = vpack.c.bf16 %v5979_v7, %v5978_v58  ;;  %v14200_v57 = vld [vmem:[%s18348_s5 + $0x90] sm:$0xff]   ;;  %v6022_v18 = vpack.c.bf16 %v5981_v42, %v5980_v1  ;;  %v16760_v47 = vld [vmem:[%s18348_s5 + $0xd8] sm:$0xff]  }
 0x3ce   : > { %5226 = vst.msk [vmem:[#allocation3 + $0x160] sm:$0xff] %vm5181_vm3, %v5178_v62  ;;  %v5132_v20 = vadd.f32 %v14432_v61, %v5078_v59  ;;  %13680 = vmatmul.mubr.msk.bf16.gmra.mxu1 %vm5181_vm3, %v5292_v12  ;;  %v5366_v26 = vpack.c.bf16 %v5342_v46, %v5341_v0  ;;  %v5269_v21 = vld [vmem:[#allocation3 + $0x140] sm:$0xff]  ;;  %v6403_v48 = vld [vmem:[#allocation3 + $0x53] sm:$0xff]  ;;  %v5985_v56 = vld [vmem:[#allocation3 + $0x4a] sm:$0xff] }
 0x3cf   : > { %v5272_v37 = vld [vmem:[#allocation3 + $0x158] sm:$0xff]  ;;  %v6401_v27 = vld [vmem:[#allocation3 + $0x43] sm:$0xff]  ;;  %v6442_v15 = vpack.c.bf16 %v6403_v48, %v6402_v10  ;;  %v6406_v41 = vld [vmem:[#allocation3 + $0x6b] sm:$0xff] }
 0x3d0   : > { %v5179_v5 = vmax.f32 %v5132_v20, 0.0  ;;  %v5294_v34 = vpack.c.bf16 %v5272_v37, %v5271_v60  ;;  %v5345_v2 = vld [vmem:[#allocation3 + $0x151] sm:$0xff]  ;;  %v6441_v9 = vpack.c.bf16 %v6401_v27, %v6400_v36  ;;  %v5984_v55 = vld [vmem:[#allocation3 + $0x42] sm:$0xff]  ;;  %v5987_v32 = vld [vmem:[#allocation3 + $0x5a] sm:$0xff] }
 0x3d1   : > { %13628 = vmatmul.mubr.msk.bf16.gmra.mxu0 %vm5181_vm3, %v5366_v26  ;;  %v5343_v51 = vld [vmem:[#allocation3 + $0x141] sm:$0xff]  ;;  %v5344_v35 = vld [vmem:[#allocation3 + $0x149] sm:$0xff]  ;;  %v14206_v52 = vld [vmem:[%s18348_s5 + $0xa0] sm:$0xff]   ;;  %v6024_v38 = vpack.c.bf16 %v5985_v56, %v5984_v55 }
 0x3d2   : > { %v5270_v13 = vld [vmem:[#allocation3 + $0x148] sm:$0xff]  ;;  %5227 = vst.msk [vmem:[#allocation3 + $0x168] sm:$0xff] %vm5181_vm3, %v5179_v5  ;;  %v5367_v53 = vpack.c.bf16 %v5344_v35, %v5343_v51  ;;  %v14202_v4 = vld [vmem:[%s18348_s5 + $0x80] sm:$0xff]   ;;  %v16775_v43 = vld [vmem:[%s18348_s5 + $0xf8] sm:$0xff]  }
 0x3d3   : > { %v5293_v11 = vpack.c.bf16 %v5270_v13, %v5269_v21  ;;  %v6405_v23 = vld [vmem:[#allocation3 + $0x63] sm:$0xff]  ;;  %v6404_v40 = vld [vmem:[#allocation3 + $0x5b] sm:$0xff]  ;;  %v6407_v28 = vld [vmem:[#allocation3 + $0x73] sm:$0xff] }
 0x3d4   : > { %13631 = vmatprep.mubr.msk.bf16.mxu0 %vm5181_vm3, %v5367_v53  ;;  %v6443_v49 = vpack.c.bf16 %v6405_v23, %v6404_v40  ;;  %v6444_v62 = vpack.c.bf16 %v6407_v28, %v6406_v41  ;;  %v5988_v59 = vld [vmem:[#allocation3 + $0x62] sm:$0xff]  ;;  %v5989_v12 = vld [vmem:[#allocation3 + $0x6a] sm:$0xff]  ;;  %v5986_v0 = vld [vmem:[#allocation3 + $0x52] sm:$0xff] }
 0x3d5   : > { %13683 = vmatprep.mubr.msk.bf16.mxu1 %vm5181_vm3, %v5293_v11  ;;  %v5346_v63 = vld [vmem:[#allocation3 + $0x159] sm:$0xff]  ;;  %v6025_v46 = vpack.c.bf16 %v5987_v32, %v5986_v0  ;;  %v6026_v61 = vpack.c.bf16 %v5989_v12, %v5988_v59  ;;  %v6409_v20 = vld [vmem:[#allocation3 + $0x83] sm:$0xff]  ;;  %v6410_v26 = vld [vmem:[#allocation3 + $0x8b] sm:$0xff] }
 0x3d6   : > { %13684 = vmatmul.mubr.msk.bf16.gmra.mxu1 %vm5181_vm3, %v5294_v34  ;;  %v5368_v31 = vpack.c.bf16 %v5346_v63, %v5345_v2  ;;  %v6408_v5 = vld [vmem:[#allocation3 + $0x7b] sm:$0xff]  ;;  %v6411_v37 = vld [vmem:[#allocation3 + $0x93] sm:$0xff]  ;;  %v5993_v53 = vld [vmem:[#allocation3 + $0x8a] sm:$0xff] }
 0x3d7   : > { %13747 = vmatprep.mubr.msk.bf16.mxu1 %vm5181_vm3, %v6438_v22  ;;  %v6445_v21 = vpack.c.bf16 %v6409_v20, %v6408_v5  ;;  %v5991_v51 = vld [vmem:[#allocation3 + $0x7a] sm:$0xff]  ;;  %v6446_v35 = vpack.c.bf16 %v6411_v37, %v6410_v26  ;;  %v5992_v13 = vld [vmem:[#allocation3 + $0x82] sm:$0xff]  ;;  %v5990_v11 = vld [vmem:[#allocation3 + $0x72] sm:$0xff] }
 0x3d8   : > { %v6027_v3 = vpack.c.bf16 %v5991_v51, %v5990_v11  ;;  %v6028_v60 = vpack.c.bf16 %v5993_v53, %v5992_v13  ;;  %v6413_v34 = vld [vmem:[#allocation3 + $0xa3] sm:$0xff]  ;;  %v6414_v45 = vld [vmem:[#allocation3 + $0xab] sm:$0xff]  ;;  %v6412_v8 = vld [vmem:[#allocation3 + $0x9b] sm:$0xff] }
 0x3d9   : > { %13632 = vmatmul.mubr.msk.bf16.gmra.mxu0 %vm5181_vm3, %v5368_v31  ;;  %v6447_v22 = vpack.c.bf16 %v6413_v34, %v6412_v8  ;;  %v6415_v2 = vld [vmem:[#allocation3 + $0xb3] sm:$0xff]  ;;  %v5996_v31 = vld [vmem:[#allocation3 + $0xa2] sm:$0xff]  ;;  %v6418_v7 = vld [vmem:[#allocation3 + $0xcb] sm:$0xff] }
 0x3da   : > { %13695 = vmatprep.mubr.msk.bf16.mxu0 %vm5181_vm3, %v6020_v17  ;;  %v5995_v63 = vld [vmem:[#allocation3 + $0x9a] sm:$0xff]  ;;  %v6448_v14 = vpack.c.bf16 %v6415_v2, %v6414_v45  ;;  %v5997_v17 = vld [vmem:[#allocation3 + $0xaa] sm:$0xff]  ;;  %v5994_v19 = vld [vmem:[#allocation3 + $0x92] sm:$0xff] }
 0x3db   : > { %v6029_v50 = vpack.c.bf16 %v5995_v63, %v5994_v19  ;;  %v6417_v54 = vld [vmem:[#allocation3 + $0xc3] sm:$0xff]  ;;  %v6419_v1 = vld [vmem:[#allocation3 + $0xd3] sm:$0xff]  ;;  %v6422_v36 = vld [vmem:[#allocation3 + $0xeb] sm:$0xff] }
 0x3dc   : > { %v5999_v42 = vld [vmem:[#allocation3 + $0xba] sm:$0xff]  ;;  %v6450_v58 = vpack.c.bf16 %v6419_v1, %v6418_v7  ;;  %v6421_v10 = vld [vmem:[#allocation3 + $0xe3] sm:$0xff]  ;;  %v6006_v59 = vld [vmem:[#allocation3 + $0xf2] sm:$0xff] }
 0x3dd   : > { %v6423_v48 = vld [vmem:[#allocation3 + $0xf3] sm:$0xff]  ;;  %v6004_v55 = vld [vmem:[#allocation3 + $0xe2] sm:$0xff]  ;;  %v6005_v56 = vld [vmem:[#allocation3 + $0xea] sm:$0xff] }
 0x3de   : > { %13748 = vmatmul.mubr.msk.bf16.vlgmr.msra.gmra.mxu1 %vm5181_vm3, %v6439_v33  ;;  %v6030_v33 = vpack.c.bf16 %v5997_v17, %v5996_v31  ;;  %v6424_v23 = vld [vmem:[#allocation3 + $0xfb] sm:$0xff]  ;;  %v6427_v40 = vld [vmem:[#allocation3 + $0x113] sm:$0xff] }
 0x3df   : > { %13751 = vmatprep.mubr.msk.bf16.mxu1 %vm5181_vm3, %v6440_v44  ;;  %13844 = vmatpush3.bf16.msra.mxu1 %v16598_v29  ;;  %v14201_v29 = vld [vmem:[%s18348_s5 + $0x88] sm:$0xff]   ;;  %v6431_v5 = vld [vmem:[#allocation3 + $0x133] sm:$0xff] }
 0x3e0   : > { %13845 = vmatprep.subr.bf16.mxu1 %v14204_v24  ;;  %v6008_v32 = vld [vmem:[#allocation3 + $0x102] sm:$0xff]  ;;  %v6010_v13 = vld [vmem:[#allocation3 + $0x112] sm:$0xff] }
 0x3e1   : > { %13696 = vmatmul.mubr.msk.bf16.vlgmr.msra.gmra.mxu0 %vm5181_vm3, %v6021_v30  ;;  %v6000_v30 = vld [vmem:[#allocation3 + $0xc2] sm:$0xff]  ;;  %v6435_v8 = vld [vmem:[#allocation3 + $0x153] sm:$0xff] }
 0x3e2   : > { %13699 = vmatprep.mubr.msk.bf16.mxu0 %vm5181_vm3, %v6022_v18  ;;  %13792 = vmatpush3.bf16.msra.mxu0 %v16521_v6  ;;  %v5982_v6 = vld [vmem:[#allocation3 + $0x32] sm:$0xff]  ;;  %v6428_v20 = vld [vmem:[#allocation3 + $0x11b] sm:$0xff] }
 0x3e3   : > { %13793 = vmatprep.subr.bf16.mxu0 %v14200_v57  ;;  %13846 = vmatpush3.bf16.msra.mxu1 %v14204_v24  ;;  %v6023_v25 = vpack.c.bf16 %v5983_v16, %v5982_v6  ;;  %v6416_v24 = vld [vmem:[#allocation3 + $0xbb] sm:$0xff]  ;;  %v5998_v18 = vld [vmem:[#allocation3 + $0xb2] sm:$0xff] }
 0x3e4   : > { %13847 = vmatprep.subr.bf16.mxu1 %v14205_v39  ;;  %v6449_v44 = vpack.c.bf16 %v6417_v54, %v6416_v24  ;;  %v6003_v16 = vld [vmem:[#allocation3 + $0xda] sm:$0xff]  ;;  %v6012_v51 = vld [vmem:[#allocation3 + $0x122] sm:$0xff]  ;;  %v6014_v31 = vld [vmem:[#allocation3 + $0x132] sm:$0xff] }
 0x3e5   : > { %v6432_v34 = vld [vmem:[#allocation3 + $0x13b] sm:$0xff] }
 0x3e6   : > { %13752 = vmatmul.mubr.msk.bf16.gmra.mxu1 %vm5181_vm3, %v6441_v9  ;;  %13794 = vmatpush3.bf16.msra.mxu0 %v14200_v57  ;;  %v6001_v57 = vld [vmem:[#allocation3 + $0xca] sm:$0xff]  ;;  %v6016_v63 = vld [vmem:[#allocation3 + $0x142] sm:$0xff]  ;;  %v7231_v24 = vld [vmem:[#allocation3 + $0x15] sm:$0xff] }
 0x3e7   : > { %13755 = vmatprep.mubr.msk.bf16.mxu1 %vm5181_vm3, %v6442_v15  ;;  %13795 = vmatprep.subr.bf16.mxu0 %v14201_v29  ;;  %v6032_v27 = vpack.c.bf16 %v6001_v57, %v6000_v30  ;;  %v6452_v15 = vpack.c.bf16 %v6423_v48, %v6422_v36  ;;  %v6436_v54 = vld [vmem:[#allocation3 + $0x15b] sm:$0xff]  ;;  %v14212_v48 = vld [vmem:[%s18348_s5 + $0xf0] sm:$0xff]  }
 0x3e8   : > { %13848 = vmatpush3.bf16.msra.mxu1 %v14205_v39  ;;  %v6031_v39 = vpack.c.bf16 %v5999_v42, %v5998_v18  ;;  %v6812_v42 = vld [vmem:[#allocation3 + $0xc] sm:$0xff]  ;;  %v6813_v57 = vld [vmem:[#allocation3 + $0x14] sm:$0xff] }
 0x3e9   : > { %13700 = vmatmul.mubr.msk.bf16.gmra.mxu0 %vm5181_vm3, %v6023_v25  ;;  %13849 = vmatprep.subr.bf16.mxu1 %v14206_v52  ;;  %v6034_v25 = vpack.c.bf16 %v6005_v56, %v6004_v55  ;;  %v6856_v18 = vpack.c.bf16 %v6813_v57, %v6812_v42  ;;  %v6814_v55 = vld [vmem:[#allocation3 + $0x1c] sm:$0xff]  ;;  %v6828_v42 = vld [vmem:[#allocation3 + $0x8c] sm:$0xff] }
 0x3ea   : > { %13703 = vmatprep.mubr.msk.bf16.mxu0 %vm5181_vm3, %v6024_v38  ;;  %13796 = vmatpush3.bf16.msra.mxu0 %v14201_v29  ;;  %v6420_v29 = vld [vmem:[#allocation3 + $0xdb] sm:$0xff]  ;;  %v6426_v38 = vld [vmem:[#allocation3 + $0x10b] sm:$0xff] }
 0x3eb   : > { %13797 = vmatprep.subr.bf16.mxu0 %v14202_v4  ;;  %v6451_v9 = vpack.c.bf16 %v6421_v10, %v6420_v29  ;;  %v6454_v28 = vpack.c.bf16 %v6427_v40, %v6426_v38  ;;  %v7232_v10 = vld [vmem:[#allocation3 + $0x1d] sm:$0xff]  ;;  %v7235_v29 = vld [vmem:[#allocation3 + $0x35] sm:$0xff]  ;;  %v7237_v38 = vld [vmem:[#allocation3 + $0x45] sm:$0xff] }
 0x3ec   : > { %13850 = vmatpush3.bf16.msra.mxu1 %v14206_v52  ;;  %v6002_v52 = vld [vmem:[#allocation3 + $0xd2] sm:$0xff]  ;;  %v6826_v57 = vld [vmem:[#allocation3 + $0x7c] sm:$0xff] }
 0x3ed   : > { %13947 = vmatprep.subr.bf16.mxu1 %v16775_v43  ;;  %v6033_v6 = vpack.c.bf16 %v6003_v16, %v6002_v52  ;;  %v6817_v52 = vld [vmem:[#allocation3 + $0x34] sm:$0xff] }
 0x3ee   : > { %13756 = vmatmul.mubr.msk.bf16.gmra.mxu1 %vm5181_vm3, %v6443_v49  ;;  %13798 = vmatpush3.bf16.msra.mxu0 %v14202_v4  ;;  %v6425_v4 = vld [vmem:[#allocation3 + $0x103] sm:$0xff]  ;;  %v6007_v49 = vld [vmem:[#allocation3 + $0xfa] sm:$0xff] }
 0x3ef   : > { %13759 = vmatprep.mubr.msk.bf16.mxu1 %vm5181_vm3, %v6444_v62  ;;  %13895 = vmatprep.subr.bf16.mxu0 %v16760_v47  ;;  %v6453_v41 = vpack.c.bf16 %v6425_v4, %v6424_v23  ;;  %v6009_v62 = vld [vmem:[#allocation3 + $0x10a] sm:$0xff]  ;;  %v6035_v12 = vpack.c.bf16 %v6007_v49, %v6006_v59  ;;  %v14213_v4 = vld [vmem:[%s18348_s5 + $0xe8] sm:$0xff]   ;;  %v7239_v49 = vld [vmem:[#allocation3 + $0x55] sm:$0xff] }
 0x3f0   : > { %v6036_v0 = vpack.c.bf16 %v6009_v62, %v6008_v32  ;;  %v7238_v23 = vld [vmem:[#allocation3 + $0x4d] sm:$0xff]  ;;  %v14214_v59 = vld [vmem:[%s18348_s5 + $0xe0] sm:$0xff]  }
 0x3f1   : > { %13704 = vmatmul.mubr.msk.bf16.gmra.mxu0 %vm5181_vm3, %v6025_v46  ;;  %v6429_v46 = vld [vmem:[#allocation3 + $0x123] sm:$0xff]  ;;  %v7278_v32 = vpack.c.bf16 %v7239_v49, %v7238_v23  ;;  %v6820_v62 = vld [vmem:[#allocation3 + $0x4c] sm:$0xff] }
 0x3f2   : > { %13707 = vmatprep.mubr.msk.bf16.mxu0 %vm5181_vm3, %v6026_v61  ;;  %v6430_v61 = vld [vmem:[#allocation3 + $0x12b] sm:$0xff]  ;;  %v6455_v26 = vpack.c.bf16 %v6429_v46, %v6428_v20  ;;  %v14210_v46 = vld [vmem:[%s18348_s5 + $0xc0] sm:$0xff]  }
 0x3f3   : > { %v6456_v37 = vpack.c.bf16 %v6431_v5, %v6430_v61  ;;  %v7241_v20 = vld [vmem:[#allocation3 + $0x65] sm:$0xff]  ;;  %v7240_v5 = vld [vmem:[#allocation3 + $0x5d] sm:$0xff] }
 0x3f4   : > { %v6831_v23 = vld [vmem:[#allocation3 + $0xa4] sm:$0xff] }
 0x3f6   : > { %13760 = vmatmul.mubr.msk.bf16.gmra.mxu1 %vm5181_vm3, %v6445_v21  ;;  %v6011_v21 = vld [vmem:[#allocation3 + $0x11a] sm:$0xff] }
 0x3f7   : > { %13763 = vmatprep.mubr.msk.bf16.mxu1 %vm5181_vm3, %v6446_v35  ;;  %v6013_v35 = vld [vmem:[#allocation3 + $0x12a] sm:$0xff]  ;;  %v6037_v53 = vpack.c.bf16 %v6011_v21, %v6010_v13 }
 0x3f8   : > { %v6038_v11 = vpack.c.bf16 %v6013_v35, %v6012_v51  ;;  %v16836_v21 = vld [vmem:[%s18348_s5 + $0x118] sm:$0xff]   ;;  %v6823_v35 = vld [vmem:[#allocation3 + $0x64] sm:$0xff] }
 0x3f9   : > { %13708 = vmatmul.mubr.msk.bf16.gmra.mxu0 %vm5181_vm3, %v6027_v3  ;;  %v6433_v3 = vld [vmem:[#allocation3 + $0x143] sm:$0xff]  ;;  %v7243_v51 = vld [vmem:[#allocation3 + $0x75] sm:$0xff] }
 0x3fa   : > { %13711 = vmatprep.mubr.msk.bf16.mxu0 %vm5181_vm3, %v6028_v60  ;;  %v6434_v60 = vld [vmem:[#allocation3 + $0x14b] sm:$0xff]  ;;  %v6457_v45 = vpack.c.bf16 %v6433_v3, %v6432_v34  ;;  %v6822_v3 = vld [vmem:[#allocation3 + $0x5c] sm:$0xff]  ;;  %v6825_v34 = vld [vmem:[#allocation3 + $0x74] sm:$0xff] }
 0x3fb   : > { %v6458_v2 = vpack.c.bf16 %v6435_v8, %v6434_v60  ;;  %v6861_v60 = vpack.c.bf16 %v6823_v35, %v6822_v3  ;;  %v6835_v3 = vld [vmem:[#allocation3 + $0xc4] sm:$0xff] }
 0x3fe   : > { %13764 = vmatmul.mubr.msk.bf16.gmra.mxu1 %vm5181_vm3, %v6447_v22  ;;  %v6015_v22 = vld [vmem:[#allocation3 + $0x13a] sm:$0xff] }
 0x3ff   : > { %13767 = vmatprep.mubr.msk.bf16.mxu1 %vm5181_vm3, %v6448_v14  ;;  %v6017_v14 = vld [vmem:[#allocation3 + $0x14a] sm:$0xff]  ;;  %v6039_v17 = vpack.c.bf16 %v6015_v22, %v6014_v31 }
 0x400   : > { %v6040_v19 = vpack.c.bf16 %v6017_v14, %v6016_v63  ;;  %v7246_v31 = vld [vmem:[#allocation3 + $0x8d] sm:$0xff] }
 0x401   : > { %13712 = vmatmul.mubr.msk.bf16.gmra.mxu0 %vm5181_vm3, %v6029_v50  ;;  %v6437_v50 = vld [vmem:[#allocation3 + $0x163] sm:$0xff] }
 0x402   : > { %13715 = vmatprep.mubr.msk.bf16.mxu0 %vm5181_vm3, %v6030_v33  ;;  %v7230_v33 = vld [vmem:[#allocation3 + $0xd] sm:$0xff]  ;;  %v6459_v7 = vpack.c.bf16 %v6437_v50, %v6436_v54 }
 0x403   : > { %v7274_v1 = vpack.c.bf16 %v7231_v24, %v7230_v33  ;;  %v6827_v24 = vld [vmem:[#allocation3 + $0x84] sm:$0xff] }
 0x406   : > { %13768 = vmatmul.mubr.msk.bf16.gmra.mxu1 %vm5181_vm3, %v6449_v44  ;;  %v6019_v44 = vld [vmem:[#allocation3 + $0x15a] sm:$0xff] }
 0x407   : > { %13771 = vmatprep.mubr.msk.bf16.mxu1 %vm5181_vm3, %v6450_v58  ;;  %v6018_v58 = vld [vmem:[#allocation3 + $0x152] sm:$0xff] }
 0x408   : > { %v6041_v30 = vpack.c.bf16 %v6019_v44, %v6018_v58 }
 0x409   : > { %13716 = vmatmul.mubr.msk.bf16.gmra.mxu0 %vm5181_vm3, %v6031_v39  ;;  %v7233_v39 = vld [vmem:[#allocation3 + $0x25] sm:$0xff] }
 0x40a   : > { %13719 = vmatprep.mubr.msk.bf16.mxu0 %vm5181_vm3, %v6032_v27  ;;  %v7234_v27 = vld [vmem:[#allocation3 + $0x2d] sm:$0xff]  ;;  %v7275_v36 = vpack.c.bf16 %v7233_v39, %v7232_v10  ;;  %v6863_v39 = vpack.c.bf16 %v6827_v24, %v6826_v57 }
 0x40b   : > { %v7276_v16 = vpack.c.bf16 %v7235_v29, %v7234_v27  ;;  %v6829_v27 = vld [vmem:[#allocation3 + $0x94] sm:$0xff] }
 0x40c   : > { %v6864_v29 = vpack.c.bf16 %v6829_v27, %v6828_v42  ;;  %v7256_v42 = vld [vmem:[#allocation3 + $0xdd] sm:$0xff] }
 0x40e   : > { %13772 = vmatmul.mubr.msk.bf16.gmra.mxu1 %vm5181_vm3, %v6451_v9  ;;  %v6815_v9 = vld [vmem:[#allocation3 + $0x24] sm:$0xff] }
 0x40f   : > { %13775 = vmatprep.mubr.msk.bf16.mxu1 %vm5181_vm3, %v6452_v15  ;;  %v6816_v15 = vld [vmem:[#allocation3 + $0x2c] sm:$0xff]  ;;  %v6857_v56 = vpack.c.bf16 %v6815_v9, %v6814_v55 }
 0x410   : > { %v7250_v55 = vld [vmem:[#allocation3 + $0xad] sm:$0xff] }
 0x411   : > { %13720 = vmatmul.mubr.msk.bf16.gmra.mxu0 %vm5181_vm3, %v6033_v6  ;;  %v14208_v6 = vld [vmem:[%s18348_s5 + $0xd0] sm:$0xff]  }
 0x412   : > { %13723 = vmatprep.mubr.msk.bf16.mxu0 %vm5181_vm3, %v6034_v25  ;;  %v6858_v25 = vpack.c.bf16 %v6817_v52, %v6816_v15  ;;  %v7248_v52 = vld [vmem:[#allocation3 + $0x9d] sm:$0xff] }
 0x416   : > { %13776 = vmatmul.mubr.msk.bf16.gmra.mxu1 %vm5181_vm3, %v6453_v41  ;;  %v7236_v41 = vld [vmem:[#allocation3 + $0x3d] sm:$0xff] }
 0x417   : > { %13779 = vmatprep.mubr.msk.bf16.mxu1 %vm5181_vm3, %v6454_v28  ;;  %v7277_v40 = vpack.c.bf16 %v7237_v38, %v7236_v41  ;;  %v6819_v28 = vld [vmem:[#allocation3 + $0x44] sm:$0xff]  ;;  %v7251_v38 = vld [vmem:[#allocation3 + $0xb5] sm:$0xff] }
 0x419   : > { %13724 = vmatmul.mubr.msk.bf16.gmra.mxu0 %vm5181_vm3, %v6035_v12 }
 0x41a   : > { %13727 = vmatprep.mubr.msk.bf16.mxu0 %vm5181_vm3, %v6036_v0  ;;  %v6821_v0 = vld [vmem:[#allocation3 + $0x54] sm:$0xff] }
 0x41b   : > { %v6860_v61 = vpack.c.bf16 %v6821_v0, %v6820_v62 }
 0x41e   : > { %13780 = vmatmul.mubr.msk.bf16.gmra.mxu1 %vm5181_vm3, %v6455_v26  ;;  %v7242_v26 = vld [vmem:[#allocation3 + $0x6d] sm:$0xff] }
 0x41f   : > { %13783 = vmatprep.mubr.msk.bf16.mxu1 %vm5181_vm3, %v6456_v37  ;;  %v7279_v37 = vpack.c.bf16 %v7241_v20, %v7240_v5  ;;  %v7280_v13 = vpack.c.bf16 %v7243_v51, %v7242_v26  ;;  %v7253_v20 = vld [vmem:[#allocation3 + $0xc5] sm:$0xff]  ;;  %v7254_v5 = vld [vmem:[#allocation3 + $0xcd] sm:$0xff]  ;;  %v7252_v51 = vld [vmem:[#allocation3 + $0xbd] sm:$0xff] }
 0x421   : > { %13728 = vmatmul.mubr.msk.bf16.gmra.mxu0 %vm5181_vm3, %v6037_v53  ;;  %v6824_v53 = vld [vmem:[#allocation3 + $0x6c] sm:$0xff] }
 0x422   : > { %13731 = vmatprep.mubr.msk.bf16.mxu0 %vm5181_vm3, %v6038_v11  ;;  %v6862_v8 = vpack.c.bf16 %v6825_v34, %v6824_v53  ;;  %v7285_v53 = vpack.c.bf16 %v7253_v20, %v7252_v51 }
 0x426   : > { %13784 = vmatmul.mubr.msk.bf16.gmra.mxu1 %vm5181_vm3, %v6457_v45 }
 0x427   : > { %13787 = vmatprep.mubr.msk.bf16.mxu1 %vm5181_vm3, %v6458_v2  ;;  %v7245_v2 = vld [vmem:[#allocation3 + $0x85] sm:$0xff] }
 0x429   : > { %13732 = vmatmul.mubr.msk.bf16.gmra.mxu0 %vm5181_vm3, %v6039_v17 }
 0x42a   : > { %13735 = vmatprep.mubr.msk.bf16.mxu0 %vm5181_vm3, %v6040_v19  ;;  %v7244_v19 = vld [vmem:[#allocation3 + $0x7d] sm:$0xff] }
 0x42b   : > { %v7281_v54 = vpack.c.bf16 %v7245_v2, %v7244_v19 }
 0x42e   : > { %13788 = vmatmul.mubr.msk.bf16.gmra.mxu1 %vm5181_vm3, %v6459_v7  ;;  %v7247_v7 = vld [vmem:[#allocation3 + $0x95] sm:$0xff] }
 0x42f   : > { %13851 = vmatprep.mubr.msk.bf16.mxu1 %vm5181_vm3, %v7274_v1  ;;  %v7282_v1 = vpack.c.bf16 %v7247_v7, %v7246_v31  ;;  %v6837_v31 = vld [vmem:[#allocation3 + $0xd4] sm:$0xff]  ;;  %v7257_v7 = vld [vmem:[#allocation3 + $0xe5] sm:$0xff] }
 0x430   : > { %v7287_v57 = vpack.c.bf16 %v7257_v7, %v7256_v42  ;;  %v6847_v7 = vld [vmem:[#allocation3 + $0x124] sm:$0xff] }
 0x431   : > { %13736 = vmatmul.mubr.msk.bf16.gmra.mxu0 %vm5181_vm3, %v6041_v30 }
 0x432   : > { %13799 = vmatprep.mubr.msk.bf16.mxu0 %vm5181_vm3, %v6856_v18 }
 0x436   : > { %13852 = vmatmul.mubr.msk.bf16.vlgmr.msra.gmra.mxu1 %vm5181_vm3, %v7275_v36 }
 0x437   : > { %13855 = vmatprep.mubr.msk.bf16.mxu1 %vm5181_vm3, %v7276_v16  ;;  %13948 = vmatpush3.bf16.msra.mxu1 %v16775_v43  ;;  %v14209_v43 = vld [vmem:[%s18348_s5 + $0xc8] sm:$0xff]  }
 0x438   : > { %13949 = vmatprep.subr.bf16.mxu1 %v14212_v48 }
 0x439   : > { %13800 = vmatmul.mubr.msk.bf16.vlgmr.msra.gmra.mxu0 %vm5181_vm3, %v6857_v56 }
 0x43a   : > { %13803 = vmatprep.mubr.msk.bf16.mxu0 %vm5181_vm3, %v6858_v25  ;;  %13896 = vmatpush3.bf16.msra.mxu0 %v16760_v47  ;;  %v6818_v47 = vld [vmem:[#allocation3 + $0x3c] sm:$0xff] }
 0x43b   : > { %13897 = vmatprep.subr.bf16.mxu0 %v14208_v6  ;;  %13950 = vmatpush3.bf16.msra.mxu1 %v14212_v48  ;;  %v6859_v12 = vpack.c.bf16 %v6819_v28, %v6818_v47  ;;  %v7249_v48 = vld [vmem:[#allocation3 + $0xa5] sm:$0xff]  ;;  %v6833_v47 = vld [vmem:[#allocation3 + $0xb4] sm:$0xff] }
 0x43c   : > { %13951 = vmatprep.subr.bf16.mxu1 %v14213_v4 }
 0x43e   : > { %13856 = vmatmul.mubr.msk.bf16.gmra.mxu1 %vm5181_vm3, %v7277_v40  ;;  %13898 = vmatpush3.bf16.msra.mxu0 %v14208_v6  ;;  %v6832_v40 = vld [vmem:[#allocation3 + $0xac] sm:$0xff] }
 0x43f   : > { %13859 = vmatprep.mubr.msk.bf16.mxu1 %vm5181_vm3, %v7278_v32  ;;  %13899 = vmatprep.subr.bf16.mxu0 %v14209_v43  ;;  %v6830_v32 = vld [vmem:[#allocation3 + $0x9c] sm:$0xff] }
 0x440   : > { %13952 = vmatpush3.bf16.msra.mxu1 %v14213_v4  ;;  %v7283_v4 = vpack.c.bf16 %v7249_v48, %v7248_v52  ;;  %v6838_v48 = vld [vmem:[#allocation3 + $0xdc] sm:$0xff] }
 0x441   : > { %13804 = vmatmul.mubr.msk.bf16.gmra.mxu0 %vm5181_vm3, %v6859_v12  ;;  %13953 = vmatprep.subr.bf16.mxu1 %v14214_v59 }
 0x442   : > { %13807 = vmatprep.mubr.msk.bf16.mxu0 %vm5181_vm3, %v6860_v61  ;;  %13900 = vmatpush3.bf16.msra.mxu0 %v14209_v43  ;;  %v7284_v43 = vpack.c.bf16 %v7251_v38, %v7250_v55  ;;  %v7261_v38 = vld [vmem:[#allocation3 + $0x105] sm:$0xff] }
 0x443   : > { %13901 = vmatprep.subr.bf16.mxu0 %v14210_v46 }
 0x444   : > { %13954 = vmatpush3.bf16.msra.mxu1 %v14214_v59  ;;  %v6865_v59 = vpack.c.bf16 %v6831_v23, %v6830_v32 }
 0x446   : > { %v13645_v11 = vpop.f32.mrf.mxu1  ;;  %13860 = vmatmul.mubr.msk.bf16.gmra.mxu1 %vm5181_vm3, %v7279_v37  ;;  %13902 = vmatpush3.bf16.msra.mxu0 %v14210_v46  ;;  %v6866_v46 = vpack.c.bf16 %v6833_v47, %v6832_v40  ;;  %v6843_v47 = vld [vmem:[#allocation3 + $0x104] sm:$0xff] }
 0x447   : > { %13863 = vmatprep.mubr.msk.bf16.mxu1 %vm5181_vm3, %v7280_v13  ;;  %13999 = vmatprep.subr.bf16.mxu0 %v16836_v21 }
 0x448   : > { %v5801_v45 = vpop.f32.mrf.mxu1 }
 0x449   : > { %v13593_v22 = vpop.f32.mrf.mxu0  ;;  %13808 = vmatmul.mubr.msk.bf16.gmra.mxu0 %vm5181_vm3, %v6861_v60 }
 0x44a   : > { %v16842_v63 = vadd.f32 %v13645_v11, %v13593_v22  ;;  %v13646_v14 = vpop.f32.mrf.mxu1  ;;  %13811 = vmatprep.mubr.msk.bf16.mxu0 %vm5181_vm3, %v6862_v8  ;;  %v7255_v11 = vld [vmem:[#allocation3 + $0xd5] sm:$0xff] }
 0x44b   : > { %v5502_v17 = vpop.f32.mrf.mxu0  ;;  %v7286_v34 = vpack.c.bf16 %v7255_v11, %v7254_v5  ;;  %v6834_v22 = vld [vmem:[#allocation3 + $0xbc] sm:$0xff] }
 0x44c   : > { %v16845_v50 = vadd.f32 %v5801_v45, %v5502_v17  ;;  %v5804_v33 = vpop.f32.mrf.mxu1  ;;  %v6836_v45 = vld [vmem:[#allocation3 + $0xcc] sm:$0xff]  ;;  %v6842_v5 = vld [vmem:[#allocation3 + $0xfc] sm:$0xff] }
 0x44d   : > { %v13594_v44 = vpop.f32.mrf.mxu0  ;;  %v6871_v51 = vpack.c.bf16 %v6843_v47, %v6842_v5 }
 0x44e   : > { %v16847_v58 = vadd.f32 %v13646_v14, %v13594_v44  ;;  %v13649_v30 = vpop.f32.mrf.mxu1  ;;  %13864 = vmatmul.mubr.msk.bf16.gmra.mxu1 %vm5181_vm3, %v7281_v54  ;;  %v6867_v14 = vpack.c.bf16 %v6835_v3, %v6834_v22  ;;  %v7258_v44 = vld [vmem:[#allocation3 + $0xed] sm:$0xff] }
 0x44f   : > { %v5505_v18 = vpop.f32.mrf.mxu0  ;;  %13867 = vmatprep.mubr.msk.bf16.mxu1 %vm5181_vm3, %v7282_v1  ;;  %v7266_v22 = vld [vmem:[#allocation3 + $0x12d] sm:$0xff] }
 0x450   : > { %v16851_v10 = vadd.f32 %v5804_v33, %v5505_v18  ;;  %v5817_v36 = vpop.f32.mrf.mxu1  ;;  %v6868_v33 = vpack.c.bf16 %v6837_v31, %v6836_v45  ;;  %v7259_v18 = vld [vmem:[#allocation3 + $0xf5] sm:$0xff] }
 0x451   : > { %v13597_v9 = vpop.f32.mrf.mxu0  ;;  %13812 = vmatmul.mubr.msk.bf16.gmra.mxu0 %vm5181_vm3, %v6863_v39  ;;  %v6839_v39 = vld [vmem:[#allocation3 + $0xe4] sm:$0xff] }
 0x452   : > { %v16854_v16 = vadd.f32 %v13649_v30, %v13597_v9  ;;  %v13650_v15 = vpop.f32.mrf.mxu1  ;;  %13815 = vmatprep.mubr.msk.bf16.mxu0 %vm5181_vm3, %v6864_v29  ;;  %v6840_v29 = vld [vmem:[#allocation3 + $0xec] sm:$0xff]  ;;  %v6869_v55 = vpack.c.bf16 %v6839_v39, %v6838_v48 }
 0x453   : > { %v5518_v56 = vpop.f32.mrf.mxu0 }
 0x454   : > { %v16857_v6 = vadd.f32 %v5817_v36, %v5518_v56  ;;  %v5820_v25 = vpop.f32.mrf.mxu1  ;;  %v7288_v36 = vpack.c.bf16 %v7259_v18, %v7258_v44  ;;  %v6841_v56 = vld [vmem:[#allocation3 + $0xf4] sm:$0xff] }
 0x455   : > { %v13598_v41 = vpop.f32.mrf.mxu0 }
 0x456   : > { %v16859_v49 = vadd.f32 %v13650_v15, %v13598_v41  ;;  %v13653_v28 = vpop.f32.mrf.mxu1  ;;  %13868 = vmatmul.mubr.msk.bf16.gmra.mxu1 %vm5181_vm3, %v7283_v4 }
 0x457   : > { %v5521_v62 = vpop.f32.mrf.mxu0  ;;  %13871 = vmatprep.mubr.msk.bf16.mxu1 %vm5181_vm3, %v7284_v43  ;;  %v7262_v43 = vld [vmem:[#allocation3 + $0x10d] sm:$0xff]  ;;  %v7260_v28 = vld [vmem:[#allocation3 + $0xfd] sm:$0xff] }
 0x458   : > { %v16863_v12 = vadd.f32 %v5820_v25, %v5521_v62  ;;  %v5833_v0 = vpop.f32.mrf.mxu1  ;;  %v6870_v25 = vpack.c.bf16 %v6841_v56, %v6840_v29  ;;  %v7289_v62 = vpack.c.bf16 %v7261_v38, %v7260_v28  ;;  %v6851_v28 = vld [vmem:[#allocation3 + $0x144] sm:$0xff] }
 0x459   : > { %v13601_v61 = vpop.f32.mrf.mxu0  ;;  %13816 = vmatmul.mubr.msk.bf16.gmra.mxu0 %vm5181_vm3, %v6865_v59  ;;  %v7263_v59 = vld [vmem:[#allocation3 + $0x115] sm:$0xff] }
 0x45a   : > { %v13654_v26 = vpop.f32.mrf.mxu1  ;;  %13819 = vmatprep.mubr.msk.bf16.mxu0 %vm5181_vm3, %v6866_v46  ;;  %v7290_v46 = vpack.c.bf16 %v7263_v59, %v7262_v43  ;;  %v6844_v61 = vld [vmem:[#allocation3 + $0x10c] sm:$0xff] }
 0x45b   : > { %v5534_v37 = vpop.f32.mrf.mxu0  ;;  %v6852_v59 = vld [vmem:[#allocation3 + $0x14c] sm:$0xff] }
 0x45c   : > { %v16867_v35 = vadd.f32 %v5833_v0, %v5534_v37  ;;  %v5836_v13 = vpop.f32.mrf.mxu1 }
 0x45d   : > { %v13602_v60 = vpop.f32.mrf.mxu0 }
 0x45e   : > { %v13657_v8 = vpop.f32.mrf.mxu1  ;;  %13872 = vmatmul.mubr.msk.bf16.gmra.mxu1 %vm5181_vm3, %v7285_v53 }
 0x45f   : > { %v5537_v2 = vpop.f32.mrf.mxu0  ;;  %13875 = vmatprep.mubr.msk.bf16.mxu1 %vm5181_vm3, %v7286_v34  ;;  %v7265_v34 = vld [vmem:[#allocation3 + $0x125] sm:$0xff] }
 0x460   : > { %v16871_v17 = vadd.f32 %v5836_v13, %v5537_v2  ;;  %v5849_v19 = vpop.f32.mrf.mxu1  ;;  %v6845_v13 = vld [vmem:[#allocation3 + $0x114] sm:$0xff] }
 0x461   : > { %v13605_v54 = vpop.f32.mrf.mxu0  ;;  %13820 = vmatmul.mubr.msk.bf16.gmra.mxu0 %vm5181_vm3, %v6867_v14  ;;  %v6872_v3 = vpack.c.bf16 %v6845_v13, %v6844_v61  ;;  %v7264_v14 = vld [vmem:[#allocation3 + $0x11d] sm:$0xff] }
 0x462   : > { %v13658_v24 = vpop.f32.mrf.mxu1  ;;  %13823 = vmatprep.mubr.msk.bf16.mxu0 %vm5181_vm3, %v6868_v33  ;;  %v7291_v33 = vpack.c.bf16 %v7265_v34, %v7264_v14  ;;  %v7267_v54 = vld [vmem:[#allocation3 + $0x135] sm:$0xff] }
 0x463   : > { %v5550_v1 = vpop.f32.mrf.mxu0  ;;  %v7292_v44 = vpack.c.bf16 %v7267_v54, %v7266_v22  ;;  %v8066_v14 = vld [vmem:[#allocation3 + $0x17] sm:$0xff] }
 0x464   : > { %v5852_v30 = vpop.f32.mrf.mxu1  ;;  %v6848_v1 = vld [vmem:[#allocation3 + $0x12c] sm:$0xff] }
 0x465   : > { %v13606_v27 = vpop.f32.mrf.mxu0 }
 0x466   : > { %v13661_v9 = vpop.f32.mrf.mxu1  ;;  %13876 = vmatmul.mubr.msk.bf16.gmra.mxu1 %vm5181_vm3, %v7287_v57  ;;  %v6846_v57 = vld [vmem:[#allocation3 + $0x11c] sm:$0xff]  ;;  %v6849_v27 = vld [vmem:[#allocation3 + $0x134] sm:$0xff] }
 0x467   : > { %v5553_v15 = vpop.f32.mrf.mxu0  ;;  %13879 = vmatprep.mubr.msk.bf16.mxu1 %vm5181_vm3, %v7288_v36  ;;  %v6873_v39 = vpack.c.bf16 %v6847_v7, %v6846_v57  ;;  %v7649_v7 = vld [vmem:[#allocation3 + $0x1e] sm:$0xff]  ;;  %v7648_v57 = vld [vmem:[#allocation3 + $0x16] sm:$0xff] }
 0x468   : > { %v5865_v52 = vpop.f32.mrf.mxu1  ;;  %v7269_v15 = vld [vmem:[#allocation3 + $0x145] sm:$0xff] }
 0x469   : > { %v13609_v4 = vpop.f32.mrf.mxu0  ;;  %13824 = vmatmul.mubr.msk.bf16.gmra.mxu0 %vm5181_vm3, %v6869_v55  ;;  %v7270_v52 = vld [vmem:[#allocation3 + $0x14d] sm:$0xff] }
 0x46a   : > { %v16878_v23 = vadd.f32 %v13661_v9, %v13609_v4  ;;  %v13662_v41 = vpop.f32.mrf.mxu1  ;;  %13827 = vmatprep.mubr.msk.bf16.mxu0 %vm5181_vm3, %v6870_v25  ;;  %v6874_v9 = vpack.c.bf16 %v6849_v27, %v6848_v1  ;;  %v7268_v4 = vld [vmem:[#allocation3 + $0x13d] sm:$0xff] }
 0x46b   : > { %v5566_v40 = vpop.f32.mrf.mxu0  ;;  %v7293_v43 = vpack.c.bf16 %v7269_v15, %v7268_v4 }
 0x46c   : > { %v5868_v32 = vpop.f32.mrf.mxu1  ;;  %v7271_v40 = vld [vmem:[#allocation3 + $0x155] sm:$0xff] }
 0x46d   : > { %v13610_v0 = vpop.f32.mrf.mxu0 }
 0x46e   : > { %v16881_v20 = vadd.f32 %v13662_v41, %v13610_v0  ;;  %v13665_v26 = vpop.f32.mrf.mxu1  ;;  %13880 = vmatmul.mubr.msk.bf16.gmra.mxu1 %vm5181_vm3, %v7289_v62  ;;  %v7294_v62 = vpack.c.bf16 %v7271_v40, %v7270_v52  ;;  %v6850_v0 = vld [vmem:[#allocation3 + $0x13c] sm:$0xff]  ;;  %v7651_v40 = vld [vmem:[#allocation3 + $0x2e] sm:$0xff] }
 0x46f   : > { %v5569_v37 = vpop.f32.mrf.mxu0  ;;  %13883 = vmatprep.mubr.msk.bf16.mxu1 %vm5181_vm3, %v7290_v46  ;;  %v6875_v61 = vpack.c.bf16 %v6851_v28, %v6850_v0 }
 0x470   : > { %v16885_v53 = vadd.f32 %v5868_v32, %v5569_v37  ;;  %v5881_v11 = vpop.f32.mrf.mxu1 }
 0x471   : > { %v13613_v60 = vpop.f32.mrf.mxu0  ;;  %13828 = vmatmul.mubr.msk.bf16.gmra.mxu0 %vm5181_vm3, %v6871_v51 }
 0x472   : > { %v16888_v45 = vadd.f32 %v13665_v26, %v13613_v60  ;;  %v13666_v8 = vpop.f32.mrf.mxu1  ;;  %13831 = vmatprep.mubr.msk.bf16.mxu0 %vm5181_vm3, %v6872_v3  ;;  %v6853_v26 = vld [vmem:[#allocation3 + $0x154] sm:$0xff]  ;;  %v8067_v60 = vld [vmem:[#allocation3 + $0x1f] sm:$0xff] }
 0x473   : > { %v5582_v2 = vpop.f32.mrf.mxu0  ;;  %v6876_v51 = vpack.c.bf16 %v6853_v26, %v6852_v59  ;;  %v8110_v54 = vpack.c.bf16 %v8067_v60, %v8066_v14  ;;  %v14216_v26 = vld [vmem:[%s18348_s5 + $0x110] sm:$0xff]  }
 0x474   : > { %v16891_v31 = vadd.f32 %v5881_v11, %v5582_v2  ;;  %v5884_v19 = vpop.f32.mrf.mxu1  ;;  %v7273_v11 = vld [vmem:[#allocation3 + $0x165] sm:$0xff] }
 0x475   : > { %v13614_v24 = vpop.f32.mrf.mxu0 }
 0x476   : > { %v16893_v42 = vadd.f32 %v13666_v8, %v13614_v24  ;;  %v13669_v30 = vpop.f32.mrf.mxu1  ;;  %13884 = vmatmul.mubr.msk.bf16.gmra.mxu1 %vm5181_vm3, %v7291_v33  ;;  %v7272_v8 = vld [vmem:[#allocation3 + $0x15d] sm:$0xff] }
 0x477   : > { %v5585_v18 = vpop.f32.mrf.mxu0  ;;  %13887 = vmatprep.mubr.msk.bf16.mxu1 %vm5181_vm3, %v7292_v44  ;;  %v7295_v2 = vpack.c.bf16 %v7273_v11, %v7272_v8  ;;  %v6854_v44 = vld [vmem:[#allocation3 + $0x15c] sm:$0xff]  ;;  %v8072_v11 = vld [vmem:[#allocation3 + $0x47] sm:$0xff] }
 0x478   : > { %v16897_v36 = vadd.f32 %v5884_v19, %v5585_v18  ;;  %v5897_v29 = vpop.f32.mrf.mxu1  ;;  %v6855_v19 = vld [vmem:[#allocation3 + $0x164] sm:$0xff] }
 0x479   : > { %v13617_v48 = vpop.f32.mrf.mxu0  ;;  %13832 = vmatmul.mubr.msk.bf16.gmra.mxu0 %vm5181_vm3, %v6873_v39  ;;  %v7692_v39 = vpack.c.bf16 %v7649_v7, %v7648_v57  ;;  %v8075_v8 = vld [vmem:[#allocation3 + $0x5f] sm:$0xff] }
 0x47a   : > { %v16900_v55 = vadd.f32 %v13669_v30, %v13617_v48  ;;  %v13670_v56 = vpop.f32.mrf.mxu1  ;;  %13835 = vmatprep.mubr.msk.bf16.mxu0 %vm5181_vm3, %v6874_v9  ;;  %v6877_v30 = vpack.c.bf16 %v6855_v19, %v6854_v44  ;;  %v8069_v9 = vld [vmem:[#allocation3 + $0x2f] sm:$0xff]  ;;  %v7654_v7 = vld [vmem:[#allocation3 + $0x46] sm:$0xff] }
 0x47b   : > { %v5598_v25 = vpop.f32.mrf.mxu0  ;;  %v8071_v56 = vld [vmem:[#allocation3 + $0x3f] sm:$0xff] }
 0x47c   : > { %v16903_v38 = vadd.f32 %v5897_v29, %v5598_v25  ;;  %v5900_v41 = vpop.f32.mrf.mxu1  ;;  %v8068_v29 = vld [vmem:[#allocation3 + $0x27] sm:$0xff] }
 0x47d   : > { %v13618_v32 = vpop.f32.mrf.mxu0  ;;  %v8111_v4 = vpack.c.bf16 %v8069_v9, %v8068_v29  ;;  %v14218_v29 = vld [vmem:[%s18348_s5 + $0x100] sm:$0xff]  }
 0x47e   : > { %v13673_v47 = vpop.f32.mrf.mxu1  ;;  %13888 = vmatmul.mubr.msk.bf16.gmra.mxu1 %vm5181_vm3, %v7293_v43  ;;  %v7650_v43 = vld [vmem:[#allocation3 + $0x26] sm:$0xff] }
 0x47f   : > { %v5601_v46 = vpop.f32.mrf.mxu0  ;;  %13891 = vmatprep.mubr.msk.bf16.mxu1 %vm5181_vm3, %v7294_v62  ;;  %v7653_v62 = vld [vmem:[#allocation3 + $0x3e] sm:$0xff] }
 0x480   : > { %v16907_v5 = vadd.f32 %v5900_v41, %v5601_v46  ;;  %v5913_v37 = vpop.f32.mrf.mxu1  ;;  %v8070_v41 = vld [vmem:[#allocation3 + $0x37] sm:$0xff]  ;;  %v7693_v46 = vpack.c.bf16 %v7651_v40, %v7650_v43  ;;  %v8079_v40 = vld [vmem:[#allocation3 + $0x7f] sm:$0xff] }
 0x481   : > { %v13621_v13 = vpop.f32.mrf.mxu0  ;;  %13836 = vmatmul.mubr.msk.bf16.gmra.mxu0 %vm5181_vm3, %v6875_v61  ;;  %v8112_v32 = vpack.c.bf16 %v8071_v56, %v8070_v41  ;;  %v7652_v61 = vld [vmem:[#allocation3 + $0x36] sm:$0xff] }
 0x482   : > { %v13674_v3 = vpop.f32.mrf.mxu1  ;;  %13839 = vmatprep.mubr.msk.bf16.mxu0 %vm5181_vm3, %v6876_v51  ;;  %v7694_v51 = vpack.c.bf16 %v7653_v62, %v7652_v61  ;;  %v7659_v61 = vld [vmem:[#allocation3 + $0x6e] sm:$0xff] }
 0x483   : > { %v5614_v34 = vpop.f32.mrf.mxu0  ;;  %v8073_v3 = vld [vmem:[#allocation3 + $0x4f] sm:$0xff] }
 0x484   : > { %v5916_v22 = vpop.f32.mrf.mxu1 }
 0x485   : > { %v13622_v33 = vpop.f32.mrf.mxu0 }
 0x486   : > { %v13677_v24 = vpop.f32.mrf.mxu1  ;;  %13892 = vmatmul.mubr.msk.bf16.gmra.mxu1 %vm5181_vm3, %v7295_v2  ;;  %v14217_v2 = vld [vmem:[%s18348_s5 + $0x108] sm:$0xff]   ;;  %v8113_v33 = vpack.c.bf16 %v8073_v3, %v8072_v11 }
 0x487   : > { %v5617_v1 = vpop.f32.mrf.mxu0  ;;  %13955 = vmatprep.mubr.msk.bf16.mxu1 %vm5181_vm3, %v8110_v54  ;;  %v8074_v54 = vld [vmem:[#allocation3 + $0x57] sm:$0xff] }
 0x488   : > { %v5929_v18 = vpop.f32.mrf.mxu1  ;;  %v8114_v1 = vpack.c.bf16 %v8075_v8, %v8074_v54  ;;  %v7660_v8 = vld [vmem:[#allocation3 + $0x76] sm:$0xff]  ;;  %v8080_v54 = vld [vmem:[#allocation3 + $0x87] sm:$0xff] }
 0x489   : > { %v13625_v27 = vpop.f32.mrf.mxu0  ;;  %13840 = vmatmul.mubr.msk.bf16.gmra.mxu0 %vm5181_vm3, %v6877_v30  ;;  %v7657_v30 = vld [vmem:[#allocation3 + $0x5e] sm:$0xff] }
 0x48a   : > { %v16914_v48 = vadd.f32 %v13677_v24, %v13625_v27  ;;  %v13678_v15 = vpop.f32.mrf.mxu1  ;;  %13903 = vmatprep.mubr.msk.bf16.mxu0 %vm5181_vm3, %v7692_v39  ;;  %v7655_v24 = vld [vmem:[#allocation3 + $0x4e] sm:$0xff]  ;;  %v7656_v27 = vld [vmem:[#allocation3 + $0x56] sm:$0xff] }
 0x48b   : > { %v5630_v52 = vpop.f32.mrf.mxu0  ;;  %v7695_v39 = vpack.c.bf16 %v7655_v24, %v7654_v7  ;;  %v7696_v56 = vpack.c.bf16 %v7657_v30, %v7656_v27  ;;  %v8081_v7 = vld [vmem:[#allocation3 + $0x8f] sm:$0xff]  ;;  %v8082_v27 = vld [vmem:[#allocation3 + $0x97] sm:$0xff] }
 0x48c   : > { %v5932_v25 = vpop.f32.mrf.mxu1 }
 0x48d   : > { %v13626_v28 = vpop.f32.mrf.mxu0  ;;  %v8076_v25 = vld [vmem:[#allocation3 + $0x67] sm:$0xff] }
 0x48e   : > { %v16917_v59 = vadd.f32 %v13678_v15, %v13626_v28  ;;  %v13681_v47 = vpop.f32.mrf.mxu1  ;;  %13956 = vmatmul.mubr.msk.bf16.vlgmr.msra.gmra.mxu1 %vm5181_vm3, %v8111_v4  ;;  %v8077_v4 = vld [vmem:[#allocation3 + $0x6f] sm:$0xff] }
 0x48f   : > { %v5633_v0 = vpop.f32.mrf.mxu0  ;;  %13959 = vmatprep.mubr.msk.bf16.mxu1 %vm5181_vm3, %v8112_v32 }
 0x490   : > { %v5945_v37 = vpop.f32.mrf.mxu1  ;;  %v8078_v0 = vld [vmem:[#allocation3 + $0x77] sm:$0xff] }
 0x491   : > { %v13629_v13 = vpop.f32.mrf.mxu0  ;;  %13904 = vmatmul.mubr.msk.bf16.vlgmr.msra.gmra.mxu0 %vm5181_vm3, %v7693_v46  ;;  %v7658_v46 = vld [vmem:[#allocation3 + $0x66] sm:$0xff] }
 0x492   : > { %v16925_v60 = vadd.f32 %v13681_v47, %v13629_v13  ;;  %v13682_v34 = vpop.f32.mrf.mxu1  ;;  %13907 = vmatprep.mubr.msk.bf16.mxu0 %vm5181_vm3, %v7694_v51  ;;  %14000 = vmatpush3.bf16.msra.mxu0 %v16836_v21  ;;  %v8115_v47 = vpack.c.bf16 %v8077_v4, %v8076_v25  ;;  %v7661_v51 = vld [vmem:[#allocation3 + $0x7e] sm:$0xff] }
 0x493   : > { %v5646_v22 = vpop.f32.mrf.mxu0  ;;  %14001 = vmatprep.subr.bf16.mxu0 %v14216_v26  ;;  %v7665_v4 = vld [vmem:[#allocation3 + $0x9e] sm:$0xff] }
 0x494   : > { %v16932_v14 = vadd.f32 %v5945_v37, %v5646_v22  ;;  %v5948_v19 = vpop.f32.mrf.mxu1  ;;  %v8116_v37 = vpack.c.bf16 %v8079_v40, %v8078_v0 }
 0x495   : > { %v13630_v44 = vpop.f32.mrf.mxu0 }
 0x496   : > { %v16934_v57 = vadd.f32 %v13682_v34, %v13630_v44  ;;  %v13685_v21 = vpop.f32.mrf.mxu1  ;;  %13960 = vmatmul.mubr.msk.bf16.gmra.mxu1 %vm5181_vm3, %v8113_v33  ;;  %14002 = vmatpush3.bf16.msra.mxu0 %v14216_v26  ;;  %v7697_v34 = vpack.c.bf16 %v7659_v61, %v7658_v46 }
 0x497   : > { %v5649_v18 = vpop.f32.mrf.mxu0  ;;  %13963 = vmatprep.mubr.msk.bf16.mxu1 %vm5181_vm3, %v8114_v1  ;;  %14003 = vmatprep.subr.bf16.mxu0 %v14217_v2  ;;  %v8083_v1 = vld [vmem:[#allocation3 + $0x9f] sm:$0xff] }
 0x498   : > { %v16941_v9 = vadd.f32 %v5948_v19, %v5649_v18  ;;  %v5961_v15 = vpop.f32.mrf.mxu1  ;;  %v7698_v19 = vpack.c.bf16 %v7661_v51, %v7660_v8  ;;  %v8118_v25 = vpack.c.bf16 %v8083_v1, %v8082_v27  ;;  %v7668_v27 = vld [vmem:[#allocation3 + $0xb6] sm:$0xff] }
 0x499   : > { %v13633_v52 = vpop.f32.mrf.mxu0  ;;  %13908 = vmatmul.mubr.msk.bf16.gmra.mxu0 %vm5181_vm3, %v7695_v39  ;;  %v8117_v39 = vpack.c.bf16 %v8081_v7, %v8080_v54  ;;  %v7666_v54 = vld [vmem:[#allocation3 + $0xa6] sm:$0xff]  ;;  %v7667_v7 = vld [vmem:[#allocation3 + $0xae] sm:$0xff] }
 0x49a   : > { %v16944_v41 = vadd.f32 %v13685_v21, %v13633_v52  ;;  %v13686_v43 = vpop.f32.mrf.mxu1  ;;  %13911 = vmatprep.mubr.msk.bf16.mxu0 %vm5181_vm3, %v7696_v56  ;;  %14004 = vmatpush3.bf16.msra.mxu0 %v14217_v2 }
 0x49b   : > { %v5662_v28 = vpop.f32.mrf.mxu0  ;;  %14005 = vmatprep.subr.bf16.mxu0 %v14218_v29 }
 0x49c   : > { %v16947_v32 = vadd.f32 %v5961_v15, %v5662_v28  ;;  %v5964_v62 = vpop.f32.mrf.mxu1  ;;  %v7663_v15 = vld [vmem:[#allocation3 + $0x8e] sm:$0xff] }
 0x49d   : > { %v13634_v26 = vpop.f32.mrf.mxu0 }
 0x49e   : > { %v16949_v13 = vadd.f32 %v13686_v43, %v13634_v26  ;;  %v13749_v11 = vpop.f32.mrf.mxu1  ;;  %13964 = vmatmul.mubr.msk.bf16.gmra.mxu1 %vm5181_vm3, %v8115_v47  ;;  %14006 = vmatpush3.bf16.msra.mxu0 %v14218_v29  ;;  %v7662_v29 = vld [vmem:[#allocation3 + $0x86] sm:$0xff] }
 0x49f   : > { %v5665_v3 = vpop.f32.mrf.mxu0  ;;  %13967 = vmatprep.mubr.msk.bf16.mxu1 %vm5181_vm3, %v8116_v37  ;;  %v8085_v37 = vld [vmem:[#allocation3 + $0xaf] sm:$0xff] }
 0x4a0   : > { %v16953_v22 = vadd.f32 %v5964_v62, %v5665_v3  ;;  %v6593_v2 = vpop.f32.mrf.mxu1  ;;  %v7664_v62 = vld [vmem:[#allocation3 + $0x96] sm:$0xff]  ;;  %v8087_v3 = vld [vmem:[#allocation3 + $0xbf] sm:$0xff] }
 0x4a1   : > { %v13697_v33 = vpop.f32.mrf.mxu0  ;;  %13912 = vmatmul.mubr.msk.bf16.gmra.mxu0 %vm5181_vm3, %v7697_v34  ;;  %v7700_v46 = vpack.c.bf16 %v7665_v4, %v7664_v62 }
 0x4a2   : > { %v6352_v24 = vadd.f32 %v13697_v33, %v16842_v63  ;;  %v13750_v44 = vpop.f32.mrf.mxu1  ;;  %13915 = vmatprep.mubr.msk.bf16.mxu0 %vm5181_vm3, %v7698_v19  ;;  %v8086_v33 = vld [vmem:[#allocation3 + $0xb7] sm:$0xff] }
 0x4a3   : > { %v6175_v30 = vpop.f32.mrf.mxu0  ;;  %v8120_v1 = vpack.c.bf16 %v8087_v3, %v8086_v33 }
 0x4a4   : > { %v6350_v21 = vadd.f32 %v6175_v30, %v16845_v50  ;;  %v6596_v18 = vpop.f32.mrf.mxu1  ;;  %v16959_v56 = vadd.f32 %v13749_v11, %v6352_v24  ;;  %v7699_v50 = vpack.c.bf16 %v7663_v15, %v7662_v29  ;;  %v7669_v30 = vld [vmem:[#allocation3 + $0xbe] sm:$0xff] }
 0x4a5   : > { %v13698_v52 = vpop.f32.mrf.mxu0 }
 0x4a6   : > { %v6353_v43 = vadd.f32 %v13698_v52, %v16847_v58  ;;  %v13753_v63 = vpop.f32.mrf.mxu1  ;;  %13968 = vmatmul.mubr.msk.bf16.gmra.mxu1 %vm5181_vm3, %v8117_v39  ;;  %v16963_v40 = vadd.f32 %v6593_v2, %v6350_v21  ;;  %v8084_v58 = vld [vmem:[#allocation3 + $0xa7] sm:$0xff]  ;;  %v7702_v52 = vpack.c.bf16 %v7669_v30, %v7668_v27 }
 0x4a7   : > { %v6178_v28 = vpop.f32.mrf.mxu0  ;;  %13971 = vmatprep.mubr.msk.bf16.mxu1 %vm5181_vm3, %v8118_v25  ;;  %v8119_v19 = vpack.c.bf16 %v8085_v37, %v8084_v58  ;;  %v7671_v58 = vld [vmem:[#allocation3 + $0xce] sm:$0xff] }
 0x4a8   : > { %v6351_v47 = vadd.f32 %v6178_v28, %v16851_v10  ;;  %v6609_v0 = vpop.f32.mrf.mxu1  ;;  %v16967_v61 = vadd.f32 %v13750_v44, %v6353_v43  ;;  %v8089_v43 = vld [vmem:[#allocation3 + $0xcf] sm:$0xff]  ;;  %v8091_v28 = vld [vmem:[#allocation3 + $0xdf] sm:$0xff] }
 0x4a9   : > { %v13701_v26 = vpop.f32.mrf.mxu0  ;;  %13916 = vmatmul.mubr.msk.bf16.gmra.mxu0 %vm5181_vm3, %v7699_v50 }
 0x4aa   : > { %v6356_v51 = vadd.f32 %v13701_v26, %v16854_v16  ;;  %v13754_v11 = vpop.f32.mrf.mxu1  ;;  %13919 = vmatprep.mubr.msk.bf16.mxu0 %vm5181_vm3, %v7700_v46  ;;  %v16972_v34 = vadd.f32 %v6596_v18, %v6351_v47  ;;  %v8090_v46 = vld [vmem:[#allocation3 + $0xd7] sm:$0xff]  ;;  %v7670_v26 = vld [vmem:[#allocation3 + $0xc6] sm:$0xff] }
 0x4ab   : > { %v6191_v8 = vpop.f32.mrf.mxu0 }
 0x4ac   : > { %v6354_v10 = vadd.f32 %v6191_v8, %v16857_v6  ;;  %v6612_v2 = vpop.f32.mrf.mxu1  ;;  %v16975_v24 = vadd.f32 %v13753_v63, %v6356_v51  ;;  %v7701_v6 = vpack.c.bf16 %v7667_v7, %v7666_v54  ;;  %v8122_v51 = vpack.c.bf16 %v8091_v28, %v8090_v46  ;;  %v8096_v46 = vld [vmem:[#allocation3 + $0x107] sm:$0xff] }
 0x4ad   : > { %v13702_v44 = vpop.f32.mrf.mxu0 }
 0x4ae   : > { %v6357_v16 = vadd.f32 %v13702_v44, %v16859_v49  ;;  %v13757_v21 = vpop.f32.mrf.mxu1  ;;  %13972 = vmatmul.mubr.msk.bf16.gmra.mxu1 %vm5181_vm3, %v8119_v19  ;;  %v16979_v18 = vadd.f32 %v6609_v0, %v6354_v10  ;;  %v8088_v49 = vld [vmem:[#allocation3 + $0xc7] sm:$0xff]  ;;  %v7672_v19 = vld [vmem:[#allocation3 + $0xd6] sm:$0xff] }
 0x4af   : > { %v6194_v39 = vpop.f32.mrf.mxu0  ;;  %13975 = vmatprep.mubr.msk.bf16.mxu1 %vm5181_vm3, %v8120_v1  ;;  %v8092_v44 = vld [vmem:[#allocation3 + $0xe7] sm:$0xff]  ;;  %v8093_v1 = vld [vmem:[#allocation3 + $0xef] sm:$0xff] }
 0x4b0   : > { %v6355_v29 = vadd.f32 %v6194_v39, %v16863_v12  ;;  %v6625_v15 = vpop.f32.mrf.mxu1  ;;  %v16983_v25 = vadd.f32 %v13754_v11, %v6357_v16  ;;  %v8121_v12 = vpack.c.bf16 %v8089_v43, %v8088_v49  ;;  %v7673_v11 = vld [vmem:[#allocation3 + $0xde] sm:$0xff]  ;;  %v8123_v27 = vpack.c.bf16 %v8093_v1, %v8092_v44 }
 0x4b1   : > { %v13705_v4 = vpop.f32.mrf.mxu0  ;;  %13920 = vmatmul.mubr.msk.bf16.gmra.mxu0 %vm5181_vm3, %v7701_v6  ;;  %v7704_v54 = vpack.c.bf16 %v7673_v11, %v7672_v19  ;;  %v8095_v16 = vld [vmem:[#allocation3 + $0xff] sm:$0xff] }
 0x4b2   : > { %v13758_v63 = vpop.f32.mrf.mxu1  ;;  %13923 = vmatprep.mubr.msk.bf16.mxu0 %vm5181_vm3, %v7702_v52  ;;  %v16987_v50 = vadd.f32 %v6612_v2, %v6355_v29  ;;  %v7703_v2 = vpack.c.bf16 %v7671_v58, %v7670_v26  ;;  %v8094_v29 = vld [vmem:[#allocation3 + $0xf7] sm:$0xff]  ;;  %v7675_v52 = vld [vmem:[#allocation3 + $0xee] sm:$0xff]  ;;  %v7678_v19 = vld [vmem:[#allocation3 + $0x106] sm:$0xff] }
 0x4b3   : > { %v6207_v62 = vpop.f32.mrf.mxu0  ;;  %v8124_v4 = vpack.c.bf16 %v8095_v16, %v8094_v29  ;;  %v7677_v49 = vld [vmem:[#allocation3 + $0xfe] sm:$0xff]  ;;  %v8097_v26 = vld [vmem:[#allocation3 + $0x10f] sm:$0xff] }
 0x4b4   : > { %v6358_v47 = vadd.f32 %v6207_v62, %v16867_v35  ;;  %v6628_v0 = vpop.f32.mrf.mxu1  ;;  %v7676_v62 = vld [vmem:[#allocation3 + $0xf6] sm:$0xff]  ;;  %v7681_v44 = vld [vmem:[#allocation3 + $0x11e] sm:$0xff] }
 0x4b5   : > { %v13706_v37 = vpop.f32.mrf.mxu0 }
 0x4b6   : > { %v13761_v3 = vpop.f32.mrf.mxu1  ;;  %13976 = vmatmul.mubr.msk.bf16.gmra.mxu1 %vm5181_vm3, %v8121_v12  ;;  %v16991_v8 = vadd.f32 %v6625_v15, %v6358_v47  ;;  %v7674_v15 = vld [vmem:[#allocation3 + $0xe6] sm:$0xff] }
 0x4b7   : > { %v6210_v10 = vpop.f32.mrf.mxu0  ;;  %13979 = vmatprep.mubr.msk.bf16.mxu1 %vm5181_vm3, %v8122_v51  ;;  %v7705_v28 = vpack.c.bf16 %v7675_v52, %v7674_v15  ;;  %v8099_v51 = vld [vmem:[#allocation3 + $0x11f] sm:$0xff] }
 0x4b8   : > { %v6359_v35 = vadd.f32 %v6210_v10, %v16871_v17  ;;  %v6641_v33 = vpop.f32.mrf.mxu1  ;;  %v8125_v10 = vpack.c.bf16 %v8097_v26, %v8096_v46  ;;  %v7683_v46 = vld [vmem:[#allocation3 + $0x12e] sm:$0xff] }
 0x4b9   : > { %v13709_v7 = vpop.f32.mrf.mxu0  ;;  %13924 = vmatmul.mubr.msk.bf16.gmra.mxu0 %vm5181_vm3, %v7703_v2  ;;  %v8098_v2 = vld [vmem:[#allocation3 + $0x117] sm:$0xff] }
 0x4ba   : > { %v13762_v30 = vpop.f32.mrf.mxu1  ;;  %13927 = vmatprep.mubr.msk.bf16.mxu0 %vm5181_vm3, %v7704_v54  ;;  %v16997_v21 = vadd.f32 %v6628_v0, %v6359_v35  ;;  %v7706_v0 = vpack.c.bf16 %v7677_v49, %v7676_v62  ;;  %v7679_v35 = vld [vmem:[#allocation3 + $0x10e] sm:$0xff]  ;;  %v8126_v7 = vpack.c.bf16 %v8099_v51, %v8098_v2  ;;  %v7684_v2 = vld [vmem:[#allocation3 + $0x136] sm:$0xff] }
 0x4bb   : > { %v6223_v39 = vpop.f32.mrf.mxu0  ;;  %v7707_v16 = vpack.c.bf16 %v7679_v35, %v7678_v19 }
 0x4bc   : > { %v6644_v6 = vpop.f32.mrf.mxu1  ;;  %v7680_v39 = vld [vmem:[#allocation3 + $0x116] sm:$0xff] }
 0x4bd   : > { %v13710_v17 = vpop.f32.mrf.mxu0  ;;  %v7708_v29 = vpack.c.bf16 %v7681_v44, %v7680_v39 }
 0x4be   : > { %v13765_v43 = vpop.f32.mrf.mxu1  ;;  %13980 = vmatmul.mubr.msk.bf16.gmra.mxu1 %vm5181_vm3, %v8123_v27  ;;  %v8100_v17 = vld [vmem:[#allocation3 + $0x127] sm:$0xff] }
 0x4bf   : > { %v6226_v63 = vpop.f32.mrf.mxu0  ;;  %13983 = vmatprep.mubr.msk.bf16.mxu1 %vm5181_vm3, %v8124_v4  ;;  %v8101_v4 = vld [vmem:[#allocation3 + $0x12f] sm:$0xff] }
 0x4c0   : > { %v6657_v47 = vpop.f32.mrf.mxu1 }
 0x4c1   : > { %v13713_v12 = vpop.f32.mrf.mxu0  ;;  %13928 = vmatmul.mubr.msk.bf16.gmra.mxu0 %vm5181_vm3, %v7705_v28  ;;  %v8127_v47 = vpack.c.bf16 %v8101_v4, %v8100_v17  ;;  %v7687_v17 = vld [vmem:[#allocation3 + $0x14e] sm:$0xff] }
 0x4c2   : > { %v6368_v58 = vadd.f32 %v13713_v12, %v16878_v23  ;;  %v13766_v37 = vpop.f32.mrf.mxu1  ;;  %13931 = vmatprep.mubr.msk.bf16.mxu0 %vm5181_vm3, %v7706_v0  ;;  %v8102_v0 = vld [vmem:[#allocation3 + $0x137] sm:$0xff]  ;;  %v7682_v12 = vld [vmem:[#allocation3 + $0x126] sm:$0xff] }
 0x4c3   : > { %v6239_v11 = vpop.f32.mrf.mxu0 }
 0x4c4   : > { %v6660_v3 = vpop.f32.mrf.mxu1  ;;  %v17004_v33 = vadd.f32 %v13765_v43, %v6368_v58  ;;  %v8103_v43 = vld [vmem:[#allocation3 + $0x13f] sm:$0xff] }
 0x4c5   : > { %v13714_v54 = vpop.f32.mrf.mxu0 }
 0x4c6   : > { %v6369_v1 = vadd.f32 %v13714_v54, %v16881_v20  ;;  %v13769_v30 = vpop.f32.mrf.mxu1  ;;  %13984 = vmatmul.mubr.msk.bf16.gmra.mxu1 %vm5181_vm3, %v8125_v10 }
 0x4c7   : > { %v6242_v23 = vpop.f32.mrf.mxu0  ;;  %13987 = vmatprep.mubr.msk.bf16.mxu1 %vm5181_vm3, %v8126_v7 }
 0x4c8   : > { %v6367_v6 = vadd.f32 %v6242_v23, %v16885_v53  ;;  %v6673_v27 = vpop.f32.mrf.mxu1  ;;  %v17010_v15 = vadd.f32 %v13766_v37, %v6369_v1  ;;  %v8128_v37 = vpack.c.bf16 %v8103_v43, %v8102_v0  ;;  %v8105_v1 = vld [vmem:[#allocation3 + $0x14f] sm:$0xff]  ;;  %v7689_v43 = vld [vmem:[#allocation3 + $0x15e] sm:$0xff] }
 0x4c9   : > { %v13717_v52 = vpop.f32.mrf.mxu0  ;;  %13932 = vmatmul.mubr.msk.bf16.gmra.mxu0 %vm5181_vm3, %v7707_v16  ;;  %v8107_v16 = vld [vmem:[#allocation3 + $0x15f] sm:$0xff] }
 0x4ca   : > { %v6372_v20 = vadd.f32 %v13717_v52, %v16888_v45  ;;  %v13770_v49 = vpop.f32.mrf.mxu1  ;;  %13935 = vmatprep.mubr.msk.bf16.mxu0 %vm5181_vm3, %v7708_v29  ;;  %v17015_v63 = vadd.f32 %v6660_v3, %v6367_v6  ;;  %v7685_v45 = vld [vmem:[#allocation3 + $0x13e] sm:$0xff]  ;;  %v7686_v52 = vld [vmem:[#allocation3 + $0x146] sm:$0xff] }
 0x4cb   : > { %v6255_v28 = vpop.f32.mrf.mxu0  ;;  %v7710_v54 = vpack.c.bf16 %v7685_v45, %v7684_v2  ;;  %v8106_v29 = vld [vmem:[#allocation3 + $0x157] sm:$0xff]  ;;  %v8109_v45 = vld [vmem:[#allocation3 + $0x16f] sm:$0xff]  ;;  %v7690_v2 = vld [vmem:[#allocation3 + $0x166] sm:$0xff] }
 0x4cc   : > { %v6370_v53 = vadd.f32 %v6255_v28, %v16891_v31  ;;  %v17018_v62 = vpop.f32.mrf.mxu1  ;;  %v17020_v26 = vadd.f32 %v13769_v30, %v6372_v20  ;;  %v7709_v31 = vpack.c.bf16 %v7683_v46, %v7682_v12 }
 0x4cd   : > { %v13718_v58 = vpop.f32.mrf.mxu0 }
 0x4ce   : > { %v6373_v51 = vadd.f32 %v13718_v58, %v16893_v42  ;;  %v13773_v11 = vpop.f32.mrf.mxu1  ;;  %13988 = vmatmul.mubr.msk.bf16.gmra.mxu1 %vm5181_vm3, %v8127_v47  ;;  %v17024_v3 = vadd.f32 %v6673_v27, %v6370_v53  ;;  %v8104_v42 = vld [vmem:[#allocation3 + $0x147] sm:$0xff]  ;;  %v7688_v47 = vld [vmem:[#allocation3 + $0x156] sm:$0xff] }
 0x4cf   : > { %v6258_v10 = vpop.f32.mrf.mxu0  ;;  %13991 = vmatprep.mubr.msk.bf16.mxu1 %vm5181_vm3, %v8128_v37  ;;  %v8129_v27 = vpack.c.bf16 %v8105_v1, %v8104_v42  ;;  %v7712_v46 = vpack.c.bf16 %v7689_v43, %v7688_v47  ;;  %v8108_v37 = vld [vmem:[#allocation3 + $0x167] sm:$0xff] }
 0x4d0   : > { %v17028_v19 = vadd.f32 %v6258_v10, %v16897_v36  ;;  %v6689_v35 = vpop.f32.mrf.mxu1  ;;  %v17030_v7 = vadd.f32 %v13770_v49, %v6373_v51  ;;  %v8130_v49 = vpack.c.bf16 %v8107_v16, %v8106_v29  ;;  %v8489_v43 = vld [vmem:[#allocation3 + $0x40] sm:$0xff] }
 0x4d1   : > { %v13721_v44 = vpop.f32.mrf.mxu0  ;;  %13936 = vmatmul.mubr.msk.bf16.gmra.mxu0 %vm5181_vm3, %v7709_v31  ;;  %v8131_v31 = vpack.c.bf16 %v8109_v45, %v8108_v37 }
 0x4d2   : > { %v6376_v30 = vadd.f32 %v13721_v44, %v16900_v55  ;;  %v13774_v23 = vpop.f32.mrf.mxu1  ;;  %13939 = vmatprep.mubr.msk.bf16.mxu0 %vm5181_vm3, %v7710_v54  ;;  %v8485_v44 = vld [vmem:[#allocation3 + $0x20] sm:$0xff] }
 0x4d3   : > { %v6271_v39 = vpop.f32.mrf.mxu0 }
 0x4d4   : > { %v6374_v6 = vadd.f32 %v6271_v39, %v16903_v38  ;;  %v17036_v36 = vpop.f32.mrf.mxu1  ;;  %v17038_v4 = vadd.f32 %v13773_v11, %v6376_v30  ;;  %v7711_v38 = vpack.c.bf16 %v7687_v17, %v7686_v52  ;;  %v8484_v30 = vld [vmem:[#allocation3 + $0x18] sm:$0xff]  ;;  %v8486_v17 = vld [vmem:[#allocation3 + $0x28] sm:$0xff] }
 0x4d5   : > { %v13722_v20 = vpop.f32.mrf.mxu0  ;;  %v8528_v16 = vpack.c.bf16 %v8485_v44, %v8484_v30  ;;  %v8493_v44 = vld [vmem:[#allocation3 + $0x60] sm:$0xff] }
 0x4d6   : > { %v13777_v28 = vpop.f32.mrf.mxu1  ;;  %13992 = vmatmul.mubr.msk.bf16.gmra.mxu1 %vm5181_vm3, %v8129_v27  ;;  %v17041_v55 = vadd.f32 %v6689_v35, %v6374_v6  ;;  %v7691_v35 = vld [vmem:[#allocation3 + $0x16e] sm:$0xff] }
 0x4d7   : > { %v6274_v53 = vpop.f32.mrf.mxu0  ;;  %13995 = vmatprep.mubr.msk.bf16.mxu1 %vm5181_vm3, %v8130_v49  ;;  %v7713_v1 = vpack.c.bf16 %v7691_v35, %v7690_v2  ;;  %v8490_v2 = vld [vmem:[#allocation3 + $0x48] sm:$0xff] }
 0x4d8   : > { %v17045_v0 = vadd.f32 %v6274_v53, %v16907_v5  ;;  %v6705_v12 = vpop.f32.mrf.mxu1 }
 0x4d9   : > { %v13725_v58 = vpop.f32.mrf.mxu0  ;;  %13940 = vmatmul.mubr.msk.bf16.gmra.mxu0 %vm5181_vm3, %v7711_v38  ;;  %v8487_v38 = vld [vmem:[#allocation3 + $0x30] sm:$0xff] }
 0x4da   : > { %v13778_v51 = vpop.f32.mrf.mxu1  ;;  %13943 = vmatprep.mubr.msk.bf16.mxu0 %vm5181_vm3, %v7712_v46  ;;  %v8529_v12 = vpack.c.bf16 %v8487_v38, %v8486_v17  ;;  %v8488_v46 = vld [vmem:[#allocation3 + $0x38] sm:$0xff]  ;;  %v8497_v38 = vld [vmem:[#allocation3 + $0x80] sm:$0xff] }
 0x4db   : > { %v6287_v11 = vpop.f32.mrf.mxu0  ;;  %v8530_v37 = vpack.c.bf16 %v8489_v43, %v8488_v46  ;;  %v8495_v46 = vld [vmem:[#allocation3 + $0x70] sm:$0xff] }
 0x4dc   : > { %v6708_v10 = vpop.f32.mrf.mxu1 }
 0x4dd   : > { %v13726_v54 = vpop.f32.mrf.mxu0 }
 0x4de   : > { %v13781_v42 = vpop.f32.mrf.mxu1  ;;  %13996 = vmatmul.mubr.msk.bf16.gmra.mxu1 %vm5181_vm3, %v8131_v31 }
 0x4df   : > { %v6290_v5 = vpop.f32.mrf.mxu0 }
 0x4e0   : > { %v6721_v23 = vpop.f32.mrf.mxu1 }
 0x4e1   : > { %v13729_v39 = vpop.f32.mrf.mxu0  ;;  %13944 = vmatmul.mubr.msk.bf16.gmra.mxu0 %vm5181_vm3, %v7713_v1  ;;  %v8491_v1 = vld [vmem:[#allocation3 + $0x50] sm:$0xff] }
 0x4e2   : > { %v6384_v6 = vadd.f32 %v13729_v39, %v16914_v48  ;;  %v13782_v27 = vpop.f32.mrf.mxu1  ;;  %14007 = vmatprep.mubr.msk.bf16.mxu0 %vm5181_vm3, %v8528_v16  ;;  %v8531_v23 = vpack.c.bf16 %v8491_v1, %v8490_v2  ;;  %v8492_v16 = vld [vmem:[#allocation3 + $0x58] sm:$0xff] }
 0x4e3   : > { %v6303_v29 = vpop.f32.mrf.mxu0 }
 0x4e4   : > { %v6724_v52 = vpop.f32.mrf.mxu1  ;;  %v17053_v20 = vadd.f32 %v13781_v42, %v6384_v6  ;;  %v8532_v6 = vpack.c.bf16 %v8493_v44, %v8492_v16 }
 0x4e5   : > { %v13730_v49 = vpop.f32.mrf.mxu0 }
 0x4e6   : > { %v6385_v28 = vadd.f32 %v13730_v49, %v16917_v59  ;;  %v13785_v53 = vpop.f32.mrf.mxu1 }
 0x4e7   : > { %v6306_v47 = vpop.f32.mrf.mxu0 }
 0x4e8   : > { %v6737_v58 = vpop.f32.mrf.mxu1  ;;  %v17056_v48 = vadd.f32 %v13782_v27, %v6385_v28  ;;  %v8494_v28 = vld [vmem:[#allocation3 + $0x68] sm:$0xff] }
 0x4e9   : > { %v13733_v45 = vpop.f32.mrf.mxu0  ;;  %14008 = vmatmul.mubr.msk.bf16.vlgmr.msra.gmra.mxu0 %vm5181_vm3, %v8529_v12 }
 0x4ea   : > { %v6388_v51 = vadd.f32 %v13733_v45, %v16925_v60  ;;  %v13786_v11 = vpop.f32.mrf.mxu1  ;;  %14011 = vmatprep.mubr.msk.bf16.mxu0 %vm5181_vm3, %v8530_v37  ;;  %v8533_v37 = vpack.c.bf16 %v8495_v46, %v8494_v28  ;;  %v8496_v45 = vld [vmem:[#allocation3 + $0x78] sm:$0xff]  ;;  %v8502_v46 = vld [vmem:[#allocation3 + $0xa8] sm:$0xff] }
 0x4eb   : > { %v6319_v10 = vpop.f32.mrf.mxu0 }
 0x4ec   : > { %v6386_v59 = vadd.f32 %v6319_v10, %v16932_v14  ;;  %v17062_v31 = vpop.f32.mrf.mxu1  ;;  %v17064_v35 = vadd.f32 %v13785_v53, %v6388_v51 }
 0x4ed   : > { %v13734_v54 = vpop.f32.mrf.mxu0 }
 0x4ee   : > { %v6389_v42 = vadd.f32 %v13734_v54, %v16934_v57  ;;  %v13789_v5 = vpop.f32.mrf.mxu1  ;;  %v17067_v30 = vadd.f32 %v6737_v58, %v6386_v59 }
 0x4ef   : > { %v6322_v60 = vpop.f32.mrf.mxu0 }
 0x4f0   : > { %v17070_v39 = vadd.f32 %v6322_v60, %v16941_v9  ;;  %v6753_v14 = vpop.f32.mrf.mxu1  ;;  %v17072_v27 = vadd.f32 %v13786_v11, %v6389_v42  ;;  %v8534_v11 = vpack.c.bf16 %v8497_v38, %v8496_v45  ;;  %v8501_v60 = vld [vmem:[#allocation3 + $0xa0] sm:$0xff] }
 0x4f1   : > { %v13737_v29 = vpop.f32.mrf.mxu0  ;;  %14012 = vmatmul.mubr.msk.bf16.gmra.mxu0 %vm5181_vm3, %v8531_v23 }
 0x4f2   : > { %v6392_v52 = vadd.f32 %v13737_v29, %v16944_v41  ;;  %v13790_v57 = vpop.f32.mrf.mxu1  ;;  %14015 = vmatprep.mubr.msk.bf16.mxu0 %vm5181_vm3, %v8532_v6 }
 0x4f3   : > { %v6335_v17 = vpop.f32.mrf.mxu0 }
 0x4f4   : > { %v6390_v49 = vadd.f32 %v6335_v17, %v16947_v32  ;;  %v17078_v43 = vpop.f32.mrf.mxu1  ;;  %v17080_v9 = vadd.f32 %v13789_v5, %v6392_v52  ;;  %v8498_v5 = vld [vmem:[#allocation3 + $0x88] sm:$0xff]  ;;  %v8500_v52 = vld [vmem:[#allocation3 + $0x98] sm:$0xff] }
 0x4f5   : > { %v13738_v53 = vpop.f32.mrf.mxu0  ;;  %v8536_v17 = vpack.c.bf16 %v8501_v60, %v8500_v52  ;;  %v8507_v52 = vld [vmem:[#allocation3 + $0xd0] sm:$0xff] }
 0x4f6   : > { %v6393_v47 = vadd.f32 %v13738_v53, %v16949_v13  ;;  %v13853_v12 = vpop.f32.mrf.mxu1  ;;  %v17083_v58 = vadd.f32 %v6753_v14, %v6390_v49  ;;  %v8499_v14 = vld [vmem:[#allocation3 + $0x90] sm:$0xff] }
 0x4f7   : > { %v6338_v41 = vpop.f32.mrf.mxu0  ;;  %v8535_v29 = vpack.c.bf16 %v8499_v14, %v8498_v5  ;;  %v8506_v14 = vld [vmem:[#allocation3 + $0xc8] sm:$0xff] }
 0x4f8   : > { %v17086_v51 = vadd.f32 %v6338_v41, %v16953_v22  ;;  %v7429_v32 = vpop.f32.mrf.mxu1  ;;  %v17088_v10 = vadd.f32 %v13790_v57, %v6393_v47 }
 0x4f9   : > { %v13801_v59 = vpop.f32.mrf.mxu0  ;;  %14016 = vmatmul.mubr.msk.bf16.gmra.mxu0 %vm5181_vm3, %v8533_v37  ;;  %v8505_v37 = vld [vmem:[#allocation3 + $0xc0] sm:$0xff] }
 0x4fa   : > { %v7188_v2 = vadd.f32 %v13801_v59, %v16959_v56  ;;  %v13854_v13 = vpop.f32.mrf.mxu1  ;;  %14019 = vmatprep.mubr.msk.bf16.mxu0 %vm5181_vm3, %v8534_v11  ;;  %v8503_v11 = vld [vmem:[#allocation3 + $0xb0] sm:$0xff] }
 0x4fb   : > { %v7011_v54 = vpop.f32.mrf.mxu0 }
 0x4fc   : > { %v7186_v44 = vadd.f32 %v7011_v54, %v16963_v40  ;;  %v17094_v42 = vpop.f32.mrf.mxu1  ;;  %v17096_v22 = vadd.f32 %v13853_v12, %v7188_v2  ;;  %v8537_v2 = vpack.c.bf16 %v8503_v11, %v8502_v46  ;;  %v8513_v11 = vld [vmem:[#allocation3 + $0x100] sm:$0xff] }
 0x4fd   : > { %v13802_v1 = vpop.f32.mrf.mxu0 }
 0x4fe   : > { %v7189_v23 = vadd.f32 %v13802_v1, %v16967_v61  ;;  %v13857_v16 = vpop.f32.mrf.mxu1  ;;  %v17099_v6 = vadd.f32 %v7429_v32, %v7186_v44 }
 0x4ff   : > { %v7014_v56 = vpop.f32.mrf.mxu0 }
 0x500   : > { %v17102_v57 = vadd.f32 %v7014_v56, %v16972_v34  ;;  %v7445_v40 = vpop.f32.mrf.mxu1  ;;  %v17104_v49 = vadd.f32 %v13854_v13, %v7189_v23  ;;  %v8504_v13 = vld [vmem:[#allocation3 + $0xb8] sm:$0xff] }
 0x501   : > { %v13805_v28 = vpop.f32.mrf.mxu0  ;;  %14020 = vmatmul.mubr.msk.bf16.gmra.mxu0 %vm5181_vm3, %v8535_v29  ;;  %v8538_v44 = vpack.c.bf16 %v8505_v37, %v8504_v13  ;;  %v8509_v29 = vld [vmem:[#allocation3 + $0xe0] sm:$0xff] }
 0x502   : > { %v7192_v53 = vadd.f32 %v13805_v28, %v16975_v24  ;;  %v13858_v61 = vpop.f32.mrf.mxu1  ;;  %14023 = vmatprep.mubr.msk.bf16.mxu0 %vm5181_vm3, %v8536_v17  ;;  %v8539_v28 = vpack.c.bf16 %v8507_v52, %v8506_v14 }
 0x503   : > { %v7027_v38 = vpop.f32.mrf.mxu0 }
 0x504   : > { %v7190_v47 = vadd.f32 %v7027_v38, %v16979_v18  ;;  %v17110_v12 = vpop.f32.mrf.mxu1  ;;  %v17112_v34 = vadd.f32 %v13857_v16, %v7192_v53  ;;  %v8508_v53 = vld [vmem:[#allocation3 + $0xd8] sm:$0xff] }
 0x505   : > { %v13806_v41 = vpop.f32.mrf.mxu0 }
 0x506   : > { %v7193_v45 = vadd.f32 %v13806_v41, %v16983_v25  ;;  %v13861_v32 = vpop.f32.mrf.mxu1  ;;  %v17115_v59 = vadd.f32 %v7445_v40, %v7190_v47  ;;  %v8540_v47 = vpack.c.bf16 %v8509_v29, %v8508_v53  ;;  %v8514_v29 = vld [vmem:[#allocation3 + $0x108] sm:$0xff] }
 0x507   : > { %v7030_v24 = vpop.f32.mrf.mxu0 }
 0x508   : > { %v17118_v54 = vadd.f32 %v7030_v24, %v16987_v50  ;;  %v7461_v18 = vpop.f32.mrf.mxu1  ;;  %v17120_v5 = vadd.f32 %v13858_v61, %v7193_v45  ;;  %v8510_v45 = vld [vmem:[#allocation3 + $0xe8] sm:$0xff] }
 0x509   : > { %v13809_v1 = vpop.f32.mrf.mxu0  ;;  %14024 = vmatmul.mubr.msk.bf16.gmra.mxu0 %vm5181_vm3, %v8537_v2  ;;  %v8511_v2 = vld [vmem:[#allocation3 + $0xf0] sm:$0xff] }
 0x50a   : > { %v13862_v60 = vpop.f32.mrf.mxu1  ;;  %14027 = vmatprep.mubr.msk.bf16.mxu0 %vm5181_vm3, %v8538_v44  ;;  %v8512_v44 = vld [vmem:[#allocation3 + $0xf8] sm:$0xff] }
 0x50b   : > { %v7043_v25 = vpop.f32.mrf.mxu0  ;;  %v8542_v1 = vpack.c.bf16 %v8513_v11, %v8512_v44  ;;  %v8518_v44 = vld [vmem:[#allocation3 + $0x128] sm:$0xff] }
 0x50c   : > { %v7194_v23 = vadd.f32 %v7043_v25, %v16991_v8  ;;  %v17125_v16 = vpop.f32.mrf.mxu1 }
 0x50d   : > { %v13810_v56 = vpop.f32.mrf.mxu0 }
 0x50e   : > { %v13865_v50 = vpop.f32.mrf.mxu1  ;;  %v17127_v40 = vadd.f32 %v7461_v18, %v7194_v23  ;;  %v8541_v18 = vpack.c.bf16 %v8511_v2, %v8510_v45 }
 0x50f   : > { %v7046_v17 = vpop.f32.mrf.mxu0 }
 0x510   : > { %v17130_v61 = vadd.f32 %v7046_v17, %v16997_v21  ;;  %v7477_v38 = vpop.f32.mrf.mxu1  ;;  %v8517_v17 = vld [vmem:[#allocation3 + $0x120] sm:$0xff] }
 0x511   : > { %v13813_v46 = vpop.f32.mrf.mxu0  ;;  %14028 = vmatmul.mubr.msk.bf16.gmra.mxu0 %vm5181_vm3, %v8539_v28  ;;  %v8515_v38 = vld [vmem:[#allocation3 + $0x110] sm:$0xff] }
 0x512   : > { %v13866_v8 = vpop.f32.mrf.mxu1  ;;  %14031 = vmatprep.mubr.msk.bf16.mxu0 %vm5181_vm3, %v8540_v47  ;;  %v8543_v46 = vpack.c.bf16 %v8515_v38, %v8514_v29 }
 0x513   : > { %v7059_v41 = vpop.f32.mrf.mxu0  ;;  %v8516_v8 = vld [vmem:[#allocation3 + $0x118] sm:$0xff] }
 0x514   : > { %v7480_v37 = vpop.f32.mrf.mxu1 }
 0x515   : > { %v13814_v32 = vpop.f32.mrf.mxu0  ;;  %v8544_v37 = vpack.c.bf16 %v8517_v17, %v8516_v8 }
 0x516   : > { %v13869_v24 = vpop.f32.mrf.mxu1 }
 0x517   : > { %v7062_v13 = vpop.f32.mrf.mxu0 }
 0x518   : > { %v7493_v21 = vpop.f32.mrf.mxu1 }
 0x519   : > { %v13817_v60 = vpop.f32.mrf.mxu0  ;;  %14032 = vmatmul.mubr.msk.bf16.gmra.mxu0 %vm5181_vm3, %v8541_v18 }
 0x51a   : > { %v7204_v25 = vadd.f32 %v13817_v60, %v17004_v33  ;;  %v13870_v23 = vpop.f32.mrf.mxu1  ;;  %14035 = vmatprep.mubr.msk.bf16.mxu0 %vm5181_vm3, %v8542_v1  ;;  %v8521_v1 = vld [vmem:[#allocation3 + $0x140] sm:$0xff] }
 0x51b   : > { %v7075_v14 = vpop.f32.mrf.mxu0 }
 0x51c   : > { %v7496_v56 = vpop.f32.mrf.mxu1  ;;  %v17137_v50 = vadd.f32 %v13869_v24, %v7204_v25 }
 0x51d   : > { %v13818_v52 = vpop.f32.mrf.mxu0 }
 0x51e   : > { %v7205_v28 = vadd.f32 %v13818_v52, %v17010_v15  ;;  %v13873_v53 = vpop.f32.mrf.mxu1  ;;  %v8520_v52 = vld [vmem:[#allocation3 + $0x138] sm:$0xff] }
 0x51f   : > { %v7078_v47 = vpop.f32.mrf.mxu0 }
 0x520   : > { %v7203_v41 = vadd.f32 %v7078_v47, %v17015_v63  ;;  %v7509_v33 = vpop.f32.mrf.mxu1  ;;  %v17141_v45 = vadd.f32 %v13870_v23, %v7205_v28  ;;  %v8519_v23 = vld [vmem:[#allocation3 + $0x130] sm:$0xff]  ;;  %v8546_v28 = vpack.c.bf16 %v8521_v1, %v8520_v52 }
 0x521   : > { %v13821_v32 = vpop.f32.mrf.mxu0  ;;  %14036 = vmatmul.mubr.msk.bf16.gmra.mxu0 %vm5181_vm3, %v8543_v46  ;;  %v8545_v29 = vpack.c.bf16 %v8519_v23, %v8518_v44  ;;  %v8527_v52 = vld [vmem:[#allocation3 + $0x170] sm:$0xff] }
 0x522   : > { %v7208_v11 = vadd.f32 %v13821_v32, %v17020_v26  ;;  %v13874_v24 = vpop.f32.mrf.mxu1  ;;  %14039 = vmatprep.mubr.msk.bf16.mxu0 %vm5181_vm3, %v8544_v37  ;;  %v17146_v15 = vadd.f32 %v7496_v56, %v7203_v41  ;;  %v6789_v26 = vadd.f32 %v17018_v62, %v17028_v19  ;;  %v8522_v41 = vld [vmem:[#allocation3 + $0x148] sm:$0xff]  ;;  %v8525_v32 = vld [vmem:[#allocation3 + $0x160] sm:$0xff] }
 0x523   : > { %v7091_v2 = vpop.f32.mrf.mxu0 }
 0x524   : > { %v7206_v13 = vadd.f32 %v7091_v2, %v17024_v3  ;;  %v7512_v18 = vpop.f32.mrf.mxu1  ;;  %v17149_v63 = vadd.f32 %v13873_v53, %v7208_v11  ;;  %v8523_v2 = vld [vmem:[#allocation3 + $0x150] sm:$0xff] }
 0x525   : > { %v13822_v21 = vpop.f32.mrf.mxu0  ;;  %v8547_v44 = vpack.c.bf16 %v8523_v2, %v8522_v41 }
 0x526   : > { %v7209_v60 = vadd.f32 %v13822_v21, %v17030_v7  ;;  %v13877_v25 = vpop.f32.mrf.mxu1  ;;  %v17154_v14 = vadd.f32 %v7509_v33, %v7206_v13 }
 0x527   : > { %v7094_v56 = vpop.f32.mrf.mxu0 }
 0x528   : > { %v7207_v17 = vadd.f32 %v7094_v56, %v6789_v26  ;;  %v7525_v3 = vpop.f32.mrf.mxu1  ;;  %v17156_v38 = vadd.f32 %v13874_v24, %v7209_v60  ;;  %v6793_v24 = vadd.f32 %v17036_v36, %v17045_v0  ;;  %v8526_v36 = vld [vmem:[#allocation3 + $0x168] sm:$0xff] }
 0x529   : > { %v13825_v53 = vpop.f32.mrf.mxu0  ;;  %14040 = vmatmul.mubr.msk.bf16.gmra.mxu0 %vm5181_vm3, %v8545_v29 }
 0x52a   : > { %v7212_v7 = vadd.f32 %v13825_v53, %v17038_v4  ;;  %v13878_v47 = vpop.f32.mrf.mxu1  ;;  %14043 = vmatprep.mubr.msk.bf16.mxu0 %vm5181_vm3, %v8546_v28  ;;  %v17161_v62 = vadd.f32 %v7512_v18, %v7207_v17  ;;  %v8524_v18 = vld [vmem:[#allocation3 + $0x158] sm:$0xff] }
 0x52b   : > { %v7107_v19 = vpop.f32.mrf.mxu0  ;;  %v8548_v60 = vpack.c.bf16 %v8525_v32, %v8524_v18 }
 0x52c   : > { %v7210_v46 = vadd.f32 %v7107_v19, %v17041_v55  ;;  %v7528_v8 = vpop.f32.mrf.mxu1  ;;  %v17164_v33 = vadd.f32 %v13877_v25, %v7212_v7 }
 0x52d   : > { %v13826_v37 = vpop.f32.mrf.mxu0 }
 0x52e   : > { %v13881_v11 = vpop.f32.mrf.mxu1  ;;  %v17168_v4 = vadd.f32 %v7525_v3, %v7210_v46  ;;  %v8549_v3 = vpack.c.bf16 %v8527_v52, %v8526_v36 }
 0x52f   : > { %v7110_v13 = vpop.f32.mrf.mxu0 }
 0x530   : > { %v7211_v21 = vadd.f32 %v7110_v13, %v6793_v24  ;;  %v7541_v1 = vpop.f32.mrf.mxu1 }
 0x531   : > { %v13829_v55 = vpop.f32.mrf.mxu0  ;;  %14044 = vmatmul.mubr.msk.bf16.gmra.mxu0 %vm5181_vm3, %v8547_v44 }
 0x532   : > { %v13882_v25 = vpop.f32.mrf.mxu1  ;;  %14047 = vmatprep.mubr.msk.bf16.mxu0 %vm5181_vm3, %v8548_v60  ;;  %v17172_v26 = vadd.f32 %v7528_v8, %v7211_v21 }
 0x533   : > { %v7123_v23 = vpop.f32.mrf.mxu0 }
 0x534   : > { %v7544_v56 = vpop.f32.mrf.mxu1 }
 0x535   : > { %v13830_v0 = vpop.f32.mrf.mxu0 }
 0x536   : > { %v13885_v29 = vpop.f32.mrf.mxu1 }
 0x537   : > { %v7126_v17 = vpop.f32.mrf.mxu0 }
 0x538   : > { %v7557_v28 = vpop.f32.mrf.mxu1 }
 0x539   : > { %v13833_v53 = vpop.f32.mrf.mxu0  ;;  %14048 = vmatmul.mubr.msk.bf16.gmra.mxu0 %vm5181_vm3, %v8549_v3 }
 0x53a   : > { %v7220_v7 = vadd.f32 %v13833_v53, %v17053_v20  ;;  %v13886_v47 = vpop.f32.mrf.mxu1 }
 0x53b   : > { %v7139_v19 = vpop.f32.mrf.mxu0 }
 0x53c   : > { %v7560_v46 = vpop.f32.mrf.mxu1  ;;  %v17176_v41 = vadd.f32 %v13885_v29, %v7220_v7 }
 0x53d   : > { %v13834_v8 = vpop.f32.mrf.mxu0 }
 0x53e   : > { %v7221_v37 = vadd.f32 %v13834_v8, %v17056_v48  ;;  %v13889_v32 = vpop.f32.mrf.mxu1  ;;  %v6805_v48 = vadd.f32 %v17062_v31, %v17070_v39 }
 0x53f   : > { %v7142_v11 = vpop.f32.mrf.mxu0 }
 0x540   : > { %v7573_v24 = vpop.f32.mrf.mxu1  ;;  %v17179_v2 = vadd.f32 %v13886_v47, %v7221_v37  ;;  %v6809_v47 = vadd.f32 %v17078_v43, %v17086_v51 }
 0x541   : > { %v13837_v13 = vpop.f32.mrf.mxu0 }
 0x542   : > { %v7224_v44 = vadd.f32 %v13837_v13, %v17064_v35  ;;  %v13890_v18 = vpop.f32.mrf.mxu1 }
 0x543   : > { %v7155_v21 = vpop.f32.mrf.mxu0 }
 0x544   : > { %v7222_v20 = vadd.f32 %v7155_v21, %v17067_v30  ;;  %v7576_v1 = vpop.f32.mrf.mxu1  ;;  %v17183_v60 = vadd.f32 %v13889_v32, %v7224_v44  ;;  %v7605_v44 = vadd.f32 %v17094_v42, %v17102_v57  ;;  %v7609_v42 = vadd.f32 %v17110_v12, %v17118_v54 }
 0x545   : > { %v13838_v55 = vpop.f32.mrf.mxu0 }
 0x546   : > { %v7225_v25 = vadd.f32 %v13838_v55, %v17072_v27  ;;  %v13893_v23 = vpop.f32.mrf.mxu1  ;;  %v17188_v56 = vadd.f32 %v7573_v24, %v7222_v20 }
 0x547   : > { %v7158_v36 = vpop.f32.mrf.mxu0 }
 0x548   : > { %v7223_v0 = vadd.f32 %v7158_v36, %v6805_v48  ;;  %v7589_v29 = vpop.f32.mrf.mxu1  ;;  %v17190_v35 = vadd.f32 %v13890_v18, %v7225_v25 }
 0x549   : > { %v13841_v52 = vpop.f32.mrf.mxu0 }
 0x54a   : > { %v7228_v30 = vadd.f32 %v13841_v52, %v17080_v9  ;;  %v13894_v17 = vpop.f32.mrf.mxu1  ;;  %v17193_v3 = vadd.f32 %v7576_v1, %v7223_v0 }
 0x54b   : > { %v7171_v28 = vpop.f32.mrf.mxu0 }
 0x54c   : > { %v7226_v27 = vadd.f32 %v7171_v28, %v17083_v58  ;;  %v17196_v53 = vadd.f32 %v13893_v23, %v7228_v30  ;;  %v7592_v7 = vpop.f32.mrf.mxu1 }
 0x54d   : > { %v13842_v31 = vpop.f32.mrf.mxu0 }
 0x54e   : > { %v7229_v39 = vadd.f32 %v13842_v31, %v17088_v10  ;;  %v17201_v19 = vadd.f32 %v7589_v29, %v7226_v27  ;;  %v17205_v37 = vpop.f32.mrf.mxu1 }
 0x54f   : > { %v7174_v46 = vpop.f32.mrf.mxu0 }
 0x550   : > { %v7227_v8 = vadd.f32 %v7174_v46, %v6809_v47  ;;  %v17203_v9 = vadd.f32 %v13894_v17, %v7229_v39  ;;  %v17215_v13 = vpop.f32.mrf.mxu1 }
 0x551   : > { %v13905_v32 = vpop.f32.mrf.mxu0 }
 0x552   : > { %v17208_v58 = vadd.f32 %v13905_v32, %v17096_v22  ;;  %v17210_v11 = vadd.f32 %v7592_v7, %v7227_v8  ;;  %v17224_v22 = vpop.f32.mrf.mxu1 }
 0x553   : > { %v7847_v24 = vpop.f32.mrf.mxu0 }
 0x554   : > { %v17213_v10 = vadd.f32 %v7847_v24, %v17099_v6  ;;  %v17232_v25 = vpop.f32.mrf.mxu1 }
 0x555   : > { %v13906_v43 = vpop.f32.mrf.mxu0 }
 0x556   : > { %v17218_v51 = vadd.f32 %v13906_v43, %v17104_v49  ;;  %v17241_v36 = vpop.f32.mrf.mxu1 }
 0x557   : > { %v7850_v18 = vpop.f32.mrf.mxu0 }
 0x558   : > { %v17222_v21 = vadd.f32 %v7850_v18, %v7605_v44 }
 0x559   : > { %v13909_v20 = vpop.f32.mrf.mxu0 }
 0x55a   : > { %v17227_v1 = vadd.f32 %v13909_v20, %v17112_v34 }
 0x55b   : > { %v7863_v6 = vpop.f32.mrf.mxu0 }
 0x55c   : > { %v17230_v55 = vadd.f32 %v7863_v6, %v17115_v59  ;;  %v17246_v59 = vpop.f32.mrf.mxu1 }
 0x55d   : > { %v13910_v49 = vpop.f32.mrf.mxu0 }
 0x55e   : > { %v17235_v23 = vadd.f32 %v13910_v49, %v17120_v5  ;;  %v7613_v5 = vadd.f32 %v17125_v16, %v17130_v61  ;;  %v17252_v12 = vpop.f32.mrf.mxu1 }
 0x55f   : > { %v7866_v57 = vpop.f32.mrf.mxu0 }
 0x560   : > { %v17239_v48 = vadd.f32 %v7866_v57, %v7609_v42  ;;  %v17254_v27 = vpop.f32.mrf.mxu1 }
 0x561   : > { %v13913_v34 = vpop.f32.mrf.mxu0 }
 0x562   : > { %v13965_v39 = vpop.f32.mrf.mxu1 }
 0x563   : > { %v7879_v0 = vpop.f32.mrf.mxu0 }
 0x564   : > { %v17244_v29 = vadd.f32 %v7879_v0, %v17127_v40  ;;  %v17259_v8 = vpop.f32.mrf.mxu1 }
 0x565   : > { %v13914_v52 = vpop.f32.mrf.mxu0 }
 0x566   : > { %v13966_v43 = vpop.f32.mrf.mxu1 }
 0x567   : > { %v7882_v30 = vpop.f32.mrf.mxu0 }
 0x568   : > { %v17250_v17 = vadd.f32 %v7882_v30, %v7613_v5  ;;  %v17273_v6 = vpop.f32.mrf.mxu1 }
 0x569   : > { %v13917_v54 = vpop.f32.mrf.mxu0 }
 0x56b   : > { %v7895_v28 = vpop.f32.mrf.mxu0 }
 0x56d   : > { %v13918_v7 = vpop.f32.mrf.mxu0 }
 0x56f   : > { %v7898_v31 = vpop.f32.mrf.mxu0 }
 0x571   : > { %v13921_v40 = vpop.f32.mrf.mxu0 }
 0x572   : > { %v17257_v47 = vadd.f32 %v13921_v40, %v17137_v50 }
 0x573   : > { %v7911_v46 = vpop.f32.mrf.mxu0 }
 0x575   : > { %v13922_v16 = vpop.f32.mrf.mxu0 }
 0x576   : > { %v17262_v61 = vadd.f32 %v13922_v16, %v17141_v45 }
 0x577   : > { %v7914_v32 = vpop.f32.mrf.mxu0 }
 0x578   : > { %v17265_v24 = vadd.f32 %v7914_v32, %v17146_v15  ;;  %v13969_v15 = vpop.f32.mrf.mxu1 }
 0x579   : > { %v13925_v44 = vpop.f32.mrf.mxu0 }
 0x57a   : > { %v17268_v18 = vadd.f32 %v13925_v44, %v17149_v63 }
 0x57b   : > { %v7927_v20 = vpop.f32.mrf.mxu0 }
 0x57c   : > { %v17271_v50 = vadd.f32 %v7927_v20, %v17154_v14  ;;  %v8313_v14 = vpop.f32.mrf.mxu1 }
 0x57d   : > { %v13926_v49 = vpop.f32.mrf.mxu0 }
 0x57e   : > { %v17276_v42 = vadd.f32 %v13926_v49, %v17156_v38  ;;  %v13970_v38 = vpop.f32.mrf.mxu1 }
 0x57f   : > { %v7930_v45 = vpop.f32.mrf.mxu0 }
 0x580   : > { %v17279_v57 = vadd.f32 %v7930_v45, %v17161_v62  ;;  %v8316_v62 = vpop.f32.mrf.mxu1 }
 0x581   : > { %v13929_v34 = vpop.f32.mrf.mxu0 }
 0x582   : > { %v17282_v0 = vadd.f32 %v13929_v34, %v17164_v33  ;;  %v17290_v40 = vpop.f32.mrf.mxu1 }
 0x583   : > { %v7943_v63 = vpop.f32.mrf.mxu0 }
 0x584   : > { %v17285_v52 = vadd.f32 %v7943_v63, %v17168_v4  ;;  %v8329_v16 = vpop.f32.mrf.mxu1 }
 0x585   : > { %v13930_v5 = vpop.f32.mrf.mxu0 }
 0x586   : > { %v17298_v44 = vpop.f32.mrf.mxu1 }
 0x587   : > { %v7946_v30 = vpop.f32.mrf.mxu0 }
 0x588   : > { %v17288_v54 = vadd.f32 %v7946_v30, %v17172_v26  ;;  %v17309_v34 = vpop.f32.mrf.mxu1 }
 0x589   : > { %v13933_v28 = vpop.f32.mrf.mxu0 }
 0x58b   : > { %v7959_v7 = vpop.f32.mrf.mxu0 }
 0x58d   : > { %v13934_v31 = vpop.f32.mrf.mxu0 }
 0x58f   : > { %v7962_v39 = vpop.f32.mrf.mxu0 }
 0x591   : > { %v13937_v33 = vpop.f32.mrf.mxu0 }
 0x592   : > { %v17293_v46 = vadd.f32 %v13937_v33, %v17176_v41  ;;  %v14219_v41 = vld [vmem:[%s18350_s7 + $0x78] sm:$0xff]   ;;  %v8442_v33 = vadd.f32 %v17205_v37, %v17208_v58  ;;  %v8440_v37 = vadd.f32 %v17215_v13, %v17213_v10 }
 0x593   : > { %v7975_v4 = vpop.f32.mrf.mxu0  ;;  %13053 = vmatprep.subr.bf16.mxu1 %v14219_v41 }
 0x595   : > { %v13938_v32 = vpop.f32.mrf.mxu0 }
 0x596   : > { %v17296_v43 = vadd.f32 %v13938_v32, %v17179_v2 }
 0x597   : > { %v7978_v26 = vpop.f32.mrf.mxu0 }
 0x599   : > { %v13941_v20 = vpop.f32.mrf.mxu0 }
 0x59a   : > { %v17301_v49 = vadd.f32 %v13941_v20, %v17183_v60  ;;  %v14220_v60 = vld [vmem:[%s18350_s7 + $0x38] sm:$0xff]   ;;  %v8443_v20 = vadd.f32 %v17224_v22, %v17218_v51  ;;  %v8446_v51 = vadd.f32 %v17241_v36, %v17227_v1  ;;  %v8447_v1 = vadd.f32 %v17252_v12, %v17235_v23  ;;  %v14223_v36 = vld [vmem:[%s18350_s7 + $0x68] sm:$0xff]  }
 0x59b   : > { %v7991_v45 = vpop.f32.mrf.mxu0  ;;  %13054 = vmatpush3.bf16.msra.mxu1 %v14220_v60  ;;  %v8445_v23 = vadd.f32 %v17254_v27, %v17239_v48 }
 0x59c   : > { %v17304_v15 = vadd.f32 %v7991_v45, %v17188_v56  ;;  %v17320_v56 = vpop.f32.mrf.mxu1 }
 0x59d   : > { %v13942_v63 = vpop.f32.mrf.mxu0 }
 0x59e   : > { %v17312_v2 = vadd.f32 %v13942_v63, %v17190_v35  ;;  %v17328_v7 = vpop.f32.mrf.mxu1 }
 0x59f   : > { %v7994_v14 = vpop.f32.mrf.mxu0 }
 0x5a0   : > { %v17315_v5 = vadd.f32 %v7994_v14, %v17193_v3  ;;  %v17344_v4 = vpop.f32.mrf.mxu1 }
 0x5a1   : > { %v13945_v30 = vpop.f32.mrf.mxu0 }
 0x5a2   : > { %v17323_v38 = vadd.f32 %v13945_v30, %v17196_v53  ;;  %v14221_v53 = vld [vmem:[%s18350_s7 + $0x70] sm:$0xff]   ;;  %v17356_v45 = vpop.f32.mrf.mxu1  ;;  %v8441_v30 = vadd.f32 %v17232_v25, %v17222_v21  ;;  %v8444_v21 = vadd.f32 %v17246_v59, %v17230_v55 }
 0x5a3   : > { %v8007_v28 = vpop.f32.mrf.mxu0  ;;  %13055 = vmatprep.subr.bf16.mxu1 %v14221_v53 }
 0x5a4   : > { %v17326_v35 = vadd.f32 %v8007_v28, %v17201_v19  ;;  %v14222_v19 = vld [vmem:[%s18350_s7 + $0x30] sm:$0xff]   ;;  %v17365_v22 = vpop.f32.mrf.mxu1 }
 0x5a5   : > { %v13946_v62 = vpop.f32.mrf.mxu0  ;;  %13056 = vmatpush3.bf16.msra.mxu1 %v14222_v19 }
 0x5a6   : > { %v17331_v3 = vadd.f32 %v13946_v62, %v17203_v9  ;;  %v17349_v9 = vld [vmem:[%s18349_s6] ss:$0 sm:$0xff]  ;;  %13057 = vmatprep.subr.bf16.mxu1 %v14223_v36 }
 0x5a7   : > { %v8010_v31 = vpop.f32.mrf.mxu0 }
 0x5a8   : > { %v17334_v39 = vadd.f32 %v8010_v31, %v17210_v11 }
 0x5a9   : > { %v14009_v16 = vpop.f32.mrf.mxu0 }
 0x5aa   : > { %v8860_v11 = vadd.f32 %v14009_v16, %v8442_v33 }
 0x5ab   : > { %v8683_v58 = vpop.f32.mrf.mxu0 }
 0x5ac   : > { %v8911_v32 = vadd.f32 %v17349_v9, %v8860_v11  ;;  %v8858_v26 = vadd.f32 %v8683_v58, %v8440_v37  ;;  %v14224_v58 = vld [vmem:[%s18350_s7 + $0x28] sm:$0xff]  }
 0x5ad   : > { %v14010_v41 = vpop.f32.mrf.mxu0  ;;  %13058 = vmatpush3.bf16.msra.mxu1 %v14224_v58 }
 0x5ae   : > { %v8955_v63 = vmax.f32 %v8911_v32, 0.0  ;;  %v8909_v14 = vadd.f32 %v17349_v9, %v8858_v26  ;;  %v8861_v60 = vadd.f32 %v14010_v41, %v8443_v20  ;;  %v17381_v32 = vpop.f32.mrf.mxu1 }
 0x5af   : > { %v8686_v10 = vpop.f32.mrf.mxu0 }
 0x5b0   : > { %8999 = vst.msk [vmem:[#allocation4 + $0x10] sm:$0xff] %vm5181_vm3, %v8955_v63  ;;  %v8953_v13 = vmax.f32 %v8909_v14, 0.0  ;;  %v8912_v28 = vadd.f32 %v17349_v9, %v8861_v60  ;;  %v8859_v62 = vadd.f32 %v8686_v10, %v8441_v30  ;;  %v13982_v10 = vpop.f32.mrf.mxu1 }
 0x5b1   : > { %v14013_v31 = vpop.f32.mrf.mxu0 }
 0x5b2   : > { %8997 = vst.msk [vmem:[#allocation4] sm:$0xff] %vm5181_vm3, %v8953_v13  ;;  %v8956_v33 = vmax.f32 %v8912_v28, 0.0  ;;  %v8910_v53 = vadd.f32 %v17349_v9, %v8859_v62  ;;  %v8864_v19 = vadd.f32 %v14013_v31, %v8446_v51  ;;  %v8448_v62 = vadd.f32 %v17259_v8, %v17244_v29 }
 0x5b3   : > { %v8699_v25 = vpop.f32.mrf.mxu0 }
 0x5b4   : > { %9000 = vst.msk [vmem:[#allocation4 + $0x18] sm:$0xff] %vm5181_vm3, %v8956_v33  ;;  %v8954_v16 = vmax.f32 %v8910_v53, 0.0  ;;  %v8915_v11 = vadd.f32 %v17349_v9, %v8864_v19  ;;  %v8862_v37 = vadd.f32 %v8699_v25, %v8444_v21 }
 0x5b5   : > { %v14014_v55 = vpop.f32.mrf.mxu0 }
 0x5b6   : > { %8998 = vst.msk [vmem:[#allocation4 + $0x8] sm:$0xff] %vm5181_vm3, %v8954_v16  ;;  %v8959_v59 = vmax.f32 %v8915_v11, 0.0  ;;  %v8913_v26 = vadd.f32 %v17349_v9, %v8862_v37  ;;  %v8865_v20 = vadd.f32 %v14014_v55, %v8447_v1  ;;  %v17400_v11 = vpop.f32.mrf.mxu1  ;;  %v8449_v1 = vadd.f32 %v17273_v6, %v17250_v17 }
 0x5b7   : > { %v8702_v12 = vpop.f32.mrf.mxu0  ;;  %v9099_v41 = vld [vmem:[#allocation4 + $0x16] sm:$0x1]  ;;  %v9091_v30 = vld [vmem:[#allocation4 + $0x10] sm:$0x1] }
 0x5b8   : > { %9003 = vst.msk [vmem:[#allocation4 + $0x30] sm:$0xff] %vm5181_vm3, %v8959_v59  ;;  %v8957_v63 = vmax.f32 %v8913_v26, 0.0  ;;  %v8916_v14 = vadd.f32 %v17349_v9, %v8865_v20  ;;  %v8863_v60 = vadd.f32 %v8702_v12, %v8445_v23  ;;  %v14225_v23 = vld [vmem:[%s18350_s7 + $0x60] sm:$0xff]   ;;  %v13985_v6 = vpop.f32.mrf.mxu1 }
 0x5b9   : > { %9100 = vst.msk [vmem:[#allocation5 + $0x1c] sm:$0x1] %vm9042_vm4, %v9099_v41  ;;  %v14017_v13 = vpop.f32.mrf.mxu0  ;;  %v9044_v28 = vld [vmem:[#allocation4 + $0x1] sm:$0x1]  ;;  %9092 = vst.msk [vmem:[#allocation5 + $0x18] sm:$0x1] %vm9042_vm4, %v9091_v30  ;;  %13059 = vmatprep.subr.bf16.mxu1 %v14225_v23  ;;  %v8457_v6 = vadd.f32 %v17309_v34, %v17265_v24  ;;  %v8460_v24 = vadd.f32 %v17328_v7, %v17271_v50 }
 0x5ba   : > { %9001 = vst.msk [vmem:[#allocation4 + $0x20] sm:$0xff] %vm5181_vm3, %v8957_v63  ;;  %v8960_v48 = vmax.f32 %v8916_v14, 0.0  ;;  %v8914_v27 = vadd.f32 %v17349_v9, %v8863_v60  ;;  %9046 = vrot.lane.b32.xlu0 %v9044_v28, %s14442_s28  ;;  %v9041_v51 = vld [vmem:[#allocation4] sm:$0x1]  ;;  %v9051_v31 = vld [vmem:[#allocation4 + $0x2] sm:$0x1]  ;;  %v8377_v28 = vpop.f32.mrf.mxu1 }
 0x5bb   : > { %v8715_v33 = vpop.f32.mrf.mxu0  ;;  %9043 = vst.msk [vmem:[#allocation5] sm:$0x1] %vm9042_vm4, %v9041_v51  ;;  %9052 = vst.msk [vmem:[#allocation5 + $0x4] sm:$0x1] %vm9042_vm4, %v9051_v31  ;;  %v9067_v53 = vld [vmem:[#allocation4 + $0x6] sm:$0x1] }
 0x5bc   : > { %9004 = vst.msk [vmem:[#allocation4 + $0x38] sm:$0xff] %vm5181_vm3, %v8960_v48  ;;  %v8958_v19 = vmax.f32 %v8914_v27, 0.0  ;;  %v8866_v21 = vadd.f32 %v8715_v33, %v8448_v62  ;;  %v9059_v25 = vld [vmem:[#allocation4 + $0x4] sm:$0x1]  ;;  %v9115_v16 = vld [vmem:[#allocation4 + $0x1a] sm:$0x1] }
 0x5bd   : > { %9068 = vst.msk [vmem:[#allocation5 + $0xc] sm:$0x1] %vm9042_vm4, %v9067_v53  ;;  %v14018_v37 = vpop.f32.mrf.mxu0  ;;  %v9053_v29 = vld [vmem:[#allocation4 + $0x3] sm:$0x1]  ;;  %9060 = vst.msk [vmem:[#allocation5 + $0x8] sm:$0x1] %vm9042_vm4, %v9059_v25 }
 0x5be   : > { %9116 = vst.msk [vmem:[#allocation5 + $0x24] sm:$0x1] %vm9042_vm4, %v9115_v16  ;;  %v8917_v8 = vadd.f32 %v17349_v9, %v8866_v21  ;;  %9055 = vrot.lane.b32.xlu0 %v9053_v29, %s14442_s28  ;;  %v9083_v36 = vld [vmem:[#allocation4 + $0xe] sm:$0x1]  ;;  %v9075_v58 = vld [vmem:[#allocation4 + $0xc] sm:$0x1]  ;;  %v8458_v21 = vadd.f32 %v17290_v40, %v17257_v47  ;;  %v13986_v37 = vpop.f32.mrf.mxu1 }
 0x5bf   : > { %9002 = vst.msk [vmem:[#allocation4 + $0x28] sm:$0xff] %vm5181_vm3, %v8958_v19  ;;  %v8718_v55 = vpop.f32.mrf.mxu0  ;;  %v9107_v59 = vld [vmem:[#allocation4 + $0x18] sm:$0x1]  ;;  %v14226_v12 = vld [vmem:[%s18350_s7 + $0x20] sm:$0xff]   ;;  %v9123_v17 = vld [vmem:[#allocation4 + $0x1c] sm:$0x1] }
 0x5c0   : > { %9084 = vst.msk [vmem:[#allocation5 + $0x14] sm:$0x1] %vm9042_vm4, %v9083_v36  ;;  %9076 = vst.msk [vmem:[#allocation5 + $0x10] sm:$0x1] %vm9042_vm4, %v9075_v58  ;;  %v8961_v26 = vmax.f32 %v8917_v8, 0.0  ;;  %v8867_v20 = vadd.f32 %v8718_v55, %v8449_v1  ;;  %13060 = vmatpush3.bf16.msra.mxu1 %v14226_v12  ;;  %v14227_v25 = vld [vmem:[%s18350_s7 + $0x58] sm:$0xff]   ;;  %v8459_v55 = vadd.f32 %v17298_v44, %v17262_v61 }
 0x5c1   : > { %9108 = vst.msk [vmem:[#allocation5 + $0x20] sm:$0x1] %vm9042_vm4, %v9107_v59  ;;  %v14021_v41 = vpop.f32.mrf.mxu0  ;;  %9124 = vst.msk [vmem:[#allocation5 + $0x28] sm:$0x1] %vm9042_vm4, %v9123_v17  ;;  %v9131_v14 = vld [vmem:[#allocation4 + $0x22] sm:$0x1]  ;;  %13061 = vmatprep.subr.bf16.mxu1 %v14227_v25  ;;  %v8466_v25 = vadd.f32 %v17365_v22, %v17282_v0 }
 0x5c2   : > { %9005 = vst.msk [vmem:[#allocation4 + $0x40] sm:$0xff] %vm5181_vm3, %v8961_v26  ;;  %v8918_v63 = vadd.f32 %v17349_v9, %v8867_v20  ;;  %v9147_v10 = vld [vmem:[#allocation4 + $0x26] sm:$0x1]  ;;  %v9139_v13 = vld [vmem:[#allocation4 + $0x24] sm:$0x1]  ;;  %v14228_v59 = vld [vmem:[%s18350_s7 + $0x18] sm:$0xff]   ;;  %v8380_v26 = vpop.f32.mrf.mxu1 }
 0x5c3   : > { %v8731_v60 = vpop.f32.mrf.mxu0  ;;  %9132 = vst.msk [vmem:[#allocation5 + $0x2c] sm:$0x1] %vm9042_vm4, %v9131_v14  ;;  %9148 = vst.msk [vmem:[#allocation5 + $0x34] sm:$0x1] %vm9042_vm4, %v9147_v10  ;;  %v9179_v51 = vld [vmem:[#allocation4 + $0x32] sm:$0x1] }
 0x5c4   : > { %v8962_v30 = vmax.f32 %v8918_v63, 0.0  ;;  %9140 = vst.msk [vmem:[#allocation5 + $0x30] sm:$0x1] %vm9042_vm4, %v9139_v13  ;;  %9180 = vst.msk [vmem:[#allocation5 + $0x44] sm:$0x1] %vm9042_vm4, %v9179_v51  ;;  %13062 = vmatpush3.bf16.msra.mxu1 %v14228_v59  ;;  %v8462_v63 = vadd.f32 %v17320_v56, %v17268_v18  ;;  %v17453_v14 = vpop.f32.mrf.mxu1  ;;  %v8463_v18 = vadd.f32 %v17344_v4, %v17276_v42  ;;  %v14229_v51 = vld [vmem:[%s18350_s7 + $0x50] sm:$0xff]  }
 0x5c5   : > { %v14022_v48 = vpop.f32.mrf.mxu0  ;;  %v9171_v33 = vld [vmem:[#allocation4 + $0x30] sm:$0x1]  ;;  %v9195_v53 = vld [vmem:[#allocation4 + $0x3a] sm:$0x1]  ;;  %v9187_v19 = vld [vmem:[#allocation4 + $0x38] sm:$0x1]  ;;  %13063 = vmatprep.subr.bf16.mxu1 %v14229_v51 }
 0x5c6   : > { %v9163_v27 = vld [vmem:[#allocation4 + $0x2e] sm:$0x1]  ;;  %9006 = vst.msk [vmem:[#allocation4 + $0x48] sm:$0xff] %vm5181_vm3, %v8962_v30  ;;  %v9155_v62 = vld [vmem:[#allocation4 + $0x2c] sm:$0x1]  ;;  %v8393_v56 = vpop.f32.mrf.mxu1  ;;  %v14230_v50 = vld [vmem:[%s18350_s7 + $0x10] sm:$0xff]  }
 0x5c7   : > { %9164 = vst.msk [vmem:[#allocation5 + $0x3c] sm:$0x1] %vm9042_vm4, %v9163_v27  ;;  %v8734_v31 = vpop.f32.mrf.mxu0  ;;  %9156 = vst.msk [vmem:[#allocation5 + $0x38] sm:$0x1] %vm9042_vm4, %v9155_v62  ;;  %v9203_v16 = vld [vmem:[#allocation4 + $0x3c] sm:$0x1] }
 0x5c8   : > { %9172 = vst.msk [vmem:[#allocation5 + $0x40] sm:$0x1] %vm9042_vm4, %v9171_v33  ;;  %9196 = vst.msk [vmem:[#allocation5 + $0x4c] sm:$0x1] %vm9042_vm4, %v9195_v53  ;;  %v8461_v53 = vadd.f32 %v17356_v45, %v17279_v57  ;;  %13064 = vmatpush3.bf16.msra.mxu1 %v14230_v50 }
 0x5c9   : > { %9188 = vst.msk [vmem:[#allocation5 + $0x48] sm:$0x1] %vm9042_vm4, %v9187_v19  ;;  %v14025_v29 = vpop.f32.mrf.mxu0  ;;  %9204 = vst.msk [vmem:[#allocation5 + $0x50] sm:$0x1] %vm9042_vm4, %v9203_v16  ;;  %v9211_v1 = vld [vmem:[#allocation4 + $0x42] sm:$0x1] }
 0x5ca   : > { %v8876_v8 = vadd.f32 %v14025_v29, %v8458_v21  ;;  %v9227_v36 = vld [vmem:[#allocation4 + $0x46] sm:$0x1]  ;;  %9212 = vst.msk [vmem:[#allocation5 + $0x54] sm:$0x1] %vm9042_vm4, %v9211_v1  ;;  %v9219_v40 = vld [vmem:[#allocation4 + $0x44] sm:$0x1]  ;;  %v17476_v29 = vpop.f32.mrf.mxu1 }
 0x5cb   : > { %v8747_v47 = vpop.f32.mrf.mxu0  ;;  %9228 = vst.msk [vmem:[#allocation5 + $0x5c] sm:$0x1] %vm9042_vm4, %v9227_v36  ;;  %9220 = vst.msk [vmem:[#allocation5 + $0x58] sm:$0x1] %vm9042_vm4, %v9219_v40  ;;  %v8464_v36 = vadd.f32 %v17381_v32, %v17285_v52  ;;  %v8465_v32 = vadd.f32 %v17400_v11, %v17288_v54  ;;  %v14232_v54 = vld [vmem:[%s18350_s7 + $0x8] sm:$0xff]  }
 0x5cc   : > { %v8927_v58 = vadd.f32 %v17349_v9, %v8876_v8  ;;  %v8396_v59 = vpop.f32.mrf.mxu1 }
 0x5cd   : > { %v9235_v20 = vld [vmem:[#allocation4 + $0x48] sm:$0x1]  ;;  %v14026_v23 = vpop.f32.mrf.mxu0 }
 0x5ce   : > { %9236 = vst.msk [vmem:[#allocation5 + $0x60] sm:$0x1] %vm9042_vm4, %v9235_v20  ;;  %v8971_v12 = vmax.f32 %v8927_v58, 0.0  ;;  %v8877_v17 = vadd.f32 %v14026_v23, %v8459_v55 }
 0x5cf   : > { %v8750_v41 = vpop.f32.mrf.mxu0 }
 0x5d0   : > { %9015 = vst.msk [vmem:[#allocation4 + $0x90] sm:$0xff] %vm5181_vm3, %v8971_v12  ;;  %v8928_v61 = vadd.f32 %v17349_v9, %v8877_v17  ;;  %v8875_v44 = vadd.f32 %v8750_v41, %v8457_v6 }
 0x5d1   : > { %v14029_v60 = vpop.f32.mrf.mxu0 }
 0x5d2   : > { %v8972_v30 = vmax.f32 %v8928_v61, 0.0  ;;  %v8926_v10 = vadd.f32 %v17349_v9, %v8875_v44  ;;  %v8880_v13 = vadd.f32 %v14029_v60, %v8462_v63  ;;  %v14231_v63 = vld [vmem:[%s18350_s7 + $0x48] sm:$0xff]   ;;  %v17503_v60 = vpop.f32.mrf.mxu1 }
 0x5d3   : > { %v8763_v34 = vpop.f32.mrf.mxu0  ;;  %13065 = vmatprep.subr.bf16.mxu1 %v14231_v63 }
 0x5d4   : > { %9016 = vst.msk [vmem:[#allocation4 + $0x98] sm:$0xff] %vm5181_vm3, %v8972_v30  ;;  %v8970_v28 = vmax.f32 %v8926_v10, 0.0  ;;  %v8931_v48 = vadd.f32 %v17349_v9, %v8880_v13  ;;  %v8878_v27 = vadd.f32 %v8763_v34, %v8460_v24  ;;  %13066 = vmatpush3.bf16.msra.mxu1 %v14232_v54  ;;  %v8409_v51 = vpop.f32.mrf.mxu1  ;;  %v14238_v54 = vld [vmem:[%s18350_s7 + $0x1b0] sm:$0xff]  }
 0x5d5   : > { %v14030_v62 = vpop.f32.mrf.mxu0 }
 0x5d6   : > { %9014 = vst.msk [vmem:[#allocation4 + $0x88] sm:$0xff] %vm5181_vm3, %v8970_v28  ;;  %v8975_v7 = vmax.f32 %v8931_v48, 0.0  ;;  %v8929_v31 = vadd.f32 %v17349_v9, %v8878_v27  ;;  %v8881_v33 = vadd.f32 %v14030_v62, %v8463_v18 }
 0x5d7   : > { %v8766_v42 = vpop.f32.mrf.mxu0  ;;  %v9277_v16 = vld [vmem:[#allocation4 + $0x96] sm:$0x1]  ;;  %v9269_v37 = vld [vmem:[#allocation4 + $0x94] sm:$0x1] }
 0x5d8   : > { %9019 = vst.msk [vmem:[#allocation4 + $0xb0] sm:$0xff] %vm5181_vm3, %v8975_v7  ;;  %v8973_v4 = vmax.f32 %v8929_v31, 0.0  ;;  %v8932_v19 = vadd.f32 %v17349_v9, %v8881_v33  ;;  %v8879_v21 = vadd.f32 %v8766_v42, %v8461_v53 }
 0x5d9   : > { %v14033_v8 = vpop.f32.mrf.mxu0  ;;  %9278 = vst.msk [vmem:[#allocation5 + $0x15] sm:$0x1] %vm9042_vm4, %v9277_v16  ;;  %9270 = vst.msk [vmem:[#allocation5 + $0x11] sm:$0x1] %vm9042_vm4, %v9269_v37 }
 0x5da   : > { %9017 = vst.msk [vmem:[#allocation4 + $0xa0] sm:$0xff] %vm5181_vm3, %v8973_v4  ;;  %v8976_v57 = vmax.f32 %v8932_v19, 0.0  ;;  %v8930_v45 = vadd.f32 %v17349_v9, %v8879_v21  ;;  %v8884_v1 = vadd.f32 %v14033_v8, %v8466_v25  ;;  %v8474_v4 = vadd.f32 %v17453_v14, %v17293_v46  ;;  %v14233_v19 = vld [vmem:[%s18350_s7 + $0x1f8] sm:$0xff]   ;;  %v13994_v25 = vpop.f32.mrf.mxu1 }
 0x5db   : > { %v8779_v0 = vpop.f32.mrf.mxu0  ;;  %v9293_v22 = vld [vmem:[#allocation4 + $0x9e] sm:$0x1]  ;;  %v9285_v55 = vld [vmem:[#allocation4 + $0x98] sm:$0x1]  ;;  %13119 = vmatprep.subr.bf16.mxu0 %v14233_v19  ;;  %v8479_v63 = vadd.f32 %v13994_v25, %v17312_v2  ;;  %v9069_v19 = vld [vmem:[#allocation4 + $0xb] sm:$0x1] }
 0x5dc   : > { %9020 = vst.msk [vmem:[#allocation4 + $0xb8] sm:$0xff] %vm5181_vm3, %v8976_v57  ;;  %v8974_v47 = vmax.f32 %v8930_v45, 0.0  ;;  %v8935_v40 = vadd.f32 %v17349_v9, %v8884_v1  ;;  %v8882_v58 = vadd.f32 %v8779_v0, %v8464_v36  ;;  %v14234_v46 = vld [vmem:[%s18350_s7 + $0x1b8] sm:$0xff]   ;;  %v8475_v36 = vadd.f32 %v17476_v29, %v17296_v43  ;;  %v14235_v0 = vld [vmem:[%s18350_s7 + $0x40] sm:$0xff]  }
 0x5dd   : > { %9294 = vst.msk [vmem:[#allocation5 + $0x1d] sm:$0x1] %vm9042_vm4, %v9293_v22  ;;  %v14034_v26 = vpop.f32.mrf.mxu0  ;;  %v9239_v20 = vld [vmem:[#allocation4 + $0x89] sm:$0x1]  ;;  %9286 = vst.msk [vmem:[#allocation5 + $0x19] sm:$0x1] %vm9042_vm4, %v9285_v55  ;;  %13120 = vmatpush3.bf16.msra.mxu0 %v14234_v46  ;;  %13067 = vmatprep.subr.bf16.mxu1 %v14235_v0 }
 0x5de   : > { %9018 = vst.msk [vmem:[#allocation4 + $0xa8] sm:$0xff] %vm5181_vm3, %v8974_v47  ;;  %v8979_v23 = vmax.f32 %v8935_v40, 0.0  ;;  %v8933_v52 = vadd.f32 %v17349_v9, %v8882_v58  ;;  %9241 = vrot.lane.b32.xlu1 %v9239_v20, %s14442_s28  ;;  %v9237_v12 = vld [vmem:[#allocation4 + $0x88] sm:$0x1]  ;;  %v9245_v17 = vld [vmem:[#allocation4 + $0x8a] sm:$0x1]  ;;  %v8412_v47 = vpop.f32.mrf.mxu1 }
 0x5df   : > { %v8782_v6 = vpop.f32.mrf.mxu0  ;;  %9238 = vst.msk [vmem:[#allocation5 + $0x1] sm:$0x1] %vm9042_vm4, %v9237_v12  ;;  %9246 = vst.msk [vmem:[#allocation5 + $0x5] sm:$0x1] %vm9042_vm4, %v9245_v17  ;;  %v9261_v41 = vld [vmem:[#allocation4 + $0x8e] sm:$0x1] }
 0x5e0   : > { %9023 = vst.msk [vmem:[#allocation4 + $0xd0] sm:$0xff] %vm5181_vm3, %v8979_v23  ;;  %v8977_v61 = vmax.f32 %v8933_v52, 0.0  ;;  %v8883_v44 = vadd.f32 %v8782_v6, %v8465_v32  ;;  %v9253_v11 = vld [vmem:[#allocation4 + $0x8c] sm:$0x1]  ;;  %v9247_v10 = vld [vmem:[#allocation4 + $0x8b] sm:$0x1]  ;;  %v8478_v23 = vadd.f32 %v17503_v60, %v17301_v49  ;;  %v13997_v52 = vpop.f32.mrf.mxu1  ;;  %v8476_v6 = vadd.f32 %v8409_v51, %v17304_v15 }
 0x5e1   : > { %9262 = vst.msk [vmem:[#allocation5 + $0xd] sm:$0x1] %vm9042_vm4, %v9261_v41  ;;  %v14037_v30 = vpop.f32.mrf.mxu0  ;;  %9254 = vst.msk [vmem:[#allocation5 + $0x9] sm:$0x1] %vm9042_vm4, %v9253_v11  ;;  %v9309_v13 = vld [vmem:[#allocation4 + $0xa2] sm:$0x1] }
 0x5e2   : > { %9021 = vst.msk [vmem:[#allocation4 + $0xc0] sm:$0xff] %vm5181_vm3, %v8977_v61  ;;  %v8934_v24 = vadd.f32 %v17349_v9, %v8883_v44  ;;  %9249 = vrot.lane.b32.xlu1 %v9247_v10, %s14442_s28  ;;  %v9301_v34 = vld [vmem:[#allocation4 + $0xa0] sm:$0x1]  ;;  %v9317_v28 = vld [vmem:[#allocation4 + $0xa4] sm:$0x1]  ;;  %v14237_v49 = vld [vmem:[%s18350_s7 + $0x1f0] sm:$0xff]   ;;  %v8425_v11 = vpop.f32.mrf.mxu1 }
 0x5e3   : > { %9310 = vst.msk [vmem:[#allocation5 + $0x25] sm:$0x1] %vm9042_vm4, %v9309_v13  ;;  %v8795_v48 = vpop.f32.mrf.mxu0  ;;  %9302 = vst.msk [vmem:[#allocation5 + $0x21] sm:$0x1] %vm9042_vm4, %v9301_v34  ;;  %v9357_v27 = vld [vmem:[#allocation4 + $0xb6] sm:$0x1]  ;;  %v8477_v13 = vadd.f32 %v8412_v47, %v17315_v5  ;;  %13121 = vmatprep.subr.bf16.mxu0 %v14237_v49 }
 0x5e4   : > { %9318 = vst.msk [vmem:[#allocation5 + $0x29] sm:$0x1] %vm9042_vm4, %v9317_v28  ;;  %v8978_v18 = vmax.f32 %v8934_v24, 0.0  ;;  %9358 = vst.msk [vmem:[#allocation5 + $0x3d] sm:$0x1] %vm9042_vm4, %v9357_v27  ;;  %v14236_v22 = vld [vmem:[%s18350_s7] sm:$0xff]   ;;  %13122 = vmatpush3.bf16.msra.mxu0 %v14238_v54  ;;  %v13998_v51 = vpop.f32.mrf.mxu1 }
 0x5e5   : > { %v9349_v56 = vld [vmem:[#allocation4 + $0xb4] sm:$0x1]  ;;  %v9373_v62 = vld [vmem:[#allocation4 + $0xba] sm:$0x1]  ;;  %v14038_v50 = vpop.f32.mrf.mxu0  ;;  %v9325_v7 = vld [vmem:[#allocation4 + $0xaa] sm:$0x1]  ;;  %13068 = vmatpush3.bf16.msra.mxu1 %v14236_v22 }
 0x5e6   : > { %9350 = vst.msk [vmem:[#allocation5 + $0x39] sm:$0x1] %vm9042_vm4, %v9349_v56  ;;  %9374 = vst.msk [vmem:[#allocation5 + $0x45] sm:$0x1] %vm9042_vm4, %v9373_v62  ;;  %v9341_v53 = vld [vmem:[#allocation4 + $0xae] sm:$0x1] }
 0x5e7   : > { %9022 = vst.msk [vmem:[#allocation4 + $0xc8] sm:$0xff] %vm5181_vm3, %v8978_v18  ;;  %v9429_v31 = vld [vmem:[#allocation4 + $0xd0] sm:$0x1]  ;;  %v8798_v33 = vpop.f32.mrf.mxu0  ;;  %v9333_v42 = vld [vmem:[#allocation4 + $0xac] sm:$0x1]  ;;  %v8482_v18 = vadd.f32 %v13997_v52, %v17323_v38  ;;  %v14240_v5 = vld [vmem:[%s18350_s7 + $0xf8] sm:$0xff]  }
 0x5e8   : > { %9326 = vst.msk [vmem:[#allocation5 + $0x2d] sm:$0x1] %vm9042_vm4, %v9325_v7  ;;  %9430 = vst.msk [vmem:[#allocation5 + $0x61] sm:$0x1] %vm9042_vm4, %v9429_v31  ;;  %v9365_v21 = vld [vmem:[#allocation4 + $0xb8] sm:$0x1]  ;;  %13075 = vmatprep.subr.bf16.mxu1 %v14240_v5 }
 0x5e9   : > { %9342 = vst.msk [vmem:[#allocation5 + $0x35] sm:$0x1] %vm9042_vm4, %v9341_v53  ;;  %9334 = vst.msk [vmem:[#allocation5 + $0x31] sm:$0x1] %vm9042_vm4, %v9333_v42  ;;  %v14041_v16 = vpop.f32.mrf.mxu0  ;;  %v9389_v8 = vld [vmem:[#allocation4 + $0xc2] sm:$0x1]  ;;  %v8480_v42 = vadd.f32 %v8425_v11, %v17326_v35  ;;  %v8483_v35 = vadd.f32 %v13998_v51, %v17331_v3 }
 0x5ea   : > { %9366 = vst.msk [vmem:[#allocation5 + $0x41] sm:$0x1] %vm9042_vm4, %v9365_v21  ;;  %v8892_v37 = vadd.f32 %v14041_v16, %v8474_v4  ;;  %v9381_v57 = vld [vmem:[#allocation4 + $0xc0] sm:$0x1]  ;;  %9390 = vst.msk [vmem:[#allocation5 + $0x4d] sm:$0x1] %vm9042_vm4, %v9389_v8 }
 0x5eb   : > { %v8811_v45 = vpop.f32.mrf.mxu0  ;;  %9382 = vst.msk [vmem:[#allocation5 + $0x49] sm:$0x1] %vm9042_vm4, %v9381_v57  ;;  %v9397_v14 = vld [vmem:[#allocation4 + $0xc4] sm:$0x1]  ;;  %v9061_v21 = vld [vmem:[#allocation4 + $0x5] sm:$0x1]  ;;  %v8428_v57 = vpop.f32.mrf.mxu1 }
 0x5ec   : > { %v8943_v1 = vadd.f32 %v17349_v9, %v8892_v37  ;;  %9398 = vst.msk [vmem:[#allocation5 + $0x51] sm:$0x1] %vm9042_vm4, %v9397_v14  ;;  %v8481_v0 = vadd.f32 %v8428_v57, %v17334_v39  ;;  %v9263_v47 = vld [vmem:[#allocation4 + $0x93] sm:$0x1]  ;;  %v14252_v49 = vld [vmem:[%s18350_s7 + $0x1e0] sm:$0xff]  }
 0x5ed   : > { %v14042_v40 = vpop.f32.mrf.mxu0  ;;  %v9279_v11 = vld [vmem:[#allocation4 + $0x97] sm:$0x1]  ;;  %v9311_v57 = vld [vmem:[#allocation4 + $0xa3] sm:$0x1] }
 0x5ee   : > { %v8987_v58 = vmax.f32 %v8943_v1, 0.0  ;;  %v8893_v55 = vadd.f32 %v14042_v40, %v8475_v36  ;;  %v9405_v59 = vld [vmem:[#allocation4 + $0xca] sm:$0x1]  ;;  %v9421_v26 = vld [vmem:[#allocation4 + $0xce] sm:$0x1] }
 0x5ef   : > { %v8814_v20 = vpop.f32.mrf.mxu0  ;;  %9406 = vst.msk [vmem:[#allocation5 + $0x55] sm:$0x1] %vm9042_vm4, %v9405_v59  ;;  %9422 = vst.msk [vmem:[#allocation5 + $0x5d] sm:$0x1] %vm9042_vm4, %v9421_v26  ;;  %v9413_v43 = vld [vmem:[#allocation4 + $0xcc] sm:$0x1] }
 0x5f0   : > { %9031 = vst.msk [vmem:[#allocation4 + $0x110] sm:$0xff] %vm5181_vm3, %v8987_v58  ;;  %v8944_v29 = vadd.f32 %v17349_v9, %v8893_v55  ;;  %v9255_v40 = vld [vmem:[#allocation4 + $0x8d] sm:$0x1] }
 0x5f1   : > { %9414 = vst.msk [vmem:[#allocation5 + $0x59] sm:$0x1] %vm9042_vm4, %v9413_v43  ;;  %v14045_v32 = vpop.f32.mrf.mxu0  ;;  %v14246_v20 = vld [vmem:[%s18350_s7 + $0x1e8] sm:$0xff]  }
 0x5f2   : > { %v8988_v12 = vmax.f32 %v8944_v29, 0.0  ;;  %v8896_v17 = vadd.f32 %v14045_v32, %v8478_v23  ;;  %v14247_v43 = vld [vmem:[%s18350_s7 + $0x1a8] sm:$0xff]   ;;  %13123 = vmatprep.subr.bf16.mxu0 %v14246_v20 }
 0x5f3   : > { %v8827_v41 = vpop.f32.mrf.mxu0  ;;  %13124 = vmatpush3.bf16.msra.mxu0 %v14247_v43 }
 0x5f4   : > { %9032 = vst.msk [vmem:[#allocation4 + $0x118] sm:$0xff] %vm5181_vm3, %v8988_v12  ;;  %v8947_v61 = vadd.f32 %v17349_v9, %v8896_v17  ;;  %v8894_v44 = vadd.f32 %v8827_v41, %v8476_v6  ;;  %13125 = vmatprep.subr.bf16.mxu0 %v14252_v49 }
 0x5f5   : > { %v14046_v60 = vpop.f32.mrf.mxu0 }
 0x5f6   : > { %v8991_v30 = vmax.f32 %v8947_v61, 0.0  ;;  %v8945_v15 = vadd.f32 %v17349_v9, %v8894_v44  ;;  %v8897_v10 = vadd.f32 %v14046_v60, %v8479_v63  ;;  %v9085_v44 = vld [vmem:[#allocation4 + $0xf] sm:$0x1]  ;;  %v9077_v63 = vld [vmem:[#allocation4 + $0xd] sm:$0x1]  ;;  %v14254_v60 = vld [vmem:[%s18350_s7 + $0x1a0] sm:$0xff]  }
 0x5f7   : > { %v8830_v24 = vpop.f32.mrf.mxu0  ;;  %v9441_v34 = vld [vmem:[#allocation4 + $0x113] sm:$0x1]  ;;  %v9433_v2 = vld [vmem:[#allocation4 + $0x111] sm:$0x1]  ;;  %v9439_v56 = vld [vmem:[#allocation4 + $0x112] sm:$0x1]  ;;  %13126 = vmatpush3.bf16.msra.mxu0 %v14254_v60 }
 0x5f8   : > { %9035 = vst.msk [vmem:[#allocation4 + $0x130] sm:$0xff] %vm5181_vm3, %v8991_v30  ;;  %v8989_v28 = vmax.f32 %v8945_v15, 0.0  ;;  %v8948_v48 = vadd.f32 %v17349_v9, %v8897_v10  ;;  %v8895_v27 = vadd.f32 %v8830_v24, %v8477_v13  ;;  %9443 = vrot.lane.b32.xlu1 %v9441_v34, %s14442_s28  ;;  %9435 = vrot.lane.b32.xlu0 %v9433_v2, %s14442_s28  ;;  %v9431_v62 = vld [vmem:[#allocation4 + $0x110] sm:$0x1]  ;;  %v9455_v7 = vld [vmem:[#allocation4 + $0x116] sm:$0x1] }
 0x5f9   : > { %v14049_v50 = vpop.f32.mrf.mxu0  ;;  %9440 = vst.msk [vmem:[#allocation5 + $0x6] sm:$0x1] %vm9042_vm4, %v9439_v56  ;;  %9432 = vst.msk [vmem:[#allocation5 + $0x2] sm:$0x1] %vm9042_vm4, %v9431_v62  ;;  %v9447_v31 = vld [vmem:[#allocation4 + $0x114] sm:$0x1] }
 0x5fa   : > { %9033 = vst.msk [vmem:[#allocation4 + $0x120] sm:$0xff] %vm5181_vm3, %v8989_v28  ;;  %v8992_v33 = vmax.f32 %v8948_v48, 0.0  ;;  %v8946_v53 = vadd.f32 %v17349_v9, %v8895_v27  ;;  %v8900_v38 = vadd.f32 %v14049_v50, %v8482_v18  ;;  %v9449_v52 = vld [vmem:[#allocation4 + $0x115] sm:$0x1]  ;;  %v14256_v24 = vld [vmem:[%s18350_s7 + $0x1d8] sm:$0xff]  }
 0x5fb   : > { %9456 = vst.msk [vmem:[#allocation5 + $0xe] sm:$0x1] %vm9042_vm4, %v9455_v7  ;;  %9448 = vst.msk [vmem:[#allocation5 + $0xa] sm:$0x1] %vm9042_vm4, %v9447_v31  ;;  %v8843_v4 = vpop.f32.mrf.mxu0  ;;  %v9471_v8 = vld [vmem:[#allocation4 + $0x11e] sm:$0x1]  ;;  %13127 = vmatprep.subr.bf16.mxu0 %v14256_v24 }
 0x5fc   : > { %9036 = vst.msk [vmem:[#allocation4 + $0x138] sm:$0xff] %vm5181_vm3, %v8992_v33  ;;  %v8990_v25 = vmax.f32 %v8946_v53, 0.0  ;;  %v8951_v16 = vadd.f32 %v17349_v9, %v8900_v38  ;;  %v8898_v37 = vadd.f32 %v8843_v4, %v8480_v42  ;;  %9071 = vrot.lane.b32.xlu1 %v9069_v19, %s14442_s28  ;;  %9063 = vrot.lane.b32.xlu0 %v9061_v21, %s14442_s28  ;;  %v9463_v46 = vld [vmem:[#allocation4 + $0x11c] sm:$0x1]  ;;  %v9457_v23 = vld [vmem:[#allocation4 + $0x11b] sm:$0x1] }
 0x5fd   : > { %v14050_v45 = vpop.f32.mrf.mxu0  ;;  %9472 = vst.msk [vmem:[#allocation5 + $0x16] sm:$0x1] %vm9042_vm4, %v9471_v8  ;;  %9464 = vst.msk [vmem:[#allocation5 + $0x12] sm:$0x1] %vm9042_vm4, %v9463_v46  ;;  %v9271_v13 = vld [vmem:[#allocation4 + $0x95] sm:$0x1] }
 0x5fe   : > { %9034 = vst.msk [vmem:[#allocation4 + $0x128] sm:$0xff] %vm5181_vm3, %v8990_v25  ;;  %v8995_v14 = vmax.f32 %v8951_v16, 0.0  ;;  %v8949_v1 = vadd.f32 %v17349_v9, %v8898_v37  ;;  %v8901_v36 = vadd.f32 %v14050_v45, %v8483_v35  ;;  %v14258_v28 = vld [vmem:[%s18350_s7 + $0x198] sm:$0xff]   ;;  %v14260_v62 = vld [vmem:[%s18350_s7 + $0x1d0] sm:$0xff]   ;;  %v14264_v53 = vld [vmem:[%s18350_s7 + $0x1c8] sm:$0xff]  }
 0x5ff   : > { %v8846_v22 = vpop.f32.mrf.mxu0  ;;  %v9535_v12 = vld [vmem:[#allocation4 + $0x136] sm:$0x1]  ;;  %v9527_v61 = vld [vmem:[#allocation4 + $0x134] sm:$0x1]  ;;  %v9473_v18 = vld [vmem:[#allocation4 + $0x11f] sm:$0x1]  ;;  %13128 = vmatpush3.bf16.msra.mxu0 %v14258_v28 }
 0x600   : > { %9039 = vst.msk [vmem:[#allocation4 + $0x150] sm:$0xff] %vm5181_vm3, %v8995_v14  ;;  %v8993_v3 = vmax.f32 %v8949_v1, 0.0  ;;  %v8952_v58 = vadd.f32 %v17349_v9, %v8901_v36  ;;  %v8899_v55 = vadd.f32 %v8846_v22, %v8481_v0  ;;  %9265 = vrot.lane.b32.xlu1 %v9263_v47, %s14442_s28  ;;  %9257 = vrot.lane.b32.xlu0 %v9255_v40, %s14442_s28  ;;  %v9465_v56 = vld [vmem:[#allocation4 + $0x11d] sm:$0x1]  ;;  %v14262_v7 = vld [vmem:[%s18350_s7 + $0x190] sm:$0xff]   ;;  %v14266_v38 = vld [vmem:[%s18350_s7 + $0x188] sm:$0xff]  }
 0x601   : > { %v9487_v59 = vld [vmem:[#allocation4 + $0x126] sm:$0x1]  ;;  %v9479_v29 = vld [vmem:[#allocation4 + $0x120] sm:$0x1]  ;;  %9536 = vst.msk [vmem:[#allocation5 + $0x36] sm:$0x1] %vm9042_vm4, %v9535_v12  ;;  %13129 = vmatprep.subr.bf16.mxu0 %v14260_v62 }
 0x602   : > { %9037 = vst.msk [vmem:[#allocation4 + $0x140] sm:$0xff] %vm5181_vm3, %v8993_v3  ;;  %v8996_v26 = vmax.f32 %v8952_v58, 0.0  ;;  %v8950_v39 = vadd.f32 %v17349_v9, %v8899_v55  ;;  %v9519_v9 = vld [vmem:[#allocation4 + $0x132] sm:$0x1]  ;;  %v9101_v31 = vld [vmem:[#allocation4 + $0x17] sm:$0x1] }
 0x603   : > { %9488 = vst.msk [vmem:[#allocation5 + $0x1e] sm:$0x1] %vm9042_vm4, %v9487_v59  ;;  %9480 = vst.msk [vmem:[#allocation5 + $0x1a] sm:$0x1] %vm9042_vm4, %v9479_v29  ;;  %v9551_v54 = vld [vmem:[#allocation4 + $0x13e] sm:$0x1]  ;;  %13130 = vmatpush3.bf16.msra.mxu0 %v14262_v7 }
 0x604   : > { %9040 = vst.msk [vmem:[#allocation4 + $0x158] sm:$0xff] %vm5181_vm3, %v8996_v26  ;;  %v8994_v32 = vmax.f32 %v8950_v39, 0.0  ;;  %9459 = vrot.lane.b32.xlu1 %v9457_v23, %s14442_s28  ;;  %9451 = vrot.lane.b32.xlu0 %v9449_v52, %s14442_s28  ;;  %v9543_v30 = vld [vmem:[#allocation4 + $0x13c] sm:$0x1]  ;;  %v9093_v33 = vld [vmem:[#allocation4 + $0x11] sm:$0x1] }
 0x605   : > { %v9503_v17 = vld [vmem:[#allocation4 + $0x12a] sm:$0x1]  ;;  %9520 = vst.msk [vmem:[#allocation5 + $0x2e] sm:$0x1] %vm9042_vm4, %v9519_v9  ;;  %v9495_v6 = vld [vmem:[#allocation4 + $0x128] sm:$0x1]  ;;  %13131 = vmatprep.subr.bf16.mxu0 %v14264_v53 }
 0x606   : > { %9038 = vst.msk [vmem:[#allocation4 + $0x148] sm:$0xff] %vm5181_vm3, %v8994_v32  ;;  %v9511_v41 = vld [vmem:[#allocation4 + $0x12c] sm:$0x1]  ;;  %v9295_v42 = vld [vmem:[#allocation4 + $0x9f] sm:$0x1]  ;;  %v14268_v19 = vld [vmem:[%s18350_s7 + $0x1c0] sm:$0xff]  }
 0x607   : > { %9504 = vst.msk [vmem:[#allocation5 + $0x26] sm:$0x1] %vm9042_vm4, %v9503_v17  ;;  %9496 = vst.msk [vmem:[#allocation5 + $0x22] sm:$0x1] %vm9042_vm4, %v9495_v6  ;;  %v9599_v2 = vld [vmem:[#allocation4 + $0x152] sm:$0x1]  ;;  %13132 = vmatpush3.bf16.msra.mxu0 %v14266_v38 }
 0x608   : > { %9512 = vst.msk [vmem:[#allocation5 + $0x2a] sm:$0x1] %vm9042_vm4, %v9511_v41  ;;  %9528 = vst.msk [vmem:[#allocation5 + $0x32] sm:$0x1] %vm9042_vm4, %v9527_v61  ;;  %9087 = vrot.lane.b32.xlu1 %v9085_v44, %s14442_s28  ;;  %9079 = vrot.lane.b32.xlu0 %v9077_v63, %s14442_s28  ;;  %v9615_v51 = vld [vmem:[#allocation4 + $0x156] sm:$0x1] }
 0x609   : > { %9552 = vst.msk [vmem:[#allocation5 + $0x3e] sm:$0x1] %vm9042_vm4, %v9551_v54  ;;  %v9567_v15 = vld [vmem:[#allocation4 + $0x142] sm:$0x1]  ;;  %9544 = vst.msk [vmem:[#allocation5 + $0x3a] sm:$0x1] %vm9042_vm4, %v9543_v30  ;;  %13133 = vmatprep.subr.bf16.mxu0 %v14268_v19 }
 0x60a   : > { %9568 = vst.msk [vmem:[#allocation5 + $0x46] sm:$0x1] %vm9042_vm4, %v9567_v15  ;;  %v9559_v34 = vld [vmem:[#allocation4 + $0x140] sm:$0x1]  ;;  %9600 = vst.msk [vmem:[#allocation5 + $0x56] sm:$0x1] %vm9042_vm4, %v9599_v2 }
 0x60b   : > { %v9623_v10 = vld [vmem:[#allocation4 + $0x158] sm:$0x1]  ;;  %9560 = vst.msk [vmem:[#allocation5 + $0x42] sm:$0x1] %vm9042_vm4, %v9559_v34  ;;  %v9607_v50 = vld [vmem:[#allocation4 + $0x154] sm:$0x1] }
 0x60c   : > { %9624 = vst.msk [vmem:[#allocation5 + $0x62] sm:$0x1] %vm9042_vm4, %v9623_v10  ;;  %9281 = vrot.lane.b32.xlu1 %v9279_v11, %s14442_s28  ;;  %9273 = vrot.lane.b32.xlu0 %v9271_v13, %s14442_s28  ;;  %9616 = vst.msk [vmem:[#allocation5 + $0x5e] sm:$0x1] %vm9042_vm4, %v9615_v51  ;;  %v9287_v4 = vld [vmem:[#allocation4 + $0x99] sm:$0x1] }
 0x60d   : > { %v9583_v48 = vld [vmem:[#allocation4 + $0x14a] sm:$0x1]  ;;  %v9575_v27 = vld [vmem:[#allocation4 + $0x148] sm:$0x1]  ;;  %v9591_v5 = vld [vmem:[#allocation4 + $0x14c] sm:$0x1] }
 0x60e   : > { %9584 = vst.msk [vmem:[#allocation5 + $0x4e] sm:$0x1] %vm9042_vm4, %v9583_v48  ;;  %9576 = vst.msk [vmem:[#allocation5 + $0x4a] sm:$0x1] %vm9042_vm4, %v9575_v27  ;;  %v14271_v21 = vld [vmem:[%s18350_s7 + $0x180] sm:$0xff]   ;;  %v14274_v37 = vld [vmem:[%s18350_s7 + $0x2f8] sm:$0xff]  }
 0x60f   : > { %9592 = vst.msk [vmem:[#allocation5 + $0x52] sm:$0x1] %vm9042_vm4, %v9591_v5  ;;  %9608 = vst.msk [vmem:[#allocation5 + $0x5a] sm:$0x1] %vm9042_vm4, %v9607_v50  ;;  %v9489_v25 = vld [vmem:[#allocation4 + $0x127] sm:$0x1]  ;;  %13134 = vmatpush3.bf16.msra.mxu0 %v14271_v21 }
 0x610   : > { %9475 = vrot.lane.b32.xlu1 %v9473_v18, %s14442_s28  ;;  %9467 = vrot.lane.b32.xlu0 %v9465_v56, %s14442_s28  ;;  %v9481_v16 = vld [vmem:[#allocation4 + $0x121] sm:$0x1]  ;;  %v9117_v35 = vld [vmem:[#allocation4 + $0x1b] sm:$0x1]  ;;  %v9109_v8 = vld [vmem:[#allocation4 + $0x19] sm:$0x1] }
 0x611   : > { %13163 = vmatprep.subr.bf16.mxu0 %v14274_v37  ;;  %v9303_v45 = vld [vmem:[#allocation4 + $0xa1] sm:$0x1]  ;;  %v9505_v46 = vld [vmem:[#allocation4 + $0x12b] sm:$0x1]  ;;  %v9497_v14 = vld [vmem:[#allocation4 + $0x129] sm:$0x1] }
 0x612   : > { %v9133_v1 = vld [vmem:[#allocation4 + $0x23] sm:$0x1]  ;;  %v9125_v36 = vld [vmem:[#allocation4 + $0x21] sm:$0x1]  ;;  %v9327_v22 = vld [vmem:[#allocation4 + $0xab] sm:$0x1] }
 0x613   : > { %v9319_v47 = vld [vmem:[#allocation4 + $0xa9] sm:$0x1]  ;;  %v9521_v3 = vld [vmem:[#allocation4 + $0x133] sm:$0x1]  ;;  %v9513_v58 = vld [vmem:[#allocation4 + $0x131] sm:$0x1] }
 0x614   : > { %9103 = vrot.lane.b32.xlu1 %v9101_v31, %s14442_s28  ;;  %9095 = vrot.lane.b32.xlu0 %v9093_v33, %s14442_s28  ;;  %v9149_v55 = vld [vmem:[#allocation4 + $0x27] sm:$0x1]  ;;  %v9141_v59 = vld [vmem:[#allocation4 + $0x25] sm:$0x1]  ;;  %v9343_v26 = vld [vmem:[#allocation4 + $0xaf] sm:$0x1] }
 0x615   : > { %v9335_v39 = vld [vmem:[#allocation4 + $0xad] sm:$0x1]  ;;  %v9537_v20 = vld [vmem:[#allocation4 + $0x137] sm:$0x1]  ;;  %v9529_v43 = vld [vmem:[#allocation4 + $0x135] sm:$0x1] }
 0x616   : > { %v9165_v29 = vld [vmem:[#allocation4 + $0x2f] sm:$0x1]  ;;  %v9157_v23 = vld [vmem:[#allocation4 + $0x2d] sm:$0x1]  ;;  %v9359_v52 = vld [vmem:[#allocation4 + $0xb7] sm:$0x1] }
 0x617   : > { %v9351_v32 = vld [vmem:[#allocation4 + $0xb5] sm:$0x1]  ;;  %v9553_v9 = vld [vmem:[#allocation4 + $0x13f] sm:$0x1]  ;;  %v9545_v12 = vld [vmem:[#allocation4 + $0x13d] sm:$0x1] }
 0x618   : > { %9297 = vrot.lane.b32.xlu1 %v9295_v42, %s14442_s28  ;;  %9289 = vrot.lane.b32.xlu0 %v9287_v4, %s14442_s28  ;;  %v9181_v17 = vld [vmem:[#allocation4 + $0x37] sm:$0x1]  ;;  %v9173_v6 = vld [vmem:[#allocation4 + $0x31] sm:$0x1]  ;;  %v9375_v61 = vld [vmem:[#allocation4 + $0xbf] sm:$0x1] }
 0x619   : > { %v9367_v44 = vld [vmem:[#allocation4 + $0xb9] sm:$0x1]  ;;  %v9569_v49 = vld [vmem:[#allocation4 + $0x147] sm:$0x1]  ;;  %v9561_v54 = vld [vmem:[#allocation4 + $0x141] sm:$0x1] }
 0x61a   : > { %v9197_v11 = vld [vmem:[#allocation4 + $0x3b] sm:$0x1]  ;;  %v9189_v60 = vld [vmem:[#allocation4 + $0x39] sm:$0x1]  ;;  %v9391_v30 = vld [vmem:[#allocation4 + $0xc3] sm:$0x1] }
 0x61b   : > { %v9383_v15 = vld [vmem:[#allocation4 + $0xc1] sm:$0x1]  ;;  %v9585_v10 = vld [vmem:[#allocation4 + $0x14b] sm:$0x1]  ;;  %v9577_v13 = vld [vmem:[#allocation4 + $0x149] sm:$0x1] }
 0x61c   : > { %9491 = vrot.lane.b32.xlu1 %v9489_v25, %s14442_s28  ;;  %9483 = vrot.lane.b32.xlu0 %v9481_v16, %s14442_s28  ;;  %v9213_v24 = vld [vmem:[#allocation4 + $0x43] sm:$0x1]  ;;  %v9205_v34 = vld [vmem:[#allocation4 + $0x3d] sm:$0x1]  ;;  %v9407_v48 = vld [vmem:[#allocation4 + $0xcb] sm:$0x1] }
 0x61d   : > { %v9399_v27 = vld [vmem:[#allocation4 + $0xc5] sm:$0x1]  ;;  %v9601_v62 = vld [vmem:[#allocation4 + $0x153] sm:$0x1]  ;;  %v9593_v5 = vld [vmem:[#allocation4 + $0x14d] sm:$0x1] }
 0x61e   : > { %v9229_v31 = vld [vmem:[#allocation4 + $0x47] sm:$0x1]  ;;  %v9221_v33 = vld [vmem:[#allocation4 + $0x45] sm:$0x1]  ;;  %v14241_v19 = vld [vmem:[%s18350_s7 + $0xb8] sm:$0xff]  }
 0x61f   : > { %v9423_v25 = vld [vmem:[#allocation4 + $0xcf] sm:$0x1]  ;;  %v9415_v16 = vld [vmem:[#allocation4 + $0xcd] sm:$0x1]  ;;  %v14242_v37 = vld [vmem:[%s18350_s7 + $0xf0] sm:$0xff]  }
 0x620   : > { %9119 = vrot.lane.b32.xlu1 %v9117_v35, %s14442_s28  ;;  %9111 = vrot.lane.b32.xlu0 %v9109_v8, %s14442_s28 }
 0x624   : > { %9313 = vrot.lane.b32.xlu1 %v9311_v57, %s14442_s28  ;;  %9305 = vrot.lane.b32.xlu0 %v9303_v45, %s14442_s28  ;;  %v14243_v57 = vld [vmem:[%s18350_s7 + $0xb0] sm:$0xff]  }
 0x625   : > { %v9617_v45 = vld [vmem:[#allocation4 + $0x157] sm:$0x1] }
 0x628   : > { %9507 = vrot.lane.b32.xlu1 %v9505_v46, %s14442_s28  ;;  %9499 = vrot.lane.b32.xlu0 %v9497_v14, %s14442_s28  ;;  %v9609_v46 = vld [vmem:[#allocation4 + $0x155] sm:$0x1]  ;;  %v14244_v14 = vld [vmem:[%s18350_s7 + $0xe8] sm:$0xff]  }
 0x62c   : > { %9135 = vrot.lane.b32.xlu1 %v9133_v1, %s14442_s28  ;;  %9127 = vrot.lane.b32.xlu0 %v9125_v36, %s14442_s28  ;;  %v9047_v0 = vpop.permute.xlu0 %9046 }
 0x62d   : > { %9050 = vst.msk [vmem:[#allocation5] sm:$0x1] %vm9049_vm5, %v9047_v0  ;;  %v14245_v0 = vld [vmem:[%s18350_s7 + $0xa8] sm:$0xff]  }
 0x630   : > { %9329 = vrot.lane.b32.xlu1 %v9327_v22, %s14442_s28  ;;  %9321 = vrot.lane.b32.xlu0 %v9319_v47, %s14442_s28  ;;  %v9056_v40 = vpop.permute.xlu0 %9055  ;;  %v14248_v47 = vld [vmem:[%s18350_s7 + $0xe0] sm:$0xff]  }
 0x631   : > { %9058 = vst.msk [vmem:[#allocation5 + $0x4] sm:$0x1] %vm9049_vm5, %v9056_v40 }
 0x634   : > { %9523 = vrot.lane.b32.xlu1 %v9521_v3, %s14442_s28  ;;  %9515 = vrot.lane.b32.xlu0 %v9513_v58, %s14442_s28 }
 0x638   : > { %9151 = vrot.lane.b32.xlu1 %v9149_v55, %s14442_s28  ;;  %9143 = vrot.lane.b32.xlu0 %v9141_v59, %s14442_s28  ;;  %v14250_v59 = vld [vmem:[%s18350_s7 + $0xa0] sm:$0xff]  }
 0x63c   : > { %9345 = vrot.lane.b32.xlu1 %v9343_v26, %s14442_s28  ;;  %9337 = vrot.lane.b32.xlu0 %v9335_v39, %s14442_s28  ;;  %v14251_v26 = vld [vmem:[%s18350_s7 + $0xd8] sm:$0xff]  }
 0x640   : > { %9539 = vrot.lane.b32.xlu1 %v9537_v20, %s14442_s28  ;;  %9531 = vrot.lane.b32.xlu0 %v9529_v43, %s14442_s28  ;;  %v14253_v43 = vld [vmem:[%s18350_s7 + $0x98] sm:$0xff]  }
 0x644   : > { %9167 = vrot.lane.b32.xlu1 %v9165_v29, %s14442_s28  ;;  %9159 = vrot.lane.b32.xlu0 %v9157_v23, %s14442_s28  ;;  %v14255_v29 = vld [vmem:[%s18350_s7 + $0xd0] sm:$0xff]  }
 0x648   : > { %9361 = vrot.lane.b32.xlu1 %v9359_v52, %s14442_s28  ;;  %9353 = vrot.lane.b32.xlu0 %v9351_v32, %s14442_s28  ;;  %v14257_v32 = vld [vmem:[%s18350_s7 + $0x90] sm:$0xff]  }
 0x64c   : > { %9555 = vrot.lane.b32.xlu1 %v9553_v9, %s14442_s28  ;;  %9547 = vrot.lane.b32.xlu0 %v9545_v12, %s14442_s28  ;;  %v14259_v9 = vld [vmem:[%s18350_s7 + $0xc8] sm:$0xff]  }
 0x650   : > { %v9242_v41 = vpop.permute.xlu1 %9241  ;;  %9183 = vrot.lane.b32.xlu1 %v9181_v17, %s14442_s28  ;;  %9175 = vrot.lane.b32.xlu0 %v9173_v6, %s14442_s28  ;;  %v14261_v6 = vld [vmem:[%s18350_s7 + $0x88] sm:$0xff]  }
 0x651   : > { %9244 = vst.msk [vmem:[#allocation5 + $0x1] sm:$0x1] %vm9049_vm5, %v9242_v41  ;;  %v14263_v41 = vld [vmem:[%s18350_s7 + $0xc0] sm:$0xff]  }
 0x654   : > { %v9250_v63 = vpop.permute.xlu1 %9249  ;;  %9377 = vrot.lane.b32.xlu1 %v9375_v61, %s14442_s28  ;;  %9369 = vrot.lane.b32.xlu0 %v9367_v44, %s14442_s28 }
 0x655   : > { %9252 = vst.msk [vmem:[#allocation5 + $0x5] sm:$0x1] %vm9049_vm5, %v9250_v63 }
 0x658   : > { %9571 = vrot.lane.b32.xlu1 %v9569_v49, %s14442_s28  ;;  %9563 = vrot.lane.b32.xlu0 %v9561_v54, %s14442_s28  ;;  %v14265_v49 = vld [vmem:[%s18350_s7 + $0x80] sm:$0xff]   ;;  %v14267_v54 = vld [vmem:[%s18350_s7 + $0x178] sm:$0xff]  }
 0x65c   : > { %9199 = vrot.lane.b32.xlu1 %v9197_v11, %s14442_s28  ;;  %9191 = vrot.lane.b32.xlu0 %v9189_v60, %s14442_s28 }
 0x660   : > { %9393 = vrot.lane.b32.xlu1 %v9391_v30, %s14442_s28  ;;  %9385 = vrot.lane.b32.xlu0 %v9383_v15, %s14442_s28  ;;  %v14269_v15 = vld [vmem:[%s18350_s7 + $0x138] sm:$0xff]  }
 0x664   : > { %9587 = vrot.lane.b32.xlu1 %v9585_v10, %s14442_s28  ;;  %9579 = vrot.lane.b32.xlu0 %v9577_v13, %s14442_s28 }
 0x668   : > { %9215 = vrot.lane.b32.xlu1 %v9213_v24, %s14442_s28  ;;  %9207 = vrot.lane.b32.xlu0 %v9205_v34, %s14442_s28  ;;  %v14272_v24 = vld [vmem:[%s18350_s7 + $0x170] sm:$0xff]  }
 0x66a   : > { %v9444_v2 = vpop.permute.xlu1 %9443  ;;  %v9436_v28 = vpop.permute.xlu0 %9435 }
 0x66b   : > { %9446 = vst.msk [vmem:[#allocation5 + $0x6] sm:$0x1] %vm9049_vm5, %v9444_v2  ;;  %9438 = vst.msk [vmem:[#allocation5 + $0x2] sm:$0x1] %vm9049_vm5, %v9436_v28 }
 0x66c   : > { %9409 = vrot.lane.b32.xlu1 %v9407_v48, %s14442_s28  ;;  %9401 = vrot.lane.b32.xlu0 %v9399_v27, %s14442_s28  ;;  %v14276_v48 = vld [vmem:[%s18350_s7 + $0x2b8] sm:$0xff]  }
 0x66e   : > { %v9072_v18 = vpop.permute.xlu1 %9071  ;;  %v9064_v56 = vpop.permute.xlu0 %9063 }
 0x66f   : > { %9074 = vst.msk [vmem:[#allocation5 + $0xc] sm:$0x1] %vm9049_vm5, %v9072_v18  ;;  %9066 = vst.msk [vmem:[#allocation5 + $0x8] sm:$0x1] %vm9049_vm5, %v9064_v56 }
 0x670   : > { %9603 = vrot.lane.b32.xlu1 %v9601_v62, %s14442_s28  ;;  %9595 = vrot.lane.b32.xlu0 %v9593_v5, %s14442_s28  ;;  %v14275_v62 = vld [vmem:[%s18350_s7 + $0x130] sm:$0xff]  }
 0x671   : > { %v14278_v5 = vld [vmem:[%s18350_s7 + $0x2f0] sm:$0xff]  }
 0x672   : > { %v9266_v51 = vpop.permute.xlu1 %9265  ;;  %v9258_v50 = vpop.permute.xlu0 %9257  ;;  %v9625_v7 = vld [vmem:[#allocation5] sm:$0x77] }
 0x673   : > { %9268 = vst.msk [vmem:[#allocation5 + $0xd] sm:$0x1] %vm9049_vm5, %v9266_v51  ;;  %9260 = vst.msk [vmem:[#allocation5 + $0x9] sm:$0x1] %vm9049_vm5, %v9258_v50  ;;  %v9650_v53 = vcombine.high %v9625_v7, %v9625_v7  ;;  %v9674_v21 = vpack.c.bf16 %v9625_v7, %v9625_v7  ;;  %v14277_v51 = vld [vmem:[%s18350_s7 + $0x168] sm:$0xff]   ;;  %v14280_v50 = vld [vmem:[%s18350_s7 + $0x2b0] sm:$0xff]  }
 0x674   : > { %9231 = vrot.lane.b32.xlu1 %v9229_v31, %s14442_s28  ;;  %9223 = vrot.lane.b32.xlu0 %v9221_v33, %s14442_s28  ;;  %v14279_v33 = vld [vmem:[%s18350_s7 + $0x128] sm:$0xff]  }
 0x675   : > { %v9675_v38 = vpack.c.bf16 %v9650_v53, %v9650_v53  ;;  %v14282_v53 = vld [vmem:[%s18350_s7 + $0x2e8] sm:$0xff]  }
 0x676   : > { %v9460_v42 = vpop.permute.xlu1 %9459  ;;  %v9452_v4 = vpop.permute.xlu0 %9451 }
 0x677   : > { %9462 = vst.msk [vmem:[#allocation5 + $0xe] sm:$0x1] %vm9049_vm5, %v9460_v42  ;;  %9454 = vst.msk [vmem:[#allocation5 + $0xa] sm:$0x1] %vm9049_vm5, %v9452_v4  ;;  %11309 = vmatprep.mubr.bf16.mxu1 %v9675_v38  ;;  %v14281_v38 = vld [vmem:[%s18350_s7 + $0x160] sm:$0xff]   ;;  %v14284_v42 = vld [vmem:[%s18350_s7 + $0x2a8] sm:$0xff]  }
 0x678   : > { %9425 = vrot.lane.b32.xlu1 %v9423_v25, %s14442_s28  ;;  %9417 = vrot.lane.b32.xlu0 %v9415_v16, %s14442_s28  ;;  %v14286_v25 = vld [vmem:[%s18350_s7 + $0x2e0] sm:$0xff]   ;;  %v14285_v16 = vld [vmem:[%s18350_s7 + $0x158] sm:$0xff]  }
 0x679   : > { %11310 = vmatmul.mubr.bf16.vlgmr.msra.gmra.mxu1 %v9674_v21  ;;  %v14283_v21 = vld [vmem:[%s18350_s7 + $0x120] sm:$0xff]  }
 0x67a   : > { %13076 = vmatpush3.bf16.msra.mxu1 %v14241_v19  ;;  %v9088_v35 = vpop.permute.xlu1 %9087  ;;  %v9080_v8 = vpop.permute.xlu0 %9079 }
 0x67b   : > { %9090 = vst.msk [vmem:[#allocation5 + $0x14] sm:$0x1] %vm9049_vm5, %v9088_v35  ;;  %9082 = vst.msk [vmem:[#allocation5 + $0x10] sm:$0x1] %vm9049_vm5, %v9080_v8  ;;  %13077 = vmatprep.subr.bf16.mxu1 %v14242_v37  ;;  %v14288_v37 = vld [vmem:[%s18350_s7 + $0x2a0] sm:$0xff]  }
 0x67c   : > { %9619 = vrot.lane.b32.xlu1 %v9617_v45, %s14442_s28  ;;  %9611 = vrot.lane.b32.xlu0 %v9609_v46, %s14442_s28  ;;  %v14290_v45 = vld [vmem:[%s18350_s7 + $0x2d8] sm:$0xff]   ;;  %v14289_v46 = vld [vmem:[%s18350_s7 + $0x150] sm:$0xff]  }
 0x67e   : > { %13078 = vmatpush3.bf16.msra.mxu1 %v14243_v57  ;;  %v9282_v1 = vpop.permute.xlu1 %9281  ;;  %v9274_v36 = vpop.permute.xlu0 %9273  ;;  %v9626_v22 = vld [vmem:[#allocation5 + $0x8] sm:$0x77]  ;;  %v14287_v57 = vld [vmem:[%s18350_s7 + $0x118] sm:$0xff]  }
 0x67f   : > { %9284 = vst.msk [vmem:[#allocation5 + $0x15] sm:$0x1] %vm9049_vm5, %v9282_v1  ;;  %9276 = vst.msk [vmem:[#allocation5 + $0x11] sm:$0x1] %vm9049_vm5, %v9274_v36  ;;  %13079 = vmatprep.subr.bf16.mxu1 %v14244_v14  ;;  %v9651_v40 = vcombine.high %v9626_v22, %v9626_v22  ;;  %v9676_v13 = vpack.c.bf16 %v9626_v22, %v9626_v22  ;;  %v14292_v14 = vld [vmem:[%s18350_s7 + $0x298] sm:$0xff]   ;;  %v14294_v22 = vld [vmem:[%s18350_s7 + $0x2d0] sm:$0xff]  }
 0x681   : > { %v9677_v3 = vpack.c.bf16 %v9651_v40, %v9651_v40  ;;  %v14296_v40 = vld [vmem:[%s18350_s7 + $0x290] sm:$0xff]  }
 0x682   : > { %13080 = vmatpush3.bf16.msra.mxu1 %v14245_v0  ;;  %v9476_v58 = vpop.permute.xlu1 %9475  ;;  %v9468_v55 = vpop.permute.xlu0 %9467  ;;  %v14291_v0 = vld [vmem:[%s18350_s7 + $0x110] sm:$0xff]  }
 0x683   : > { %9478 = vst.msk [vmem:[#allocation5 + $0x16] sm:$0x1] %vm9049_vm5, %v9476_v58  ;;  %9470 = vst.msk [vmem:[#allocation5 + $0x12] sm:$0x1] %vm9049_vm5, %v9468_v55  ;;  %13081 = vmatprep.subr.bf16.mxu1 %v14248_v47  ;;  %11349 = vmatprep.mubr.bf16.mxu1 %v9677_v3  ;;  %v14293_v47 = vld [vmem:[%s18350_s7 + $0x148] sm:$0xff]  }
 0x684   : > { %v14295_v55 = vld [vmem:[%s18350_s7 + $0x108] sm:$0xff]  }
 0x686   : > { %13082 = vmatpush3.bf16.msra.mxu1 %v14250_v59  ;;  %v9104_v39 = vpop.permute.xlu1 %9103  ;;  %v9096_v20 = vpop.permute.xlu0 %9095  ;;  %v14298_v59 = vld [vmem:[%s18350_s7 + $0x2c8] sm:$0xff]  }
 0x687   : > { %9106 = vst.msk [vmem:[#allocation5 + $0x1c] sm:$0x1] %vm9049_vm5, %v9104_v39  ;;  %9098 = vst.msk [vmem:[#allocation5 + $0x18] sm:$0x1] %vm9049_vm5, %v9096_v20  ;;  %13083 = vmatprep.subr.bf16.mxu1 %v14251_v26  ;;  %v14297_v39 = vld [vmem:[%s18350_s7 + $0x140] sm:$0xff]  }
 0x68a   : > { %13084 = vmatpush3.bf16.msra.mxu1 %v14253_v43  ;;  %v9298_v23 = vpop.permute.xlu1 %9297  ;;  %v9290_v52 = vpop.permute.xlu0 %9289  ;;  %v17779_v61 = vld [vmem:[#allocation5 + $0x10] sm:$0x77] }
 0x68b   : > { %9300 = vst.msk [vmem:[#allocation5 + $0x1d] sm:$0x1] %vm9049_vm5, %v9298_v23  ;;  %9292 = vst.msk [vmem:[#allocation5 + $0x19] sm:$0x1] %vm9049_vm5, %v9290_v52  ;;  %13085 = vmatprep.subr.bf16.mxu1 %v14255_v29  ;;  %v9652_v11 = vcombine.high %v17779_v61, %v17779_v61  ;;  %v14301_v29 = vld [vmem:[%s18350_s7 + $0x288] sm:$0xff]  }
 0x68d   : > { %v9679_v2 = vpack.c.bf16 %v9652_v11, %v9652_v11  ;;  %v14307_v11 = vld [vmem:[%s18350_s7 + $0x270] sm:$0xff]  }
 0x68e   : > { %13086 = vmatpush3.bf16.msra.mxu1 %v14257_v32  ;;  %v9492_v12 = vpop.permute.xlu1 %9491  ;;  %v9484_v17 = vpop.permute.xlu0 %9483 }
 0x68f   : > { %9494 = vst.msk [vmem:[#allocation5 + $0x1e] sm:$0x1] %vm9049_vm5, %v9492_v12  ;;  %9486 = vst.msk [vmem:[#allocation5 + $0x1a] sm:$0x1] %vm9049_vm5, %v9484_v17  ;;  %13087 = vmatprep.subr.bf16.mxu1 %v14259_v9  ;;  %v14300_v9 = vld [vmem:[%s18350_s7 + $0x100] sm:$0xff]   ;;  %v14302_v17 = vld [vmem:[%s18350_s7 + $0x278] sm:$0xff]  }
 0x690   : > { %v14303_v12 = vld [vmem:[%s18350_s7 + $0x2c0] sm:$0xff]  }
 0x692   : > { %13088 = vmatpush3.bf16.msra.mxu1 %v14261_v6  ;;  %v9120_v44 = vpop.permute.xlu1 %9119  ;;  %v9112_v63 = vpop.permute.xlu0 %9111 }
 0x693   : > { %9122 = vst.msk [vmem:[#allocation5 + $0x24] sm:$0x1] %vm9049_vm5, %v9120_v44  ;;  %9114 = vst.msk [vmem:[#allocation5 + $0x20] sm:$0x1] %vm9049_vm5, %v9112_v63  ;;  %13089 = vmatprep.subr.bf16.mxu1 %v14263_v41  ;;  %v14306_v41 = vld [vmem:[%s18350_s7 + $0x280] sm:$0xff]  }
 0x696   : > { %13090 = vmatpush3.bf16.msra.mxu1 %v14265_v49  ;;  %v9314_v60 = vpop.permute.xlu1 %9313  ;;  %v9306_v30 = vpop.permute.xlu0 %9305  ;;  %v9628_v10 = vld [vmem:[#allocation5 + $0x18] sm:$0x77] }
 0x697   : > { %9316 = vst.msk [vmem:[#allocation5 + $0x25] sm:$0x1] %vm9049_vm5, %v9314_v60  ;;  %9308 = vst.msk [vmem:[#allocation5 + $0x21] sm:$0x1] %vm9049_vm5, %v9306_v30  ;;  %13097 = vmatprep.subr.bf16.mxu1 %v14267_v54  ;;  %v9653_v34 = vcombine.high %v9628_v10, %v9628_v10  ;;  %v9680_v56 = vpack.c.bf16 %v9628_v10, %v9628_v10  ;;  %v14304_v49 = vld [vmem:[%s18350_s7 + $0x238] sm:$0xff]   ;;  %v9678_v54 = vpack.c.bf16 %v17779_v61, %v17779_v61 }
 0x698   : > { %v14308_v60 = vld [vmem:[%s18350_s7 + $0x3f8] sm:$0xff]  }
 0x699   : > { %11350 = vmatmul.mubr.bf16.vlgmr.msra.gmra.mxu1 %v9676_v13  ;;  %v9681_v28 = vpack.c.bf16 %v9653_v34, %v9653_v34  ;;  %v14310_v61 = vld [vmem:[%s18350_s7 + $0x3b8] sm:$0xff]   ;;  %v14312_v34 = vld [vmem:[%s18350_s7 + $0x3f0] sm:$0xff]  }
 0x69a   : > { %13098 = vmatpush3.bf16.msra.mxu1 %v14269_v15  ;;  %11389 = vmatprep.mubr.bf16.mxu1 %v9679_v2  ;;  %v9508_v27 = vpop.permute.xlu1 %9507  ;;  %v9500_v18 = vpop.permute.xlu0 %9499  ;;  %v14311_v2 = vld [vmem:[%s18350_s7 + $0x268] sm:$0xff]  }
 0x69b   : > { %9510 = vst.msk [vmem:[#allocation5 + $0x26] sm:$0x1] %vm9049_vm5, %v9508_v27  ;;  %9502 = vst.msk [vmem:[#allocation5 + $0x22] sm:$0x1] %vm9049_vm5, %v9500_v18  ;;  %13099 = vmatprep.subr.bf16.mxu1 %v14272_v24  ;;  %11429 = vmatprep.mubr.bf16.mxu0 %v9681_v28  ;;  %v14309_v24 = vld [vmem:[%s18350_s7 + $0x230] sm:$0xff]   ;;  %v14313_v18 = vld [vmem:[%s18350_s7 + $0x228] sm:$0xff]  }
 0x69c   : > { %11430 = vmatmul.mubr.bf16.vlgmr.msra.gmra.mxu0 %v9680_v56  ;;  %v14314_v28 = vld [vmem:[%s18350_s7 + $0x3b0] sm:$0xff]   ;;  %v14316_v56 = vld [vmem:[%s18350_s7 + $0x3e8] sm:$0xff]  }
 0x69d   : > { %13164 = vmatpush3.bf16.msra.mxu0 %v14276_v48 }
 0x69e   : > { %13100 = vmatpush3.bf16.msra.mxu1 %v14275_v62  ;;  %v9136_v7 = vpop.permute.xlu1 %9135  ;;  %v9128_v31 = vpop.permute.xlu0 %9127  ;;  %13165 = vmatprep.subr.bf16.mxu0 %v14278_v5  ;;  %v14315_v62 = vld [vmem:[%s18350_s7 + $0x260] sm:$0xff]   ;;  %v14318_v5 = vld [vmem:[%s18350_s7 + $0x3a8] sm:$0xff]  }
 0x69f   : > { %9138 = vst.msk [vmem:[#allocation5 + $0x2c] sm:$0x1] %vm9049_vm5, %v9136_v7  ;;  %9130 = vst.msk [vmem:[#allocation5 + $0x28] sm:$0x1] %vm9049_vm5, %v9128_v31  ;;  %13101 = vmatprep.subr.bf16.mxu1 %v14277_v51  ;;  %v14317_v7 = vld [vmem:[%s18350_s7 + $0x220] sm:$0xff]  }
 0x6a0   : > { %v14320_v31 = vld [vmem:[%s18350_s7 + $0x3e0] sm:$0xff]  }
 0x6a1   : > { %13166 = vmatpush3.bf16.msra.mxu0 %v14280_v50 }
 0x6a2   : > { %13102 = vmatpush3.bf16.msra.mxu1 %v14279_v33  ;;  %v9330_v4 = vpop.permute.xlu1 %9329  ;;  %v9322_v19 = vpop.permute.xlu0 %9321  ;;  %13167 = vmatprep.subr.bf16.mxu0 %v14282_v53  ;;  %v17886_v23 = vld [vmem:[#allocation5 + $0x20] sm:$0x77]  ;;  %v14319_v33 = vld [vmem:[%s18350_s7 + $0x258] sm:$0xff]  }
 0x6a3   : > { %9332 = vst.msk [vmem:[#allocation5 + $0x2d] sm:$0x1] %vm9049_vm5, %v9330_v4  ;;  %9324 = vst.msk [vmem:[#allocation5 + $0x29] sm:$0x1] %vm9049_vm5, %v9322_v19  ;;  %13103 = vmatprep.subr.bf16.mxu1 %v14281_v38  ;;  %v9654_v6 = vcombine.high %v17886_v23, %v17886_v23  ;;  %v14322_v53 = vld [vmem:[%s18350_s7 + $0x3a0] sm:$0xff]   ;;  %v14321_v4 = vld [vmem:[%s18350_s7 + $0x218] sm:$0xff]  }
 0x6a4   : > { %v14324_v19 = vld [vmem:[%s18350_s7 + $0x3d8] sm:$0xff]  }
 0x6a5   : > { %13168 = vmatpush3.bf16.msra.mxu0 %v14284_v42  ;;  %v9683_v30 = vpack.c.bf16 %v9654_v6, %v9654_v6  ;;  %v14342_v6 = vld [vmem:[%s18350_s7 + $0x4f8] sm:$0xff]  }
 0x6a6   : > { %13104 = vmatpush3.bf16.msra.mxu1 %v14283_v21  ;;  %v9524_v35 = vpop.permute.xlu1 %9523  ;;  %v9516_v8 = vpop.permute.xlu0 %9515  ;;  %13169 = vmatprep.subr.bf16.mxu0 %v14286_v25  ;;  %v14323_v25 = vld [vmem:[%s18350_s7 + $0x250] sm:$0xff]  }
 0x6a7   : > { %9526 = vst.msk [vmem:[#allocation5 + $0x2e] sm:$0x1] %vm9049_vm5, %v9524_v35  ;;  %9518 = vst.msk [vmem:[#allocation5 + $0x2a] sm:$0x1] %vm9049_vm5, %v9516_v8  ;;  %13105 = vmatprep.subr.bf16.mxu1 %v14285_v16  ;;  %v14327_v35 = vld [vmem:[%s18350_s7 + $0x398] sm:$0xff]  }
 0x6a9   : > { %13170 = vmatpush3.bf16.msra.mxu0 %v14288_v37 }
 0x6aa   : > { %13106 = vmatpush3.bf16.msra.mxu1 %v14287_v57  ;;  %v9152_v1 = vpop.permute.xlu1 %9151  ;;  %v9144_v36 = vpop.permute.xlu0 %9143  ;;  %13171 = vmatprep.subr.bf16.mxu0 %v14290_v45  ;;  %v14326_v45 = vld [vmem:[%s18350_s7 + $0x210] sm:$0xff]  }
 0x6ab   : > { %9154 = vst.msk [vmem:[#allocation5 + $0x34] sm:$0x1] %vm9049_vm5, %v9152_v1  ;;  %9146 = vst.msk [vmem:[#allocation5 + $0x30] sm:$0x1] %vm9049_vm5, %v9144_v36  ;;  %13107 = vmatprep.subr.bf16.mxu1 %v14289_v46  ;;  %v14329_v46 = vld [vmem:[%s18350_s7 + $0x3d0] sm:$0xff]  }
 0x6ac   : > { %v14331_v1 = vld [vmem:[%s18350_s7 + $0x390] sm:$0xff]  }
 0x6ad   : > { %13172 = vmatpush3.bf16.msra.mxu0 %v14292_v14  ;;  %v14328_v14 = vld [vmem:[%s18350_s7 + $0x248] sm:$0xff]  }
 0x6ae   : > { %13108 = vmatpush3.bf16.msra.mxu1 %v14291_v0  ;;  %v9346_v3 = vpop.permute.xlu1 %9345  ;;  %v9338_v58 = vpop.permute.xlu0 %9337  ;;  %13173 = vmatprep.subr.bf16.mxu0 %v14294_v22  ;;  %v9630_v26 = vld [vmem:[#allocation5 + $0x28] sm:$0x77] }
 0x6af   : > { %9348 = vst.msk [vmem:[#allocation5 + $0x35] sm:$0x1] %vm9049_vm5, %v9346_v3  ;;  %9340 = vst.msk [vmem:[#allocation5 + $0x31] sm:$0x1] %vm9049_vm5, %v9338_v58  ;;  %13109 = vmatprep.subr.bf16.mxu1 %v14293_v47  ;;  %v9655_v20 = vcombine.high %v9630_v26, %v9630_v26  ;;  %v9684_v15 = vpack.c.bf16 %v9630_v26, %v9630_v26  ;;  %v14330_v22 = vld [vmem:[%s18350_s7 + $0x208] sm:$0xff]   ;;  %v14334_v26 = vld [vmem:[%s18350_s7 + $0x200] sm:$0xff]  }
 0x6b0   : > { %v14333_v47 = vld [vmem:[%s18350_s7 + $0x3c8] sm:$0xff]  }
 0x6b1   : > { %13174 = vmatpush3.bf16.msra.mxu0 %v14296_v40  ;;  %v9685_v43 = vpack.c.bf16 %v9655_v20, %v9655_v20  ;;  %v14332_v40 = vld [vmem:[%s18350_s7 + $0x240] sm:$0xff]   ;;  %v14335_v3 = vld [vmem:[%s18350_s7 + $0x388] sm:$0xff]   ;;  %v14336_v20 = vld [vmem:[%s18350_s7 + $0x378] sm:$0xff]  }
 0x6b2   : > { %13110 = vmatpush3.bf16.msra.mxu1 %v14295_v55  ;;  %v9540_v52 = vpop.permute.xlu1 %9539  ;;  %v9532_v32 = vpop.permute.xlu0 %9531  ;;  %13175 = vmatprep.subr.bf16.mxu0 %v14298_v59 }
 0x6b3   : > { %9542 = vst.msk [vmem:[#allocation5 + $0x36] sm:$0x1] %vm9049_vm5, %v9540_v52  ;;  %9534 = vst.msk [vmem:[#allocation5 + $0x32] sm:$0x1] %vm9049_vm5, %v9532_v32  ;;  %13111 = vmatprep.subr.bf16.mxu1 %v14297_v39  ;;  %11509 = vmatprep.mubr.bf16.mxu0 %v9685_v43  ;;  %v14337_v39 = vld [vmem:[%s18350_s7 + $0x3c0] sm:$0xff]  }
 0x6b5   : > { %13176 = vmatpush3.bf16.msra.mxu0 %v14301_v29  ;;  %v14340_v29 = vld [vmem:[%s18350_s7 + $0x380] sm:$0xff]  }
 0x6b6   : > { %13112 = vmatpush3.bf16.msra.mxu1 %v14300_v9  ;;  %v9168_v44 = vpop.permute.xlu1 %9167  ;;  %v9160_v63 = vpop.permute.xlu0 %9159  ;;  %13177 = vmatprep.subr.bf16.mxu0 %v14303_v12  ;;  %v14338_v9 = vld [vmem:[%s18350_s7 + $0x338] sm:$0xff]   ;;  %v9682_v12 = vpack.c.bf16 %v17886_v23, %v17886_v23 }
 0x6b7   : > { %9170 = vst.msk [vmem:[#allocation5 + $0x3c] sm:$0x1] %vm9049_vm5, %v9168_v44  ;;  %9162 = vst.msk [vmem:[#allocation5 + $0x38] sm:$0x1] %vm9049_vm5, %v9160_v63  ;;  %13141 = vmatprep.subr.bf16.mxu1 %v14302_v17  ;;  %v14341_v17 = vld [vmem:[%s18350_s7 + $0x370] sm:$0xff]   ;;  %v14344_v23 = vld [vmem:[%s18350_s7 + $0x4b8] sm:$0xff]  }
 0x6b9   : > { %11390 = vmatmul.mubr.bf16.vlgmr.msra.gmra.mxu1 %v9678_v54  ;;  %13178 = vmatpush3.bf16.msra.mxu0 %v14306_v41  ;;  %v14343_v54 = vld [vmem:[%s18350_s7 + $0x330] sm:$0xff]  }
 0x6ba   : > { %13142 = vmatpush3.bf16.msra.mxu1 %v14304_v49  ;;  %11469 = vmatprep.mubr.bf16.mxu1 %v9683_v30  ;;  %v9362_v10 = vpop.permute.xlu1 %9361  ;;  %v9354_v13 = vpop.permute.xlu0 %9353  ;;  %v18008_v58 = vld [vmem:[#allocation5 + $0x30] sm:$0x77] }
 0x6bb   : > { %9364 = vst.msk [vmem:[#allocation5 + $0x3d] sm:$0x1] %vm9049_vm5, %v9362_v10  ;;  %9356 = vst.msk [vmem:[#allocation5 + $0x39] sm:$0x1] %vm9049_vm5, %v9354_v13  ;;  %13143 = vmatprep.subr.bf16.mxu1 %v14307_v11  ;;  %13207 = vmatprep.subr.bf16.mxu0 %v14308_v60  ;;  %v9656_v43 = vcombine.high %v18008_v58, %v18008_v58  ;;  %v14346_v11 = vld [vmem:[%s18350_s7 + $0x4f0] sm:$0xff]   ;;  %v14345_v60 = vld [vmem:[%s18350_s7 + $0x368] sm:$0xff]  }
 0x6bc   : > { %11510 = vmatmul.mubr.bf16.vlgmr.msra.gmra.mxu0 %v9684_v15  ;;  %v14348_v30 = vld [vmem:[%s18350_s7 + $0x4b0] sm:$0xff]   ;;  %v14347_v10 = vld [vmem:[%s18350_s7 + $0x328] sm:$0xff]  }
 0x6bd   : > { %13208 = vmatpush3.bf16.msra.mxu0 %v14310_v61  ;;  %v9687_v41 = vpack.c.bf16 %v9656_v43, %v9656_v43  ;;  %v14350_v13 = vld [vmem:[%s18350_s7 + $0x4e8] sm:$0xff]   ;;  %v14378_v43 = vld [vmem:[%s18350_s7 + $0x5b8] sm:$0xff]  }
 0x6be   : > { %13144 = vmatpush3.bf16.msra.mxu1 %v14309_v24  ;;  %v9556_v48 = vpop.permute.xlu1 %9555  ;;  %v9548_v27 = vpop.permute.xlu0 %9547  ;;  %13209 = vmatprep.subr.bf16.mxu0 %v14312_v34  ;;  %v14349_v34 = vld [vmem:[%s18350_s7 + $0x360] sm:$0xff]  }
 0x6bf   : > { %9558 = vst.msk [vmem:[#allocation5 + $0x3e] sm:$0x1] %vm9049_vm5, %v9556_v48  ;;  %9550 = vst.msk [vmem:[#allocation5 + $0x3a] sm:$0x1] %vm9049_vm5, %v9548_v27  ;;  %13145 = vmatprep.subr.bf16.mxu1 %v14311_v2  ;;  %v14353_v48 = vld [vmem:[%s18350_s7 + $0x4a8] sm:$0xff]  }
 0x6c1   : > { %13210 = vmatpush3.bf16.msra.mxu0 %v14314_v28 }
 0x6c2   : > { %13146 = vmatpush3.bf16.msra.mxu1 %v14313_v18  ;;  %v9184_v51 = vpop.permute.xlu1 %9183  ;;  %v9176_v50 = vpop.permute.xlu0 %9175  ;;  %13211 = vmatprep.subr.bf16.mxu0 %v14316_v56  ;;  %v14352_v56 = vld [vmem:[%s18350_s7 + $0x320] sm:$0xff]  }
 0x6c3   : > { %9186 = vst.msk [vmem:[#allocation5 + $0x44] sm:$0x1] %vm9049_vm5, %v9184_v51  ;;  %9178 = vst.msk [vmem:[#allocation5 + $0x40] sm:$0x1] %vm9049_vm5, %v9176_v50  ;;  %13147 = vmatprep.subr.bf16.mxu1 %v14315_v62  ;;  %v14355_v62 = vld [vmem:[%s18350_s7 + $0x4e0] sm:$0xff]  }
 0x6c4   : > { %v14357_v51 = vld [vmem:[%s18350_s7 + $0x4a0] sm:$0xff]  }
 0x6c5   : > { %13212 = vmatpush3.bf16.msra.mxu0 %v14318_v5  ;;  %v14354_v5 = vld [vmem:[%s18350_s7 + $0x358] sm:$0xff]  }
 0x6c6   : > { %13148 = vmatpush3.bf16.msra.mxu1 %v14317_v7  ;;  %v9378_v38 = vpop.permute.xlu1 %9377  ;;  %v9370_v42 = vpop.permute.xlu0 %9369  ;;  %13213 = vmatprep.subr.bf16.mxu0 %v14320_v31  ;;  %v17968_v21 = vld [vmem:[#allocation5 + $0x38] sm:$0x77] }
 0x6c7   : > { %9380 = vst.msk [vmem:[#allocation5 + $0x45] sm:$0x1] %vm9049_vm5, %v9378_v38  ;;  %9372 = vst.msk [vmem:[#allocation5 + $0x41] sm:$0x1] %vm9049_vm5, %v9370_v42  ;;  %13149 = vmatprep.subr.bf16.mxu1 %v14319_v33  ;;  %v9657_v16 = vcombine.high %v17968_v21, %v17968_v21  ;;  %v9688_v44 = vpack.c.bf16 %v17968_v21, %v17968_v21  ;;  %v14356_v31 = vld [vmem:[%s18350_s7 + $0x318] sm:$0xff]   ;;  %v14363_v21 = vld [vmem:[%s18350_s7 + $0x4d0] sm:$0xff]  }
 0x6c8   : > { %v14359_v33 = vld [vmem:[%s18350_s7 + $0x4d8] sm:$0xff]  }
 0x6c9   : > { %13214 = vmatpush3.bf16.msra.mxu0 %v14322_v53  ;;  %v9689_v37 = vpack.c.bf16 %v9657_v16, %v9657_v16  ;;  %v14358_v53 = vld [vmem:[%s18350_s7 + $0x350] sm:$0xff]   ;;  %v14361_v38 = vld [vmem:[%s18350_s7 + $0x498] sm:$0xff]  }
 0x6ca   : > { %13150 = vmatpush3.bf16.msra.mxu1 %v14321_v4  ;;  %v9572_v8 = vpop.permute.xlu1 %9571  ;;  %v9564_v57 = vpop.permute.xlu0 %9563  ;;  %13215 = vmatprep.subr.bf16.mxu0 %v14324_v19  ;;  %v14360_v19 = vld [vmem:[%s18350_s7 + $0x310] sm:$0xff]  }
 0x6cb   : > { %9574 = vst.msk [vmem:[#allocation5 + $0x46] sm:$0x1] %vm9049_vm5, %v9572_v8  ;;  %9566 = vst.msk [vmem:[#allocation5 + $0x42] sm:$0x1] %vm9049_vm5, %v9564_v57  ;;  %13151 = vmatprep.subr.bf16.mxu1 %v14323_v25  ;;  %11589 = vmatprep.mubr.bf16.mxu0 %v9689_v37  ;;  %v14362_v25 = vld [vmem:[%s18350_s7 + $0x348] sm:$0xff]   ;;  %v14365_v16 = vld [vmem:[%s18350_s7 + $0x490] sm:$0xff]  }
 0x6cc   : > { %v14364_v8 = vld [vmem:[%s18350_s7 + $0x308] sm:$0xff]  }
 0x6cd   : > { %13216 = vmatpush3.bf16.msra.mxu0 %v14327_v35  ;;  %v14367_v57 = vld [vmem:[%s18350_s7 + $0x4c8] sm:$0xff]  }
 0x6ce   : > { %13152 = vmatpush3.bf16.msra.mxu1 %v14326_v45  ;;  %v9200_v36 = vpop.permute.xlu1 %9199  ;;  %v9192_v0 = vpop.permute.xlu0 %9191  ;;  %13217 = vmatprep.subr.bf16.mxu0 %v14329_v46  ;;  %v14366_v45 = vld [vmem:[%s18350_s7 + $0x340] sm:$0xff]   ;;  %v14369_v46 = vld [vmem:[%s18350_s7 + $0x488] sm:$0xff]  }
 0x6cf   : > { %9202 = vst.msk [vmem:[#allocation5 + $0x4c] sm:$0x1] %vm9049_vm5, %v9200_v36  ;;  %9194 = vst.msk [vmem:[#allocation5 + $0x48] sm:$0x1] %vm9049_vm5, %v9192_v0  ;;  %13153 = vmatprep.subr.bf16.mxu1 %v14328_v14  ;;  %v14371_v36 = vld [vmem:[%s18350_s7 + $0x4c0] sm:$0xff]   ;;  %v14370_v0 = vld [vmem:[%s18350_s7 + $0x478] sm:$0xff]  }
 0x6d1   : > { %13218 = vmatpush3.bf16.msra.mxu0 %v14331_v1  ;;  %v14368_v1 = vld [vmem:[%s18350_s7 + $0x300] sm:$0xff]  }
 0x6d2   : > { %13154 = vmatpush3.bf16.msra.mxu1 %v14330_v22  ;;  %v9394_v55 = vpop.permute.xlu1 %9393  ;;  %v9386_v59 = vpop.permute.xlu0 %9385  ;;  %13219 = vmatprep.subr.bf16.mxu0 %v14333_v47  ;;  %v18132_v14 = vld [vmem:[#allocation5 + $0x40] sm:$0x77] }
 0x6d3   : > { %9396 = vst.msk [vmem:[#allocation5 + $0x4d] sm:$0x1] %vm9049_vm5, %v9394_v55  ;;  %9388 = vst.msk [vmem:[#allocation5 + $0x49] sm:$0x1] %vm9049_vm5, %v9386_v59  ;;  %13155 = vmatprep.subr.bf16.mxu1 %v14332_v40  ;;  %v9658_v22 = vcombine.high %v18132_v14, %v18132_v14  ;;  %v14374_v47 = vld [vmem:[%s18350_s7 + $0x480] sm:$0xff]   ;;  %v14372_v40 = vld [vmem:[%s18350_s7 + $0x438] sm:$0xff]   ;;  %v9686_v55 = vpack.c.bf16 %v18008_v58, %v18008_v58 }
 0x6d4   : > { %v14375_v59 = vld [vmem:[%s18350_s7 + $0x470] sm:$0xff]  }
 0x6d5   : > { %13220 = vmatpush3.bf16.msra.mxu0 %v14335_v3 }
 0x6d6   : > { %13156 = vmatpush3.bf16.msra.mxu1 %v14334_v26  ;;  %v9588_v52 = vpop.permute.xlu1 %9587  ;;  %v9580_v32 = vpop.permute.xlu0 %9579  ;;  %13221 = vmatprep.subr.bf16.mxu0 %v14337_v39  ;;  %v14376_v26 = vld [vmem:[%s18350_s7 + $0x5f8] sm:$0xff]  }
 0x6d7   : > { %9590 = vst.msk [vmem:[#allocation5 + $0x4e] sm:$0x1] %vm9049_vm5, %v9588_v52  ;;  %9582 = vst.msk [vmem:[#allocation5 + $0x4a] sm:$0x1] %vm9049_vm5, %v9580_v32  ;;  %13185 = vmatprep.subr.bf16.mxu1 %v14336_v20  ;;  %v9691_v20 = vpack.c.bf16 %v9658_v22, %v9658_v22  ;;  %v14377_v52 = vld [vmem:[%s18350_s7 + $0x430] sm:$0xff]  }
 0x6d8   : > { %v14381_v32 = vld [vmem:[%s18350_s7 + $0x5f0] sm:$0xff]  }
 0x6d9   : > { %11470 = vmatmul.mubr.bf16.vlgmr.msra.gmra.mxu1 %v9682_v12  ;;  %13222 = vmatpush3.bf16.msra.mxu0 %v14340_v29  ;;  %v14383_v12 = vld [vmem:[%s18350_s7 + $0x5b0] sm:$0xff]  }
 0x6da   : > { %13186 = vmatpush3.bf16.msra.mxu1 %v14338_v9  ;;  %11549 = vmatprep.mubr.bf16.mxu1 %v9687_v41  ;;  %v9216_v63 = vpop.permute.xlu1 %9215  ;;  %v9208_v49 = vpop.permute.xlu0 %9207  ;;  %v14380_v9 = vld [vmem:[%s18350_s7 + $0x468] sm:$0xff]   ;;  %v14384_v41 = vld [vmem:[%s18350_s7 + $0x460] sm:$0xff]   ;;  %v14424_v22 = vld [vmem:[%s18350_s7 + $0x610] sm:$0xff]  }
 0x6db   : > { %9218 = vst.msk [vmem:[#allocation5 + $0x54] sm:$0x1] %vm9049_vm5, %v9216_v63  ;;  %9210 = vst.msk [vmem:[#allocation5 + $0x50] sm:$0x1] %vm9049_vm5, %v9208_v49  ;;  %13187 = vmatprep.subr.bf16.mxu1 %v14341_v17  ;;  %13251 = vmatprep.subr.bf16.mxu0 %v14342_v6  ;;  %v14382_v17 = vld [vmem:[%s18350_s7 + $0x428] sm:$0xff]   ;;  %v14389_v63 = vld [vmem:[%s18350_s7 + $0x5e0] sm:$0xff]  }
 0x6dc   : > { %11590 = vmatmul.mubr.bf16.vlgmr.msra.gmra.mxu0 %v9688_v44  ;;  %v14385_v6 = vld [vmem:[%s18350_s7 + $0x5e8] sm:$0xff]   ;;  %v14386_v44 = vld [vmem:[%s18350_s7 + $0x420] sm:$0xff]   ;;  %v14388_v49 = vld [vmem:[%s18350_s7 + $0x458] sm:$0xff]  }
 0x6dd   : > { %13252 = vmatpush3.bf16.msra.mxu0 %v14344_v23  ;;  %v14387_v23 = vld [vmem:[%s18350_s7 + $0x5a8] sm:$0xff]  }
 0x6de   : > { %13188 = vmatpush3.bf16.msra.mxu1 %v14343_v54  ;;  %v9410_v61 = vpop.permute.xlu1 %9409  ;;  %v9402_v15 = vpop.permute.xlu0 %9401  ;;  %13253 = vmatprep.subr.bf16.mxu0 %v14346_v11  ;;  %v18064_v24 = vld [vmem:[#allocation5 + $0x48] sm:$0x77]  ;;  %v14391_v54 = vld [vmem:[%s18350_s7 + $0x5a0] sm:$0xff]   ;;  %v14390_v11 = vld [vmem:[%s18350_s7 + $0x418] sm:$0xff]  }
 0x6df   : > { %9412 = vst.msk [vmem:[#allocation5 + $0x55] sm:$0x1] %vm9049_vm5, %v9410_v61  ;;  %9404 = vst.msk [vmem:[#allocation5 + $0x51] sm:$0x1] %vm9049_vm5, %v9402_v15  ;;  %13189 = vmatprep.subr.bf16.mxu1 %v14345_v60  ;;  %v9659_v2 = vcombine.high %v18064_v24, %v18064_v24  ;;  %v9692_v29 = vpack.c.bf16 %v18064_v24, %v18064_v24  ;;  %v14393_v60 = vld [vmem:[%s18350_s7 + $0x5d8] sm:$0xff]   ;;  %v14394_v15 = vld [vmem:[%s18350_s7 + $0x410] sm:$0xff]  }
 0x6e0   : > { %v14395_v61 = vld [vmem:[%s18350_s7 + $0x598] sm:$0xff]   ;;  %v14399_v24 = vld [vmem:[%s18350_s7 + $0x590] sm:$0xff]  }
 0x6e1   : > { %13254 = vmatpush3.bf16.msra.mxu0 %v14348_v30  ;;  %v9693_v28 = vpack.c.bf16 %v9659_v2, %v9659_v2  ;;  %v14392_v30 = vld [vmem:[%s18350_s7 + $0x450] sm:$0xff]   ;;  %v14401_v2 = vld [vmem:[%s18350_s7 + $0x5c8] sm:$0xff]  }
 0x6e2   : > { %13190 = vmatpush3.bf16.msra.mxu1 %v14347_v10  ;;  %v9604_v27 = vpop.permute.xlu1 %9603  ;;  %v9596_v18 = vpop.permute.xlu0 %9595  ;;  %13255 = vmatprep.subr.bf16.mxu0 %v14350_v13  ;;  %v14397_v10 = vld [vmem:[%s18350_s7 + $0x5d0] sm:$0xff]   ;;  %v14396_v13 = vld [vmem:[%s18350_s7 + $0x448] sm:$0xff]  }
 0x6e3   : > { %9606 = vst.msk [vmem:[#allocation5 + $0x56] sm:$0x1] %vm9049_vm5, %v9604_v27  ;;  %9598 = vst.msk [vmem:[#allocation5 + $0x52] sm:$0x1] %vm9049_vm5, %v9596_v18  ;;  %13191 = vmatprep.subr.bf16.mxu1 %v14349_v34  ;;  %11669 = vmatprep.mubr.bf16.mxu0 %v9693_v28  ;;  %v14398_v34 = vld [vmem:[%s18350_s7 + $0x408] sm:$0xff]   ;;  %v14400_v28 = vld [vmem:[%s18350_s7 + $0x440] sm:$0xff]  }
 0x6e4   : > { %v14402_v18 = vld [vmem:[%s18350_s7 + $0x400] sm:$0xff]  }
 0x6e5   : > { %13256 = vmatpush3.bf16.msra.mxu0 %v14353_v48  ;;  %v14403_v48 = vld [vmem:[%s18350_s7 + $0x588] sm:$0xff]  }
 0x6e6   : > { %13192 = vmatpush3.bf16.msra.mxu1 %v14352_v56  ;;  %v9232_v50 = vpop.permute.xlu1 %9231  ;;  %v9224_v7 = vpop.permute.xlu0 %9223  ;;  %13257 = vmatprep.subr.bf16.mxu0 %v14355_v62  ;;  %v14405_v56 = vld [vmem:[%s18350_s7 + $0x5c0] sm:$0xff]   ;;  %v14404_v62 = vld [vmem:[%s18350_s7 + $0x578] sm:$0xff]  }
 0x6e7   : > { %9234 = vst.msk [vmem:[#allocation5 + $0x5c] sm:$0x1] %vm9049_vm5, %v9232_v50  ;;  %9226 = vst.msk [vmem:[#allocation5 + $0x58] sm:$0x1] %vm9049_vm5, %v9224_v7  ;;  %13193 = vmatprep.subr.bf16.mxu1 %v14354_v5  ;;  %v14406_v50 = vld [vmem:[%s18350_s7 + $0x538] sm:$0xff]   ;;  %v9690_v7 = vpack.c.bf16 %v18132_v14, %v18132_v14 }
 0x6e8   : > { %v14423_v14 = vld [vmem:[%s18350_s7 + $0x618] sm:$0xff]  }
 0x6e9   : > { %13258 = vmatpush3.bf16.msra.mxu0 %v14357_v51  ;;  %v14408_v51 = vld [vmem:[%s18350_s7 + $0x580] sm:$0xff]  }
 0x6ea   : > { %13194 = vmatpush3.bf16.msra.mxu1 %v14356_v31  ;;  %v9426_v42 = vpop.permute.xlu1 %9425  ;;  %v9418_v4 = vpop.permute.xlu0 %9417  ;;  %13259 = vmatprep.subr.bf16.mxu0 %v14359_v33  ;;  %v9635_v27 = vld [vmem:[#allocation5 + $0x50] sm:$0x77] }
 0x6eb   : > { %9428 = vst.msk [vmem:[#allocation5 + $0x5d] sm:$0x1] %vm9049_vm5, %v9426_v42  ;;  %9420 = vst.msk [vmem:[#allocation5 + $0x59] sm:$0x1] %vm9049_vm5, %v9418_v4  ;;  %13195 = vmatprep.subr.bf16.mxu1 %v14358_v53  ;;  %v9660_v5 = vcombine.high %v9635_v27, %v9635_v27  ;;  %v14409_v31 = vld [vmem:[%s18350_s7 + $0x570] sm:$0xff]   ;;  %v14411_v42 = vld [vmem:[%s18350_s7 + $0x568] sm:$0xff]  }
 0x6ec   : > { %v14412_v4 = vld [vmem:[%s18350_s7 + $0x528] sm:$0xff]  }
 0x6ed   : > { %13260 = vmatpush3.bf16.msra.mxu0 %v14361_v38  ;;  %v9695_v33 = vpack.c.bf16 %v9660_v5, %v9660_v5  ;;  %v14410_v38 = vld [vmem:[%s18350_s7 + $0x530] sm:$0xff]  }
 0x6ee   : > { %13196 = vmatpush3.bf16.msra.mxu1 %v14360_v19  ;;  %v9620_v37 = vpop.permute.xlu1 %9619  ;;  %v9612_v35 = vpop.permute.xlu0 %9611  ;;  %13261 = vmatprep.subr.bf16.mxu0 %v14363_v21  ;;  %v14413_v19 = vld [vmem:[%s18350_s7 + $0x560] sm:$0xff]  }
 0x6ef   : > { %9622 = vst.msk [vmem:[#allocation5 + $0x5e] sm:$0x1] %vm9049_vm5, %v9620_v37  ;;  %9614 = vst.msk [vmem:[#allocation5 + $0x5a] sm:$0x1] %vm9049_vm5, %v9612_v35  ;;  %13197 = vmatprep.subr.bf16.mxu1 %v14362_v25  ;;  %v14414_v21 = vld [vmem:[%s18350_s7 + $0x520] sm:$0xff]   ;;  %v14415_v25 = vld [vmem:[%s18350_s7 + $0x558] sm:$0xff]  }
 0x6f0   : > { %v14417_v37 = vld [vmem:[%s18350_s7 + $0x550] sm:$0xff]  }
 0x6f1   : > { %13262 = vmatpush3.bf16.msra.mxu0 %v14365_v16  ;;  %v14416_v16 = vld [vmem:[%s18350_s7 + $0x518] sm:$0xff]   ;;  %v14418_v35 = vld [vmem:[%s18350_s7 + $0x510] sm:$0xff]  }
 0x6f2   : > { %13198 = vmatpush3.bf16.msra.mxu1 %v14364_v8  ;;  %13263 = vmatprep.subr.bf16.mxu0 %v14367_v57  ;;  %v14419_v8 = vld [vmem:[%s18350_s7 + $0x548] sm:$0xff]  }
 0x6f3   : > { %13199 = vmatprep.subr.bf16.mxu1 %v14366_v45  ;;  %v14420_v57 = vld [vmem:[%s18350_s7 + $0x508] sm:$0xff]   ;;  %v14421_v45 = vld [vmem:[%s18350_s7 + $0x540] sm:$0xff]  }
 0x6f5   : > { %13264 = vmatpush3.bf16.msra.mxu0 %v14369_v46  ;;  %v14422_v46 = vld [vmem:[%s18350_s7 + $0x500] sm:$0xff]  }
 0x6f6   : > { %13200 = vmatpush3.bf16.msra.mxu1 %v14368_v1  ;;  %13265 = vmatprep.subr.bf16.mxu0 %v14371_v36  ;;  %v18151_v3 = vld [vmem:[#allocation5 + $0x58] sm:$0x77]  ;;  %v9694_v1 = vpack.c.bf16 %v9635_v27, %v9635_v27  ;;  %v14443_v36 = vmov 0.0   ;;  %v14429_v27 = vld [vmem:[%s18352_s9 + $0x8] sm:$0xff]  }
 0x6f7   : > { %13229 = vmatprep.subr.bf16.mxu1 %v14370_v0  ;;  %v9661_v39 = vcombine.high %v18151_v3, %v18151_v3  ;;  %v9696_v53 = vpack.c.bf16 %v18151_v3, %v18151_v3 }
 0x6f9   : > { %11550 = vmatmul.mubr.bf16.vlgmr.msra.gmra.mxu1 %v9686_v55  ;;  %13266 = vmatpush3.bf16.msra.mxu0 %v14374_v47  ;;  %v9697_v58 = vpack.c.bf16 %v9661_v39, %v9661_v39  ;;  %v14425_v55 = vld [vmem:[%s18350_s7 + $0x608] sm:$0xff]   ;;  %v9637_v39 = vld [vmem:[#allocation5 + $0x60] sm:$0x7] }
 0x6fa   : > { %13230 = vmatpush3.bf16.msra.mxu1 %v14372_v40  ;;  %11629 = vmatprep.mubr.bf16.mxu1 %v9691_v20  ;;  %v9698_v20 = vpack.c.bf16 %v9637_v39, %v9637_v39 }
 0x6fb   : > { %13231 = vmatprep.subr.bf16.mxu1 %v14375_v59  ;;  %13295 = vmatprep.subr.bf16.mxu0 %v14376_v26  ;;  %v14426_v26 = vld [vmem:[%s18350_s7 + $0x600] sm:$0xff]  }
 0x6fc   : > { %11670 = vmatmul.mubr.bf16.vlgmr.msra.gmra.mxu0 %v9692_v29 }
 0x6fd   : > { %13296 = vmatpush3.bf16.msra.mxu0 %v14378_v43  ;;  %11749 = vmatprep.mubr.bf16.mxu0 %v9697_v58  ;;  %v12484_v43 = vld [vmem:[%s18351_s8] ss:$0 sm:$0xff] }
 0x6fe   : > { %13232 = vmatpush3.bf16.msra.mxu1 %v14377_v52  ;;  %13297 = vmatprep.subr.bf16.mxu0 %v14381_v32 }
 0x6ff   : > { %13233 = vmatprep.subr.bf16.mxu1 %v14380_v9 }
 0x701   : > { %13298 = vmatpush3.bf16.msra.mxu0 %v14383_v12 }
 0x702   : > { %13234 = vmatpush3.bf16.msra.mxu1 %v14382_v17  ;;  %13299 = vmatprep.subr.bf16.mxu0 %v14385_v6 }
 0x703   : > { %13235 = vmatprep.subr.bf16.mxu1 %v14384_v41 }
 0x705   : > { %13300 = vmatpush3.bf16.msra.mxu0 %v14387_v23 }
 0x706   : > { %13236 = vmatpush3.bf16.msra.mxu1 %v14386_v44  ;;  %13301 = vmatprep.subr.bf16.mxu0 %v14389_v63 }
 0x707   : > { %13237 = vmatprep.subr.bf16.mxu1 %v14388_v49 }
 0x709   : > { %13302 = vmatpush3.bf16.msra.mxu0 %v14391_v54 }
 0x70a   : > { %13238 = vmatpush3.bf16.msra.mxu1 %v14390_v11  ;;  %13303 = vmatprep.subr.bf16.mxu0 %v14393_v60 }
 0x70b   : > { %13239 = vmatprep.subr.bf16.mxu1 %v14392_v30 }
 0x70d   : > { %13304 = vmatpush3.bf16.msra.mxu0 %v14395_v61 }
 0x70e   : > { %13240 = vmatpush3.bf16.msra.mxu1 %v14394_v15  ;;  %13305 = vmatprep.subr.bf16.mxu0 %v14397_v10 }
 0x70f   : > { %13241 = vmatprep.subr.bf16.mxu1 %v14396_v13 }
 0x711   : > { %13306 = vmatpush3.bf16.msra.mxu0 %v14399_v24  ;;  %v14427_v24 = vld [vmem:[%s18352_s9 + $0x18] sm:$0xff]  }
 0x712   : > { %13242 = vmatpush3.bf16.msra.mxu1 %v14398_v34  ;;  %13307 = vmatprep.subr.bf16.mxu0 %v14401_v2 }
 0x713   : > { %13243 = vmatprep.subr.bf16.mxu1 %v14400_v28  ;;  %v14428_v28 = vld [vmem:[%s18352_s9 + $0x10] sm:$0xff]  }
 0x715   : > { %13308 = vmatpush3.bf16.msra.mxu0 %v14403_v48 }
 0x716   : > { %13244 = vmatpush3.bf16.msra.mxu1 %v14402_v18  ;;  %13309 = vmatprep.subr.bf16.mxu0 %v14405_v56  ;;  %v14430_v18 = vld [vmem:[%s18352_s9] sm:$0xff]  }
 0x717   : > { %13273 = vmatprep.subr.bf16.mxu1 %v14404_v62 }
 0x719   : > { %11630 = vmatmul.mubr.bf16.vlgmr.msra.gmra.mxu1 %v9690_v7  ;;  %13310 = vmatpush3.bf16.msra.mxu0 %v14408_v51 }
 0x71a   : > { %13274 = vmatpush3.bf16.msra.mxu1 %v14406_v50  ;;  %11709 = vmatprep.mubr.bf16.mxu1 %v9695_v33 }
 0x71b   : > { %13275 = vmatprep.subr.bf16.mxu1 %v14409_v31 }
 0x71c   : > { %11750 = vmatmul.mubr.bf16.vlgmr.msra.gmra.mxu0 %v9696_v53 }
 0x71e   : > { %13276 = vmatpush3.bf16.msra.mxu1 %v14410_v38 }
 0x71f   : > { %13277 = vmatprep.subr.bf16.mxu1 %v14411_v42 }
 0x722   : > { %13278 = vmatpush3.bf16.msra.mxu1 %v14412_v4 }
 0x723   : > { %13279 = vmatprep.subr.bf16.mxu1 %v14413_v19 }
 0x726   : > { %13280 = vmatpush3.bf16.msra.mxu1 %v14414_v21 }
 0x727   : > { %13281 = vmatprep.subr.bf16.mxu1 %v14415_v25 }
 0x72a   : > { %13282 = vmatpush3.bf16.msra.mxu1 %v14416_v16 }
 0x72b   : > { %13283 = vmatprep.subr.bf16.mxu1 %v14417_v37 }
 0x72e   : > { %13284 = vmatpush3.bf16.msra.mxu1 %v14418_v35 }
 0x72f   : > { %13285 = vmatprep.subr.bf16.mxu1 %v14419_v8 }
 0x732   : > { %13286 = vmatpush3.bf16.msra.mxu1 %v14420_v57 }
 0x733   : > { %13287 = vmatprep.subr.bf16.mxu1 %v14421_v45 }
 0x736   : > { %13288 = vmatpush3.bf16.msra.mxu1 %v14422_v46 }
 0x737   : > { %14051 = vmatprep.subr.bf16.mxu1 %v14443_v36 }
 0x739   : > { %11710 = vmatmul.mubr.bf16.vlgmr.msra.gmra.mxu1 %v9694_v1  ;;  %v13069_v0 = vpop.f32.mrf.mxu1 }
 0x73a   : > { %14052 = vmatpush3.bf16.msra.mxu1 %v14423_v14  ;;  %14059 = vmatprep.mubr.msk.bf16.mxu1 %vm14444_vm6, %v14443_v36 }
 0x73b   : > { %v13070_v47 = vpop.f32.mrf.mxu1  ;;  %14053 = vmatprep.subr.bf16.mxu1 %v14443_v36 }
 0x73c   : > { %v13071_v40 = vadd.f32 %v13070_v47, %v13069_v0 }
 0x73d   : > { %v13072_v3 = vpop.f32.mrf.mxu1 }
 0x73e   : > { %14054 = vmatpush3.bf16.msra.mxu1 %v14424_v22  ;;  %v11312_v52 = vadd.f32 %v13071_v40, %v12484_v43 }
 0x73f   : > { %v13073_v59 = vpop.f32.mrf.mxu1  ;;  %14055 = vmatprep.subr.bf16.mxu1 %v14443_v36 }
 0x742   : > { %14056 = vmatpush3.bf16.msra.mxu1 %v14425_v55 }
 0x743   : > { %14057 = vmatprep.subr.bf16.mxu1 %v14443_v36 }
 0x746   : > { %14058 = vmatpush3.bf16.msra.mxu1 %v14426_v26 }
 0x747   : > { %14063 = vmatprep.subr.bf16.mxu1 %v14443_v36 }
 0x749   : > { %14060 = vmatmul.mubr.msk.bf16.vlgmr.msra.gmra.mxu1 %vm5181_vm3, %v9698_v20 }
 0x74a   : > { %14071 = vmatprep.mubr.msk.bf16.mxu1 %vm14444_vm6, %v14443_v36  ;;  %14064 = vmatpush3.bf16.msra.mxu1 %v14427_v24 }
 0x74b   : > { %14065 = vmatprep.subr.bf16.mxu1 %v14443_v36 }
 0x74e   : > { %14066 = vmatpush3.bf16.msra.mxu1 %v14428_v28 }
 0x74f   : > { %14067 = vmatprep.subr.bf16.mxu1 %v14443_v36 }
 0x752   : > { %14068 = vmatpush3.bf16.msra.mxu1 %v14429_v27 }
 0x753   : > { %14069 = vmatprep.subr.bf16.mxu1 %v14443_v36 }
 0x756   : > { %14070 = vmatpush3.bf16.msra.mxu1 %v14430_v18 }
 0x759   : > { %v13091_v58 = vpop.f32.mrf.mxu1 }
 0x75b   : > { %v13092_v29 = vpop.f32.mrf.mxu1 }
 0x75c   : > { %v13093_v32 = vadd.f32 %v13092_v29, %v13091_v58  ;;  %v13135_v9 = vpop.f32.mrf.mxu0 }
 0x75d   : > { %v13094_v12 = vpop.f32.mrf.mxu1 }
 0x75e   : > { %v11352_v17 = vadd.f32 %v13093_v32, %v11312_v52  ;;  %v13136_v6 = vpop.f32.mrf.mxu0 }
 0x75f   : > { %v13095_v41 = vpop.f32.mrf.mxu1  ;;  %v13137_v23 = vadd.f32 %v13136_v6, %v13135_v9 }
 0x760   : > { %v13138_v44 = vpop.f32.mrf.mxu0 }
 0x762   : > { %v13139_v63 = vpop.f32.mrf.mxu0 }
 0x779   : > { %v13113_v49 = vpop.f32.mrf.mxu1 }
 0x77b   : > { %v13114_v54 = vpop.f32.mrf.mxu1 }
 0x77c   : > { %v13115_v11 = vadd.f32 %v13114_v54, %v13113_v49  ;;  %v13179_v60 = vpop.f32.mrf.mxu0 }
 0x77d   : > { %v13116_v30 = vpop.f32.mrf.mxu1 }
 0x77e   : > { %v11392_v61 = vadd.f32 %v13115_v11, %v11352_v17  ;;  %v13180_v15 = vpop.f32.mrf.mxu0  ;;  %v12682_v11 = vld [vmem:[%s18353_s10] ss:$0 sm:$0xff] }
 0x77f   : > { %v13117_v10 = vpop.f32.mrf.mxu1  ;;  %v13181_v13 = vadd.f32 %v13180_v15, %v13179_v60 }
 0x780   : > { %v13182_v34 = vpop.f32.mrf.mxu0  ;;  %v11432_v2 = vadd.f32 %v13137_v23, %v11392_v61 }
 0x782   : > { %v13183_v48 = vpop.f32.mrf.mxu0 }
 0x799   : > { %v13157_v56 = vpop.f32.mrf.mxu1 }
 0x79b   : > { %v13158_v62 = vpop.f32.mrf.mxu1 }
 0x79c   : > { %v13159_v5 = vadd.f32 %v13158_v62, %v13157_v56  ;;  %v13223_v51 = vpop.f32.mrf.mxu0 }
 0x79d   : > { %v13160_v50 = vpop.f32.mrf.mxu1 }
 0x79e   : > { %v11472_v7 = vadd.f32 %v13159_v5, %v11432_v2  ;;  %v13224_v31 = vpop.f32.mrf.mxu0 }
 0x79f   : > { %v13161_v33 = vpop.f32.mrf.mxu1  ;;  %v13225_v53 = vadd.f32 %v13224_v31, %v13223_v51 }
 0x7a0   : > { %v13226_v38 = vpop.f32.mrf.mxu0  ;;  %v11512_v42 = vadd.f32 %v13181_v13, %v11472_v7 }
 0x7a2   : > { %v13227_v4 = vpop.f32.mrf.mxu0 }
 0x7b9   : > { %v13201_v19 = vpop.f32.mrf.mxu1 }
 0x7bb   : > { %v13202_v21 = vpop.f32.mrf.mxu1 }
 0x7bc   : > { %v13203_v25 = vadd.f32 %v13202_v21, %v13201_v19  ;;  %v13267_v16 = vpop.f32.mrf.mxu0 }
 0x7bd   : > { %v13204_v37 = vpop.f32.mrf.mxu1 }
 0x7be   : > { %v11552_v35 = vadd.f32 %v13203_v25, %v11512_v42  ;;  %v13268_v8 = vpop.f32.mrf.mxu0 }
 0x7bf   : > { %v13205_v57 = vpop.f32.mrf.mxu1  ;;  %v13269_v45 = vadd.f32 %v13268_v8, %v13267_v16 }
 0x7c0   : > { %v13270_v46 = vpop.f32.mrf.mxu0  ;;  %v11592_v14 = vadd.f32 %v13225_v53, %v11552_v35 }
 0x7c2   : > { %v13271_v1 = vpop.f32.mrf.mxu0 }
 0x7d9   : > { %v13245_v36 = vpop.f32.mrf.mxu1 }
 0x7db   : > { %v13246_v0 = vpop.f32.mrf.mxu1 }
 0x7dc   : > { %v13247_v22 = vadd.f32 %v13246_v0, %v13245_v36  ;;  %v13311_v47 = vpop.f32.mrf.mxu0 }
 0x7dd   : > { %v13248_v40 = vpop.f32.mrf.mxu1 }
 0x7de   : > { %v11632_v3 = vadd.f32 %v13247_v22, %v11592_v14  ;;  %v13312_v55 = vpop.f32.mrf.mxu0 }
 0x7df   : > { %v13249_v59 = vpop.f32.mrf.mxu1  ;;  %v13313_v12 = vadd.f32 %v13312_v55, %v13311_v47 }
 0x7e0   : > { %v13314_v26 = vpop.f32.mrf.mxu0  ;;  %v11672_v39 = vadd.f32 %v13269_v45, %v11632_v3 }
 0x7e2   : > { %v13315_v20 = vpop.f32.mrf.mxu0 }
 0x7f9   : > { %v13289_v43 = vpop.f32.mrf.mxu1 }
 0x7fb   : > { %v13290_v58 = vpop.f32.mrf.mxu1 }
 0x7fc   : > { %v13291_v32 = vadd.f32 %v13290_v58, %v13289_v43 }
 0x7fd   : > { %v13292_v29 = vpop.f32.mrf.mxu1 }
 0x7fe   : > { %v11712_v9 = vadd.f32 %v13291_v32, %v11672_v39 }
 0x7ff   : > { %v13293_v52 = vpop.f32.mrf.mxu1 }
 0x800   : > { %v11752_v17 = vadd.f32 %v13313_v12, %v11712_v9 }
 0x809   : > { %v11791_v6 = vpop.f32.mrf.mxu1 }
 0x80a   : > { %v11792_v41 = vadd.f32 %v11791_v6, %v11752_v17 }
 0x80b   : > { %v14061_v23 = vpop.f32.mrf.mxu1 }
 0x80c   : > { %v11797_v44 = vmax.f32 %v11792_v41, 0.0 }
 0x80d   : > { %v11794_v63 = vpop.f32.mrf.mxu1 }
 0x80e   : > { %v11798_v49 = vpack.c.bf16 %v11797_v44, %v11797_v44 }
 0x80f   : > { %v14062_v54 = vpop.f32.mrf.mxu1 }
 0x810   : > { %14072 = vmatmul.mubr.msk.bf16.vlgmr.msra.gmra.mxu1 %vm5181_vm3, %v11798_v49 }
 0x8d0   : > { %v11875_v60 = vpop.f32.mrf.mxu1 }
 0x8d1   : > { %v11876_v30 = vadd.f32 %v12682_v11, %v11875_v60 }
 0x8d2   : > { %v14073_v61 = vpop.f32.mrf.mxu1 }
 0x8d3   : > { %11881 = vst [vmem:[%s389_s19] sm:$0x7] %v11876_v30 }
 0x8d4   : > { %v11878_v15 = vpop.f32.mrf.mxu1 }
 0x8d6   : > { %v14074_v10 = vpop.f32.mrf.mxu1 }
 0x8d7 PF: > { %s21_s17 = sadd.s32 1, %s14439_s17  }
 0x8d8   : > { %p18_p5 = scmp.ge.s32.totalorder %s21_s17, 4  }
 0x8da   :  { %20 = sbr.rel (!%p18_p5) target bundleno = 1 (0x1), region = 108 }

</bundles_post_ra>
